<compile_context>
chip_gen: v7x
topology: tpu7x:2x2x1
jax: 0.10.0
libtpu: 0.0.40
codegen_flags: <defaults>
</compile_context>

<pallas_src>
import jax
import jax.numpy as jnp
from jax import lax
from jax.experimental import pallas as pl
from jax.experimental.pallas import tpu as pltpu

# ---------------- configuration (small shapes consistent with the module) ----
BATCH = 2
SIGLEN = 1024          # signal_length
KSIZE = 5              # kernel_size (module default is 15)
PAD = (KSIZE - 1) // 2
STRIDE = 2
EMB = 32               # embedded_size  (== lstm_hidden_size)
CL_EMB = 16            # CL_embedded_size
LSTM_H = EMB // 2      # per-direction LSTM hidden size
LEAKY_SLOPE = 0.1
BN_EPS = 1e-5

CONV_CH = [(12, 32), (32, 32), (32, 64), (64, 64), (64, 64)]   # (Cin, Cout)


def _conv_len(L):
    return (L + 2 * PAD - KSIZE) // STRIDE + 1


def _pool_len(L):
    return (L - KSIZE) // STRIDE + 1


# static sequence lengths through the stack
L1 = _conv_len(SIGLEN)       # 512
L2 = _conv_len(L1)           # 256
L2P = _pool_len(L2)          # 126
L3 = _conv_len(L2P)          # 63
L3P = _pool_len(L3)          # 30
L4 = _conv_len(L3P)          # 15
T_OUT = _conv_len(L4)        # 8


# ---------------- fused kernel ------------------------------------------------
def _fused_kernel(x_ref,
                  w1_ref, b1_ref, w2_ref, b2_ref, w3_ref, b3_ref,
                  w4_ref, b4_ref, w5_ref, b5_ref,
                  lw_ref, lb_ref, hw_ref, hb_ref,
                  emb_ref, proj_ref, attw_ref,
                  xp1, xp2, y2s, xp3, y3s, xp4, xp5, enc_ref):
    f32 = jnp.float32

    def pad_into(xp_ref, x):
        # zero halo every grid step (scratch persists across iterations)
        xp_ref[...] = jnp.zeros_like(xp_ref)
        xp_ref[PAD:PAD + x.shape[0], :] = x

    def conv(xp_ref, w_ref, b_ref):
        # stride-2 conv as ONE deep matmul: gather K taps with stride-2
        # sublane loads and lane-concat them into an (Lout, K*Cin) operand.
        lout = (xp_ref.shape[0] - KSIZE) // STRIDE + 1
        taps = [xp_ref[pl.ds(k, lout, stride=STRIDE), :] for k in range(KSIZE)]
        xk = jnp.concatenate(taps, axis=1).astype(jnp.bfloat16)     # (Lout, K*Cin)
        y = jnp.dot(xk, w_ref[...], preferred_element_type=f32) + b_ref[...]
        return jnp.where(y > 0, y, LEAKY_SLOPE * y)                 # leaky_relu(0.1)

    def avgpool(y_ref):
        # AvgPool1d(K, stride=2) as K strided-slice adds (no pooling matmul)
        lp = (y_ref.shape[0] - KSIZE) // STRIDE + 1
        acc = y_ref[pl.ds(0, lp, stride=STRIDE), :]
        for m in range(1, KSIZE):
            acc = acc + y_ref[pl.ds(m, lp, stride=STRIDE), :]
        return acc * (1.0 / KSIZE)

    # ---------------- conv stack (BN folded) + leaky_relu + pools ------------
    pad_into(xp1, x_ref[...])
    h = conv(xp1, w1_ref, b1_ref)            # (512, 32)
    pad_into(xp2, h)
    y2s[...] = conv(xp2, w2_ref, b2_ref)     # (256, 32)
    pad_into(xp3, avgpool(y2s))              # pooled -> (126, 32)
    y3s[...] = conv(xp3, w3_ref, b3_ref)     # (63, 64)
    pad_into(xp4, avgpool(y3s))              # pooled -> (30, 64)
    h = conv(xp4, w4_ref, b4_ref)            # (15, 64)
    pad_into(xp5, h)
    x5 = conv(xp5, w5_ref, b5_ref)           # (T, 64) -> LSTM input

    # ---------------- bi-LSTM x2 + attention + fc1 + projector ---------------
    T = x5.shape[0]
    G = lw_ref.shape[1]        # 8*H = 128 (4 gates x 2 directions)
    H = G // 8                 # per-direction hidden size (16)
    H2 = 2 * H                 # bi-directional hidden size (32)
    D0 = x5.shape[1]           # layer-0 input features (64)
    CL = proj_ref.shape[1]     # 16

    # packed gate-major / direction-minor columns: [i_f i_b f_f f_b g_f g_b o_f o_b]
    col = lax.broadcasted_iota(jnp.int32, (1, G), 1)
    fwd_mask = (col % H2) < H

    def bilstm(x_in, wih, whh, bias):
        # x-projection for all timesteps in one bf16 matmul (f32 accumulation)
        g = jnp.dot(x_in.astype(jnp.bfloat16), wih.astype(jnp.bfloat16),
                    preferred_element_type=f32) + bias               # (T, 8H)
        hh = jnp.zeros((1, H2), f32)     # [h_fwd | h_bwd]
        cc = jnp.zeros((1, H2), f32)
        for s in range(T):               # fully unrolled recurrence, static slices
            # forward columns read g[s]; backward columns read g[T-1-s]
            ga = jnp.where(fwd_mask, g[s:s + 1, :], g[T - 1 - s:T - s, :])
            z = ga + jnp.dot(hh, whh, preferred_element_type=f32)    # (1, 8H)
            ig = jax.nn.sigmoid(z[:, 0 * H2:1 * H2])
            fg = jax.nn.sigmoid(z[:, 1 * H2:2 * H2])
            gg = jnp.tanh(z[:, 2 * H2:3 * H2])
            og = jax.nn.sigmoid(z[:, 3 * H2:4 * H2])
            cc = fg * cc + ig * gg
            hh = og * jnp.tanh(cc)
            enc_ref[s:s + 1, 0:H] = hh[:, 0:H]             # fwd hidden @ time s
            enc_ref[T - 1 - s:T - s, H:H2] = hh[:, H:H2]   # bwd hidden @ time T-1-s
        return enc_ref[...]

    enc = bilstm(x5, lw_ref[0:D0, :], lw_ref[D0:D0 + H2, :], lb_ref[0:1, :])
    enc = bilstm(enc, lw_ref[D0 + H2:D0 + 2 * H2, :],
                 lw_ref[D0 + 2 * H2:D0 + 3 * H2, :], lb_ref[1:2, :])   # (T, 2H)

    wh_t = hw_ref[0 * H2:1 * H2, :]      # attention, acts on last hidden state
    we_t = hw_ref[1 * H2:2 * H2, :]      # attention, acts on encoder outputs
    fc1_t = hw_ref[2 * H2:3 * H2, :]
    p1_t = hw_ref[3 * H2:4 * H2, :]
    p2_t = hw_ref[4 * H2:5 * H2, :]
    b_att, v_row = hb_ref[0:1, :], hb_ref[1:2, :]
    fc1_b, p1_b, p2_b = hb_ref[2:3, :], hb_ref[3:4, :], hb_ref[4:5, :]

    hidden = enc[T - 1:T, :]                                          # lstm_out[:, -1, :]
    eh = jnp.dot(hidden, wh_t, preferred_element_type=f32) + b_att    # (1, H2)
    ee = jnp.dot(enc, we_t, preferred_element_type=f32)               # (T, H2)
    energy = jnp.tanh(ee + eh)                                        # eh broadcasts over T
    sc = jnp.sum(energy * v_row, axis=1, keepdims=True)               # (T, 1)
    sc = sc - jnp.max(sc, axis=0, keepdims=True)
    ew = jnp.exp(sc)
    attw = ew / jnp.sum(ew, axis=0, keepdims=True)                    # exact softmax
    ctx = jnp.sum(attw * enc, axis=0, keepdims=True)                  # (1, H2)

    emb = jnp.dot(ctx, fc1_t, preferred_element_type=f32) + fc1_b
    emb = jnp.where(emb > 0, emb, LEAKY_SLOPE * emb)
    h1 = jnp.maximum(jnp.dot(emb, p1_t, preferred_element_type=f32) + p1_b, 0.0)
    pj = jnp.dot(h1, p2_t, preferred_element_type=f32) + p2_b

    emb_ref[...] = emb.astype(emb_ref.dtype)
    proj_ref[...] = pj[:, 0:CL].astype(proj_ref.dtype)
    attw_ref[...] = attw.astype(attw_ref.dtype)


# ---------------- wrapper ------------------------------------------------------
def ecg_forward(x, kp):
    """x: (B, 12, SIGLEN) f32 -> (emb (B,EMB), proj (B,CL_EMB), attn (B,T))."""
    B = x.shape[0]
    xn = jnp.transpose(x, (0, 2, 1))              # NCW -> NWC, single host op

    def const_spec(a):
        zeros = (0,) * a.ndim
        return pl.BlockSpec(a.shape, lambda b, z=zeros: z)   # resident weights

    weights = []
    for i in range(1, 6):
        weights += [kp[f'conv{i}_w'], kp[f'conv{i}_b']]
    weights += [kp['lstm_w'], kp['lstm_b'], kp['head_w'], kp['head_b']]

    in_specs = ([pl.BlockSpec((None, SIGLEN, CONV_CH[0][0]), lambda b: (b, 0, 0))]
                + [const_spec(a) for a in weights])

    out_shape = (jax.ShapeDtypeStruct((B, 1, EMB), jnp.float32),
                 jax.ShapeDtypeStruct((B, 1, CL_EMB), jnp.float32),
                 jax.ShapeDtypeStruct((B, T_OUT, 1), jnp.float32))
    out_specs = (pl.BlockSpec((None, 1, EMB), lambda b: (b, 0, 0)),
                 pl.BlockSpec((None, 1, CL_EMB), lambda b: (b, 0, 0)),
                 pl.BlockSpec((None, T_OUT, 1), lambda b: (b, 0, 0)))

    scratch = [
        pltpu.VMEM((SIGLEN + 2 * PAD, CONV_CH[0][0]), jnp.float32),  # conv1 padded in
        pltpu.VMEM((L1 + 2 * PAD, CONV_CH[1][0]), jnp.float32),      # conv2 padded in
        pltpu.VMEM((L2, CONV_CH[1][1]), jnp.float32),                # conv2 out (pre-pool)
        pltpu.VMEM((L2P + 2 * PAD, CONV_CH[2][0]), jnp.float32),     # conv3 padded in
        pltpu.VMEM((L3, CONV_CH[2][1]), jnp.float32),                # conv3 out (pre-pool)
        pltpu.VMEM((L3P + 2 * PAD, CONV_CH[3][0]), jnp.float32),     # conv4 padded in
        pltpu.VMEM((L4 + 2 * PAD, CONV_CH[4][0]), jnp.float32),      # conv5 padded in
        pltpu.VMEM((T_OUT, EMB), jnp.float32),                       # LSTM encoder seq
    ]

    emb3, proj3, attw3 = pl.pallas_call(
        _fused_kernel,
        out_shape=out_shape,
        grid=(B,),
        in_specs=in_specs,
        out_specs=out_specs,
        scratch_shapes=scratch,
        compiler_params=pltpu.CompilerParams(
            dimension_semantics=("parallel",)),   # v7x: one sample per TensorCore
    )(xn, *weights)
    return emb3[:, 0, :], proj3[:, 0, :], attw3[:, :, 0]


# ---------------- parameter construction & packing -----------------------------
def init_params(key):
    """PyTorch-shaped raw parameters (deterministic)."""
    keys = iter(jax.random.split(key, 64))

    def nrm(shape, scale=0.1):
        return scale * jax.random.normal(next(keys), shape, jnp.float32)

    p = {}
    for idx, (ci, co) in enumerate(CONV_CH, start=1):
        p[f'conv{idx}_w'] = nrm((co, ci, KSIZE))
        p[f'conv{idx}_b'] = nrm((co,))
        # (gamma, beta, running_mean, running_var) — fresh-module eval statistics
        p[f'bn{idx}'] = (jnp.ones((co,), jnp.float32), jnp.zeros((co,), jnp.float32),
                         jnp.zeros((co,), jnp.float32), jnp.ones((co,), jnp.float32))

    lstm = []
    for layer in range(2):
        din = 64 if layer == 0 else 2 * LSTM_H
        lp = {}
        for d in ('fwd', 'bwd'):
            lp[d] = (nrm((4 * LSTM_H, din)),      # W_ih (gate order i,f,g,o)
                     nrm((4 * LSTM_H, LSTM_H)),   # W_hh
                     nrm((4 * LSTM_H,)),          # b_ih
                     nrm((4 * LSTM_H,)))          # b_hh
        lstm.append(lp)
    p['lstm'] = lstm

    p['attn_w'] = nrm((EMB, 2 * EMB))
    p['attn_b'] = nrm((EMB,))
    p['attn_v'] = nrm((1, EMB))
    p['fc1_w'] = nrm((EMB, EMB))
    p['fc1_b'] = nrm((EMB,))
    p['proj1_w'] = nrm((EMB, EMB))
    p['proj1_b'] = nrm((EMB,))
    p['proj2_w'] = nrm((CL_EMB, EMB))
    p['proj2_b'] = nrm((CL_EMB,))
    return p


def _pack_bilstm(fwd, bwd, H):
    """Pack one bi-LSTM layer into gate-major / direction-minor stacked weights.

    Column layout (width 8H): [i_f i_b | f_f f_b | g_f g_b | o_f o_b].
    Returns wih (Din, 8H), block-diagonal whh (2H, 8H), bias (1, 8H)."""
    w_ih_f, w_hh_f, b_ih_f, b_hh_f = fwd
    w_ih_b, w_hh_b, b_ih_b, b_hh_b = bwd
    z = jnp.zeros((H, H), jnp.float32)
    wih_cols, whh_cols, b_cols = [], [], []
    for g in range(4):
        rs = slice(g * H, (g + 1) * H)
        wih_cols += [w_ih_f[rs, :].T, w_ih_b[rs, :].T]
        whh_cols += [jnp.concatenate([w_hh_f[rs, :].T, z], axis=0),
                     jnp.concatenate([z, w_hh_b[rs, :].T], axis=0)]
        b_cols += [(b_ih_f + b_hh_f)[rs], (b_ih_b + b_hh_b)[rs]]
    return (jnp.concatenate(wih_cols, axis=1),
            jnp.concatenate(whh_cols, axis=1),
            jnp.concatenate(b_cols)[None, :])


def prepare_params(p):
    """Fold BN, transpose/pack/cast everything into kernel-ready arrays."""
    kp = {}
    # conv weights: (Cout, Cin, K) -> (K*Cin, Cout) bf16 with eval-BN folded in
    for idx in range(1, 6):
        w, b = p[f'conv{idx}_w'], p[f'conv{idx}_b']
        gamma, beta, mean, var = p[f'bn{idx}']
        scale = gamma / jnp.sqrt(var + BN_EPS)
        shift = beta - mean * scale
        wk = jnp.transpose(w, (2, 1, 0)) * scale[None, None, :]   # (K, Cin, Cout)
        kp[f'conv{idx}_w'] = wk.reshape(-1, wk.shape[-1]).astype(jnp.bfloat16)
        kp[f'conv{idx}_b'] = (b * scale + shift)[None, :].astype(jnp.float32)

    # LSTM: both layers / both directions stacked into one (D0 + 3*2H, 8H) array
    H = LSTM_H
    wih0, whh0, b0 = _pack_bilstm(p['lstm'][0]['fwd'], p['lstm'][0]['bwd'], H)
    wih1, whh1, b1 = _pack_bilstm(p['lstm'][1]['fwd'], p['lstm'][1]['bwd'], H)
    kp['lstm_w'] = jnp.concatenate([wih0, whh0, wih1, whh1], axis=0)
    kp['lstm_b'] = jnp.concatenate([b0, b1], axis=0)

    # attention + fc1 + contrastive projector (W_a[:, :H2] acts on hidden)
    H2 = 2 * H
    wa = p['attn_w']
    p2_t = jnp.pad(p['proj2_w'].T, ((0, 0), (0, EMB - CL_EMB)))
    kp['head_w'] = jnp.concatenate(
        [wa[:, :H2].T, wa[:, H2:].T, p['fc1_w'].T, p['proj1_w'].T, p2_t], axis=0)
    kp['head_b'] = jnp.stack(
        [p['attn_b'], p['attn_v'][0], p['fc1_b'], p['proj1_b'],
         jnp.pad(p['proj2_b'], (0, EMB - CL_EMB)),
         jnp.zeros((EMB,), jnp.float32), jnp.zeros((EMB,), jnp.float32),
         jnp.zeros((EMB,), jnp.float32)], axis=0)
    return kp


# ---------------- pure-JAX reference (raw f32 weights, PyTorch semantics) ------
def ref_forward(x, p):
    f32 = jnp.float32

    def conv_bn(h, w, b, bn):
        gamma, beta, mean, var = bn
        _, L, cin = h.shape
        lout = (L + 2 * PAD - KSIZE) // STRIDE + 1
        hp = jnp.pad(h, ((0, 0), (PAD, PAD), (0, 0)))
        taps = jnp.concatenate(
            [hp[:, k:k + 2 * lout - 1:STRIDE, :] for k in range(KSIZE)], axis=2)
        wk = jnp.transpose(w, (2, 1, 0)).reshape(KSIZE * cin, -1)
        y = jnp.einsum('blc,co->blo', taps, wk) + b
        scale = gamma / jnp.sqrt(var + BN_EPS)
        y = y * scale + (beta - mean * scale)
        return jnp.where(y > 0, y, LEAKY_SLOPE * y)

    def avgpool(h):
        lp = (h.shape[1] - KSIZE) // STRIDE + 1
        return sum(h[:, m:m + 2 * lp - 1:STRIDE, :] for m in range(KSIZE)) / KSIZE

    h = jnp.transpose(x, (0, 2, 1))
    h = conv_bn(h, p['conv1_w'], p['conv1_b'], p['bn1'])
    h = avgpool(conv_bn(h, p['conv2_w'], p['conv2_b'], p['bn2']))
    h = avgpool(conv_bn(h, p['conv3_w'], p['conv3_b'], p['bn3']))
    h = conv_bn(h, p['conv4_w'], p['conv4_b'], p['bn4'])
    h = conv_bn(h, p['conv5_w'], p['conv5_b'], p['bn5'])      # (B, T, 64)

    def lstm_dir(xseq, wih, whh, bih, bhh, reverse):
        B, T, _ = xseq.shape
        Hh = whh.shape[1]
        hh = jnp.zeros((B, Hh), f32)
        cc = jnp.zeros((B, Hh), f32)
        order = range(T - 1, -1, -1) if reverse else range(T)
        outs = [None] * T
        for t in order:
            z = xseq[:, t, :] @ wih.T + hh @ whh.T + bih + bhh
            ig = jax.nn.sigmoid(z[:, 0:Hh])
            fg = jax.nn.sigmoid(z[:, Hh:2 * Hh])
            gg = jnp.tanh(z[:, 2 * Hh:3 * Hh])
            og = jax.nn.sigmoid(z[:, 3 * Hh:4 * Hh])
            cc = fg * cc + ig * gg
            hh = og * jnp.tanh(cc)
            outs[t] = hh
        return jnp.stack(outs, axis=1)

    seq = h
    for layer in range(2):
        fwd = lstm_dir(seq, *p['lstm'][layer]['fwd'], reverse=False)
        bwd = lstm_dir(seq, *p['lstm'][layer]['bwd'], reverse=True)
        seq = jnp.concatenate([fwd, bwd], axis=2)

    T = seq.shape[1]
    hidden = seq[:, -1, :]
    hid_rep = jnp.repeat(hidden[:, None, :], T, axis=1)
    energy = jnp.tanh(
        jnp.concatenate([hid_rep, seq], axis=2) @ p['attn_w'].T + p['attn_b'])
    scores = jnp.einsum('btd,d->bt', energy, p['attn_v'][0])
    attw = jax.nn.softmax(scores, axis=1)
    ctx = jnp.einsum('bt,btd->bd', attw, seq)
    emb = ctx @ p['fc1_w'].T + p['fc1_b']
    emb = jnp.where(emb > 0, emb, LEAKY_SLOPE * emb)
    h1 = jnp.maximum(emb @ p['proj1_w'].T + p['proj1_b'], 0.0)
    proj = h1 @ p['proj2_w'].T + p['proj2_b']
    return emb, proj, attw


# ---------------- main ----------------------------------------------------------
if __name__ == "__main__":
    key = jax.random.PRNGKey(0)
    k_x, k_p = jax.random.split(key)
    x = jax.random.normal(k_x, (BATCH, 12, SIGLEN), jnp.float32)   # 12-lead ECG, NCW
    raw_params = init_params(k_p)
    kparams = prepare_params(raw_params)

    emb, proj, attw = jax.jit(ecg_forward)(x, kparams)
    jax.block_until_ready((emb, proj, attw))

    # pure-JAX f32 reference for a sanity check (kernel uses bf16 MXU operands)
    with jax.default_matmul_precision("float32"):
        r_emb, r_proj, r_attw = jax.jit(ref_forward)(x, raw_params)
    jax.block_until_ready((r_emb, r_proj, r_attw))

    assert emb.shape == (BATCH, EMB)
    assert proj.shape == (BATCH, CL_EMB)
    assert attw.shape == (BATCH, T_OUT)
    assert bool(jnp.all(jnp.isfinite(emb)))
    assert bool(jnp.all(jnp.isfinite(proj)))
    assert bool(jnp.all(jnp.abs(jnp.sum(attw, axis=1) - 1.0) < 1e-4))

    def rel(a, b):
        return float(jnp.linalg.norm(a - b) / (jnp.linalg.norm(b) + 1e-9))

    # loose norm-relative tolerance: bf16 conv / x-projection operands vs f32 ref
    assert rel(emb, r_emb) < 0.1, rel(emb, r_emb)
    assert rel(proj, r_proj) < 0.1, rel(proj, r_proj)
    assert float(jnp.max(jnp.abs(attw - r_attw))) < 0.02

    print("KERNEL_OK")
</pallas_src>

<mosaic_0001>
module attributes {stable_mosaic.version = 11 : i64} {
  func.func @_fused_kernel(%arg0: i32, %arg1: memref<1x1024x12xf32, #tpu.memory_space<vmem>>, %arg2: memref<60x32xbf16, #tpu.memory_space<vmem>>, %arg3: memref<1x32xf32, #tpu.memory_space<vmem>>, %arg4: memref<160x32xbf16, #tpu.memory_space<vmem>>, %arg5: memref<1x32xf32, #tpu.memory_space<vmem>>, %arg6: memref<160x64xbf16, #tpu.memory_space<vmem>>, %arg7: memref<1x64xf32, #tpu.memory_space<vmem>>, %arg8: memref<320x64xbf16, #tpu.memory_space<vmem>>, %arg9: memref<1x64xf32, #tpu.memory_space<vmem>>, %arg10: memref<320x64xbf16, #tpu.memory_space<vmem>>, %arg11: memref<1x64xf32, #tpu.memory_space<vmem>>, %arg12: memref<160x128xf32, #tpu.memory_space<vmem>>, %arg13: memref<2x128xf32, #tpu.memory_space<vmem>>, %arg14: memref<160x32xf32, #tpu.memory_space<vmem>>, %arg15: memref<8x32xf32, #tpu.memory_space<vmem>>, %arg16: memref<1x1x32xf32, #tpu.memory_space<vmem>>, %arg17: memref<1x1x16xf32, #tpu.memory_space<vmem>>, %arg18: memref<1x8x1xf32, #tpu.memory_space<vmem>>, %arg19: memref<1028x12xf32, #tpu.memory_space<vmem>>, %arg20: memref<516x32xf32, #tpu.memory_space<vmem>>, %arg21: memref<256x32xf32, #tpu.memory_space<vmem>>, %arg22: memref<130x32xf32, #tpu.memory_space<vmem>>, %arg23: memref<63x64xf32, #tpu.memory_space<vmem>>, %arg24: memref<34x64xf32, #tpu.memory_space<vmem>>, %arg25: memref<19x64xf32, #tpu.memory_space<vmem>>, %arg26: memref<8x32xf32, #tpu.memory_space<vmem>>) attributes {dimension_semantics = [#tpu.dimension_semantics<parallel>], iteration_bounds = array<i64: 2>, scalar_prefetch = 0 : i64, scratch_operands = 8 : i64, tpu.core_type = #tpu.core_type<tc>, window_params = [{transform_indices = @transform_0, window_bounds = array<i64: 1, 1024, 12>}, {pipeline_mode = #tpu.pipeline_mode<synchronous>, transform_indices = @transform_1, window_bounds = array<i64: 60, 32>}, {pipeline_mode = #tpu.pipeline_mode<synchronous>, transform_indices = @transform_2, window_bounds = array<i64: 1, 32>}, {pipeline_mode = #tpu.pipeline_mode<synchronous>, transform_indices = @transform_3, window_bounds = array<i64: 160, 32>}, {pipeline_mode = #tpu.pipeline_mode<synchronous>, transform_indices = @transform_4, window_bounds = array<i64: 1, 32>}, {pipeline_mode = #tpu.pipeline_mode<synchronous>, transform_indices = @transform_5, window_bounds = array<i64: 160, 64>}, {pipeline_mode = #tpu.pipeline_mode<synchronous>, transform_indices = @transform_6, window_bounds = array<i64: 1, 64>}, {pipeline_mode = #tpu.pipeline_mode<synchronous>, transform_indices = @transform_7, window_bounds = array<i64: 320, 64>}, {pipeline_mode = #tpu.pipeline_mode<synchronous>, transform_indices = @transform_8, window_bounds = array<i64: 1, 64>}, {pipeline_mode = #tpu.pipeline_mode<synchronous>, transform_indices = @transform_9, window_bounds = array<i64: 320, 64>}, {pipeline_mode = #tpu.pipeline_mode<synchronous>, transform_indices = @transform_10, window_bounds = array<i64: 1, 64>}, {pipeline_mode = #tpu.pipeline_mode<synchronous>, transform_indices = @transform_11, window_bounds = array<i64: 160, 128>}, {pipeline_mode = #tpu.pipeline_mode<synchronous>, transform_indices = @transform_12, window_bounds = array<i64: 2, 128>}, {pipeline_mode = #tpu.pipeline_mode<synchronous>, transform_indices = @transform_13, window_bounds = array<i64: 160, 32>}, {pipeline_mode = #tpu.pipeline_mode<synchronous>, transform_indices = @transform_14, window_bounds = array<i64: 8, 32>}, {transform_indices = @transform_15, window_bounds = array<i64: 1, 1, 32>}, {transform_indices = @transform_16, window_bounds = array<i64: 1, 1, 16>}, {transform_indices = @transform_17, window_bounds = array<i64: 1, 8, 1>}]} {
    %c0 = arith.constant 0 : index
    %c0_0 = arith.constant 0 : index
    %c0_1 = arith.constant 0 : index
    %0 = vector.load %arg1[%c0, %c0_0, %c0_1] : memref<1x1024x12xf32, #tpu.memory_space<vmem>>, vector<1x1024x12xf32>
    %1 = vector.shape_cast %0 : vector<1x1024x12xf32> to vector<1024x12xf32>
    %cst = arith.constant 0.000000e+00 : f32
    %2 = vector.broadcast %cst : f32 to vector<1028x12xf32>
    %c0_2 = arith.constant 0 : index
    %c0_3 = arith.constant 0 : index
    %3 = vector.load %arg19[%c0_2, %c0_3] : memref<1028x12xf32, #tpu.memory_space<vmem>>, vector<1028x12xf32>
    tpu.vector_store %arg19[%c0_2, %c0_3], %2 {strides = array<i32>} : memref<1028x12xf32, #tpu.memory_space<vmem>>, vector<1028x12xf32>,
    %c2 = arith.constant 2 : index
    %c0_4 = arith.constant 0 : index
    %4 = vector.load %arg19[%c2, %c0_4] : memref<1028x12xf32, #tpu.memory_space<vmem>>, vector<1024x12xf32>
    tpu.vector_store %arg19[%c2, %c0_4], %1 {strides = array<i32>} : memref<1028x12xf32, #tpu.memory_space<vmem>>, vector<1024x12xf32>,
    %c0_5 = arith.constant 0 : index
    %c0_6 = arith.constant 0 : index
    %5 = tpu.strided_load %arg19[%c0_5, %c0_6] {strides = array<i32: 2, 1>} : memref<1028x12xf32, #tpu.memory_space<vmem>>, vector<512x12xf32>
    %c1 = arith.constant 1 : index
    %c0_7 = arith.constant 0 : index
    %6 = tpu.strided_load %arg19[%c1, %c0_7] {strides = array<i32: 2, 1>} : memref<1028x12xf32, #tpu.memory_space<vmem>>, vector<512x12xf32>
    %c2_8 = arith.constant 2 : index
    %c0_9 = arith.constant 0 : index
    %7 = tpu.strided_load %arg19[%c2_8, %c0_9] {strides = array<i32: 2, 1>} : memref<1028x12xf32, #tpu.memory_space<vmem>>, vector<512x12xf32>
    %c3 = arith.constant 3 : index
    %c0_10 = arith.constant 0 : index
    %8 = tpu.strided_load %arg19[%c3, %c0_10] {strides = array<i32: 2, 1>} : memref<1028x12xf32, #tpu.memory_space<vmem>>, vector<512x12xf32>
    %c4 = arith.constant 4 : index
    %c0_11 = arith.constant 0 : index
    %9 = tpu.strided_load %arg19[%c4, %c0_11] {strides = array<i32: 2, 1>} : memref<1028x12xf32, #tpu.memory_space<vmem>>, vector<512x12xf32>
    %10 = tpu.concatenate %5, %6, %7, %8, %9 in 1 : vector<512x12xf32>, vector<512x12xf32>, vector<512x12xf32>, vector<512x12xf32>, vector<512x12xf32> -> vector<512x60xf32>
    %11 = arith.truncf %10 : vector<512x60xf32> to vector<512x60xbf16>
    %c0_12 = arith.constant 0 : index
    %c0_13 = arith.constant 0 : index
    %12 = vector.load %arg2[%c0_12, %c0_13] : memref<60x32xbf16, #tpu.memory_space<vmem>>, vector<60x32xbf16>
    %cst_14 = arith.constant dense<0.000000e+00> : vector<512x32xf32>
    %13 = tpu.matmul %11, %12, %cst_14 {dimension_numbers = #tpu.dot_dimension_numbers<[1], [0], [0], [1], [0, 0, 1, 1], [], []>} : vector<512x60xbf16>, vector<60x32xbf16>, vector<512x32xf32> -> vector<512x32xf32>
    %c0_15 = arith.constant 0 : index
    %c0_16 = arith.constant 0 : index
    %14 = vector.load %arg3[%c0_15, %c0_16] : memref<1x32xf32, #tpu.memory_space<vmem>>, vector<1x32xf32>
    %15 = vector.broadcast %14 : vector<1x32xf32> to vector<512x32xf32>
    %16 = arith.addf %13, %15 : vector<512x32xf32>
    %cst_17 = arith.constant 0.000000e+00 : f32
    %17 = vector.broadcast %cst_17 : f32 to vector<512x32xf32>
    %18 = arith.cmpf ogt, %16, %17 : vector<512x32xf32>
    %cst_18 = arith.constant 1.000000e-01 : f32
    %19 = vector.broadcast %cst_18 : f32 to vector<512x32xf32>
    %20 = arith.mulf %19, %16 : vector<512x32xf32>
    %21 = arith.select %18, %16, %20 : vector<512x32xi1>, vector<512x32xf32>
    %cst_19 = arith.constant 0.000000e+00 : f32
    %22 = vector.broadcast %cst_19 : f32 to vector<516x32xf32>
    %c0_20 = arith.constant 0 : index
    %c0_21 = arith.constant 0 : index
    %23 = vector.load %arg20[%c0_20, %c0_21] : memref<516x32xf32, #tpu.memory_space<vmem>>, vector<516x32xf32>
    tpu.vector_store %arg20[%c0_20, %c0_21], %22 {strides = array<i32>} : memref<516x32xf32, #tpu.memory_space<vmem>>, vector<516x32xf32>,
    %c2_22 = arith.constant 2 : index
    %c0_23 = arith.constant 0 : index
    %24 = vector.load %arg20[%c2_22, %c0_23] : memref<516x32xf32, #tpu.memory_space<vmem>>, vector<512x32xf32>
    tpu.vector_store %arg20[%c2_22, %c0_23], %21 {strides = array<i32>} : memref<516x32xf32, #tpu.memory_space<vmem>>, vector<512x32xf32>,
    %c0_24 = arith.constant 0 : index
    %c0_25 = arith.constant 0 : index
    %25 = tpu.strided_load %arg20[%c0_24, %c0_25] {strides = array<i32: 2, 1>} : memref<516x32xf32, #tpu.memory_space<vmem>>, vector<256x32xf32>
    %c1_26 = arith.constant 1 : index
    %c0_27 = arith.constant 0 : index
    %26 = tpu.strided_load %arg20[%c1_26, %c0_27] {strides = array<i32: 2, 1>} : memref<516x32xf32, #tpu.memory_space<vmem>>, vector<256x32xf32>
    %c2_28 = arith.constant 2 : index
    %c0_29 = arith.constant 0 : index
    %27 = tpu.strided_load %arg20[%c2_28, %c0_29] {strides = array<i32: 2, 1>} : memref<516x32xf32, #tpu.memory_space<vmem>>, vector<256x32xf32>
    %c3_30 = arith.constant 3 : index
    %c0_31 = arith.constant 0 : index
    %28 = tpu.strided_load %arg20[%c3_30, %c0_31] {strides = array<i32: 2, 1>} : memref<516x32xf32, #tpu.memory_space<vmem>>, vector<256x32xf32>
    %c4_32 = arith.constant 4 : index
    %c0_33 = arith.constant 0 : index
    %29 = tpu.strided_load %arg20[%c4_32, %c0_33] {strides = array<i32: 2, 1>} : memref<516x32xf32, #tpu.memory_space<vmem>>, vector<256x32xf32>
    %30 = tpu.concatenate %25, %26, %27, %28, %29 in 1 : vector<256x32xf32>, vector<256x32xf32>, vector<256x32xf32>, vector<256x32xf32>, vector<256x32xf32> -> vector<256x160xf32>
    %31 = arith.truncf %30 : vector<256x160xf32> to vector<256x160xbf16>
    %c0_34 = arith.constant 0 : index
    %c0_35 = arith.constant 0 : index
    %32 = vector.load %arg4[%c0_34, %c0_35] : memref<160x32xbf16, #tpu.memory_space<vmem>>, vector<160x32xbf16>
    %cst_36 = arith.constant dense<0.000000e+00> : vector<256x32xf32>
    %33 = tpu.matmul %31, %32, %cst_36 {dimension_numbers = #tpu.dot_dimension_numbers<[1], [0], [0], [1], [0, 0, 1, 1], [], []>} : vector<256x160xbf16>, vector<160x32xbf16>, vector<256x32xf32> -> vector<256x32xf32>
    %c0_37 = arith.constant 0 : index
    %c0_38 = arith.constant 0 : index
    %34 = vector.load %arg5[%c0_37, %c0_38] : memref<1x32xf32, #tpu.memory_space<vmem>>, vector<1x32xf32>
    %35 = vector.broadcast %34 : vector<1x32xf32> to vector<256x32xf32>
    %36 = arith.addf %33, %35 : vector<256x32xf32>
    %cst_39 = arith.constant 0.000000e+00 : f32
    %37 = vector.broadcast %cst_39 : f32 to vector<256x32xf32>
    %38 = arith.cmpf ogt, %36, %37 : vector<256x32xf32>
    %cst_40 = arith.constant 1.000000e-01 : f32
    %39 = vector.broadcast %cst_40 : f32 to vector<256x32xf32>
    %40 = arith.mulf %39, %36 : vector<256x32xf32>
    %41 = arith.select %38, %36, %40 : vector<256x32xi1>, vector<256x32xf32>
    %c0_41 = arith.constant 0 : index
    %c0_42 = arith.constant 0 : index
    %42 = vector.load %arg21[%c0_41, %c0_42] : memref<256x32xf32, #tpu.memory_space<vmem>>, vector<256x32xf32>
    tpu.vector_store %arg21[%c0_41, %c0_42], %41 {strides = array<i32>} : memref<256x32xf32, #tpu.memory_space<vmem>>, vector<256x32xf32>,
    %c0_43 = arith.constant 0 : index
    %c0_44 = arith.constant 0 : index
    %43 = tpu.strided_load %arg21[%c0_43, %c0_44] {strides = array<i32: 2, 1>} : memref<256x32xf32, #tpu.memory_space<vmem>>, vector<126x32xf32>
    %c1_45 = arith.constant 1 : index
    %c0_46 = arith.constant 0 : index
    %44 = tpu.strided_load %arg21[%c1_45, %c0_46] {strides = array<i32: 2, 1>} : memref<256x32xf32, #tpu.memory_space<vmem>>, vector<126x32xf32>
    %45 = arith.addf %43, %44 : vector<126x32xf32>
    %c2_47 = arith.constant 2 : index
    %c0_48 = arith.constant 0 : index
    %46 = tpu.strided_load %arg21[%c2_47, %c0_48] {strides = array<i32: 2, 1>} : memref<256x32xf32, #tpu.memory_space<vmem>>, vector<126x32xf32>
    %47 = arith.addf %45, %46 : vector<126x32xf32>
    %c3_49 = arith.constant 3 : index
    %c0_50 = arith.constant 0 : index
    %48 = tpu.strided_load %arg21[%c3_49, %c0_50] {strides = array<i32: 2, 1>} : memref<256x32xf32, #tpu.memory_space<vmem>>, vector<126x32xf32>
    %49 = arith.addf %47, %48 : vector<126x32xf32>
    %c4_51 = arith.constant 4 : index
    %c0_52 = arith.constant 0 : index
    %50 = tpu.strided_load %arg21[%c4_51, %c0_52] {strides = array<i32: 2, 1>} : memref<256x32xf32, #tpu.memory_space<vmem>>, vector<126x32xf32>
    %51 = arith.addf %49, %50 : vector<126x32xf32>
    %cst_53 = arith.constant 2.000000e-01 : f32
    %52 = vector.broadcast %cst_53 : f32 to vector<126x32xf32>
    %53 = arith.mulf %51, %52 : vector<126x32xf32>
    %cst_54 = arith.constant 0.000000e+00 : f32
    %54 = vector.broadcast %cst_54 : f32 to vector<130x32xf32>
    %c0_55 = arith.constant 0 : index
    %c0_56 = arith.constant 0 : index
    %55 = vector.load %arg22[%c0_55, %c0_56] : memref<130x32xf32, #tpu.memory_space<vmem>>, vector<130x32xf32>
    tpu.vector_store %arg22[%c0_55, %c0_56], %54 {strides = array<i32>} : memref<130x32xf32, #tpu.memory_space<vmem>>, vector<130x32xf32>,
    %c2_57 = arith.constant 2 : index
    %c0_58 = arith.constant 0 : index
    %56 = vector.load %arg22[%c2_57, %c0_58] : memref<130x32xf32, #tpu.memory_space<vmem>>, vector<126x32xf32>
    tpu.vector_store %arg22[%c2_57, %c0_58], %53 {strides = array<i32>} : memref<130x32xf32, #tpu.memory_space<vmem>>, vector<126x32xf32>,
    %c0_59 = arith.constant 0 : index
    %c0_60 = arith.constant 0 : index
    %57 = tpu.strided_load %arg22[%c0_59, %c0_60] {strides = array<i32: 2, 1>} : memref<130x32xf32, #tpu.memory_space<vmem>>, vector<63x32xf32>
    %c1_61 = arith.constant 1 : index
    %c0_62 = arith.constant 0 : index
    %58 = tpu.strided_load %arg22[%c1_61, %c0_62] {strides = array<i32: 2, 1>} : memref<130x32xf32, #tpu.memory_space<vmem>>, vector<63x32xf32>
    %c2_63 = arith.constant 2 : index
    %c0_64 = arith.constant 0 : index
    %59 = tpu.strided_load %arg22[%c2_63, %c0_64] {strides = array<i32: 2, 1>} : memref<130x32xf32, #tpu.memory_space<vmem>>, vector<63x32xf32>
    %c3_65 = arith.constant 3 : index
    %c0_66 = arith.constant 0 : index
    %60 = tpu.strided_load %arg22[%c3_65, %c0_66] {strides = array<i32: 2, 1>} : memref<130x32xf32, #tpu.memory_space<vmem>>, vector<63x32xf32>
    %c4_67 = arith.constant 4 : index
    %c0_68 = arith.constant 0 : index
    %61 = tpu.strided_load %arg22[%c4_67, %c0_68] {strides = array<i32: 2, 1>} : memref<130x32xf32, #tpu.memory_space<vmem>>, vector<63x32xf32>
    %62 = tpu.concatenate %57, %58, %59, %60, %61 in 1 : vector<63x32xf32>, vector<63x32xf32>, vector<63x32xf32>, vector<63x32xf32>, vector<63x32xf32> -> vector<63x160xf32>
    %63 = arith.truncf %62 : vector<63x160xf32> to vector<63x160xbf16>
    %c0_69 = arith.constant 0 : index
    %c0_70 = arith.constant 0 : index
    %64 = vector.load %arg6[%c0_69, %c0_70] : memref<160x64xbf16, #tpu.memory_space<vmem>>, vector<160x64xbf16>
    %cst_71 = arith.constant dense<0.000000e+00> : vector<63x64xf32>
    %65 = tpu.matmul %63, %64, %cst_71 {dimension_numbers = #tpu.dot_dimension_numbers<[1], [0], [0], [1], [0, 0, 1, 1], [], []>} : vector<63x160xbf16>, vector<160x64xbf16>, vector<63x64xf32> -> vector<63x64xf32>
    %c0_72 = arith.constant 0 : index
    %c0_73 = arith.constant 0 : index
    %66 = vector.load %arg7[%c0_72, %c0_73] : memref<1x64xf32, #tpu.memory_space<vmem>>, vector<1x64xf32>
    %67 = vector.broadcast %66 : vector<1x64xf32> to vector<63x64xf32>
    %68 = arith.addf %65, %67 : vector<63x64xf32>
    %cst_74 = arith.constant 0.000000e+00 : f32
    %69 = vector.broadcast %cst_74 : f32 to vector<63x64xf32>
    %70 = arith.cmpf ogt, %68, %69 : vector<63x64xf32>
    %cst_75 = arith.constant 1.000000e-01 : f32
    %71 = vector.broadcast %cst_75 : f32 to vector<63x64xf32>
    %72 = arith.mulf %71, %68 : vector<63x64xf32>
    %73 = arith.select %70, %68, %72 : vector<63x64xi1>, vector<63x64xf32>
    %c0_76 = arith.constant 0 : index
    %c0_77 = arith.constant 0 : index
    %74 = vector.load %arg23[%c0_76, %c0_77] : memref<63x64xf32, #tpu.memory_space<vmem>>, vector<63x64xf32>
    tpu.vector_store %arg23[%c0_76, %c0_77], %73 {strides = array<i32>} : memref<63x64xf32, #tpu.memory_space<vmem>>, vector<63x64xf32>,
    %c0_78 = arith.constant 0 : index
    %c0_79 = arith.constant 0 : index
    %75 = tpu.strided_load %arg23[%c0_78, %c0_79] {strides = array<i32: 2, 1>} : memref<63x64xf32, #tpu.memory_space<vmem>>, vector<30x64xf32>
    %c1_80 = arith.constant 1 : index
    %c0_81 = arith.constant 0 : index
    %76 = tpu.strided_load %arg23[%c1_80, %c0_81] {strides = array<i32: 2, 1>} : memref<63x64xf32, #tpu.memory_space<vmem>>, vector<30x64xf32>
    %77 = arith.addf %75, %76 : vector<30x64xf32>
    %c2_82 = arith.constant 2 : index
    %c0_83 = arith.constant 0 : index
    %78 = tpu.strided_load %arg23[%c2_82, %c0_83] {strides = array<i32: 2, 1>} : memref<63x64xf32, #tpu.memory_space<vmem>>, vector<30x64xf32>
    %79 = arith.addf %77, %78 : vector<30x64xf32>
    %c3_84 = arith.constant 3 : index
    %c0_85 = arith.constant 0 : index
    %80 = tpu.strided_load %arg23[%c3_84, %c0_85] {strides = array<i32: 2, 1>} : memref<63x64xf32, #tpu.memory_space<vmem>>, vector<30x64xf32>
    %81 = arith.addf %79, %80 : vector<30x64xf32>
    %c4_86 = arith.constant 4 : index
    %c0_87 = arith.constant 0 : index
    %82 = tpu.strided_load %arg23[%c4_86, %c0_87] {strides = array<i32: 2, 1>} : memref<63x64xf32, #tpu.memory_space<vmem>>, vector<30x64xf32>
    %83 = arith.addf %81, %82 : vector<30x64xf32>
    %cst_88 = arith.constant 2.000000e-01 : f32
    %84 = vector.broadcast %cst_88 : f32 to vector<30x64xf32>
    %85 = arith.mulf %83, %84 : vector<30x64xf32>
    %cst_89 = arith.constant 0.000000e+00 : f32
    %86 = vector.broadcast %cst_89 : f32 to vector<34x64xf32>
    %c0_90 = arith.constant 0 : index
    %c0_91 = arith.constant 0 : index
    %87 = vector.load %arg24[%c0_90, %c0_91] : memref<34x64xf32, #tpu.memory_space<vmem>>, vector<34x64xf32>
    tpu.vector_store %arg24[%c0_90, %c0_91], %86 {strides = array<i32>} : memref<34x64xf32, #tpu.memory_space<vmem>>, vector<34x64xf32>,
    %c2_92 = arith.constant 2 : index
    %c0_93 = arith.constant 0 : index
    %88 = vector.load %arg24[%c2_92, %c0_93] : memref<34x64xf32, #tpu.memory_space<vmem>>, vector<30x64xf32>
    tpu.vector_store %arg24[%c2_92, %c0_93], %85 {strides = array<i32>} : memref<34x64xf32, #tpu.memory_space<vmem>>, vector<30x64xf32>,
    %c0_94 = arith.constant 0 : index
    %c0_95 = arith.constant 0 : index
    %89 = tpu.strided_load %arg24[%c0_94, %c0_95] {strides = array<i32: 2, 1>} : memref<34x64xf32, #tpu.memory_space<vmem>>, vector<15x64xf32>
    %c1_96 = arith.constant 1 : index
    %c0_97 = arith.constant 0 : index
    %90 = tpu.strided_load %arg24[%c1_96, %c0_97] {strides = array<i32: 2, 1>} : memref<34x64xf32, #tpu.memory_space<vmem>>, vector<15x64xf32>
    %c2_98 = arith.constant 2 : index
    %c0_99 = arith.constant 0 : index
    %91 = tpu.strided_load %arg24[%c2_98, %c0_99] {strides = array<i32: 2, 1>} : memref<34x64xf32, #tpu.memory_space<vmem>>, vector<15x64xf32>
    %c3_100 = arith.constant 3 : index
    %c0_101 = arith.constant 0 : index
    %92 = tpu.strided_load %arg24[%c3_100, %c0_101] {strides = array<i32: 2, 1>} : memref<34x64xf32, #tpu.memory_space<vmem>>, vector<15x64xf32>
    %c4_102 = arith.constant 4 : index
    %c0_103 = arith.constant 0 : index
    %93 = tpu.strided_load %arg24[%c4_102, %c0_103] {strides = array<i32: 2, 1>} : memref<34x64xf32, #tpu.memory_space<vmem>>, vector<15x64xf32>
    %94 = tpu.concatenate %89, %90, %91, %92, %93 in 1 : vector<15x64xf32>, vector<15x64xf32>, vector<15x64xf32>, vector<15x64xf32>, vector<15x64xf32> -> vector<15x320xf32>
    %95 = arith.truncf %94 : vector<15x320xf32> to vector<15x320xbf16>
    %c0_104 = arith.constant 0 : index
    %c0_105 = arith.constant 0 : index
    %96 = vector.load %arg8[%c0_104, %c0_105] : memref<320x64xbf16, #tpu.memory_space<vmem>>, vector<320x64xbf16>
    %cst_106 = arith.constant dense<0.000000e+00> : vector<15x64xf32>
    %97 = tpu.matmul %95, %96, %cst_106 {dimension_numbers = #tpu.dot_dimension_numbers<[1], [0], [0], [1], [0, 0, 1, 1], [], []>} : vector<15x320xbf16>, vector<320x64xbf16>, vector<15x64xf32> -> vector<15x64xf32>
    %c0_107 = arith.constant 0 : index
    %c0_108 = arith.constant 0 : index
    %98 = vector.load %arg9[%c0_107, %c0_108] : memref<1x64xf32, #tpu.memory_space<vmem>>, vector<1x64xf32>
    %99 = vector.broadcast %98 : vector<1x64xf32> to vector<15x64xf32>
    %100 = arith.addf %97, %99 : vector<15x64xf32>
    %cst_109 = arith.constant 0.000000e+00 : f32
    %101 = vector.broadcast %cst_109 : f32 to vector<15x64xf32>
    %102 = arith.cmpf ogt, %100, %101 : vector<15x64xf32>
    %cst_110 = arith.constant 1.000000e-01 : f32
    %103 = vector.broadcast %cst_110 : f32 to vector<15x64xf32>
    %104 = arith.mulf %103, %100 : vector<15x64xf32>
    %105 = arith.select %102, %100, %104 : vector<15x64xi1>, vector<15x64xf32>
    %cst_111 = arith.constant 0.000000e+00 : f32
    %106 = vector.broadcast %cst_111 : f32 to vector<19x64xf32>
    %c0_112 = arith.constant 0 : index
    %c0_113 = arith.constant 0 : index
    %107 = vector.load %arg25[%c0_112, %c0_113] : memref<19x64xf32, #tpu.memory_space<vmem>>, vector<19x64xf32>
    tpu.vector_store %arg25[%c0_112, %c0_113], %106 {strides = array<i32>} : memref<19x64xf32, #tpu.memory_space<vmem>>, vector<19x64xf32>,
    %c2_114 = arith.constant 2 : index
    %c0_115 = arith.constant 0 : index
    %108 = vector.load %arg25[%c2_114, %c0_115] : memref<19x64xf32, #tpu.memory_space<vmem>>, vector<15x64xf32>
    tpu.vector_store %arg25[%c2_114, %c0_115], %105 {strides = array<i32>} : memref<19x64xf32, #tpu.memory_space<vmem>>, vector<15x64xf32>,
    %c0_116 = arith.constant 0 : index
    %c0_117 = arith.constant 0 : index
    %109 = tpu.strided_load %arg25[%c0_116, %c0_117] {strides = array<i32: 2, 1>} : memref<19x64xf32, #tpu.memory_space<vmem>>, vector<8x64xf32>
    %c1_118 = arith.constant 1 : index
    %c0_119 = arith.constant 0 : index
    %110 = tpu.strided_load %arg25[%c1_118, %c0_119] {strides = array<i32: 2, 1>} : memref<19x64xf32, #tpu.memory_space<vmem>>, vector<8x64xf32>
    %c2_120 = arith.constant 2 : index
    %c0_121 = arith.constant 0 : index
    %111 = tpu.strided_load %arg25[%c2_120, %c0_121] {strides = array<i32: 2, 1>} : memref<19x64xf32, #tpu.memory_space<vmem>>, vector<8x64xf32>
    %c3_122 = arith.constant 3 : index
    %c0_123 = arith.constant 0 : index
    %112 = tpu.strided_load %arg25[%c3_122, %c0_123] {strides = array<i32: 2, 1>} : memref<19x64xf32, #tpu.memory_space<vmem>>, vector<8x64xf32>
    %c4_124 = arith.constant 4 : index
    %c0_125 = arith.constant 0 : index
    %113 = tpu.strided_load %arg25[%c4_124, %c0_125] {strides = array<i32: 2, 1>} : memref<19x64xf32, #tpu.memory_space<vmem>>, vector<8x64xf32>
    %114 = tpu.concatenate %109, %110, %111, %112, %113 in 1 : vector<8x64xf32>, vector<8x64xf32>, vector<8x64xf32>, vector<8x64xf32>, vector<8x64xf32> -> vector<8x320xf32>
    %115 = arith.truncf %114 : vector<8x320xf32> to vector<8x320xbf16>
    %c0_126 = arith.constant 0 : index
    %c0_127 = arith.constant 0 : index
    %116 = vector.load %arg10[%c0_126, %c0_127] : memref<320x64xbf16, #tpu.memory_space<vmem>>, vector<320x64xbf16>
    %cst_128 = arith.constant dense<0.000000e+00> : vector<8x64xf32>
    %117 = tpu.matmul %115, %116, %cst_128 {dimension_numbers = #tpu.dot_dimension_numbers<[1], [0], [0], [1], [0, 0, 1, 1], [], []>} : vector<8x320xbf16>, vector<320x64xbf16>, vector<8x64xf32> -> vector<8x64xf32>
    %c0_129 = arith.constant 0 : index
    %c0_130 = arith.constant 0 : index
    %118 = vector.load %arg11[%c0_129, %c0_130] : memref<1x64xf32, #tpu.memory_space<vmem>>, vector<1x64xf32>
    %119 = vector.broadcast %118 : vector<1x64xf32> to vector<8x64xf32>
    %120 = arith.addf %117, %119 : vector<8x64xf32>
    %cst_131 = arith.constant 0.000000e+00 : f32
    %121 = vector.broadcast %cst_131 : f32 to vector<8x64xf32>
    %122 = arith.cmpf ogt, %120, %121 : vector<8x64xf32>
    %cst_132 = arith.constant 1.000000e-01 : f32
    %123 = vector.broadcast %cst_132 : f32 to vector<8x64xf32>
    %124 = arith.mulf %123, %120 : vector<8x64xf32>
    %125 = arith.select %122, %120, %124 : vector<8x64xi1>, vector<8x64xf32>
    %126 = tpu.iota {dimensions = array<i32: 1>} : vector<1x128xi32>
    %c32_i32 = arith.constant 32 : i32
    %c0_i32 = arith.constant 0 : i32
    %127 = arith.cmpi eq, %c32_i32, %c0_i32 : i32
    %c1_i32 = arith.constant 1 : i32
    %128 = arith.select %127, %c1_i32, %c32_i32 : i32
    %129 = vector.broadcast %128 : i32 to vector<1x128xi32>
    %130 = arith.remsi %126, %129 : vector<1x128xi32>
    %c0_i32_133 = arith.constant 0 : i32
    %131 = vector.broadcast %c0_i32_133 : i32 to vector<1x128xi32>
    %132 = arith.cmpi ne, %130, %131 : vector<1x128xi32>
    %c0_i32_134 = arith.constant 0 : i32
    %133 = vector.broadcast %c0_i32_134 : i32 to vector<1x128xi32>
    %134 = arith.cmpi slt, %130, %133 : vector<1x128xi32>
    %c0_i32_135 = arith.constant 0 : i32
    %135 = arith.cmpi slt, %128, %c0_i32_135 : i32
    %136 = vector.broadcast %135 : i1 to vector<1x128xi1>
    %137 = vector.broadcast %136 : vector<1x128xi1> to vector<1x128xi1>
    %138 = arith.xori %134, %137 : vector<1x128xi1>
    %139 = arith.andi %138, %132 : vector<1x128xi1>
    %140 = vector.broadcast %128 : i32 to vector<1x128xi32>
    %141 = arith.addi %130, %140 : vector<1x128xi32>
    %142 = arith.select %139, %141, %130 : vector<1x128xi1>, vector<1x128xi32>
    %c16_i32 = arith.constant 16 : i32
    %143 = vector.broadcast %c16_i32 : i32 to vector<1x128xi32>
    %144 = arith.cmpi slt, %142, %143 : vector<1x128xi32>
    %c0_136 = arith.constant 0 : index
    %c0_137 = arith.constant 0 : index
    %145 = vector.load %arg12[%c0_136, %c0_137] : memref<160x128xf32, #tpu.memory_space<vmem>>, vector<64x128xf32>
    %c64 = arith.constant 64 : index
    %c0_138 = arith.constant 0 : index
    %146 = vector.load %arg12[%c64, %c0_138] : memref<160x128xf32, #tpu.memory_space<vmem>>, vector<32x128xf32>
    %c0_139 = arith.constant 0 : index
    %c0_140 = arith.constant 0 : index
    %147 = vector.load %arg13[%c0_139, %c0_140] : memref<2x128xf32, #tpu.memory_space<vmem>>, vector<1x128xf32>
    %148 = arith.truncf %125 : vector<8x64xf32> to vector<8x64xbf16>
    %149 = arith.truncf %145 : vector<64x128xf32> to vector<64x128xbf16>
    %cst_141 = arith.constant dense<0.000000e+00> : vector<8x128xf32>
    %150 = tpu.matmul %148, %149, %cst_141 {dimension_numbers = #tpu.dot_dimension_numbers<[1], [0], [0], [1], [0, 0, 1, 1], [], []>} : vector<8x64xbf16>, vector<64x128xbf16>, vector<8x128xf32> -> vector<8x128xf32>
    %151 = vector.broadcast %147 : vector<1x128xf32> to vector<8x128xf32>
    %152 = arith.addf %150, %151 : vector<8x128xf32>
    %cst_142 = arith.constant 0.000000e+00 : f32
    %153 = vector.broadcast %cst_142 : f32 to vector<1x32xf32>
    %cst_143 = arith.constant 0.000000e+00 : f32
    %154 = vector.broadcast %cst_143 : f32 to vector<1x32xf32>
    %155 = vector.extract_strided_slice %152 {offsets = [0, 0], sizes = [1, 128], strides = [1, 1]} : vector<8x128xf32> to vector<1x128xf32>
    %156 = vector.extract_strided_slice %152 {offsets = [7, 0], sizes = [1, 128], strides = [1, 1]} : vector<8x128xf32> to vector<1x128xf32>
    %157 = arith.select %144, %155, %156 : vector<1x128xi1>, vector<1x128xf32>
    %cst_144 = arith.constant dense<0.000000e+00> : vector<1x128xf32>
    %158 = tpu.matmul %153, %146, %cst_144 {dimension_numbers = #tpu.dot_dimension_numbers<[1], [0], [0], [1], [0, 0, 1, 1], [], []>} : vector<1x32xf32>, vector<32x128xf32>, vector<1x128xf32> -> vector<1x128xf32>
    %159 = arith.addf %157, %158 : vector<1x128xf32>
    %160 = vector.extract_strided_slice %159 {offsets = [0, 0], sizes = [1, 32], strides = [1, 1]} : vector<1x128xf32> to vector<1x32xf32>
    %161 = arith.negf %160 : vector<1x32xf32>
    %162 = math.exp %161 : vector<1x32xf32>
    %cst_145 = arith.constant 1.000000e+00 : f32
    %163 = vector.broadcast %cst_145 : f32 to vector<1x32xf32>
    %164 = arith.addf %163, %162 : vector<1x32xf32>
    %165 = arith.divf %163, %164 : vector<1x32xf32>
    %166 = vector.extract_strided_slice %159 {offsets = [0, 32], sizes = [1, 32], strides = [1, 1]} : vector<1x128xf32> to vector<1x32xf32>
    %167 = arith.negf %166 : vector<1x32xf32>
    %168 = math.exp %167 : vector<1x32xf32>
    %cst_146 = arith.constant 1.000000e+00 : f32
    %169 = vector.broadcast %cst_146 : f32 to vector<1x32xf32>
    %170 = arith.addf %169, %168 : vector<1x32xf32>
    %171 = arith.divf %169, %170 : vector<1x32xf32>
    %172 = vector.extract_strided_slice %159 {offsets = [0, 64], sizes = [1, 32], strides = [1, 1]} : vector<1x128xf32> to vector<1x32xf32>
    %173 = math.tanh %172 : vector<1x32xf32>
    %174 = vector.extract_strided_slice %159 {offsets = [0, 96], sizes = [1, 32], strides = [1, 1]} : vector<1x128xf32> to vector<1x32xf32>
    %175 = arith.negf %174 : vector<1x32xf32>
    %176 = math.exp %175 : vector<1x32xf32>
    %cst_147 = arith.constant 1.000000e+00 : f32
    %177 = vector.broadcast %cst_147 : f32 to vector<1x32xf32>
    %178 = arith.addf %177, %176 : vector<1x32xf32>
    %179 = arith.divf %177, %178 : vector<1x32xf32>
    %180 = arith.mulf %171, %154 : vector<1x32xf32>
    %181 = arith.mulf %165, %173 : vector<1x32xf32>
    %182 = arith.addf %180, %181 : vector<1x32xf32>
    %183 = math.tanh %182 : vector<1x32xf32>
    %184 = arith.mulf %179, %183 : vector<1x32xf32>
    %185 = vector.extract_strided_slice %184 {offsets = [0, 0], sizes = [1, 16], strides = [1, 1]} : vector<1x32xf32> to vector<1x16xf32>
    %c0_148 = arith.constant 0 : index
    %c0_149 = arith.constant 0 : index
    %186 = vector.load %arg26[%c0_148, %c0_149] : memref<8x32xf32, #tpu.memory_space<vmem>>, vector<1x16xf32>
    tpu.vector_store %arg26[%c0_148, %c0_149], %185 {strides = array<i32>} : memref<8x32xf32, #tpu.memory_space<vmem>>, vector<1x16xf32>,
    %187 = vector.extract_strided_slice %184 {offsets = [0, 16], sizes = [1, 16], strides = [1, 1]} : vector<1x32xf32> to vector<1x16xf32>
    %c7 = arith.constant 7 : index
    %c16 = arith.constant 16 : index
    %188 = vector.load %arg26[%c7, %c16] : memref<8x32xf32, #tpu.memory_space<vmem>>, vector<1x16xf32>
    tpu.vector_store %arg26[%c7, %c16], %187 {strides = array<i32>} : memref<8x32xf32, #tpu.memory_space<vmem>>, vector<1x16xf32>,
    %189 = vector.extract_strided_slice %152 {offsets = [1, 0], sizes = [1, 128], strides = [1, 1]} : vector<8x128xf32> to vector<1x128xf32>
    %190 = vector.extract_strided_slice %152 {offsets = [6, 0], sizes = [1, 128], strides = [1, 1]} : vector<8x128xf32> to vector<1x128xf32>
    %191 = arith.select %144, %189, %190 : vector<1x128xi1>, vector<1x128xf32>
    %cst_150 = arith.constant dense<0.000000e+00> : vector<1x128xf32>
    %192 = tpu.matmul %184, %146, %cst_150 {dimension_numbers = #tpu.dot_dimension_numbers<[1], [0], [0], [1], [0, 0, 1, 1], [], []>} : vector<1x32xf32>, vector<32x128xf32>, vector<1x128xf32> -> vector<1x128xf32>
    %193 = arith.addf %191, %192 : vector<1x128xf32>
    %194 = vector.extract_strided_slice %193 {offsets = [0, 0], sizes = [1, 32], strides = [1, 1]} : vector<1x128xf32> to vector<1x32xf32>
    %195 = arith.negf %194 : vector<1x32xf32>
    %196 = math.exp %195 : vector<1x32xf32>
    %cst_151 = arith.constant 1.000000e+00 : f32
    %197 = vector.broadcast %cst_151 : f32 to vector<1x32xf32>
    %198 = arith.addf %197, %196 : vector<1x32xf32>
    %199 = arith.divf %197, %198 : vector<1x32xf32>
    %200 = vector.extract_strided_slice %193 {offsets = [0, 32], sizes = [1, 32], strides = [1, 1]} : vector<1x128xf32> to vector<1x32xf32>
    %201 = arith.negf %200 : vector<1x32xf32>
    %202 = math.exp %201 : vector<1x32xf32>
    %cst_152 = arith.constant 1.000000e+00 : f32
    %203 = vector.broadcast %cst_152 : f32 to vector<1x32xf32>
    %204 = arith.addf %203, %202 : vector<1x32xf32>
    %205 = arith.divf %203, %204 : vector<1x32xf32>
    %206 = vector.extract_strided_slice %193 {offsets = [0, 64], sizes = [1, 32], strides = [1, 1]} : vector<1x128xf32> to vector<1x32xf32>
    %207 = math.tanh %206 : vector<1x32xf32>
    %208 = vector.extract_strided_slice %193 {offsets = [0, 96], sizes = [1, 32], strides = [1, 1]} : vector<1x128xf32> to vector<1x32xf32>
    %209 = arith.negf %208 : vector<1x32xf32>
    %210 = math.exp %209 : vector<1x32xf32>
    %cst_153 = arith.constant 1.000000e+00 : f32
    %211 = vector.broadcast %cst_153 : f32 to vector<1x32xf32>
    %212 = arith.addf %211, %210 : vector<1x32xf32>
    %213 = arith.divf %211, %212 : vector<1x32xf32>
    %214 = arith.mulf %205, %182 : vector<1x32xf32>
    %215 = arith.mulf %199, %207 : vector<1x32xf32>
    %216 = arith.addf %214, %215 : vector<1x32xf32>
    %217 = math.tanh %216 : vector<1x32xf32>
    %218 = arith.mulf %213, %217 : vector<1x32xf32>
    %219 = vector.extract_strided_slice %218 {offsets = [0, 0], sizes = [1, 16], strides = [1, 1]} : vector<1x32xf32> to vector<1x16xf32>
    %c1_154 = arith.constant 1 : index
    %c0_155 = arith.constant 0 : index
    %220 = vector.load %arg26[%c1_154, %c0_155] : memref<8x32xf32, #tpu.memory_space<vmem>>, vector<1x16xf32>
    tpu.vector_store %arg26[%c1_154, %c0_155], %219 {strides = array<i32>} : memref<8x32xf32, #tpu.memory_space<vmem>>, vector<1x16xf32>,
    %221 = vector.extract_strided_slice %218 {offsets = [0, 16], sizes = [1, 16], strides = [1, 1]} : vector<1x32xf32> to vector<1x16xf32>
    %c6 = arith.constant 6 : index
    %c16_156 = arith.constant 16 : index
    %222 = vector.load %arg26[%c6, %c16_156] : memref<8x32xf32, #tpu.memory_space<vmem>>, vector<1x16xf32>
    tpu.vector_store %arg26[%c6, %c16_156], %221 {strides = array<i32>} : memref<8x32xf32, #tpu.memory_space<vmem>>, vector<1x16xf32>,
    %223 = vector.extract_strided_slice %152 {offsets = [2, 0], sizes = [1, 128], strides = [1, 1]} : vector<8x128xf32> to vector<1x128xf32>
    %224 = vector.extract_strided_slice %152 {offsets = [5, 0], sizes = [1, 128], strides = [1, 1]} : vector<8x128xf32> to vector<1x128xf32>
    %225 = arith.select %144, %223, %224 : vector<1x128xi1>, vector<1x128xf32>
    %cst_157 = arith.constant dense<0.000000e+00> : vector<1x128xf32>
    %226 = tpu.matmul %218, %146, %cst_157 {dimension_numbers = #tpu.dot_dimension_numbers<[1], [0], [0], [1], [0, 0, 1, 1], [], []>} : vector<1x32xf32>, vector<32x128xf32>, vector<1x128xf32> -> vector<1x128xf32>
    %227 = arith.addf %225, %226 : vector<1x128xf32>
    %228 = vector.extract_strided_slice %227 {offsets = [0, 0], sizes = [1, 32], strides = [1, 1]} : vector<1x128xf32> to vector<1x32xf32>
    %229 = arith.negf %228 : vector<1x32xf32>
    %230 = math.exp %229 : vector<1x32xf32>
    %cst_158 = arith.constant 1.000000e+00 : f32
    %231 = vector.broadcast %cst_158 : f32 to vector<1x32xf32>
    %232 = arith.addf %231, %230 : vector<1x32xf32>
    %233 = arith.divf %231, %232 : vector<1x32xf32>
    %234 = vector.extract_strided_slice %227 {offsets = [0, 32], sizes = [1, 32], strides = [1, 1]} : vector<1x128xf32> to vector<1x32xf32>
    %235 = arith.negf %234 : vector<1x32xf32>
    %236 = math.exp %235 : vector<1x32xf32>
    %cst_159 = arith.constant 1.000000e+00 : f32
    %237 = vector.broadcast %cst_159 : f32 to vector<1x32xf32>
    %238 = arith.addf %237, %236 : vector<1x32xf32>
    %239 = arith.divf %237, %238 : vector<1x32xf32>
    %240 = vector.extract_strided_slice %227 {offsets = [0, 64], sizes = [1, 32], strides = [1, 1]} : vector<1x128xf32> to vector<1x32xf32>
    %241 = math.tanh %240 : vector<1x32xf32>
    %242 = vector.extract_strided_slice %227 {offsets = [0, 96], sizes = [1, 32], strides = [1, 1]} : vector<1x128xf32> to vector<1x32xf32>
    %243 = arith.negf %242 : vector<1x32xf32>
    %244 = math.exp %243 : vector<1x32xf32>
    %cst_160 = arith.constant 1.000000e+00 : f32
    %245 = vector.broadcast %cst_160 : f32 to vector<1x32xf32>
    %246 = arith.addf %245, %244 : vector<1x32xf32>
    %247 = arith.divf %245, %246 : vector<1x32xf32>
    %248 = arith.mulf %239, %216 : vector<1x32xf32>
    %249 = arith.mulf %233, %241 : vector<1x32xf32>
    %250 = arith.addf %248, %249 : vector<1x32xf32>
    %251 = math.tanh %250 : vector<1x32xf32>
    %252 = arith.mulf %247, %251 : vector<1x32xf32>
    %253 = vector.extract_strided_slice %252 {offsets = [0, 0], sizes = [1, 16], strides = [1, 1]} : vector<1x32xf32> to vector<1x16xf32>
    %c2_161 = arith.constant 2 : index
    %c0_162 = arith.constant 0 : index
    %254 = vector.load %arg26[%c2_161, %c0_162] : memref<8x32xf32, #tpu.memory_space<vmem>>, vector<1x16xf32>
    tpu.vector_store %arg26[%c2_161, %c0_162], %253 {strides = array<i32>} : memref<8x32xf32, #tpu.memory_space<vmem>>, vector<1x16xf32>,
    %255 = vector.extract_strided_slice %252 {offsets = [0, 16], sizes = [1, 16], strides = [1, 1]} : vector<1x32xf32> to vector<1x16xf32>
    %c5 = arith.constant 5 : index
    %c16_163 = arith.constant 16 : index
    %256 = vector.load %arg26[%c5, %c16_163] : memref<8x32xf32, #tpu.memory_space<vmem>>, vector<1x16xf32>
    tpu.vector_store %arg26[%c5, %c16_163], %255 {strides = array<i32>} : memref<8x32xf32, #tpu.memory_space<vmem>>, vector<1x16xf32>,
    %257 = vector.extract_strided_slice %152 {offsets = [3, 0], sizes = [1, 128], strides = [1, 1]} : vector<8x128xf32> to vector<1x128xf32>
    %258 = vector.extract_strided_slice %152 {offsets = [4, 0], sizes = [1, 128], strides = [1, 1]} : vector<8x128xf32> to vector<1x128xf32>
    %259 = arith.select %144, %257, %258 : vector<1x128xi1>, vector<1x128xf32>
    %cst_164 = arith.constant dense<0.000000e+00> : vector<1x128xf32>
    %260 = tpu.matmul %252, %146, %cst_164 {dimension_numbers = #tpu.dot_dimension_numbers<[1], [0], [0], [1], [0, 0, 1, 1], [], []>} : vector<1x32xf32>, vector<32x128xf32>, vector<1x128xf32> -> vector<1x128xf32>
    %261 = arith.addf %259, %260 : vector<1x128xf32>
    %262 = vector.extract_strided_slice %261 {offsets = [0, 0], sizes = [1, 32], strides = [1, 1]} : vector<1x128xf32> to vector<1x32xf32>
    %263 = arith.negf %262 : vector<1x32xf32>
    %264 = math.exp %263 : vector<1x32xf32>
    %cst_165 = arith.constant 1.000000e+00 : f32
    %265 = vector.broadcast %cst_165 : f32 to vector<1x32xf32>
    %266 = arith.addf %265, %264 : vector<1x32xf32>
    %267 = arith.divf %265, %266 : vector<1x32xf32>
    %268 = vector.extract_strided_slice %261 {offsets = [0, 32], sizes = [1, 32], strides = [1, 1]} : vector<1x128xf32> to vector<1x32xf32>
    %269 = arith.negf %268 : vector<1x32xf32>
    %270 = math.exp %269 : vector<1x32xf32>
    %cst_166 = arith.constant 1.000000e+00 : f32
    %271 = vector.broadcast %cst_166 : f32 to vector<1x32xf32>
    %272 = arith.addf %271, %270 : vector<1x32xf32>
    %273 = arith.divf %271, %272 : vector<1x32xf32>
    %274 = vector.extract_strided_slice %261 {offsets = [0, 64], sizes = [1, 32], strides = [1, 1]} : vector<1x128xf32> to vector<1x32xf32>
    %275 = math.tanh %274 : vector<1x32xf32>
    %276 = vector.extract_strided_slice %261 {offsets = [0, 96], sizes = [1, 32], strides = [1, 1]} : vector<1x128xf32> to vector<1x32xf32>
    %277 = arith.negf %276 : vector<1x32xf32>
    %278 = math.exp %277 : vector<1x32xf32>
    %cst_167 = arith.constant 1.000000e+00 : f32
    %279 = vector.broadcast %cst_167 : f32 to vector<1x32xf32>
    %280 = arith.addf %279, %278 : vector<1x32xf32>
    %281 = arith.divf %279, %280 : vector<1x32xf32>
    %282 = arith.mulf %273, %250 : vector<1x32xf32>
    %283 = arith.mulf %267, %275 : vector<1x32xf32>
    %284 = arith.addf %282, %283 : vector<1x32xf32>
    %285 = math.tanh %284 : vector<1x32xf32>
    %286 = arith.mulf %281, %285 : vector<1x32xf32>
    %287 = vector.extract_strided_slice %286 {offsets = [0, 0], sizes = [1, 16], strides = [1, 1]} : vector<1x32xf32> to vector<1x16xf32>
    %c3_168 = arith.constant 3 : index
    %c0_169 = arith.constant 0 : index
    %288 = vector.load %arg26[%c3_168, %c0_169] : memref<8x32xf32, #tpu.memory_space<vmem>>, vector<1x16xf32>
    tpu.vector_store %arg26[%c3_168, %c0_169], %287 {strides = array<i32>} : memref<8x32xf32, #tpu.memory_space<vmem>>, vector<1x16xf32>,
    %289 = vector.extract_strided_slice %286 {offsets = [0, 16], sizes = [1, 16], strides = [1, 1]} : vector<1x32xf32> to vector<1x16xf32>
    %c4_170 = arith.constant 4 : index
    %c16_171 = arith.constant 16 : index
    %290 = vector.load %arg26[%c4_170, %c16_171] : memref<8x32xf32, #tpu.memory_space<vmem>>, vector<1x16xf32>
    tpu.vector_store %arg26[%c4_170, %c16_171], %289 {strides = array<i32>} : memref<8x32xf32, #tpu.memory_space<vmem>>, vector<1x16xf32>,
    %291 = vector.extract_strided_slice %152 {offsets = [4, 0], sizes = [1, 128], strides = [1, 1]} : vector<8x128xf32> to vector<1x128xf32>
    %292 = vector.extract_strided_slice %152 {offsets = [3, 0], sizes = [1, 128], strides = [1, 1]} : vector<8x128xf32> to vector<1x128xf32>
    %293 = arith.select %144, %291, %292 : vector<1x128xi1>, vector<1x128xf32>
    %cst_172 = arith.constant dense<0.000000e+00> : vector<1x128xf32>
    %294 = tpu.matmul %286, %146, %cst_172 {dimension_numbers = #tpu.dot_dimension_numbers<[1], [0], [0], [1], [0, 0, 1, 1], [], []>} : vector<1x32xf32>, vector<32x128xf32>, vector<1x128xf32> -> vector<1x128xf32>
    %295 = arith.addf %293, %294 : vector<1x128xf32>
    %296 = vector.extract_strided_slice %295 {offsets = [0, 0], sizes = [1, 32], strides = [1, 1]} : vector<1x128xf32> to vector<1x32xf32>
    %297 = arith.negf %296 : vector<1x32xf32>
    %298 = math.exp %297 : vector<1x32xf32>
    %cst_173 = arith.constant 1.000000e+00 : f32
    %299 = vector.broadcast %cst_173 : f32 to vector<1x32xf32>
    %300 = arith.addf %299, %298 : vector<1x32xf32>
    %301 = arith.divf %299, %300 : vector<1x32xf32>
    %302 = vector.extract_strided_slice %295 {offsets = [0, 32], sizes = [1, 32], strides = [1, 1]} : vector<1x128xf32> to vector<1x32xf32>
    %303 = arith.negf %302 : vector<1x32xf32>
    %304 = math.exp %303 : vector<1x32xf32>
    %cst_174 = arith.constant 1.000000e+00 : f32
    %305 = vector.broadcast %cst_174 : f32 to vector<1x32xf32>
    %306 = arith.addf %305, %304 : vector<1x32xf32>
    %307 = arith.divf %305, %306 : vector<1x32xf32>
    %308 = vector.extract_strided_slice %295 {offsets = [0, 64], sizes = [1, 32], strides = [1, 1]} : vector<1x128xf32> to vector<1x32xf32>
    %309 = math.tanh %308 : vector<1x32xf32>
    %310 = vector.extract_strided_slice %295 {offsets = [0, 96], sizes = [1, 32], strides = [1, 1]} : vector<1x128xf32> to vector<1x32xf32>
    %311 = arith.negf %310 : vector<1x32xf32>
    %312 = math.exp %311 : vector<1x32xf32>
    %cst_175 = arith.constant 1.000000e+00 : f32
    %313 = vector.broadcast %cst_175 : f32 to vector<1x32xf32>
    %314 = arith.addf %313, %312 : vector<1x32xf32>
    %315 = arith.divf %313, %314 : vector<1x32xf32>
    %316 = arith.mulf %307, %284 : vector<1x32xf32>
    %317 = arith.mulf %301, %309 : vector<1x32xf32>
    %318 = arith.addf %316, %317 : vector<1x32xf32>
    %319 = math.tanh %318 : vector<1x32xf32>
    %320 = arith.mulf %315, %319 : vector<1x32xf32>
    %321 = vector.extract_strided_slice %320 {offsets = [0, 0], sizes = [1, 16], strides = [1, 1]} : vector<1x32xf32> to vector<1x16xf32>
    %c4_176 = arith.constant 4 : index
    %c0_177 = arith.constant 0 : index
    %322 = vector.load %arg26[%c4_176, %c0_177] : memref<8x32xf32, #tpu.memory_space<vmem>>, vector<1x16xf32>
    tpu.vector_store %arg26[%c4_176, %c0_177], %321 {strides = array<i32>} : memref<8x32xf32, #tpu.memory_space<vmem>>, vector<1x16xf32>,
    %323 = vector.extract_strided_slice %320 {offsets = [0, 16], sizes = [1, 16], strides = [1, 1]} : vector<1x32xf32> to vector<1x16xf32>
    %c3_178 = arith.constant 3 : index
    %c16_179 = arith.constant 16 : index
    %324 = vector.load %arg26[%c3_178, %c16_179] : memref<8x32xf32, #tpu.memory_space<vmem>>, vector<1x16xf32>
    tpu.vector_store %arg26[%c3_178, %c16_179], %323 {strides = array<i32>} : memref<8x32xf32, #tpu.memory_space<vmem>>, vector<1x16xf32>,
    %325 = vector.extract_strided_slice %152 {offsets = [5, 0], sizes = [1, 128], strides = [1, 1]} : vector<8x128xf32> to vector<1x128xf32>
    %326 = vector.extract_strided_slice %152 {offsets = [2, 0], sizes = [1, 128], strides = [1, 1]} : vector<8x128xf32> to vector<1x128xf32>
    %327 = arith.select %144, %325, %326 : vector<1x128xi1>, vector<1x128xf32>
    %cst_180 = arith.constant dense<0.000000e+00> : vector<1x128xf32>
    %328 = tpu.matmul %320, %146, %cst_180 {dimension_numbers = #tpu.dot_dimension_numbers<[1], [0], [0], [1], [0, 0, 1, 1], [], []>} : vector<1x32xf32>, vector<32x128xf32>, vector<1x128xf32> -> vector<1x128xf32>
    %329 = arith.addf %327, %328 : vector<1x128xf32>
    %330 = vector.extract_strided_slice %329 {offsets = [0, 0], sizes = [1, 32], strides = [1, 1]} : vector<1x128xf32> to vector<1x32xf32>
    %331 = arith.negf %330 : vector<1x32xf32>
    %332 = math.exp %331 : vector<1x32xf32>
    %cst_181 = arith.constant 1.000000e+00 : f32
    %333 = vector.broadcast %cst_181 : f32 to vector<1x32xf32>
    %334 = arith.addf %333, %332 : vector<1x32xf32>
    %335 = arith.divf %333, %334 : vector<1x32xf32>
    %336 = vector.extract_strided_slice %329 {offsets = [0, 32], sizes = [1, 32], strides = [1, 1]} : vector<1x128xf32> to vector<1x32xf32>
    %337 = arith.negf %336 : vector<1x32xf32>
    %338 = math.exp %337 : vector<1x32xf32>
    %cst_182 = arith.constant 1.000000e+00 : f32
    %339 = vector.broadcast %cst_182 : f32 to vector<1x32xf32>
    %340 = arith.addf %339, %338 : vector<1x32xf32>
    %341 = arith.divf %339, %340 : vector<1x32xf32>
    %342 = vector.extract_strided_slice %329 {offsets = [0, 64], sizes = [1, 32], strides = [1, 1]} : vector<1x128xf32> to vector<1x32xf32>
    %343 = math.tanh %342 : vector<1x32xf32>
    %344 = vector.extract_strided_slice %329 {offsets = [0, 96], sizes = [1, 32], strides = [1, 1]} : vector<1x128xf32> to vector<1x32xf32>
    %345 = arith.negf %344 : vector<1x32xf32>
    %346 = math.exp %345 : vector<1x32xf32>
    %cst_183 = arith.constant 1.000000e+00 : f32
    %347 = vector.broadcast %cst_183 : f32 to vector<1x32xf32>
    %348 = arith.addf %347, %346 : vector<1x32xf32>
    %349 = arith.divf %347, %348 : vector<1x32xf32>
    %350 = arith.mulf %341, %318 : vector<1x32xf32>
    %351 = arith.mulf %335, %343 : vector<1x32xf32>
    %352 = arith.addf %350, %351 : vector<1x32xf32>
    %353 = math.tanh %352 : vector<1x32xf32>
    %354 = arith.mulf %349, %353 : vector<1x32xf32>
    %355 = vector.extract_strided_slice %354 {offsets = [0, 0], sizes = [1, 16], strides = [1, 1]} : vector<1x32xf32> to vector<1x16xf32>
    %c5_184 = arith.constant 5 : index
    %c0_185 = arith.constant 0 : index
    %356 = vector.load %arg26[%c5_184, %c0_185] : memref<8x32xf32, #tpu.memory_space<vmem>>, vector<1x16xf32>
    tpu.vector_store %arg26[%c5_184, %c0_185], %355 {strides = array<i32>} : memref<8x32xf32, #tpu.memory_space<vmem>>, vector<1x16xf32>,
    %357 = vector.extract_strided_slice %354 {offsets = [0, 16], sizes = [1, 16], strides = [1, 1]} : vector<1x32xf32> to vector<1x16xf32>
    %c2_186 = arith.constant 2 : index
    %c16_187 = arith.constant 16 : index
    %358 = vector.load %arg26[%c2_186, %c16_187] : memref<8x32xf32, #tpu.memory_space<vmem>>, vector<1x16xf32>
    tpu.vector_store %arg26[%c2_186, %c16_187], %357 {strides = array<i32>} : memref<8x32xf32, #tpu.memory_space<vmem>>, vector<1x16xf32>,
    %359 = vector.extract_strided_slice %152 {offsets = [6, 0], sizes = [1, 128], strides = [1, 1]} : vector<8x128xf32> to vector<1x128xf32>
    %360 = vector.extract_strided_slice %152 {offsets = [1, 0], sizes = [1, 128], strides = [1, 1]} : vector<8x128xf32> to vector<1x128xf32>
    %361 = arith.select %144, %359, %360 : vector<1x128xi1>, vector<1x128xf32>
    %cst_188 = arith.constant dense<0.000000e+00> : vector<1x128xf32>
    %362 = tpu.matmul %354, %146, %cst_188 {dimension_numbers = #tpu.dot_dimension_numbers<[1], [0], [0], [1], [0, 0, 1, 1], [], []>} : vector<1x32xf32>, vector<32x128xf32>, vector<1x128xf32> -> vector<1x128xf32>
    %363 = arith.addf %361, %362 : vector<1x128xf32>
    %364 = vector.extract_strided_slice %363 {offsets = [0, 0], sizes = [1, 32], strides = [1, 1]} : vector<1x128xf32> to vector<1x32xf32>
    %365 = arith.negf %364 : vector<1x32xf32>
    %366 = math.exp %365 : vector<1x32xf32>
    %cst_189 = arith.constant 1.000000e+00 : f32
    %367 = vector.broadcast %cst_189 : f32 to vector<1x32xf32>
    %368 = arith.addf %367, %366 : vector<1x32xf32>
    %369 = arith.divf %367, %368 : vector<1x32xf32>
    %370 = vector.extract_strided_slice %363 {offsets = [0, 32], sizes = [1, 32], strides = [1, 1]} : vector<1x128xf32> to vector<1x32xf32>
    %371 = arith.negf %370 : vector<1x32xf32>
    %372 = math.exp %371 : vector<1x32xf32>
    %cst_190 = arith.constant 1.000000e+00 : f32
    %373 = vector.broadcast %cst_190 : f32 to vector<1x32xf32>
    %374 = arith.addf %373, %372 : vector<1x32xf32>
    %375 = arith.divf %373, %374 : vector<1x32xf32>
    %376 = vector.extract_strided_slice %363 {offsets = [0, 64], sizes = [1, 32], strides = [1, 1]} : vector<1x128xf32> to vector<1x32xf32>
    %377 = math.tanh %376 : vector<1x32xf32>
    %378 = vector.extract_strided_slice %363 {offsets = [0, 96], sizes = [1, 32], strides = [1, 1]} : vector<1x128xf32> to vector<1x32xf32>
    %379 = arith.negf %378 : vector<1x32xf32>
    %380 = math.exp %379 : vector<1x32xf32>
    %cst_191 = arith.constant 1.000000e+00 : f32
    %381 = vector.broadcast %cst_191 : f32 to vector<1x32xf32>
    %382 = arith.addf %381, %380 : vector<1x32xf32>
    %383 = arith.divf %381, %382 : vector<1x32xf32>
    %384 = arith.mulf %375, %352 : vector<1x32xf32>
    %385 = arith.mulf %369, %377 : vector<1x32xf32>
    %386 = arith.addf %384, %385 : vector<1x32xf32>
    %387 = math.tanh %386 : vector<1x32xf32>
    %388 = arith.mulf %383, %387 : vector<1x32xf32>
    %389 = vector.extract_strided_slice %388 {offsets = [0, 0], sizes = [1, 16], strides = [1, 1]} : vector<1x32xf32> to vector<1x16xf32>
    %c6_192 = arith.constant 6 : index
    %c0_193 = arith.constant 0 : index
    %390 = vector.load %arg26[%c6_192, %c0_193] : memref<8x32xf32, #tpu.memory_space<vmem>>, vector<1x16xf32>
    tpu.vector_store %arg26[%c6_192, %c0_193], %389 {strides = array<i32>} : memref<8x32xf32, #tpu.memory_space<vmem>>, vector<1x16xf32>,
    %391 = vector.extract_strided_slice %388 {offsets = [0, 16], sizes = [1, 16], strides = [1, 1]} : vector<1x32xf32> to vector<1x16xf32>
    %c1_194 = arith.constant 1 : index
    %c16_195 = arith.constant 16 : index
    %392 = vector.load %arg26[%c1_194, %c16_195] : memref<8x32xf32, #tpu.memory_space<vmem>>, vector<1x16xf32>
    tpu.vector_store %arg26[%c1_194, %c16_195], %391 {strides = array<i32>} : memref<8x32xf32, #tpu.memory_space<vmem>>, vector<1x16xf32>,
    %393 = vector.extract_strided_slice %152 {offsets = [7, 0], sizes = [1, 128], strides = [1, 1]} : vector<8x128xf32> to vector<1x128xf32>
    %394 = vector.extract_strided_slice %152 {offsets = [0, 0], sizes = [1, 128], strides = [1, 1]} : vector<8x128xf32> to vector<1x128xf32>
    %395 = arith.select %144, %393, %394 : vector<1x128xi1>, vector<1x128xf32>
    %cst_196 = arith.constant dense<0.000000e+00> : vector<1x128xf32>
    %396 = tpu.matmul %388, %146, %cst_196 {dimension_numbers = #tpu.dot_dimension_numbers<[1], [0], [0], [1], [0, 0, 1, 1], [], []>} : vector<1x32xf32>, vector<32x128xf32>, vector<1x128xf32> -> vector<1x128xf32>
    %397 = arith.addf %395, %396 : vector<1x128xf32>
    %398 = vector.extract_strided_slice %397 {offsets = [0, 0], sizes = [1, 32], strides = [1, 1]} : vector<1x128xf32> to vector<1x32xf32>
    %399 = arith.negf %398 : vector<1x32xf32>
    %400 = math.exp %399 : vector<1x32xf32>
    %cst_197 = arith.constant 1.000000e+00 : f32
    %401 = vector.broadcast %cst_197 : f32 to vector<1x32xf32>
    %402 = arith.addf %401, %400 : vector<1x32xf32>
    %403 = arith.divf %401, %402 : vector<1x32xf32>
    %404 = vector.extract_strided_slice %397 {offsets = [0, 32], sizes = [1, 32], strides = [1, 1]} : vector<1x128xf32> to vector<1x32xf32>
    %405 = arith.negf %404 : vector<1x32xf32>
    %406 = math.exp %405 : vector<1x32xf32>
    %cst_198 = arith.constant 1.000000e+00 : f32
    %407 = vector.broadcast %cst_198 : f32 to vector<1x32xf32>
    %408 = arith.addf %407, %406 : vector<1x32xf32>
    %409 = arith.divf %407, %408 : vector<1x32xf32>
    %410 = vector.extract_strided_slice %397 {offsets = [0, 64], sizes = [1, 32], strides = [1, 1]} : vector<1x128xf32> to vector<1x32xf32>
    %411 = math.tanh %410 : vector<1x32xf32>
    %412 = vector.extract_strided_slice %397 {offsets = [0, 96], sizes = [1, 32], strides = [1, 1]} : vector<1x128xf32> to vector<1x32xf32>
    %413 = arith.negf %412 : vector<1x32xf32>
    %414 = math.exp %413 : vector<1x32xf32>
    %cst_199 = arith.constant 1.000000e+00 : f32
    %415 = vector.broadcast %cst_199 : f32 to vector<1x32xf32>
    %416 = arith.addf %415, %414 : vector<1x32xf32>
    %417 = arith.divf %415, %416 : vector<1x32xf32>
    %418 = arith.mulf %409, %386 : vector<1x32xf32>
    %419 = arith.mulf %403, %411 : vector<1x32xf32>
    %420 = arith.addf %418, %419 : vector<1x32xf32>
    %421 = math.tanh %420 : vector<1x32xf32>
    %422 = arith.mulf %417, %421 : vector<1x32xf32>
    %423 = vector.extract_strided_slice %422 {offsets = [0, 0], sizes = [1, 16], strides = [1, 1]} : vector<1x32xf32> to vector<1x16xf32>
    %c7_200 = arith.constant 7 : index
    %c0_201 = arith.constant 0 : index
    %424 = vector.load %arg26[%c7_200, %c0_201] : memref<8x32xf32, #tpu.memory_space<vmem>>, vector<1x16xf32>
    tpu.vector_store %arg26[%c7_200, %c0_201], %423 {strides = array<i32>} : memref<8x32xf32, #tpu.memory_space<vmem>>, vector<1x16xf32>,
    %425 = vector.extract_strided_slice %422 {offsets = [0, 16], sizes = [1, 16], strides = [1, 1]} : vector<1x32xf32> to vector<1x16xf32>
    %c0_202 = arith.constant 0 : index
    %c16_203 = arith.constant 16 : index
    %426 = vector.load %arg26[%c0_202, %c16_203] : memref<8x32xf32, #tpu.memory_space<vmem>>, vector<1x16xf32>
    tpu.vector_store %arg26[%c0_202, %c16_203], %425 {strides = array<i32>} : memref<8x32xf32, #tpu.memory_space<vmem>>, vector<1x16xf32>,
    %c0_204 = arith.constant 0 : index
    %c0_205 = arith.constant 0 : index
    %427 = vector.load %arg26[%c0_204, %c0_205] : memref<8x32xf32, #tpu.memory_space<vmem>>, vector<8x32xf32>
    %c96 = arith.constant 96 : index
    %c0_206 = arith.constant 0 : index
    %428 = vector.load %arg12[%c96, %c0_206] : memref<160x128xf32, #tpu.memory_space<vmem>>, vector<32x128xf32>
    %c128 = arith.constant 128 : index
    %c0_207 = arith.constant 0 : index
    %429 = vector.load %arg12[%c128, %c0_207] : memref<160x128xf32, #tpu.memory_space<vmem>>, vector<32x128xf32>
    %c1_208 = arith.constant 1 : index
    %c0_209 = arith.constant 0 : index
    %430 = vector.load %arg13[%c1_208, %c0_209] : memref<2x128xf32, #tpu.memory_space<vmem>>, vector<1x128xf32>
    %431 = arith.truncf %427 : vector<8x32xf32> to vector<8x32xbf16>
    %432 = arith.truncf %428 : vector<32x128xf32> to vector<32x128xbf16>
    %cst_210 = arith.constant dense<0.000000e+00> : vector<8x128xf32>
    %433 = tpu.matmul %431, %432, %cst_210 {dimension_numbers = #tpu.dot_dimension_numbers<[1], [0], [0], [1], [0, 0, 1, 1], [], []>} : vector<8x32xbf16>, vector<32x128xbf16>, vector<8x128xf32> -> vector<8x128xf32>
    %434 = vector.broadcast %430 : vector<1x128xf32> to vector<8x128xf32>
    %435 = arith.addf %433, %434 : vector<8x128xf32>
    %cst_211 = arith.constant 0.000000e+00 : f32
    %436 = vector.broadcast %cst_211 : f32 to vector<1x32xf32>
    %cst_212 = arith.constant 0.000000e+00 : f32
    %437 = vector.broadcast %cst_212 : f32 to vector<1x32xf32>
    %438 = vector.extract_strided_slice %435 {offsets = [0, 0], sizes = [1, 128], strides = [1, 1]} : vector<8x128xf32> to vector<1x128xf32>
    %439 = vector.extract_strided_slice %435 {offsets = [7, 0], sizes = [1, 128], strides = [1, 1]} : vector<8x128xf32> to vector<1x128xf32>
    %440 = arith.select %144, %438, %439 : vector<1x128xi1>, vector<1x128xf32>
    %cst_213 = arith.constant dense<0.000000e+00> : vector<1x128xf32>
    %441 = tpu.matmul %436, %429, %cst_213 {dimension_numbers = #tpu.dot_dimension_numbers<[1], [0], [0], [1], [0, 0, 1, 1], [], []>} : vector<1x32xf32>, vector<32x128xf32>, vector<1x128xf32> -> vector<1x128xf32>
    %442 = arith.addf %440, %441 : vector<1x128xf32>
    %443 = vector.extract_strided_slice %442 {offsets = [0, 0], sizes = [1, 32], strides = [1, 1]} : vector<1x128xf32> to vector<1x32xf32>
    %444 = arith.negf %443 : vector<1x32xf32>
    %445 = math.exp %444 : vector<1x32xf32>
    %cst_214 = arith.constant 1.000000e+00 : f32
    %446 = vector.broadcast %cst_214 : f32 to vector<1x32xf32>
    %447 = arith.addf %446, %445 : vector<1x32xf32>
    %448 = arith.divf %446, %447 : vector<1x32xf32>
    %449 = vector.extract_strided_slice %442 {offsets = [0, 32], sizes = [1, 32], strides = [1, 1]} : vector<1x128xf32> to vector<1x32xf32>
    %450 = arith.negf %449 : vector<1x32xf32>
    %451 = math.exp %450 : vector<1x32xf32>
    %cst_215 = arith.constant 1.000000e+00 : f32
    %452 = vector.broadcast %cst_215 : f32 to vector<1x32xf32>
    %453 = arith.addf %452, %451 : vector<1x32xf32>
    %454 = arith.divf %452, %453 : vector<1x32xf32>
    %455 = vector.extract_strided_slice %442 {offsets = [0, 64], sizes = [1, 32], strides = [1, 1]} : vector<1x128xf32> to vector<1x32xf32>
    %456 = math.tanh %455 : vector<1x32xf32>
    %457 = vector.extract_strided_slice %442 {offsets = [0, 96], sizes = [1, 32], strides = [1, 1]} : vector<1x128xf32> to vector<1x32xf32>
    %458 = arith.negf %457 : vector<1x32xf32>
    %459 = math.exp %458 : vector<1x32xf32>
    %cst_216 = arith.constant 1.000000e+00 : f32
    %460 = vector.broadcast %cst_216 : f32 to vector<1x32xf32>
    %461 = arith.addf %460, %459 : vector<1x32xf32>
    %462 = arith.divf %460, %461 : vector<1x32xf32>
    %463 = arith.mulf %454, %437 : vector<1x32xf32>
    %464 = arith.mulf %448, %456 : vector<1x32xf32>
    %465 = arith.addf %463, %464 : vector<1x32xf32>
    %466 = math.tanh %465 : vector<1x32xf32>
    %467 = arith.mulf %462, %466 : vector<1x32xf32>
    %468 = vector.extract_strided_slice %467 {offsets = [0, 0], sizes = [1, 16], strides = [1, 1]} : vector<1x32xf32> to vector<1x16xf32>
    %c0_217 = arith.constant 0 : index
    %c0_218 = arith.constant 0 : index
    %469 = vector.load %arg26[%c0_217, %c0_218] : memref<8x32xf32, #tpu.memory_space<vmem>>, vector<1x16xf32>
    tpu.vector_store %arg26[%c0_217, %c0_218], %468 {strides = array<i32>} : memref<8x32xf32, #tpu.memory_space<vmem>>, vector<1x16xf32>,
    %470 = vector.extract_strided_slice %467 {offsets = [0, 16], sizes = [1, 16], strides = [1, 1]} : vector<1x32xf32> to vector<1x16xf32>
    %c7_219 = arith.constant 7 : index
    %c16_220 = arith.constant 16 : index
    %471 = vector.load %arg26[%c7_219, %c16_220] : memref<8x32xf32, #tpu.memory_space<vmem>>, vector<1x16xf32>
    tpu.vector_store %arg26[%c7_219, %c16_220], %470 {strides = array<i32>} : memref<8x32xf32, #tpu.memory_space<vmem>>, vector<1x16xf32>,
    %472 = vector.extract_strided_slice %435 {offsets = [1, 0], sizes = [1, 128], strides = [1, 1]} : vector<8x128xf32> to vector<1x128xf32>
    %473 = vector.extract_strided_slice %435 {offsets = [6, 0], sizes = [1, 128], strides = [1, 1]} : vector<8x128xf32> to vector<1x128xf32>
    %474 = arith.select %144, %472, %473 : vector<1x128xi1>, vector<1x128xf32>
    %cst_221 = arith.constant dense<0.000000e+00> : vector<1x128xf32>
    %475 = tpu.matmul %467, %429, %cst_221 {dimension_numbers = #tpu.dot_dimension_numbers<[1], [0], [0], [1], [0, 0, 1, 1], [], []>} : vector<1x32xf32>, vector<32x128xf32>, vector<1x128xf32> -> vector<1x128xf32>
    %476 = arith.addf %474, %475 : vector<1x128xf32>
    %477 = vector.extract_strided_slice %476 {offsets = [0, 0], sizes = [1, 32], strides = [1, 1]} : vector<1x128xf32> to vector<1x32xf32>
    %478 = arith.negf %477 : vector<1x32xf32>
    %479 = math.exp %478 : vector<1x32xf32>
    %cst_222 = arith.constant 1.000000e+00 : f32
    %480 = vector.broadcast %cst_222 : f32 to vector<1x32xf32>
    %481 = arith.addf %480, %479 : vector<1x32xf32>
    %482 = arith.divf %480, %481 : vector<1x32xf32>
    %483 = vector.extract_strided_slice %476 {offsets = [0, 32], sizes = [1, 32], strides = [1, 1]} : vector<1x128xf32> to vector<1x32xf32>
    %484 = arith.negf %483 : vector<1x32xf32>
    %485 = math.exp %484 : vector<1x32xf32>
    %cst_223 = arith.constant 1.000000e+00 : f32
    %486 = vector.broadcast %cst_223 : f32 to vector<1x32xf32>
    %487 = arith.addf %486, %485 : vector<1x32xf32>
    %488 = arith.divf %486, %487 : vector<1x32xf32>
    %489 = vector.extract_strided_slice %476 {offsets = [0, 64], sizes = [1, 32], strides = [1, 1]} : vector<1x128xf32> to vector<1x32xf32>
    %490 = math.tanh %489 : vector<1x32xf32>
    %491 = vector.extract_strided_slice %476 {offsets = [0, 96], sizes = [1, 32], strides = [1, 1]} : vector<1x128xf32> to vector<1x32xf32>
    %492 = arith.negf %491 : vector<1x32xf32>
    %493 = math.exp %492 : vector<1x32xf32>
    %cst_224 = arith.constant 1.000000e+00 : f32
    %494 = vector.broadcast %cst_224 : f32 to vector<1x32xf32>
    %495 = arith.addf %494, %493 : vector<1x32xf32>
    %496 = arith.divf %494, %495 : vector<1x32xf32>
    %497 = arith.mulf %488, %465 : vector<1x32xf32>
    %498 = arith.mulf %482, %490 : vector<1x32xf32>
    %499 = arith.addf %497, %498 : vector<1x32xf32>
    %500 = math.tanh %499 : vector<1x32xf32>
    %501 = arith.mulf %496, %500 : vector<1x32xf32>
    %502 = vector.extract_strided_slice %501 {offsets = [0, 0], sizes = [1, 16], strides = [1, 1]} : vector<1x32xf32> to vector<1x16xf32>
    %c1_225 = arith.constant 1 : index
    %c0_226 = arith.constant 0 : index
    %503 = vector.load %arg26[%c1_225, %c0_226] : memref<8x32xf32, #tpu.memory_space<vmem>>, vector<1x16xf32>
    tpu.vector_store %arg26[%c1_225, %c0_226], %502 {strides = array<i32>} : memref<8x32xf32, #tpu.memory_space<vmem>>, vector<1x16xf32>,
    %504 = vector.extract_strided_slice %501 {offsets = [0, 16], sizes = [1, 16], strides = [1, 1]} : vector<1x32xf32> to vector<1x16xf32>
    %c6_227 = arith.constant 6 : index
    %c16_228 = arith.constant 16 : index
    %505 = vector.load %arg26[%c6_227, %c16_228] : memref<8x32xf32, #tpu.memory_space<vmem>>, vector<1x16xf32>
    tpu.vector_store %arg26[%c6_227, %c16_228], %504 {strides = array<i32>} : memref<8x32xf32, #tpu.memory_space<vmem>>, vector<1x16xf32>,
    %506 = vector.extract_strided_slice %435 {offsets = [2, 0], sizes = [1, 128], strides = [1, 1]} : vector<8x128xf32> to vector<1x128xf32>
    %507 = vector.extract_strided_slice %435 {offsets = [5, 0], sizes = [1, 128], strides = [1, 1]} : vector<8x128xf32> to vector<1x128xf32>
    %508 = arith.select %144, %506, %507 : vector<1x128xi1>, vector<1x128xf32>
    %cst_229 = arith.constant dense<0.000000e+00> : vector<1x128xf32>
    %509 = tpu.matmul %501, %429, %cst_229 {dimension_numbers = #tpu.dot_dimension_numbers<[1], [0], [0], [1], [0, 0, 1, 1], [], []>} : vector<1x32xf32>, vector<32x128xf32>, vector<1x128xf32> -> vector<1x128xf32>
    %510 = arith.addf %508, %509 : vector<1x128xf32>
    %511 = vector.extract_strided_slice %510 {offsets = [0, 0], sizes = [1, 32], strides = [1, 1]} : vector<1x128xf32> to vector<1x32xf32>
    %512 = arith.negf %511 : vector<1x32xf32>
    %513 = math.exp %512 : vector<1x32xf32>
    %cst_230 = arith.constant 1.000000e+00 : f32
    %514 = vector.broadcast %cst_230 : f32 to vector<1x32xf32>
    %515 = arith.addf %514, %513 : vector<1x32xf32>
    %516 = arith.divf %514, %515 : vector<1x32xf32>
    %517 = vector.extract_strided_slice %510 {offsets = [0, 32], sizes = [1, 32], strides = [1, 1]} : vector<1x128xf32> to vector<1x32xf32>
    %518 = arith.negf %517 : vector<1x32xf32>
    %519 = math.exp %518 : vector<1x32xf32>
    %cst_231 = arith.constant 1.000000e+00 : f32
    %520 = vector.broadcast %cst_231 : f32 to vector<1x32xf32>
    %521 = arith.addf %520, %519 : vector<1x32xf32>
    %522 = arith.divf %520, %521 : vector<1x32xf32>
    %523 = vector.extract_strided_slice %510 {offsets = [0, 64], sizes = [1, 32], strides = [1, 1]} : vector<1x128xf32> to vector<1x32xf32>
    %524 = math.tanh %523 : vector<1x32xf32>
    %525 = vector.extract_strided_slice %510 {offsets = [0, 96], sizes = [1, 32], strides = [1, 1]} : vector<1x128xf32> to vector<1x32xf32>
    %526 = arith.negf %525 : vector<1x32xf32>
    %527 = math.exp %526 : vector<1x32xf32>
    %cst_232 = arith.constant 1.000000e+00 : f32
    %528 = vector.broadcast %cst_232 : f32 to vector<1x32xf32>
    %529 = arith.addf %528, %527 : vector<1x32xf32>
    %530 = arith.divf %528, %529 : vector<1x32xf32>
    %531 = arith.mulf %522, %499 : vector<1x32xf32>
    %532 = arith.mulf %516, %524 : vector<1x32xf32>
    %533 = arith.addf %531, %532 : vector<1x32xf32>
    %534 = math.tanh %533 : vector<1x32xf32>
    %535 = arith.mulf %530, %534 : vector<1x32xf32>
    %536 = vector.extract_strided_slice %535 {offsets = [0, 0], sizes = [1, 16], strides = [1, 1]} : vector<1x32xf32> to vector<1x16xf32>
    %c2_233 = arith.constant 2 : index
    %c0_234 = arith.constant 0 : index
    %537 = vector.load %arg26[%c2_233, %c0_234] : memref<8x32xf32, #tpu.memory_space<vmem>>, vector<1x16xf32>
    tpu.vector_store %arg26[%c2_233, %c0_234], %536 {strides = array<i32>} : memref<8x32xf32, #tpu.memory_space<vmem>>, vector<1x16xf32>,
    %538 = vector.extract_strided_slice %535 {offsets = [0, 16], sizes = [1, 16], strides = [1, 1]} : vector<1x32xf32> to vector<1x16xf32>
    %c5_235 = arith.constant 5 : index
    %c16_236 = arith.constant 16 : index
    %539 = vector.load %arg26[%c5_235, %c16_236] : memref<8x32xf32, #tpu.memory_space<vmem>>, vector<1x16xf32>
    tpu.vector_store %arg26[%c5_235, %c16_236], %538 {strides = array<i32>} : memref<8x32xf32, #tpu.memory_space<vmem>>, vector<1x16xf32>,
    %540 = vector.extract_strided_slice %435 {offsets = [3, 0], sizes = [1, 128], strides = [1, 1]} : vector<8x128xf32> to vector<1x128xf32>
    %541 = vector.extract_strided_slice %435 {offsets = [4, 0], sizes = [1, 128], strides = [1, 1]} : vector<8x128xf32> to vector<1x128xf32>
    %542 = arith.select %144, %540, %541 : vector<1x128xi1>, vector<1x128xf32>
    %cst_237 = arith.constant dense<0.000000e+00> : vector<1x128xf32>
    %543 = tpu.matmul %535, %429, %cst_237 {dimension_numbers = #tpu.dot_dimension_numbers<[1], [0], [0], [1], [0, 0, 1, 1], [], []>} : vector<1x32xf32>, vector<32x128xf32>, vector<1x128xf32> -> vector<1x128xf32>
    %544 = arith.addf %542, %543 : vector<1x128xf32>
    %545 = vector.extract_strided_slice %544 {offsets = [0, 0], sizes = [1, 32], strides = [1, 1]} : vector<1x128xf32> to vector<1x32xf32>
    %546 = arith.negf %545 : vector<1x32xf32>
    %547 = math.exp %546 : vector<1x32xf32>
    %cst_238 = arith.constant 1.000000e+00 : f32
    %548 = vector.broadcast %cst_238 : f32 to vector<1x32xf32>
    %549 = arith.addf %548, %547 : vector<1x32xf32>
    %550 = arith.divf %548, %549 : vector<1x32xf32>
    %551 = vector.extract_strided_slice %544 {offsets = [0, 32], sizes = [1, 32], strides = [1, 1]} : vector<1x128xf32> to vector<1x32xf32>
    %552 = arith.negf %551 : vector<1x32xf32>
    %553 = math.exp %552 : vector<1x32xf32>
    %cst_239 = arith.constant 1.000000e+00 : f32
    %554 = vector.broadcast %cst_239 : f32 to vector<1x32xf32>
    %555 = arith.addf %554, %553 : vector<1x32xf32>
    %556 = arith.divf %554, %555 : vector<1x32xf32>
    %557 = vector.extract_strided_slice %544 {offsets = [0, 64], sizes = [1, 32], strides = [1, 1]} : vector<1x128xf32> to vector<1x32xf32>
    %558 = math.tanh %557 : vector<1x32xf32>
    %559 = vector.extract_strided_slice %544 {offsets = [0, 96], sizes = [1, 32], strides = [1, 1]} : vector<1x128xf32> to vector<1x32xf32>
    %560 = arith.negf %559 : vector<1x32xf32>
    %561 = math.exp %560 : vector<1x32xf32>
    %cst_240 = arith.constant 1.000000e+00 : f32
    %562 = vector.broadcast %cst_240 : f32 to vector<1x32xf32>
    %563 = arith.addf %562, %561 : vector<1x32xf32>
    %564 = arith.divf %562, %563 : vector<1x32xf32>
    %565 = arith.mulf %556, %533 : vector<1x32xf32>
    %566 = arith.mulf %550, %558 : vector<1x32xf32>
    %567 = arith.addf %565, %566 : vector<1x32xf32>
    %568 = math.tanh %567 : vector<1x32xf32>
    %569 = arith.mulf %564, %568 : vector<1x32xf32>
    %570 = vector.extract_strided_slice %569 {offsets = [0, 0], sizes = [1, 16], strides = [1, 1]} : vector<1x32xf32> to vector<1x16xf32>
    %c3_241 = arith.constant 3 : index
    %c0_242 = arith.constant 0 : index
    %571 = vector.load %arg26[%c3_241, %c0_242] : memref<8x32xf32, #tpu.memory_space<vmem>>, vector<1x16xf32>
    tpu.vector_store %arg26[%c3_241, %c0_242], %570 {strides = array<i32>} : memref<8x32xf32, #tpu.memory_space<vmem>>, vector<1x16xf32>,
    %572 = vector.extract_strided_slice %569 {offsets = [0, 16], sizes = [1, 16], strides = [1, 1]} : vector<1x32xf32> to vector<1x16xf32>
    %c4_243 = arith.constant 4 : index
    %c16_244 = arith.constant 16 : index
    %573 = vector.load %arg26[%c4_243, %c16_244] : memref<8x32xf32, #tpu.memory_space<vmem>>, vector<1x16xf32>
    tpu.vector_store %arg26[%c4_243, %c16_244], %572 {strides = array<i32>} : memref<8x32xf32, #tpu.memory_space<vmem>>, vector<1x16xf32>,
    %574 = vector.extract_strided_slice %435 {offsets = [4, 0], sizes = [1, 128], strides = [1, 1]} : vector<8x128xf32> to vector<1x128xf32>
    %575 = vector.extract_strided_slice %435 {offsets = [3, 0], sizes = [1, 128], strides = [1, 1]} : vector<8x128xf32> to vector<1x128xf32>
    %576 = arith.select %144, %574, %575 : vector<1x128xi1>, vector<1x128xf32>
    %cst_245 = arith.constant dense<0.000000e+00> : vector<1x128xf32>
    %577 = tpu.matmul %569, %429, %cst_245 {dimension_numbers = #tpu.dot_dimension_numbers<[1], [0], [0], [1], [0, 0, 1, 1], [], []>} : vector<1x32xf32>, vector<32x128xf32>, vector<1x128xf32> -> vector<1x128xf32>
    %578 = arith.addf %576, %577 : vector<1x128xf32>
    %579 = vector.extract_strided_slice %578 {offsets = [0, 0], sizes = [1, 32], strides = [1, 1]} : vector<1x128xf32> to vector<1x32xf32>
    %580 = arith.negf %579 : vector<1x32xf32>
    %581 = math.exp %580 : vector<1x32xf32>
    %cst_246 = arith.constant 1.000000e+00 : f32
    %582 = vector.broadcast %cst_246 : f32 to vector<1x32xf32>
    %583 = arith.addf %582, %581 : vector<1x32xf32>
    %584 = arith.divf %582, %583 : vector<1x32xf32>
    %585 = vector.extract_strided_slice %578 {offsets = [0, 32], sizes = [1, 32], strides = [1, 1]} : vector<1x128xf32> to vector<1x32xf32>
    %586 = arith.negf %585 : vector<1x32xf32>
    %587 = math.exp %586 : vector<1x32xf32>
    %cst_247 = arith.constant 1.000000e+00 : f32
    %588 = vector.broadcast %cst_247 : f32 to vector<1x32xf32>
    %589 = arith.addf %588, %587 : vector<1x32xf32>
    %590 = arith.divf %588, %589 : vector<1x32xf32>
    %591 = vector.extract_strided_slice %578 {offsets = [0, 64], sizes = [1, 32], strides = [1, 1]} : vector<1x128xf32> to vector<1x32xf32>
    %592 = math.tanh %591 : vector<1x32xf32>
    %593 = vector.extract_strided_slice %578 {offsets = [0, 96], sizes = [1, 32], strides = [1, 1]} : vector<1x128xf32> to vector<1x32xf32>
    %594 = arith.negf %593 : vector<1x32xf32>
    %595 = math.exp %594 : vector<1x32xf32>
    %cst_248 = arith.constant 1.000000e+00 : f32
    %596 = vector.broadcast %cst_248 : f32 to vector<1x32xf32>
    %597 = arith.addf %596, %595 : vector<1x32xf32>
    %598 = arith.divf %596, %597 : vector<1x32xf32>
    %599 = arith.mulf %590, %567 : vector<1x32xf32>
    %600 = arith.mulf %584, %592 : vector<1x32xf32>
    %601 = arith.addf %599, %600 : vector<1x32xf32>
    %602 = math.tanh %601 : vector<1x32xf32>
    %603 = arith.mulf %598, %602 : vector<1x32xf32>
    %604 = vector.extract_strided_slice %603 {offsets = [0, 0], sizes = [1, 16], strides = [1, 1]} : vector<1x32xf32> to vector<1x16xf32>
    %c4_249 = arith.constant 4 : index
    %c0_250 = arith.constant 0 : index
    %605 = vector.load %arg26[%c4_249, %c0_250] : memref<8x32xf32, #tpu.memory_space<vmem>>, vector<1x16xf32>
    tpu.vector_store %arg26[%c4_249, %c0_250], %604 {strides = array<i32>} : memref<8x32xf32, #tpu.memory_space<vmem>>, vector<1x16xf32>,
    %606 = vector.extract_strided_slice %603 {offsets = [0, 16], sizes = [1, 16], strides = [1, 1]} : vector<1x32xf32> to vector<1x16xf32>
    %c3_251 = arith.constant 3 : index
    %c16_252 = arith.constant 16 : index
    %607 = vector.load %arg26[%c3_251, %c16_252] : memref<8x32xf32, #tpu.memory_space<vmem>>, vector<1x16xf32>
    tpu.vector_store %arg26[%c3_251, %c16_252], %606 {strides = array<i32>} : memref<8x32xf32, #tpu.memory_space<vmem>>, vector<1x16xf32>,
    %608 = vector.extract_strided_slice %435 {offsets = [5, 0], sizes = [1, 128], strides = [1, 1]} : vector<8x128xf32> to vector<1x128xf32>
    %609 = vector.extract_strided_slice %435 {offsets = [2, 0], sizes = [1, 128], strides = [1, 1]} : vector<8x128xf32> to vector<1x128xf32>
    %610 = arith.select %144, %608, %609 : vector<1x128xi1>, vector<1x128xf32>
    %cst_253 = arith.constant dense<0.000000e+00> : vector<1x128xf32>
    %611 = tpu.matmul %603, %429, %cst_253 {dimension_numbers = #tpu.dot_dimension_numbers<[1], [0], [0], [1], [0, 0, 1, 1], [], []>} : vector<1x32xf32>, vector<32x128xf32>, vector<1x128xf32> -> vector<1x128xf32>
    %612 = arith.addf %610, %611 : vector<1x128xf32>
    %613 = vector.extract_strided_slice %612 {offsets = [0, 0], sizes = [1, 32], strides = [1, 1]} : vector<1x128xf32> to vector<1x32xf32>
    %614 = arith.negf %613 : vector<1x32xf32>
    %615 = math.exp %614 : vector<1x32xf32>
    %cst_254 = arith.constant 1.000000e+00 : f32
    %616 = vector.broadcast %cst_254 : f32 to vector<1x32xf32>
    %617 = arith.addf %616, %615 : vector<1x32xf32>
    %618 = arith.divf %616, %617 : vector<1x32xf32>
    %619 = vector.extract_strided_slice %612 {offsets = [0, 32], sizes = [1, 32], strides = [1, 1]} : vector<1x128xf32> to vector<1x32xf32>
    %620 = arith.negf %619 : vector<1x32xf32>
    %621 = math.exp %620 : vector<1x32xf32>
    %cst_255 = arith.constant 1.000000e+00 : f32
    %622 = vector.broadcast %cst_255 : f32 to vector<1x32xf32>
    %623 = arith.addf %622, %621 : vector<1x32xf32>
    %624 = arith.divf %622, %623 : vector<1x32xf32>
    %625 = vector.extract_strided_slice %612 {offsets = [0, 64], sizes = [1, 32], strides = [1, 1]} : vector<1x128xf32> to vector<1x32xf32>
    %626 = math.tanh %625 : vector<1x32xf32>
    %627 = vector.extract_strided_slice %612 {offsets = [0, 96], sizes = [1, 32], strides = [1, 1]} : vector<1x128xf32> to vector<1x32xf32>
    %628 = arith.negf %627 : vector<1x32xf32>
    %629 = math.exp %628 : vector<1x32xf32>
    %cst_256 = arith.constant 1.000000e+00 : f32
    %630 = vector.broadcast %cst_256 : f32 to vector<1x32xf32>
    %631 = arith.addf %630, %629 : vector<1x32xf32>
    %632 = arith.divf %630, %631 : vector<1x32xf32>
    %633 = arith.mulf %624, %601 : vector<1x32xf32>
    %634 = arith.mulf %618, %626 : vector<1x32xf32>
    %635 = arith.addf %633, %634 : vector<1x32xf32>
    %636 = math.tanh %635 : vector<1x32xf32>
    %637 = arith.mulf %632, %636 : vector<1x32xf32>
    %638 = vector.extract_strided_slice %637 {offsets = [0, 0], sizes = [1, 16], strides = [1, 1]} : vector<1x32xf32> to vector<1x16xf32>
    %c5_257 = arith.constant 5 : index
    %c0_258 = arith.constant 0 : index
    %639 = vector.load %arg26[%c5_257, %c0_258] : memref<8x32xf32, #tpu.memory_space<vmem>>, vector<1x16xf32>
    tpu.vector_store %arg26[%c5_257, %c0_258], %638 {strides = array<i32>} : memref<8x32xf32, #tpu.memory_space<vmem>>, vector<1x16xf32>,
    %640 = vector.extract_strided_slice %637 {offsets = [0, 16], sizes = [1, 16], strides = [1, 1]} : vector<1x32xf32> to vector<1x16xf32>
    %c2_259 = arith.constant 2 : index
    %c16_260 = arith.constant 16 : index
    %641 = vector.load %arg26[%c2_259, %c16_260] : memref<8x32xf32, #tpu.memory_space<vmem>>, vector<1x16xf32>
    tpu.vector_store %arg26[%c2_259, %c16_260], %640 {strides = array<i32>} : memref<8x32xf32, #tpu.memory_space<vmem>>, vector<1x16xf32>,
    %642 = vector.extract_strided_slice %435 {offsets = [6, 0], sizes = [1, 128], strides = [1, 1]} : vector<8x128xf32> to vector<1x128xf32>
    %643 = vector.extract_strided_slice %435 {offsets = [1, 0], sizes = [1, 128], strides = [1, 1]} : vector<8x128xf32> to vector<1x128xf32>
    %644 = arith.select %144, %642, %643 : vector<1x128xi1>, vector<1x128xf32>
    %cst_261 = arith.constant dense<0.000000e+00> : vector<1x128xf32>
    %645 = tpu.matmul %637, %429, %cst_261 {dimension_numbers = #tpu.dot_dimension_numbers<[1], [0], [0], [1], [0, 0, 1, 1], [], []>} : vector<1x32xf32>, vector<32x128xf32>, vector<1x128xf32> -> vector<1x128xf32>
    %646 = arith.addf %644, %645 : vector<1x128xf32>
    %647 = vector.extract_strided_slice %646 {offsets = [0, 0], sizes = [1, 32], strides = [1, 1]} : vector<1x128xf32> to vector<1x32xf32>
    %648 = arith.negf %647 : vector<1x32xf32>
    %649 = math.exp %648 : vector<1x32xf32>
    %cst_262 = arith.constant 1.000000e+00 : f32
    %650 = vector.broadcast %cst_262 : f32 to vector<1x32xf32>
    %651 = arith.addf %650, %649 : vector<1x32xf32>
    %652 = arith.divf %650, %651 : vector<1x32xf32>
    %653 = vector.extract_strided_slice %646 {offsets = [0, 32], sizes = [1, 32], strides = [1, 1]} : vector<1x128xf32> to vector<1x32xf32>
    %654 = arith.negf %653 : vector<1x32xf32>
    %655 = math.exp %654 : vector<1x32xf32>
    %cst_263 = arith.constant 1.000000e+00 : f32
    %656 = vector.broadcast %cst_263 : f32 to vector<1x32xf32>
    %657 = arith.addf %656, %655 : vector<1x32xf32>
    %658 = arith.divf %656, %657 : vector<1x32xf32>
    %659 = vector.extract_strided_slice %646 {offsets = [0, 64], sizes = [1, 32], strides = [1, 1]} : vector<1x128xf32> to vector<1x32xf32>
    %660 = math.tanh %659 : vector<1x32xf32>
    %661 = vector.extract_strided_slice %646 {offsets = [0, 96], sizes = [1, 32], strides = [1, 1]} : vector<1x128xf32> to vector<1x32xf32>
    %662 = arith.negf %661 : vector<1x32xf32>
    %663 = math.exp %662 : vector<1x32xf32>
    %cst_264 = arith.constant 1.000000e+00 : f32
    %664 = vector.broadcast %cst_264 : f32 to vector<1x32xf32>
    %665 = arith.addf %664, %663 : vector<1x32xf32>
    %666 = arith.divf %664, %665 : vector<1x32xf32>
    %667 = arith.mulf %658, %635 : vector<1x32xf32>
    %668 = arith.mulf %652, %660 : vector<1x32xf32>
    %669 = arith.addf %667, %668 : vector<1x32xf32>
    %670 = math.tanh %669 : vector<1x32xf32>
    %671 = arith.mulf %666, %670 : vector<1x32xf32>
    %672 = vector.extract_strided_slice %671 {offsets = [0, 0], sizes = [1, 16], strides = [1, 1]} : vector<1x32xf32> to vector<1x16xf32>
    %c6_265 = arith.constant 6 : index
    %c0_266 = arith.constant 0 : index
    %673 = vector.load %arg26[%c6_265, %c0_266] : memref<8x32xf32, #tpu.memory_space<vmem>>, vector<1x16xf32>
    tpu.vector_store %arg26[%c6_265, %c0_266], %672 {strides = array<i32>} : memref<8x32xf32, #tpu.memory_space<vmem>>, vector<1x16xf32>,
    %674 = vector.extract_strided_slice %671 {offsets = [0, 16], sizes = [1, 16], strides = [1, 1]} : vector<1x32xf32> to vector<1x16xf32>
    %c1_267 = arith.constant 1 : index
    %c16_268 = arith.constant 16 : index
    %675 = vector.load %arg26[%c1_267, %c16_268] : memref<8x32xf32, #tpu.memory_space<vmem>>, vector<1x16xf32>
    tpu.vector_store %arg26[%c1_267, %c16_268], %674 {strides = array<i32>} : memref<8x32xf32, #tpu.memory_space<vmem>>, vector<1x16xf32>,
    %676 = vector.extract_strided_slice %435 {offsets = [7, 0], sizes = [1, 128], strides = [1, 1]} : vector<8x128xf32> to vector<1x128xf32>
    %677 = vector.extract_strided_slice %435 {offsets = [0, 0], sizes = [1, 128], strides = [1, 1]} : vector<8x128xf32> to vector<1x128xf32>
    %678 = arith.select %144, %676, %677 : vector<1x128xi1>, vector<1x128xf32>
    %cst_269 = arith.constant dense<0.000000e+00> : vector<1x128xf32>
    %679 = tpu.matmul %671, %429, %cst_269 {dimension_numbers = #tpu.dot_dimension_numbers<[1], [0], [0], [1], [0, 0, 1, 1], [], []>} : vector<1x32xf32>, vector<32x128xf32>, vector<1x128xf32> -> vector<1x128xf32>
    %680 = arith.addf %678, %679 : vector<1x128xf32>
    %681 = vector.extract_strided_slice %680 {offsets = [0, 0], sizes = [1, 32], strides = [1, 1]} : vector<1x128xf32> to vector<1x32xf32>
    %682 = arith.negf %681 : vector<1x32xf32>
    %683 = math.exp %682 : vector<1x32xf32>
    %cst_270 = arith.constant 1.000000e+00 : f32
    %684 = vector.broadcast %cst_270 : f32 to vector<1x32xf32>
    %685 = arith.addf %684, %683 : vector<1x32xf32>
    %686 = arith.divf %684, %685 : vector<1x32xf32>
    %687 = vector.extract_strided_slice %680 {offsets = [0, 32], sizes = [1, 32], strides = [1, 1]} : vector<1x128xf32> to vector<1x32xf32>
    %688 = arith.negf %687 : vector<1x32xf32>
    %689 = math.exp %688 : vector<1x32xf32>
    %cst_271 = arith.constant 1.000000e+00 : f32
    %690 = vector.broadcast %cst_271 : f32 to vector<1x32xf32>
    %691 = arith.addf %690, %689 : vector<1x32xf32>
    %692 = arith.divf %690, %691 : vector<1x32xf32>
    %693 = vector.extract_strided_slice %680 {offsets = [0, 64], sizes = [1, 32], strides = [1, 1]} : vector<1x128xf32> to vector<1x32xf32>
    %694 = math.tanh %693 : vector<1x32xf32>
    %695 = vector.extract_strided_slice %680 {offsets = [0, 96], sizes = [1, 32], strides = [1, 1]} : vector<1x128xf32> to vector<1x32xf32>
    %696 = arith.negf %695 : vector<1x32xf32>
    %697 = math.exp %696 : vector<1x32xf32>
    %cst_272 = arith.constant 1.000000e+00 : f32
    %698 = vector.broadcast %cst_272 : f32 to vector<1x32xf32>
    %699 = arith.addf %698, %697 : vector<1x32xf32>
    %700 = arith.divf %698, %699 : vector<1x32xf32>
    %701 = arith.mulf %692, %669 : vector<1x32xf32>
    %702 = arith.mulf %686, %694 : vector<1x32xf32>
    %703 = arith.addf %701, %702 : vector<1x32xf32>
    %704 = math.tanh %703 : vector<1x32xf32>
    %705 = arith.mulf %700, %704 : vector<1x32xf32>
    %706 = vector.extract_strided_slice %705 {offsets = [0, 0], sizes = [1, 16], strides = [1, 1]} : vector<1x32xf32> to vector<1x16xf32>
    %c7_273 = arith.constant 7 : index
    %c0_274 = arith.constant 0 : index
    %707 = vector.load %arg26[%c7_273, %c0_274] : memref<8x32xf32, #tpu.memory_space<vmem>>, vector<1x16xf32>
    tpu.vector_store %arg26[%c7_273, %c0_274], %706 {strides = array<i32>} : memref<8x32xf32, #tpu.memory_space<vmem>>, vector<1x16xf32>,
    %708 = vector.extract_strided_slice %705 {offsets = [0, 16], sizes = [1, 16], strides = [1, 1]} : vector<1x32xf32> to vector<1x16xf32>
    %c0_275 = arith.constant 0 : index
    %c16_276 = arith.constant 16 : index
    %709 = vector.load %arg26[%c0_275, %c16_276] : memref<8x32xf32, #tpu.memory_space<vmem>>, vector<1x16xf32>
    tpu.vector_store %arg26[%c0_275, %c16_276], %708 {strides = array<i32>} : memref<8x32xf32, #tpu.memory_space<vmem>>, vector<1x16xf32>,
    %c0_277 = arith.constant 0 : index
    %c0_278 = arith.constant 0 : index
    %710 = vector.load %arg26[%c0_277, %c0_278] : memref<8x32xf32, #tpu.memory_space<vmem>>, vector<8x32xf32>
    %c0_279 = arith.constant 0 : index
    %c0_280 = arith.constant 0 : index
    %711 = vector.load %arg14[%c0_279, %c0_280] : memref<160x32xf32, #tpu.memory_space<vmem>>, vector<32x32xf32>
    %c32 = arith.constant 32 : index
    %c0_281 = arith.constant 0 : index
    %712 = vector.load %arg14[%c32, %c0_281] : memref<160x32xf32, #tpu.memory_space<vmem>>, vector<32x32xf32>
    %c64_282 = arith.constant 64 : index
    %c0_283 = arith.constant 0 : index
    %713 = vector.load %arg14[%c64_282, %c0_283] : memref<160x32xf32, #tpu.memory_space<vmem>>, vector<32x32xf32>
    %c96_284 = arith.constant 96 : index
    %c0_285 = arith.constant 0 : index
    %714 = vector.load %arg14[%c96_284, %c0_285] : memref<160x32xf32, #tpu.memory_space<vmem>>, vector<32x32xf32>
    %c128_286 = arith.constant 128 : index
    %c0_287 = arith.constant 0 : index
    %715 = vector.load %arg14[%c128_286, %c0_287] : memref<160x32xf32, #tpu.memory_space<vmem>>, vector<32x32xf32>
    %c0_288 = arith.constant 0 : index
    %c0_289 = arith.constant 0 : index
    %716 = vector.load %arg15[%c0_288, %c0_289] : memref<8x32xf32, #tpu.memory_space<vmem>>, vector<1x32xf32>
    %c1_290 = arith.constant 1 : index
    %c0_291 = arith.constant 0 : index
    %717 = vector.load %arg15[%c1_290, %c0_291] : memref<8x32xf32, #tpu.memory_space<vmem>>, vector<1x32xf32>
    %c2_292 = arith.constant 2 : index
    %c0_293 = arith.constant 0 : index
    %718 = vector.load %arg15[%c2_292, %c0_293] : memref<8x32xf32, #tpu.memory_space<vmem>>, vector<1x32xf32>
    %c3_294 = arith.constant 3 : index
    %c0_295 = arith.constant 0 : index
    %719 = vector.load %arg15[%c3_294, %c0_295] : memref<8x32xf32, #tpu.memory_space<vmem>>, vector<1x32xf32>
    %c4_296 = arith.constant 4 : index
    %c0_297 = arith.constant 0 : index
    %720 = vector.load %arg15[%c4_296, %c0_297] : memref<8x32xf32, #tpu.memory_space<vmem>>, vector<1x32xf32>
    %721 = vector.extract_strided_slice %710 {offsets = [7, 0], sizes = [1, 32], strides = [1, 1]} : vector<8x32xf32> to vector<1x32xf32>
    %cst_298 = arith.constant dense<0.000000e+00> : vector<1x32xf32>
    %722 = tpu.matmul %721, %711, %cst_298 {dimension_numbers = #tpu.dot_dimension_numbers<[1], [0], [0], [1], [0, 0, 1, 1], [], []>} : vector<1x32xf32>, vector<32x32xf32>, vector<1x32xf32> -> vector<1x32xf32>
    %723 = arith.addf %722, %716 : vector<1x32xf32>
    %cst_299 = arith.constant dense<0.000000e+00> : vector<8x32xf32>
    %724 = tpu.matmul %710, %712, %cst_299 {dimension_numbers = #tpu.dot_dimension_numbers<[1], [0], [0], [1], [0, 0, 1, 1], [], []>} : vector<8x32xf32>, vector<32x32xf32>, vector<8x32xf32> -> vector<8x32xf32>
    %725 = vector.broadcast %723 : vector<1x32xf32> to vector<8x32xf32>
    %726 = arith.addf %724, %725 : vector<8x32xf32>
    %727 = math.tanh %726 : vector<8x32xf32>
    %728 = vector.broadcast %717 : vector<1x32xf32> to vector<8x32xf32>
    %729 = arith.mulf %727, %728 : vector<8x32xf32>
    %cst_300 = arith.constant dense<0.000000e+00> : vector<8xf32>
    %730 = vector.multi_reduction <add>, %729, %cst_300 [1] : vector<8x32xf32> to vector<8xf32>
    %731 = vector.shape_cast %730 : vector<8xf32> to vector<8x1xf32>
    %cst_301 = arith.constant dense<0xFF800000> : vector<1xf32>
    %732 = vector.multi_reduction <maximumf>, %731, %cst_301 [0] : vector<8x1xf32> to vector<1xf32>
    %733 = vector.shape_cast %732 : vector<1xf32> to vector<1x1xf32>
    %734 = vector.broadcast %733 : vector<1x1xf32> to vector<8x1xf32>
    %735 = arith.subf %731, %734 : vector<8x1xf32>
    %736 = math.exp %735 : vector<8x1xf32>
    %cst_302 = arith.constant dense<0.000000e+00> : vector<1xf32>
    %737 = vector.multi_reduction <add>, %736, %cst_302 [0] : vector<8x1xf32> to vector<1xf32>
    %738 = vector.shape_cast %737 : vector<1xf32> to vector<1x1xf32>
    %739 = vector.broadcast %738 : vector<1x1xf32> to vector<8x1xf32>
    %740 = arith.divf %736, %739 : vector<8x1xf32>
    %741 = vector.broadcast %740 : vector<8x1xf32> to vector<8x32xf32>
    %742 = arith.mulf %741, %710 : vector<8x32xf32>
    %cst_303 = arith.constant dense<0.000000e+00> : vector<32xf32>
    %743 = vector.multi_reduction <add>, %742, %cst_303 [0] : vector<8x32xf32> to vector<32xf32>
    %744 = vector.shape_cast %743 : vector<32xf32> to vector<1x32xf32>
    %cst_304 = arith.constant dense<0.000000e+00> : vector<1x32xf32>
    %745 = tpu.matmul %744, %713, %cst_304 {dimension_numbers = #tpu.dot_dimension_numbers<[1], [0], [0], [1], [0, 0, 1, 1], [], []>} : vector<1x32xf32>, vector<32x32xf32>, vector<1x32xf32> -> vector<1x32xf32>
    %746 = arith.addf %745, %718 : vector<1x32xf32>
    %cst_305 = arith.constant 0.000000e+00 : f32
    %747 = vector.broadcast %cst_305 : f32 to vector<1x32xf32>
    %748 = arith.cmpf ogt, %746, %747 : vector<1x32xf32>
    %cst_306 = arith.constant 1.000000e-01 : f32
    %749 = vector.broadcast %cst_306 : f32 to vector<1x32xf32>
    %750 = arith.mulf %749, %746 : vector<1x32xf32>
    %751 = arith.select %748, %746, %750 : vector<1x32xi1>, vector<1x32xf32>
    %cst_307 = arith.constant dense<0.000000e+00> : vector<1x32xf32>
    %752 = tpu.matmul %751, %714, %cst_307 {dimension_numbers = #tpu.dot_dimension_numbers<[1], [0], [0], [1], [0, 0, 1, 1], [], []>} : vector<1x32xf32>, vector<32x32xf32>, vector<1x32xf32> -> vector<1x32xf32>
    %753 = arith.addf %752, %719 : vector<1x32xf32>
    %cst_308 = arith.constant 0.000000e+00 : f32
    %754 = vector.broadcast %cst_308 : f32 to vector<1x32xf32>
    %755 = arith.maximumf %753, %754 : vector<1x32xf32>
    %cst_309 = arith.constant dense<0.000000e+00> : vector<1x32xf32>
    %756 = tpu.matmul %755, %715, %cst_309 {dimension_numbers = #tpu.dot_dimension_numbers<[1], [0], [0], [1], [0, 0, 1, 1], [], []>} : vector<1x32xf32>, vector<32x32xf32>, vector<1x32xf32> -> vector<1x32xf32>
    %757 = arith.addf %756, %720 : vector<1x32xf32>
    %c0_310 = arith.constant 0 : index
    %c0_311 = arith.constant 0 : index
    %c0_312 = arith.constant 0 : index
    %758 = vector.load %arg16[%c0_310, %c0_311, %c0_312] : memref<1x1x32xf32, #tpu.memory_space<vmem>>, vector<1x1x32xf32>
    %759 = vector.shape_cast %758 : vector<1x1x32xf32> to vector<1x32xf32>
    %760 = vector.shape_cast %751 : vector<1x32xf32> to vector<1x1x32xf32>
    tpu.vector_store %arg16[%c0_310, %c0_311, %c0_312], %760 {strides = array<i32>} : memref<1x1x32xf32, #tpu.memory_space<vmem>>, vector<1x1x32xf32>,
    %761 = vector.extract_strided_slice %757 {offsets = [0, 0], sizes = [1, 16], strides = [1, 1]} : vector<1x32xf32> to vector<1x16xf32>
    %c0_313 = arith.constant 0 : index
    %c0_314 = arith.constant 0 : index
    %c0_315 = arith.constant 0 : index
    %762 = vector.load %arg17[%c0_313, %c0_314, %c0_315] : memref<1x1x16xf32, #tpu.memory_space<vmem>>, vector<1x1x16xf32>
    %763 = vector.shape_cast %762 : vector<1x1x16xf32> to vector<1x16xf32>
    %764 = vector.shape_cast %761 : vector<1x16xf32> to vector<1x1x16xf32>
    tpu.vector_store %arg17[%c0_313, %c0_314, %c0_315], %764 {strides = array<i32>} : memref<1x1x16xf32, #tpu.memory_space<vmem>>, vector<1x1x16xf32>,
    %c0_316 = arith.constant 0 : index
    %c0_317 = arith.constant 0 : index
    %c0_318 = arith.constant 0 : index
    %765 = vector.load %arg18[%c0_316, %c0_317, %c0_318] : memref<1x8x1xf32, #tpu.memory_space<vmem>>, vector<1x8x1xf32>
    %766 = vector.shape_cast %765 : vector<1x8x1xf32> to vector<8x1xf32>
    %767 = vector.shape_cast %740 : vector<8x1xf32> to vector<1x8x1xf32>
    tpu.vector_store %arg18[%c0_316, %c0_317, %c0_318], %767 {strides = array<i32>} : memref<1x8x1xf32, #tpu.memory_space<vmem>>, vector<1x8x1xf32>,
    return
  }
  func.func @transform_0(%arg0: i32) -> (i32, i32, i32) {
    %c0_i32 = arith.constant 0 : i32
    %c0_i32_0 = arith.constant 0 : i32
    %c0_i32_1 = arith.constant 0 : i32
    return %arg0, %c0_i32, %c0_i32_0 : i32, i32, i32
  }
  func.func @transform_1(%arg0: i32) -> (i32, i32) {
    %c0_i32 = arith.constant 0 : i32
    %c0_i32_0 = arith.constant 0 : i32
    %c0_i32_1 = arith.constant 0 : i32
    return %c0_i32, %c0_i32_0 : i32, i32
  }
  func.func @transform_2(%arg0: i32) -> (i32, i32) {
    %c0_i32 = arith.constant 0 : i32
    %c0_i32_0 = arith.constant 0 : i32
    %c0_i32_1 = arith.constant 0 : i32
    return %c0_i32, %c0_i32_0 : i32, i32
  }
  func.func @transform_3(%arg0: i32) -> (i32, i32) {
    %c0_i32 = arith.constant 0 : i32
    %c0_i32_0 = arith.constant 0 : i32
    %c0_i32_1 = arith.constant 0 : i32
    return %c0_i32, %c0_i32_0 : i32, i32
  }
  func.func @transform_4(%arg0: i32) -> (i32, i32) {
    %c0_i32 = arith.constant 0 : i32
    %c0_i32_0 = arith.constant 0 : i32
    %c0_i32_1 = arith.constant 0 : i32
    return %c0_i32, %c0_i32_0 : i32, i32
  }
  func.func @transform_5(%arg0: i32) -> (i32, i32) {
    %c0_i32 = arith.constant 0 : i32
    %c0_i32_0 = arith.constant 0 : i32
    %c0_i32_1 = arith.constant 0 : i32
    return %c0_i32, %c0_i32_0 : i32, i32
  }
  func.func @transform_6(%arg0: i32) -> (i32, i32) {
    %c0_i32 = arith.constant 0 : i32
    %c0_i32_0 = arith.constant 0 : i32
    %c0_i32_1 = arith.constant 0 : i32
    return %c0_i32, %c0_i32_0 : i32, i32
  }
  func.func @transform_7(%arg0: i32) -> (i32, i32) {
    %c0_i32 = arith.constant 0 : i32
    %c0_i32_0 = arith.constant 0 : i32
    %c0_i32_1 = arith.constant 0 : i32
    return %c0_i32, %c0_i32_0 : i32, i32
  }
  func.func @transform_8(%arg0: i32) -> (i32, i32) {
    %c0_i32 = arith.constant 0 : i32
    %c0_i32_0 = arith.constant 0 : i32
    %c0_i32_1 = arith.constant 0 : i32
    return %c0_i32, %c0_i32_0 : i32, i32
  }
  func.func @transform_9(%arg0: i32) -> (i32, i32) {
    %c0_i32 = arith.constant 0 : i32
    %c0_i32_0 = arith.constant 0 : i32
    %c0_i32_1 = arith.constant 0 : i32
    return %c0_i32, %c0_i32_0 : i32, i32
  }
  func.func @transform_10(%arg0: i32) -> (i32, i32) {
    %c0_i32 = arith.constant 0 : i32
    %c0_i32_0 = arith.constant 0 : i32
    %c0_i32_1 = arith.constant 0 : i32
    return %c0_i32, %c0_i32_0 : i32, i32
  }
  func.func @transform_11(%arg0: i32) -> (i32, i32) {
    %c0_i32 = arith.constant 0 : i32
    %c0_i32_0 = arith.constant 0 : i32
    %c0_i32_1 = arith.constant 0 : i32
    return %c0_i32, %c0_i32_0 : i32, i32
  }
  func.func @transform_12(%arg0: i32) -> (i32, i32) {
    %c0_i32 = arith.constant 0 : i32
    %c0_i32_0 = arith.constant 0 : i32
    %c0_i32_1 = arith.constant 0 : i32
    return %c0_i32, %c0_i32_0 : i32, i32
  }
  func.func @transform_13(%arg0: i32) -> (i32, i32) {
    %c0_i32 = arith.constant 0 : i32
    %c0_i32_0 = arith.constant 0 : i32
    %c0_i32_1 = arith.constant 0 : i32
    return %c0_i32, %c0_i32_0 : i32, i32
  }
  func.func @transform_14(%arg0: i32) -> (i32, i32) {
    %c0_i32 = arith.constant 0 : i32
    %c0_i32_0 = arith.constant 0 : i32
    %c0_i32_1 = arith.constant 0 : i32
    return %c0_i32, %c0_i32_0 : i32, i32
  }
  func.func @transform_15(%arg0: i32) -> (i32, i32, i32) {
    %c0_i32 = arith.constant 0 : i32
    %c0_i32_0 = arith.constant 0 : i32
    %c0_i32_1 = arith.constant 0 : i32
    return %arg0, %c0_i32, %c0_i32_0 : i32, i32, i32
  }
  func.func @transform_16(%arg0: i32) -> (i32, i32, i32) {
    %c0_i32 = arith.constant 0 : i32
    %c0_i32_0 = arith.constant 0 : i32
    %c0_i32_1 = arith.constant 0 : i32
    return %arg0, %c0_i32, %c0_i32_0 : i32, i32, i32
  }
  func.func @transform_17(%arg0: i32) -> (i32, i32, i32) {
    %c0_i32 = arith.constant 0 : i32
    %c0_i32_0 = arith.constant 0 : i32
    %c0_i32_1 = arith.constant 0 : i32
    return %arg0, %c0_i32, %c0_i32_0 : i32, i32, i32
  }
}

</mosaic_0001>

<bundles_post_ra>
// kernel: ecg_forward.1
= control target key start
LH: loop header
LB: loop body
LE: loop exit
PB: predicated region body
PF: predicated region fallthrough
CT: control target
= control target key end

     0   :  { %s13609_s0 = inlined_call_operand.vmem [shape: f32[2,1024,12], index: 0, kind: input, shape index: {}]   ;;  %s13610_s1 = inlined_call_operand.vmem [shape: bf16[60,32], index: 1, kind: input, shape index: {}]   ;;  %s13611_s2 = inlined_call_operand.vmem [shape: f32[1,32], index: 2, kind: input, shape index: {}]   ;;  %s13612_s3 = inlined_call_operand.vmem [shape: bf16[160,32], index: 3, kind: input, shape index: {}]   ;;  %s13613_s4 = inlined_call_operand.vmem [shape: f32[1,32], index: 4, kind: input, shape index: {}]   ;;  %s13614_s5 = inlined_call_operand.vmem [shape: bf16[160,64], index: 5, kind: input, shape index: {}]   ;;  %s13615_s6 = inlined_call_operand.vmem [shape: f32[1,64], index: 6, kind: input, shape index: {}]   ;;  %s13616_s7 = inlined_call_operand.vmem [shape: bf16[320,64], index: 7, kind: input, shape index: {}]   ;;  %s13617_s8 = inlined_call_operand.vmem [shape: f32[1,64], index: 8, kind: input, shape index: {}]   ;;  %s13618_s9 = inlined_call_operand.vmem [shape: bf16[320,64], index: 9, kind: input, shape index: {}]   ;;  %s13619_s10 = inlined_call_operand.vmem [shape: f32[1,64], index: 10, kind: input, shape index: {}]   ;;  %s13620_s11 = inlined_call_operand.vmem [shape: f32[160,128], index: 11, kind: input, shape index: {}]   ;;  %s13621_s12 = inlined_call_operand.vmem [shape: f32[2,128], index: 12, kind: input, shape index: {}]   ;;  %s13622_s13 = inlined_call_operand.vmem [shape: f32[160,32], index: 13, kind: input, shape index: {}]   ;;  %s13623_s14 = inlined_call_operand.vmem [shape: f32[8,32], index: 14, kind: input, shape index: {}]   ;;  %s13624_s15 = inlined_call_operand.hbm [shape: f32[2,1,32], index: 15, kind: output, shape index: {0}]   ;;  %s13625_s16 = inlined_call_operand.hbm [shape: f32[2,1,16], index: 16, kind: output, shape index: {1}]   ;;  %s13626_s17 = inlined_call_operand.vmem [shape: f32[2,8,1], index: 17, kind: output, shape index: {2}]  }
   0x1   :  { %13643 = sst [smem:[#allocation19_spill]] %s13609_s0 }
   0x2   :  { %13644 = sst [smem:[#allocation20_spill]] %s13610_s1 }
   0x3   :  { %13645 = sst [smem:[#allocation21_spill]] %s13611_s2 }
   0x4   :  { %13646 = sst [smem:[#allocation22_spill]] %s13612_s3 }
   0x5   :  { %13647 = sst [smem:[#allocation23_spill]] %s13613_s4 }
   0x6   :  { %13648 = sst [smem:[#allocation24_spill]] %s13614_s5 }
   0x7   :  { %13649 = sst [smem:[#allocation25_spill]] %s13615_s6 }
   0x8   :  { %23 = vsyncpa [#allocation11], 0 }
   0x9   :  { %25 = vsyncpa [#allocation11 + $0x1], 0 }
   0xa   :  { %26 = vsyncpa [#allocation13], 0 }
   0xb   :  { %28 = vsyncpa [#allocation13 + $0x1], 0  ;;  %s11036_s24 = smov 0   ;;  %s11038_s25 = smov 0  }
   0xc   :  { %s11040_s26 = smov 0   ;;  %s11042_s27 = smov 0  }
   0xd LB: > { %13650 = sst [smem:[#allocation16_spill]] %s10927_s26  ;;  %s11057_s28 = sadd.s32 4294967295, %s10931_s27   ;;  %s10931_s27 = sphi %s11042_s27, %s13671_s27   ;;  %s10927_s26 = sphi %s11040_s26, %s13673_s26   ;;  %s10923_s25 = sphi %s11038_s25, %s13675_s25   ;;  %s10919_s24 = sphi %s11036_s24, %s13674_s24  }
   0xe   : > { %s8776_s29 = sadd.s32 4294967294, %s10931_s27   ;;  %s11061_s0 = sadd.s32 1, %s10931_s27  }
   0xf   : > { %13651 = sst [smem:[#allocation17_spill]] %s11061_s0  ;;  %s361_s30 = sadd.s32 1, %s10927_s26 }
  0x10   : > { %s358_s18 = ssub.s32 %s10931_s27, %s11061_s0  ;;  %p371_p0 = scmp.ne.s32.totalorder %s10927_s26, %s10923_s25 }
  0x11   : > { %p359_p1 = scmp.eq.s32.totalorder %s358_s18, 0  ;;  %p372_p2 = scmp.eq.s32.totalorder %s11057_s28, 1 }
  0x12   : > { %p377_p3 = scmp.ne.s32.totalorder %s10923_s25, %s10919_s24  ;;  %p378_p4 = scmp.eq.s32.totalorder %s8776_s29, 1 }
  0x13   : > { %s11072_s19 = scalar_select %p359_p1, %s10927_s26, %s361_s30  }
  0x14   : > { %p11074_p5 = por %p372_p2, %p371_p0  ;;  %p11078_p6 = por %p378_p4, %p377_p3 }
  0x15   : > { %13652 = sst [smem:[#allocation18_spill]] %s11072_s19  ;;  %p8779_p7 = scmp.ge.s32.totalorder %s10931_s27, 1 }
  0x16   : > { %p498_p8 = scmp.lt.s32.totalorder %s10931_s27, 3 }
  0x18   : > { %p499_p9 = pnand %p8779_p7, %p498_p8 }
  0x19   : > { %p557_p10 = scmp.lt.s32.totalorder (!%p499_p9), %s11057_s28, 1  ;;  %vm695_vm0 = vcmask (!%p499_p9), 97280   ;;  %v10933_v0 = vmov (!%p499_p9), 0.0   ;;  %s13655_s30 = sld [smem:[#allocation19_spill]] (!%p499_p9)  ;;  %vm3043_vm1 = vcmask (!%p499_p9), 1045504   ;;  %vm824_vm2 = vcmask (!%p499_p9), 93184  }
  0x1a   : > { %502 = sbr.rel (%p499_p9) target bundleno = 14568 (0x38e8), region = 80  ;;  %696 = vst.msk [vmem:[#allocation2] sm:$0xff] (!%p499_p9), %vm695_vm0, %v10933_v0  ;;  %697 = vst.msk [vmem:[#allocation2 + $0x8] sm:$0xff] (!%p499_p9), %vm695_vm0, %v10933_v0  ;;  %s13656_s0 = sld [smem:[#allocation20_spill]] (!%p499_p9)  ;;  %vm2681_vm3 = vcmask (!%p499_p9), 195584   ;;  %vm2746_vm4 = vcmask (!%p499_p9), 293888  }
  0x1b   : > { %698 = vst.msk [vmem:[#allocation2 + $0x10] sm:$0xff] (!%p499_p9), %vm695_vm0, %v10933_v0  ;;  %699 = vst.msk [vmem:[#allocation2 + $0x18] sm:$0xff] (!%p499_p9), %vm695_vm0, %v10933_v0  ;;  %s13633_s26 = smov (!%p499_p9), 24   ;;  %s10935_s19 = smov (!%p499_p9), 12   ;;  %vm2811_vm5 = vcmask (!%p499_p9), 392192   ;;  %vm2946_vm6 = vcmask (!%p499_p9), 490496  }
  0x1c   : > { %700 = vst.msk [vmem:[#allocation2 + $0x20] sm:$0xff] (!%p499_p9), %vm695_vm0, %v10933_v0  ;;  %701 = vst.msk [vmem:[#allocation2 + $0x28] sm:$0xff] (!%p499_p9), %vm695_vm0, %v10933_v0  ;;  %s10937_s23 = smov (!%p499_p9), 48   ;;  %vm3528_vm7 = vcmask (!%p499_p9), 261120   ;;  %s13659_s3 = sld [smem:[#allocation22_spill]] (!%p499_p9)  ;;  %vm4394_vm12 = vcmask (!%p499_p9), 523264  }
  0x1d   : > { %702 = vst.msk [vmem:[#allocation2 + $0x30] sm:$0xff] (!%p499_p9), %vm695_vm0, %v10933_v0  ;;  %703 = vst.msk [vmem:[#allocation2 + $0x38] sm:$0xff] (!%p499_p9), %vm695_vm0, %v10933_v0  ;;  %s13660_s2 = sld [smem:[#allocation21_spill]] (!%p499_p9)  ;;  %s13661_s4 = sld [smem:[#allocation23_spill]] (!%p499_p9) }
  0x1e   : > { %704 = vst.msk [vmem:[#allocation2 + $0x40] sm:$0xff] (!%p499_p9), %vm695_vm0, %v10933_v0  ;;  %705 = vst.msk [vmem:[#allocation2 + $0x48] sm:$0xff] (!%p499_p9), %vm695_vm0, %v10933_v0  ;;  %s13662_s5 = sld [smem:[#allocation24_spill]] (!%p499_p9)  ;;  %s13663_s6 = sld [smem:[#allocation25_spill]] (!%p499_p9) }
  0x1f   : > { %706 = vst.msk [vmem:[#allocation2 + $0x50] sm:$0xff] (!%p499_p9), %vm695_vm0, %v10933_v0  ;;  %707 = vst.msk [vmem:[#allocation2 + $0x58] sm:$0xff] (!%p499_p9), %vm695_vm0, %v10933_v0 }
  0x20   : > { %708 = vst.msk [vmem:[#allocation2 + $0x60] sm:$0xff] (!%p499_p9), %vm695_vm0, %v10933_v0  ;;  %709 = vst.msk [vmem:[#allocation2 + $0x68] sm:$0xff] (!%p499_p9), %vm695_vm0, %v10933_v0  ;;  %v10638_v1 = vld [vmem:[%s13656_s0] sm:$0xff] (!%p499_p9)  }
  0x21   : > { %710 = vst.msk [vmem:[#allocation2 + $0x70] sm:$0xff] %vm695_vm0, %v10933_v0  ;;  %711 = vst.msk [vmem:[#allocation2 + $0x78] sm:$0xff] %vm695_vm0, %v10933_v0  ;;  %s11344_s21 = scalar_select %p557_p10, %s11057_s28, 1  ;;  %9154 = vmatprep.subr.bf16.mxu0 %v10638_v1 }
  0x22   : > { %712 = vst.msk [vmem:[#allocation2 + $0x80] sm:$0xff] %vm695_vm0, %v10933_v0  ;;  %713 = vst.msk [vmem:[#allocation2 + $0x88] sm:$0xff] %vm695_vm0, %v10933_v0  ;;  %9155 = vmatpush3.bf16.msra.mxu0 %v10638_v1 }
  0x23   : > { %714 = vst.msk [vmem:[#allocation2 + $0x90] sm:$0xff] %vm695_vm0, %v10933_v0  ;;  %715 = vst.msk [vmem:[#allocation2 + $0x98] sm:$0xff] %vm695_vm0, %v10933_v0  ;;  %s8950_s22 = sshll.u32 %s11344_s21, 10 }
  0x24   : > { %716 = vst.msk [vmem:[#allocation2 + $0xa0] sm:$0xff] %vm695_vm0, %v10933_v0  ;;  %717 = vst.msk [vmem:[#allocation2 + $0xa8] sm:$0xff] %vm695_vm0, %v10933_v0  ;;  %s11350_s18 = scalar_lea.vmem %s13655_s30, %s8950_s22  ;;  %s13631_s22 = smov 36  }
  0x25   : > { %718 = vst.msk [vmem:[#allocation2 + $0xb0] sm:$0xff] %vm695_vm0, %v10933_v0  ;;  %719 = vst.msk [vmem:[#allocation2 + $0xb8] sm:$0xff] %vm695_vm0, %v10933_v0  ;;  %v567_v2 = vld [vmem:[%s11350_s18] sm:$0xff]  ;;  %v568_v3 = vld [vmem:[%s11350_s18 + $0x8] sm:$0xff] }
  0x26   : > { %720 = vst.msk [vmem:[#allocation2 + $0xc0] sm:$0xff] %vm695_vm0, %v10933_v0  ;;  %721 = vst.msk [vmem:[#allocation2 + $0xc8] sm:$0xff] %vm695_vm0, %v10933_v0  ;;  %v569_v4 = vld [vmem:[%s11350_s18 + $0x10] sm:$0xff]  ;;  %v570_v5 = vld [vmem:[%s11350_s18 + $0x18] sm:$0xff] }
  0x27   : > { %722 = vst.msk [vmem:[#allocation2 + $0xd0] sm:$0xff] %vm695_vm0, %v10933_v0  ;;  %723 = vst.msk [vmem:[#allocation2 + $0xd8] sm:$0xff] %vm695_vm0, %v10933_v0  ;;  %v571_v6 = vld [vmem:[%s11350_s18 + $0x20] sm:$0xff]  ;;  %v572_v7 = vld [vmem:[%s11350_s18 + $0x28] sm:$0xff] }
  0x28   : > { %724 = vst.msk [vmem:[#allocation2 + $0xe0] sm:$0xff] %vm695_vm0, %v10933_v0  ;;  %725 = vst.msk [vmem:[#allocation2 + $0xe8] sm:$0xff] %vm695_vm0, %v10933_v0  ;;  %v573_v8 = vld [vmem:[%s11350_s18 + $0x30] sm:$0xff]  ;;  %v574_v9 = vld [vmem:[%s11350_s18 + $0x38] sm:$0xff] }
  0x29   : > { %726 = vst.msk [vmem:[#allocation2 + $0xf0] sm:$0xff] %vm695_vm0, %v10933_v0  ;;  %727 = vst.msk [vmem:[#allocation2 + $0xf8] sm:$0xff] %vm695_vm0, %v10933_v0  ;;  %v575_v10 = vld [vmem:[%s11350_s18 + $0x40] sm:$0xff]  ;;  %v578_v11 = vld [vmem:[%s11350_s18 + $0x58] sm:$0xff] }
  0x2a   : > { %728 = vst.msk [vmem:[#allocation2 + $0x100] sm:$0xff] %vm695_vm0, %v10933_v0  ;;  %729 = vst.msk [vmem:[#allocation2 + $0x108] sm:$0xff] %vm695_vm0, %v10933_v0  ;;  %v579_v12 = vld [vmem:[%s11350_s18 + $0x60] sm:$0xff]  ;;  %v580_v13 = vld [vmem:[%s11350_s18 + $0x68] sm:$0xff] }
  0x2b   : > { %730 = vst.msk [vmem:[#allocation2 + $0x110] sm:$0xff] %vm695_vm0, %v10933_v0  ;;  %731 = vst.msk [vmem:[#allocation2 + $0x118] sm:$0xff] %vm695_vm0, %v10933_v0  ;;  %v581_v14 = vld [vmem:[%s11350_s18 + $0x70] sm:$0xff]  ;;  %v582_v15 = vld [vmem:[%s11350_s18 + $0x78] sm:$0xff] }
  0x2c   : > { %732 = vst.msk [vmem:[#allocation2 + $0x120] sm:$0xff] %vm695_vm0, %v10933_v0  ;;  %733 = vst.msk [vmem:[#allocation2 + $0x128] sm:$0xff] %vm695_vm0, %v10933_v0  ;;  %v576_v16 = vld [vmem:[%s11350_s18 + $0x48] sm:$0xff]  ;;  %v577_v17 = vld [vmem:[%s11350_s18 + $0x50] sm:$0xff] }
  0x2d   : > { %734 = vst.msk [vmem:[#allocation2 + $0x130] sm:$0xff] %vm695_vm0, %v10933_v0  ;;  %735 = vst.msk [vmem:[#allocation2 + $0x138] sm:$0xff] %vm695_vm0, %v10933_v0  ;;  %v583_v18 = vld [vmem:[%s11350_s18 + $0x80] sm:$0xff]  ;;  %v586_v19 = vld [vmem:[%s11350_s18 + $0x98] sm:$0xff] }
  0x2e   : > { %736 = vst.msk [vmem:[#allocation2 + $0x140] sm:$0xff] %vm695_vm0, %v10933_v0  ;;  %737 = vst.msk [vmem:[#allocation2 + $0x148] sm:$0xff] %vm695_vm0, %v10933_v0  ;;  %v587_v20 = vld [vmem:[%s11350_s18 + $0xa0] sm:$0xff]  ;;  %v588_v21 = vld [vmem:[%s11350_s18 + $0xa8] sm:$0xff] }
  0x2f   : > { %738 = vst.msk [vmem:[#allocation2 + $0x150] sm:$0xff] %vm695_vm0, %v10933_v0  ;;  %739 = vst.msk [vmem:[#allocation2 + $0x158] sm:$0xff] %vm695_vm0, %v10933_v0  ;;  %v589_v22 = vld [vmem:[%s11350_s18 + $0xb0] sm:$0xff]  ;;  %v590_v23 = vld [vmem:[%s11350_s18 + $0xb8] sm:$0xff] }
  0x30   : > { %740 = vst.msk [vmem:[#allocation2 + $0x160] sm:$0xff] %vm695_vm0, %v10933_v0  ;;  %741 = vst.msk [vmem:[#allocation2 + $0x168] sm:$0xff] %vm695_vm0, %v10933_v0  ;;  %v584_v24 = vld [vmem:[%s11350_s18 + $0x88] sm:$0xff]  ;;  %v585_v25 = vld [vmem:[%s11350_s18 + $0x90] sm:$0xff] }
  0x31   : > { %742 = vst.msk [vmem:[#allocation2 + $0x170] sm:$0xff] %vm695_vm0, %v10933_v0  ;;  %743 = vst.msk [vmem:[#allocation2 + $0x178] sm:$0xff] %vm695_vm0, %v10933_v0  ;;  %v591_v54 = vld [vmem:[%s11350_s18 + $0xc0] sm:$0xff]  ;;  %v594_v61 = vld [vmem:[%s11350_s18 + $0xd8] sm:$0xff] }
  0x32   : > { %744 = vst.msk [vmem:[#allocation2 + $0x180] sm:$0xff] %vm695_vm0, %v10933_v0  ;;  %745 = vst.msk [vmem:[#allocation2 + $0x188] sm:$0xff] %vm695_vm0, %v10933_v0  ;;  %v595_v62 = vld [vmem:[%s11350_s18 + $0xe0] sm:$0xff]  ;;  %v596_v63 = vld [vmem:[%s11350_s18 + $0xe8] sm:$0xff] }
  0x33   : > { %746 = vst.msk [vmem:[#allocation2 + $0x190] sm:$0xff] %vm695_vm0, %v10933_v0  ;;  %747 = vst.msk [vmem:[#allocation2 + $0x198] sm:$0xff] %vm695_vm0, %v10933_v0  ;;  %v597_v1 = vld [vmem:[%s11350_s18 + $0xf0] sm:$0xff] }
  0x34   : > { %748 = vst.msk [vmem:[#allocation2 + $0x1a0] sm:$0xff] %vm695_vm0, %v10933_v0  ;;  %749 = vst.msk [vmem:[#allocation2 + $0x1a8] sm:$0xff] %vm695_vm0, %v10933_v0 }
  0x35   : > { %750 = vst.msk [vmem:[#allocation2 + $0x1b0] sm:$0xff] %vm695_vm0, %v10933_v0  ;;  %751 = vst.msk [vmem:[#allocation2 + $0x1b8] sm:$0xff] %vm695_vm0, %v10933_v0 }
  0x36   : > { %752 = vst.msk [vmem:[#allocation2 + $0x1c0] sm:$0xff] %vm695_vm0, %v10933_v0  ;;  %753 = vst.msk [vmem:[#allocation2 + $0x1c8] sm:$0xff] %vm695_vm0, %v10933_v0 }
  0x37   : > { %754 = vst.msk [vmem:[#allocation2 + $0x1d0] sm:$0xff] %vm695_vm0, %v10933_v0  ;;  %755 = vst.msk [vmem:[#allocation2 + $0x1d8] sm:$0xff] %vm695_vm0, %v10933_v0 }
  0x38   : > { %756 = vst.msk [vmem:[#allocation2 + $0x1e0] sm:$0xff] %vm695_vm0, %v10933_v0  ;;  %757 = vst.msk [vmem:[#allocation2 + $0x1e8] sm:$0xff] %vm695_vm0, %v10933_v0 }
  0x39   : > { %758 = vst.msk [vmem:[#allocation2 + $0x1f0] sm:$0xff] %vm695_vm0, %v10933_v0  ;;  %759 = vst.msk [vmem:[#allocation2 + $0x1f8] sm:$0xff] %vm695_vm0, %v10933_v0 }
  0x3a   : > { %760 = vst.msk [vmem:[#allocation2 + $0x200] sm:$0xff] %vm695_vm0, %v10933_v0  ;;  %761 = vst.msk [vmem:[#allocation2 + $0x208] sm:$0xff] %vm695_vm0, %v10933_v0 }
  0x3b   : > { %762 = vst.msk [vmem:[#allocation2 + $0x210] sm:$0xff] %vm695_vm0, %v10933_v0  ;;  %763 = vst.msk [vmem:[#allocation2 + $0x218] sm:$0xff] %vm695_vm0, %v10933_v0 }
  0x3c   : > { %764 = vst.msk [vmem:[#allocation2 + $0x220] sm:$0xff] %vm695_vm0, %v10933_v0  ;;  %765 = vst.msk [vmem:[#allocation2 + $0x228] sm:$0xff] %vm695_vm0, %v10933_v0 }
  0x3d   : > { %766 = vst.msk [vmem:[#allocation2 + $0x230] sm:$0xff] %vm695_vm0, %v10933_v0  ;;  %767 = vst.msk [vmem:[#allocation2 + $0x238] sm:$0xff] %vm695_vm0, %v10933_v0 }
  0x3e   : > { %768 = vst.msk [vmem:[#allocation2 + $0x240] sm:$0xff] %vm695_vm0, %v10933_v0  ;;  %769 = vst.msk [vmem:[#allocation2 + $0x248] sm:$0xff] %vm695_vm0, %v10933_v0 }
  0x3f   : > { %770 = vst.msk [vmem:[#allocation2 + $0x250] sm:$0xff] %vm695_vm0, %v10933_v0  ;;  %771 = vst.msk [vmem:[#allocation2 + $0x258] sm:$0xff] %vm695_vm0, %v10933_v0 }
  0x40   : > { %772 = vst.msk [vmem:[#allocation2 + $0x260] sm:$0xff] %vm695_vm0, %v10933_v0  ;;  %773 = vst.msk [vmem:[#allocation2 + $0x268] sm:$0xff] %vm695_vm0, %v10933_v0 }
  0x41   : > { %774 = vst.msk [vmem:[#allocation2 + $0x270] sm:$0xff] %vm695_vm0, %v10933_v0  ;;  %775 = vst.msk [vmem:[#allocation2 + $0x278] sm:$0xff] %vm695_vm0, %v10933_v0 }
  0x42   : > { %776 = vst.msk [vmem:[#allocation2 + $0x280] sm:$0xff] %vm695_vm0, %v10933_v0  ;;  %777 = vst.msk [vmem:[#allocation2 + $0x288] sm:$0xff] %vm695_vm0, %v10933_v0 }
  0x43   : > { %778 = vst.msk [vmem:[#allocation2 + $0x290] sm:$0xff] %vm695_vm0, %v10933_v0  ;;  %779 = vst.msk [vmem:[#allocation2 + $0x298] sm:$0xff] %vm695_vm0, %v10933_v0 }
  0x44   : > { %780 = vst.msk [vmem:[#allocation2 + $0x2a0] sm:$0xff] %vm695_vm0, %v10933_v0  ;;  %781 = vst.msk [vmem:[#allocation2 + $0x2a8] sm:$0xff] %vm695_vm0, %v10933_v0 }
  0x45   : > { %782 = vst.msk [vmem:[#allocation2 + $0x2b0] sm:$0xff] %vm695_vm0, %v10933_v0  ;;  %783 = vst.msk [vmem:[#allocation2 + $0x2b8] sm:$0xff] %vm695_vm0, %v10933_v0 }
  0x46   : > { %784 = vst.msk [vmem:[#allocation2 + $0x2c0] sm:$0xff] %vm695_vm0, %v10933_v0  ;;  %785 = vst.msk [vmem:[#allocation2 + $0x2c8] sm:$0xff] %vm695_vm0, %v10933_v0 }
  0x47   : > { %786 = vst.msk [vmem:[#allocation2 + $0x2d0] sm:$0xff] %vm695_vm0, %v10933_v0  ;;  %787 = vst.msk [vmem:[#allocation2 + $0x2d8] sm:$0xff] %vm695_vm0, %v10933_v0 }
  0x48   : > { %788 = vst.msk [vmem:[#allocation2 + $0x2e0] sm:$0xff] %vm695_vm0, %v10933_v0  ;;  %789 = vst.msk [vmem:[#allocation2 + $0x2e8] sm:$0xff] %vm695_vm0, %v10933_v0 }
  0x49   : > { %790 = vst.msk [vmem:[#allocation2 + $0x2f0] sm:$0xff] %vm695_vm0, %v10933_v0  ;;  %791 = vst.msk [vmem:[#allocation2 + $0x2f8] sm:$0xff] %vm695_vm0, %v10933_v0 }
  0x4a   : > { %792 = vst.msk [vmem:[#allocation2 + $0x300] sm:$0xff] %vm695_vm0, %v10933_v0  ;;  %793 = vst.msk [vmem:[#allocation2 + $0x308] sm:$0xff] %vm695_vm0, %v10933_v0 }
  0x4b   : > { %794 = vst.msk [vmem:[#allocation2 + $0x310] sm:$0xff] %vm695_vm0, %v10933_v0  ;;  %795 = vst.msk [vmem:[#allocation2 + $0x318] sm:$0xff] %vm695_vm0, %v10933_v0 }
  0x4c   : > { %796 = vst.msk [vmem:[#allocation2 + $0x320] sm:$0xff] %vm695_vm0, %v10933_v0  ;;  %797 = vst.msk [vmem:[#allocation2 + $0x328] sm:$0xff] %vm695_vm0, %v10933_v0 }
  0x4d   : > { %798 = vst.msk [vmem:[#allocation2 + $0x330] sm:$0xff] %vm695_vm0, %v10933_v0  ;;  %799 = vst.msk [vmem:[#allocation2 + $0x338] sm:$0xff] %vm695_vm0, %v10933_v0 }
  0x4e   : > { %800 = vst.msk [vmem:[#allocation2 + $0x340] sm:$0xff] %vm695_vm0, %v10933_v0  ;;  %801 = vst.msk [vmem:[#allocation2 + $0x348] sm:$0xff] %vm695_vm0, %v10933_v0 }
  0x4f   : > { %802 = vst.msk [vmem:[#allocation2 + $0x350] sm:$0xff] %vm695_vm0, %v10933_v0  ;;  %803 = vst.msk [vmem:[#allocation2 + $0x358] sm:$0xff] %vm695_vm0, %v10933_v0 }
  0x50   : > { %804 = vst.msk [vmem:[#allocation2 + $0x360] sm:$0xff] %vm695_vm0, %v10933_v0  ;;  %805 = vst.msk [vmem:[#allocation2 + $0x368] sm:$0xff] %vm695_vm0, %v10933_v0 }
  0x51   : > { %806 = vst.msk [vmem:[#allocation2 + $0x370] sm:$0xff] %vm695_vm0, %v10933_v0  ;;  %807 = vst.msk [vmem:[#allocation2 + $0x378] sm:$0xff] %vm695_vm0, %v10933_v0 }
  0x52   : > { %808 = vst.msk [vmem:[#allocation2 + $0x380] sm:$0xff] %vm695_vm0, %v10933_v0  ;;  %809 = vst.msk [vmem:[#allocation2 + $0x388] sm:$0xff] %vm695_vm0, %v10933_v0 }
  0x53   : > { %810 = vst.msk [vmem:[#allocation2 + $0x390] sm:$0xff] %vm695_vm0, %v10933_v0  ;;  %811 = vst.msk [vmem:[#allocation2 + $0x398] sm:$0xff] %vm695_vm0, %v10933_v0 }
  0x54   : > { %812 = vst.msk [vmem:[#allocation2 + $0x3a0] sm:$0xff] %vm695_vm0, %v10933_v0  ;;  %813 = vst.msk [vmem:[#allocation2 + $0x3a8] sm:$0xff] %vm695_vm0, %v10933_v0 }
  0x55   : > { %814 = vst.msk [vmem:[#allocation2 + $0x3b0] sm:$0xff] %vm695_vm0, %v10933_v0  ;;  %815 = vst.msk [vmem:[#allocation2 + $0x3b8] sm:$0xff] %vm695_vm0, %v10933_v0 }
  0x56   : > { %816 = vst.msk [vmem:[#allocation2 + $0x3c0] sm:$0xff] %vm695_vm0, %v10933_v0  ;;  %817 = vst.msk [vmem:[#allocation2 + $0x3c8] sm:$0xff] %vm695_vm0, %v10933_v0 }
  0x57   : > { %818 = vst.msk [vmem:[#allocation2 + $0x3d0] sm:$0xff] %vm695_vm0, %v10933_v0  ;;  %819 = vst.msk [vmem:[#allocation2 + $0x3d8] sm:$0xff] %vm695_vm0, %v10933_v0 }
  0x58   : > { %820 = vst.msk [vmem:[#allocation2 + $0x3e0] sm:$0xff] %vm695_vm0, %v10933_v0  ;;  %821 = vst.msk [vmem:[#allocation2 + $0x3e8] sm:$0xff] %vm695_vm0, %v10933_v0 }
  0x59   : > { %822 = vst.msk [vmem:[#allocation2 + $0x3f0] sm:$0xff] %vm695_vm0, %v10933_v0  ;;  %823 = vst.msk [vmem:[#allocation2 + $0x3f8] sm:$0xff] %vm695_vm0, %v10933_v0 }
  0x5a   : > { %826 = vst.msk [vmem:[#allocation2 + $0x2] sm:$0xff] %vm695_vm0, %v567_v2  ;;  %827 = vst.msk [vmem:[#allocation2 + $0xa] sm:$0xff] %vm695_vm0, %v568_v3  ;;  %v598_v2 = vld [vmem:[%s11350_s18 + $0xf8] sm:$0xff]  ;;  %v592_v3 = vld [vmem:[%s11350_s18 + $0xc8] sm:$0xff] }
  0x5b   : > { %828 = vst.msk [vmem:[#allocation2 + $0x12] sm:$0xff] %vm695_vm0, %v569_v4  ;;  %829 = vst.msk [vmem:[#allocation2 + $0x1a] sm:$0xff] %vm695_vm0, %v570_v5  ;;  %v593_v4 = vld [vmem:[%s11350_s18 + $0xd0] sm:$0xff]  ;;  %v599_v5 = vld [vmem:[%s11350_s18 + $0x100] sm:$0xff] }
  0x5c   : > { %830 = vst.msk [vmem:[#allocation2 + $0x22] sm:$0xff] %vm695_vm0, %v571_v6  ;;  %831 = vst.msk [vmem:[#allocation2 + $0x2a] sm:$0xff] %vm695_vm0, %v572_v7 }
  0x5d   : > { %832 = vst.msk [vmem:[#allocation2 + $0x32] sm:$0xff] %vm695_vm0, %v573_v8  ;;  %833 = vst.msk [vmem:[#allocation2 + $0x3a] sm:$0xff] %vm695_vm0, %v574_v9  ;;  %v602_v9 = vld [vmem:[%s11350_s18 + $0x118] sm:$0xff] }
  0x5e   : > { %834 = vst.msk [vmem:[#allocation2 + $0x42] sm:$0xff] %vm695_vm0, %v575_v10  ;;  %837 = vst.msk [vmem:[#allocation2 + $0x5a] sm:$0xff] %vm695_vm0, %v578_v11  ;;  %v603_v10 = vld [vmem:[%s11350_s18 + $0x120] sm:$0xff]  ;;  %v604_v11 = vld [vmem:[%s11350_s18 + $0x128] sm:$0xff] }
  0x5f   : > { %838 = vst.msk [vmem:[#allocation2 + $0x62] sm:$0xff] %vm695_vm0, %v579_v12  ;;  %839 = vst.msk [vmem:[#allocation2 + $0x6a] sm:$0xff] %vm695_vm0, %v580_v13 }
  0x60   : > { %840 = vst.msk [vmem:[#allocation2 + $0x72] sm:$0xff] %vm695_vm0, %v581_v14  ;;  %841 = vst.msk [vmem:[#allocation2 + $0x7a] sm:$0xff] %vm695_vm0, %v582_v15  ;;  %v605_v15 = vld [vmem:[%s11350_s18 + $0x130] sm:$0xff] }
  0x61   : > { %835 = vst.msk [vmem:[#allocation2 + $0x4a] sm:$0xff] %vm695_vm0, %v576_v16  ;;  %836 = vst.msk [vmem:[#allocation2 + $0x52] sm:$0xff] %vm695_vm0, %v577_v17  ;;  %v1210_v26 = vld [vmem:[#allocation2 + $0x2] ss:$2 sm:$0xff]  ;;  %v1082_v27 = vld [vmem:[#allocation2 + $0x1] ss:$2 sm:$0xff] }
  0x62   : > { %842 = vst.msk [vmem:[#allocation2 + $0x82] sm:$0xff] %vm695_vm0, %v583_v18  ;;  %845 = vst.msk [vmem:[#allocation2 + $0x9a] sm:$0xff] %vm695_vm0, %v586_v19  ;;  %v1212_v28 = vld [vmem:[#allocation2 + $0x12] ss:$2 sm:$0xff]  ;;  %v1084_v29 = vld [vmem:[#allocation2 + $0x11] ss:$2 sm:$0xff] }
  0x63   : > { %846 = vst.msk [vmem:[#allocation2 + $0xa2] sm:$0xff] %vm695_vm0, %v587_v20  ;;  %847 = vst.msk [vmem:[#allocation2 + $0xaa] sm:$0xff] %vm695_vm0, %v588_v21  ;;  %v1214_v30 = vld [vmem:[#allocation2 + $0x22] ss:$2 sm:$0xff]  ;;  %v9693_v31 = vpack.i.bf16 %v1212_v28, %v1210_v26  ;;  %v9683_v32 = vpack.i.bf16 %v1084_v29, %v1082_v27  ;;  %v1086_v34 = vld [vmem:[#allocation2 + $0x21] ss:$2 sm:$0xff] }
  0x64   : > { %848 = vst.msk [vmem:[#allocation2 + $0xb2] sm:$0xff] %vm695_vm0, %v589_v22  ;;  %849 = vst.msk [vmem:[#allocation2 + $0xba] sm:$0xff] %vm695_vm0, %v590_v23  ;;  %v1216_v33 = vld [vmem:[#allocation2 + $0x32] ss:$2 sm:$0xff]  ;;  %v1088_v35 = vld [vmem:[#allocation2 + $0x31] ss:$2 sm:$0xff] }
  0x65   : > { %843 = vst.msk [vmem:[#allocation2 + $0x8a] sm:$0xff] %vm695_vm0, %v584_v24  ;;  %844 = vst.msk [vmem:[#allocation2 + $0x92] sm:$0xff] %vm695_vm0, %v585_v25  ;;  %9694 = vrot.lane.b32.xlu1 %v9693_v31, %s13633_s26  ;;  %9684 = vrot.lane.b32.xlu0 %v9683_v32, %s10935_s19  ;;  %v9698_v36 = vpack.i.bf16 %v1216_v33, %v1214_v30  ;;  %v9688_v37 = vpack.i.bf16 %v1088_v35, %v1086_v34  ;;  %v1338_v38 = vld [vmem:[#allocation2 + $0x3] ss:$2 sm:$0xff]  ;;  %v1344_v40 = vld [vmem:[#allocation2 + $0x33] ss:$2 sm:$0xff] }
  0x66   : > { %v1342_v39 = vld [vmem:[#allocation2 + $0x23] ss:$2 sm:$0xff]  ;;  %v1340_v41 = vld [vmem:[#allocation2 + $0x13] ss:$2 sm:$0xff]  ;;  %v1470_v44 = vld [vmem:[#allocation2 + $0x24] ss:$2 sm:$0xff] }
  0x67   : > { %v9708_v42 = vpack.i.bf16 %v1344_v40, %v1342_v39  ;;  %v9703_v43 = vpack.i.bf16 %v1340_v41, %v1338_v38  ;;  %v1472_v45 = vld [vmem:[#allocation2 + $0x34] ss:$2 sm:$0xff]  ;;  %v1466_v46 = vld [vmem:[#allocation2 + $0x4] ss:$2 sm:$0xff]  ;;  %v1094_v50 = vld [vmem:[#allocation2 + $0x61] ss:$2 sm:$0xff] }
  0x68   : > { %v1468_v47 = vld [vmem:[#allocation2 + $0x14] ss:$2 sm:$0xff]  ;;  %v9718_v48 = vpack.i.bf16 %v1472_v45, %v1470_v44  ;;  %v1096_v51 = vld [vmem:[#allocation2 + $0x71] ss:$2 sm:$0xff]  ;;  %v1090_v52 = vld [vmem:[#allocation2 + $0x41] ss:$2 sm:$0xff] }
  0x69   : > { %9699 = vrot.lane.b32.xlu1 %v9698_v36, %s13633_s26  ;;  %9689 = vrot.lane.b32.xlu0 %v9688_v37, %s10935_s19  ;;  %v9713_v49 = vpack.i.bf16 %v1468_v47, %v1466_v46  ;;  %v1092_v53 = vld [vmem:[#allocation2 + $0x51] ss:$2 sm:$0xff]  ;;  %v1222_v55 = vld [vmem:[#allocation2 + $0x62] ss:$2 sm:$0xff]  ;;  %v1224_v56 = vld [vmem:[#allocation2 + $0x72] ss:$2 sm:$0xff]  ;;  %v9728_v58 = vpack.i.bf16 %v1096_v51, %v1094_v50 }
  0x6a   : > { %v1218_v57 = vld [vmem:[#allocation2 + $0x42] ss:$2 sm:$0xff]  ;;  %850 = vst.msk [vmem:[#allocation2 + $0xc2] sm:$0xff] %vm695_vm0, %v591_v54  ;;  %v9723_v59 = vpack.i.bf16 %v1092_v53, %v1090_v52  ;;  %v1220_v60 = vld [vmem:[#allocation2 + $0x52] ss:$2 sm:$0xff]  ;;  %853 = vst.msk [vmem:[#allocation2 + $0xda] sm:$0xff] %vm695_vm0, %v594_v61  ;;  %v9738_v12 = vpack.i.bf16 %v1224_v56, %v1222_v55 }
  0x6b   : > { %854 = vst.msk [vmem:[#allocation2 + $0xe2] sm:$0xff] %vm695_vm0, %v595_v62  ;;  %855 = vst.msk [vmem:[#allocation2 + $0xea] sm:$0xff] %vm695_vm0, %v596_v63  ;;  %v1350_v6 = vld [vmem:[#allocation2 + $0x63] ss:$2 sm:$0xff]  ;;  %v1352_v7 = vld [vmem:[#allocation2 + $0x73] ss:$2 sm:$0xff]  ;;  %v9733_v13 = vpack.i.bf16 %v1220_v60, %v1218_v57 }
  0x6c   : > { %856 = vst.msk [vmem:[#allocation2 + $0xf2] sm:$0xff] %vm695_vm0, %v597_v1  ;;  %857 = vst.msk [vmem:[#allocation2 + $0xfa] sm:$0xff] %vm695_vm0, %v598_v2  ;;  %v1346_v8 = vld [vmem:[#allocation2 + $0x43] ss:$2 sm:$0xff]  ;;  %v1348_v14 = vld [vmem:[#allocation2 + $0x53] ss:$2 sm:$0xff]  ;;  %v9748_v25 = vpack.i.bf16 %v1352_v7, %v1350_v6 }
  0x6d   : > { %9709 = vrot.lane.b32.xlu1 %v9708_v42, %s13631_s22  ;;  %9704 = vrot.lane.b32.xlu0 %v9703_v43, %s13631_s22  ;;  %851 = vst.msk [vmem:[#allocation2 + $0xca] sm:$0xff] %vm695_vm0, %v592_v3  ;;  %852 = vst.msk [vmem:[#allocation2 + $0xd2] sm:$0xff] %vm695_vm0, %v593_v4  ;;  %v606_v16 = vld [vmem:[%s11350_s18 + $0x138] sm:$0xff]  ;;  %v600_v17 = vld [vmem:[%s11350_s18 + $0x108] sm:$0xff]  ;;  %v9743_v26 = vpack.i.bf16 %v1348_v14, %v1346_v8 }
  0x6e   : > { %858 = vst.msk [vmem:[#allocation2 + $0x102] sm:$0xff] %vm695_vm0, %v599_v5  ;;  %861 = vst.msk [vmem:[#allocation2 + $0x11a] sm:$0xff] %vm695_vm0, %v602_v9  ;;  %v601_v18 = vld [vmem:[%s11350_s18 + $0x110] sm:$0xff]  ;;  %v607_v19 = vld [vmem:[%s11350_s18 + $0x140] sm:$0xff] }
  0x6f   : > { %862 = vst.msk [vmem:[#allocation2 + $0x122] sm:$0xff] %vm695_vm0, %v603_v10  ;;  %863 = vst.msk [vmem:[#allocation2 + $0x12a] sm:$0xff] %vm695_vm0, %v604_v11  ;;  %v610_v20 = vld [vmem:[%s11350_s18 + $0x158] sm:$0xff]  ;;  %v611_v21 = vld [vmem:[%s11350_s18 + $0x160] sm:$0xff] }
  0x70   : > { %864 = vst.msk [vmem:[#allocation2 + $0x132] sm:$0xff] %vm695_vm0, %v605_v15  ;;  %865 = vst.msk [vmem:[#allocation2 + $0x13a] sm:$0xff] %vm695_vm0, %v606_v16  ;;  %v612_v22 = vld [vmem:[%s11350_s18 + $0x168] sm:$0xff]  ;;  %v613_v23 = vld [vmem:[%s11350_s18 + $0x170] sm:$0xff] }
  0x71   : > { %9719 = vrot.lane.b32.xlu1 %v9718_v48, %s10937_s23  ;;  %9714 = vrot.lane.b32.xlu0 %v9713_v49, %s10937_s23  ;;  %859 = vst.msk [vmem:[#allocation2 + $0x10a] sm:$0xff] %vm695_vm0, %v600_v17  ;;  %860 = vst.msk [vmem:[#allocation2 + $0x112] sm:$0xff] %vm695_vm0, %v601_v18  ;;  %v614_v24 = vld [vmem:[%s11350_s18 + $0x178] sm:$0xff]  ;;  %v1478_v27 = vld [vmem:[#allocation2 + $0x64] ss:$2 sm:$0xff] }
  0x72   : > { %866 = vst.msk [vmem:[#allocation2 + $0x142] sm:$0xff] %vm695_vm0, %v607_v19  ;;  %869 = vst.msk [vmem:[#allocation2 + $0x15a] sm:$0xff] %vm695_vm0, %v610_v20  ;;  %v608_v28 = vld [vmem:[%s11350_s18 + $0x148] sm:$0xff]  ;;  %v609_v29 = vld [vmem:[%s11350_s18 + $0x150] sm:$0xff] }
  0x73   : > { %870 = vst.msk [vmem:[#allocation2 + $0x162] sm:$0xff] %vm695_vm0, %v611_v21  ;;  %871 = vst.msk [vmem:[#allocation2 + $0x16a] sm:$0xff] %vm695_vm0, %v612_v22  ;;  %v1480_v30 = vld [vmem:[#allocation2 + $0x74] ss:$2 sm:$0xff]  ;;  %v1474_v31 = vld [vmem:[#allocation2 + $0x44] ss:$2 sm:$0xff] }
  0x74   : > { %872 = vst.msk [vmem:[#allocation2 + $0x172] sm:$0xff] %vm695_vm0, %v613_v23  ;;  %873 = vst.msk [vmem:[#allocation2 + $0x17a] sm:$0xff] %vm695_vm0, %v614_v24  ;;  %v1476_v32 = vld [vmem:[#allocation2 + $0x54] ss:$2 sm:$0xff]  ;;  %v9758_v33 = vpack.i.bf16 %v1480_v30, %v1478_v27  ;;  %v1102_v35 = vld [vmem:[#allocation2 + $0xa1] ss:$2 sm:$0xff] }
  0x75   : > { %9729 = vrot.lane.b32.xlu1 %v9728_v58, %s10935_s19  ;;  %9724 = vrot.lane.b32.xlu0 %v9723_v59, %s10935_s19  ;;  %867 = vst.msk [vmem:[#allocation2 + $0x14a] sm:$0xff] %vm695_vm0, %v608_v28  ;;  %868 = vst.msk [vmem:[#allocation2 + $0x152] sm:$0xff] %vm695_vm0, %v609_v29  ;;  %v9753_v34 = vpack.i.bf16 %v1476_v32, %v1474_v31  ;;  %v1104_v36 = vld [vmem:[#allocation2 + $0xb1] ss:$2 sm:$0xff]  ;;  %v1098_v37 = vld [vmem:[#allocation2 + $0x81] ss:$2 sm:$0xff] }
  0x76   : > { %v1100_v38 = vld [vmem:[#allocation2 + $0x91] ss:$2 sm:$0xff]  ;;  %v9768_v39 = vpack.i.bf16 %v1104_v36, %v1102_v35  ;;  %v1230_v41 = vld [vmem:[#allocation2 + $0xa2] ss:$2 sm:$0xff]  ;;  %v1232_v42 = vld [vmem:[#allocation2 + $0xb2] ss:$2 sm:$0xff] }
  0x77   : > { %v9763_v40 = vpack.i.bf16 %v1100_v38, %v1098_v37  ;;  %v1226_v43 = vld [vmem:[#allocation2 + $0x82] ss:$2 sm:$0xff]  ;;  %v1228_v44 = vld [vmem:[#allocation2 + $0x92] ss:$2 sm:$0xff]  ;;  %v9778_v45 = vpack.i.bf16 %v1232_v42, %v1230_v41  ;;  %v1358_v47 = vld [vmem:[#allocation2 + $0xa3] ss:$2 sm:$0xff] }
  0x78   : > { %v9773_v46 = vpack.i.bf16 %v1228_v44, %v1226_v43  ;;  %v1360_v48 = vld [vmem:[#allocation2 + $0xb3] ss:$2 sm:$0xff]  ;;  %v1354_v49 = vld [vmem:[#allocation2 + $0x83] ss:$2 sm:$0xff]  ;;  %v1486_v51 = vld [vmem:[#allocation2 + $0xa4] ss:$2 sm:$0xff] }
  0x79   : > { %9739 = vrot.lane.b32.xlu1 %v9738_v12, %s13633_s26  ;;  %9734 = vrot.lane.b32.xlu0 %v9733_v13, %s13633_s26  ;;  %v1356_v50 = vld [vmem:[#allocation2 + $0x93] ss:$2 sm:$0xff]  ;;  %v9788_v53 = vpack.i.bf16 %v1360_v48, %v1358_v47  ;;  %v1488_v55 = vld [vmem:[#allocation2 + $0xb4] ss:$2 sm:$0xff]  ;;  %v1482_v56 = vld [vmem:[#allocation2 + $0x84] ss:$2 sm:$0xff] }
  0x7a   : > { %v615_v52 = vld [vmem:[%s11350_s18 + $0x180] sm:$0xff]  ;;  %v9783_v54 = vpack.i.bf16 %v1356_v50, %v1354_v49  ;;  %v618_v58 = vld [vmem:[%s11350_s18 + $0x198] sm:$0xff]  ;;  %v620_v60 = vld [vmem:[%s11350_s18 + $0x1a8] sm:$0xff]  ;;  %v9798_v7 = vpack.i.bf16 %v1488_v55, %v1486_v51  ;;  %825 = vst.msk [vmem:[#allocation2 + $0x400] sm:$0xf] %vm824_vm2, %v10933_v0 }
  0x7b   : > { %v1484_v57 = vld [vmem:[#allocation2 + $0x94] ss:$2 sm:$0xff]  ;;  %874 = vst.msk [vmem:[#allocation2 + $0x182] sm:$0xff] %vm695_vm0, %v615_v52  ;;  %877 = vst.msk [vmem:[#allocation2 + $0x19a] sm:$0xff] %vm695_vm0, %v618_v58  ;;  %v616_v63 = vld [vmem:[%s11350_s18 + $0x188] sm:$0xff] }
  0x7c   : > { %v619_v59 = vld [vmem:[%s11350_s18 + $0x1a0] sm:$0xff]  ;;  %v621_v61 = vld [vmem:[%s11350_s18 + $0x1b0] sm:$0xff]  ;;  %v622_v62 = vld [vmem:[%s11350_s18 + $0x1b8] sm:$0xff]  ;;  %879 = vst.msk [vmem:[#allocation2 + $0x1aa] sm:$0xff] %vm695_vm0, %v620_v60  ;;  %v9793_v8 = vpack.i.bf16 %v1484_v57, %v1482_v56 }
  0x7d   : > { %9749 = vrot.lane.b32.xlu1 %v9748_v25, %s13631_s22  ;;  %9744 = vrot.lane.b32.xlu0 %v9743_v26, %s13631_s22  ;;  %878 = vst.msk [vmem:[#allocation2 + $0x1a2] sm:$0xff] %vm695_vm0, %v619_v59  ;;  %v1110_v1 = vld [vmem:[#allocation2 + $0xe1] ss:$2 sm:$0xff]  ;;  %v1112_v2 = vld [vmem:[#allocation2 + $0xf1] ss:$2 sm:$0xff]  ;;  %880 = vst.msk [vmem:[#allocation2 + $0x1b2] sm:$0xff] %vm695_vm0, %v621_v61 }
  0x7e   : > { %v1106_v3 = vld [vmem:[#allocation2 + $0xc1] ss:$2 sm:$0xff]  ;;  %881 = vst.msk [vmem:[#allocation2 + $0x1ba] sm:$0xff] %vm695_vm0, %v622_v62  ;;  %v617_v4 = vld [vmem:[%s11350_s18 + $0x190] sm:$0xff]  ;;  %875 = vst.msk [vmem:[#allocation2 + $0x18a] sm:$0xff] %vm695_vm0, %v616_v63  ;;  %v9808_v20 = vpack.i.bf16 %v1112_v2, %v1110_v1 }
  0x7f   : > { %v623_v5 = vld [vmem:[%s11350_s18 + $0x1c0] sm:$0xff]  ;;  %v626_v6 = vld [vmem:[%s11350_s18 + $0x1d8] sm:$0xff]  ;;  %876 = vst.msk [vmem:[#allocation2 + $0x192] sm:$0xff] %vm695_vm0, %v617_v4  ;;  %v628_v11 = vld [vmem:[%s11350_s18 + $0x1e8] sm:$0xff] }
  0x80   : > { %v1108_v9 = vld [vmem:[#allocation2 + $0xd1] ss:$2 sm:$0xff]  ;;  %882 = vst.msk [vmem:[#allocation2 + $0x1c2] sm:$0xff] %vm695_vm0, %v623_v5  ;;  %v627_v10 = vld [vmem:[%s11350_s18 + $0x1e0] sm:$0xff]  ;;  %885 = vst.msk [vmem:[#allocation2 + $0x1da] sm:$0xff] %vm695_vm0, %v626_v6 }
  0x81   : > { %9759 = vrot.lane.b32.xlu1 %v9758_v33, %s10937_s23  ;;  %9754 = vrot.lane.b32.xlu0 %v9753_v34, %s10937_s23  ;;  %v629_v12 = vld [vmem:[%s11350_s18 + $0x1f0] sm:$0xff]  ;;  %v630_v13 = vld [vmem:[%s11350_s18 + $0x1f8] sm:$0xff]  ;;  %886 = vst.msk [vmem:[#allocation2 + $0x1e2] sm:$0xff] %vm695_vm0, %v627_v10  ;;  %887 = vst.msk [vmem:[#allocation2 + $0x1ea] sm:$0xff] %vm695_vm0, %v628_v11  ;;  %v9803_v21 = vpack.i.bf16 %v1108_v9, %v1106_v3 }
  0x82   : > { %v624_v14 = vld [vmem:[%s11350_s18 + $0x1c8] sm:$0xff]  ;;  %888 = vst.msk [vmem:[#allocation2 + $0x1f2] sm:$0xff] %vm695_vm0, %v629_v12  ;;  %889 = vst.msk [vmem:[#allocation2 + $0x1fa] sm:$0xff] %vm695_vm0, %v630_v13  ;;  %v625_v15 = vld [vmem:[%s11350_s18 + $0x1d0] sm:$0xff] }
  0x83   : > { %883 = vst.msk [vmem:[#allocation2 + $0x1ca] sm:$0xff] %vm695_vm0, %v624_v14  ;;  %v10639_v16 = vld [vmem:[%s13656_s0 + $0x8] sm:$0xff]   ;;  %v631_v17 = vld [vmem:[%s11350_s18 + $0x200] sm:$0xff]  ;;  %884 = vst.msk [vmem:[#allocation2 + $0x1d2] sm:$0xff] %vm695_vm0, %v625_v15 }
  0x84   : > { %890 = vst.msk [vmem:[#allocation2 + $0x202] sm:$0xff] %vm695_vm0, %v631_v17  ;;  %v10640_v18 = vld [vmem:[%s13656_s0 + $0x10] sm:$0xff]   ;;  %v634_v19 = vld [vmem:[%s11350_s18 + $0x218] sm:$0xff]  ;;  %v635_v23 = vld [vmem:[%s11350_s18 + $0x220] sm:$0xff]  ;;  %9156 = vmatprep.subr.bf16.mxu0 %v10639_v16 }
  0x85   : > { %9769 = vrot.lane.b32.xlu1 %v9768_v39, %s10935_s19  ;;  %9764 = vrot.lane.b32.xlu0 %v9763_v40, %s10935_s19  ;;  %v1238_v22 = vld [vmem:[#allocation2 + $0xe2] ss:$2 sm:$0xff]  ;;  %893 = vst.msk [vmem:[#allocation2 + $0x21a] sm:$0xff] %vm695_vm0, %v634_v19  ;;  %v1240_v25 = vld [vmem:[#allocation2 + $0xf2] ss:$2 sm:$0xff]  ;;  %894 = vst.msk [vmem:[#allocation2 + $0x222] sm:$0xff] %vm695_vm0, %v635_v23 }
  0x86   : > { %v636_v24 = vld [vmem:[%s11350_s18 + $0x228] sm:$0xff]  ;;  %v1236_v27 = vld [vmem:[#allocation2 + $0xd2] ss:$2 sm:$0xff]  ;;  %9157 = vmatpush3.bf16.msra.mxu0 %v10639_v16  ;;  %v9818_v28 = vpack.i.bf16 %v1240_v25, %v1238_v22  ;;  %v1368_v31 = vld [vmem:[#allocation2 + $0xf3] ss:$2 sm:$0xff]  ;;  %3531 = vst.msk [vmem:[#allocation3 + $0x10] sm:$0xff] %vm3528_vm7, %v10933_v0 }
  0x87   : > { %v1234_v26 = vld [vmem:[#allocation2 + $0xc2] ss:$2 sm:$0xff]  ;;  %895 = vst.msk [vmem:[#allocation2 + $0x22a] sm:$0xff] %vm695_vm0, %v636_v24  ;;  %9158 = vmatprep.subr.bf16.mxu0 %v10640_v18  ;;  %v1366_v30 = vld [vmem:[#allocation2 + $0xe3] ss:$2 sm:$0xff]  ;;  %v642_v56 = vld [vmem:[%s11350_s18 + $0x258] sm:$0xff] }
  0x88   : > { %v9813_v29 = vpack.i.bf16 %v1236_v27, %v1234_v26  ;;  %v1362_v32 = vld [vmem:[#allocation2 + $0xc3] ss:$2 sm:$0xff]  ;;  %v1364_v33 = vld [vmem:[#allocation2 + $0xd3] ss:$2 sm:$0xff]  ;;  %v9828_v34 = vpack.i.bf16 %v1368_v31, %v1366_v30  ;;  %v1494_v36 = vld [vmem:[#allocation2 + $0xe4] ss:$2 sm:$0xff] }
  0x89   : > { %9779 = vrot.lane.b32.xlu1 %v9778_v45, %s13633_s26  ;;  %9774 = vrot.lane.b32.xlu0 %v9773_v46, %s13633_s26  ;;  %s13657_s26 = smov 24   ;;  %v9823_v35 = vpack.i.bf16 %v1364_v33, %v1362_v32  ;;  %v1496_v37 = vld [vmem:[#allocation2 + $0xf4] ss:$2 sm:$0xff]  ;;  %v1490_v38 = vld [vmem:[#allocation2 + $0xc4] ss:$2 sm:$0xff]  ;;  %901 = vst.msk [vmem:[#allocation2 + $0x25a] sm:$0xff] %vm695_vm0, %v642_v56 }
  0x8a   : > { %9159 = vmatpush3.bf16.msra.mxu0 %v10640_v18  ;;  %v1492_v39 = vld [vmem:[#allocation2 + $0xd4] ss:$2 sm:$0xff]  ;;  %v1118_v40 = vld [vmem:[#allocation2 + $0x121] ss:$2 sm:$0xff]  ;;  %v1120_v41 = vld [vmem:[#allocation2 + $0x131] ss:$2 sm:$0xff]  ;;  %v9838_v43 = vpack.i.bf16 %v1496_v37, %v1494_v36 }
  0x8b   : > { %v637_v42 = vld [vmem:[%s11350_s18 + $0x230] sm:$0xff]  ;;  %v9833_v44 = vpack.i.bf16 %v1492_v39, %v1490_v38  ;;  %v1114_v45 = vld [vmem:[#allocation2 + $0x101] ss:$2 sm:$0xff]  ;;  %v638_v46 = vld [vmem:[%s11350_s18 + $0x238] sm:$0xff]  ;;  %v9848_v57 = vpack.i.bf16 %v1120_v41, %v1118_v40  ;;  %3532 = vst.msk [vmem:[#allocation3 + $0x18] sm:$0xff] %vm3528_vm7, %v10933_v0 }
  0x8c   : > { %896 = vst.msk [vmem:[#allocation2 + $0x232] sm:$0xff] %vm695_vm0, %v637_v42  ;;  %v632_v47 = vld [vmem:[%s11350_s18 + $0x208] sm:$0xff]  ;;  %v1116_v48 = vld [vmem:[#allocation2 + $0x111] ss:$2 sm:$0xff]  ;;  %897 = vst.msk [vmem:[#allocation2 + $0x23a] sm:$0xff] %vm695_vm0, %v638_v46 }
  0x8d   : > { %9789 = vrot.lane.b32.xlu1 %v9788_v53, %s13631_s22  ;;  %9784 = vrot.lane.b32.xlu0 %v9783_v54, %s13631_s22  ;;  %s13658_s22 = smov 36   ;;  %v633_v49 = vld [vmem:[%s11350_s18 + $0x210] sm:$0xff]  ;;  %891 = vst.msk [vmem:[#allocation2 + $0x20a] sm:$0xff] %vm695_vm0, %v632_v47  ;;  %v10641_v50 = vld [vmem:[%s13656_s0 + $0x18] sm:$0x3f]   ;;  %v9843_v58 = vpack.i.bf16 %v1116_v48, %v1114_v45 }
  0x8e   : > { %892 = vst.msk [vmem:[#allocation2 + $0x212] sm:$0xff] %vm695_vm0, %v633_v49  ;;  %v1246_v51 = vld [vmem:[#allocation2 + $0x122] ss:$2 sm:$0xff]  ;;  %v1248_v52 = vld [vmem:[#allocation2 + $0x132] ss:$2 sm:$0xff]  ;;  %9627 = vmatprep.subr.msk.bf16.mxu0 %vm3043_vm1, %v10641_v50  ;;  %v3045_v54 = vsel %vm3043_vm1, %v10641_v50, 0 }
  0x8f   : > { %v1242_v53 = vld [vmem:[#allocation2 + $0x102] ss:$2 sm:$0xff]  ;;  %v1244_v59 = vld [vmem:[#allocation2 + $0x112] ss:$2 sm:$0xff]  ;;  %9161 = vmatpush3.bf16.msra.mxu0 %v3045_v54  ;;  %v9858_v4 = vpack.i.bf16 %v1248_v52, %v1246_v51  ;;  %v1374_v6 = vld [vmem:[#allocation2 + $0x123] ss:$2 sm:$0xff] }
  0x90   : > { %v639_v55 = vld [vmem:[%s11350_s18 + $0x240] sm:$0xff]  ;;  %v644_v61 = vld [vmem:[%s11350_s18 + $0x268] sm:$0xff]  ;;  %v645_v62 = vld [vmem:[%s11350_s18 + $0x270] sm:$0xff]  ;;  %v9853_v5 = vpack.i.bf16 %v1244_v59, %v1242_v53  ;;  %3529 = vst.msk [vmem:[#allocation3] sm:$0xff] %vm3528_vm7, %v10933_v0 }
  0x91   : > { %9799 = vrot.lane.b32.xlu1 %v9798_v7, %s10937_s23  ;;  %9794 = vrot.lane.b32.xlu0 %v9793_v8, %s10937_s23  ;;  %898 = vst.msk [vmem:[#allocation2 + $0x242] sm:$0xff] %vm695_vm0, %v639_v55  ;;  %v643_v60 = vld [vmem:[%s11350_s18 + $0x260] sm:$0xff]  ;;  %v646_v63 = vld [vmem:[%s11350_s18 + $0x278] sm:$0xff]  ;;  %903 = vst.msk [vmem:[#allocation2 + $0x26a] sm:$0xff] %vm695_vm0, %v644_v61 }
  0x92   : > { %902 = vst.msk [vmem:[#allocation2 + $0x262] sm:$0xff] %vm695_vm0, %v643_v60  ;;  %v640_v1 = vld [vmem:[%s11350_s18 + $0x248] sm:$0xff]  ;;  %904 = vst.msk [vmem:[#allocation2 + $0x272] sm:$0xff] %vm695_vm0, %v645_v62  ;;  %v641_v2 = vld [vmem:[%s11350_s18 + $0x250] sm:$0xff] }
  0x93   : > { %905 = vst.msk [vmem:[#allocation2 + $0x27a] sm:$0xff] %vm695_vm0, %v646_v63  ;;  %899 = vst.msk [vmem:[#allocation2 + $0x24a] sm:$0xff] %vm695_vm0, %v640_v1  ;;  %v647_v3 = vld [vmem:[%s11350_s18 + $0x280] sm:$0xff]  ;;  %v1128_v19 = vld [vmem:[#allocation2 + $0x171] ss:$2 sm:$0xff] }
  0x94   : > { %900 = vst.msk [vmem:[#allocation2 + $0x252] sm:$0xff] %vm695_vm0, %v641_v2  ;;  %906 = vst.msk [vmem:[#allocation2 + $0x282] sm:$0xff] %vm695_vm0, %v647_v3  ;;  %v1376_v7 = vld [vmem:[#allocation2 + $0x133] ss:$2 sm:$0xff]  ;;  %v1370_v8 = vld [vmem:[#allocation2 + $0x103] ss:$2 sm:$0xff] }
  0x95   : > { %9809 = vrot.lane.b32.xlu1 %v9808_v20, %s10935_s19  ;;  %9804 = vrot.lane.b32.xlu0 %v9803_v21, %s10935_s19  ;;  %v1372_v9 = vld [vmem:[#allocation2 + $0x113] ss:$2 sm:$0xff]  ;;  %v9868_v10 = vpack.i.bf16 %v1376_v7, %v1374_v6  ;;  %v1502_v12 = vld [vmem:[#allocation2 + $0x124] ss:$2 sm:$0xff]  ;;  %v1504_v13 = vld [vmem:[#allocation2 + $0x134] ss:$2 sm:$0xff] }
  0x96   : > { %v9863_v11 = vpack.i.bf16 %v1372_v9, %v1370_v8  ;;  %v1498_v14 = vld [vmem:[#allocation2 + $0x104] ss:$2 sm:$0xff]  ;;  %v1500_v15 = vld [vmem:[#allocation2 + $0x114] ss:$2 sm:$0xff]  ;;  %v9878_v16 = vpack.i.bf16 %v1504_v13, %v1502_v12  ;;  %v1126_v18 = vld [vmem:[#allocation2 + $0x161] ss:$2 sm:$0xff] }
  0x97   : > { %v9873_v17 = vpack.i.bf16 %v1500_v15, %v1498_v14  ;;  %v1122_v20 = vld [vmem:[#allocation2 + $0x141] ss:$2 sm:$0xff]  ;;  %v1124_v21 = vld [vmem:[#allocation2 + $0x151] ss:$2 sm:$0xff]  ;;  %v1254_v27 = vld [vmem:[#allocation2 + $0x162] ss:$2 sm:$0xff]  ;;  %v9888_v30 = vpack.i.bf16 %v1128_v19, %v1126_v18 }
  0x98   : > { %v650_v22 = vld [vmem:[%s11350_s18 + $0x298] sm:$0xff]  ;;  %v651_v23 = vld [vmem:[%s11350_s18 + $0x2a0] sm:$0xff]  ;;  %v652_v24 = vld [vmem:[%s11350_s18 + $0x2a8] sm:$0xff]  ;;  %v9883_v31 = vpack.i.bf16 %v1124_v21, %v1122_v20  ;;  %3530 = vst.msk [vmem:[#allocation3 + $0x8] sm:$0xff] %vm3528_vm7, %v10933_v0 }
  0x99   : > { %9819 = vrot.lane.b32.xlu1 %v9818_v28, %s13657_s26  ;;  %9814 = vrot.lane.b32.xlu0 %v9813_v29, %s13657_s26  ;;  %v653_v25 = vld [vmem:[%s11350_s18 + $0x2b0] sm:$0xff]  ;;  %v654_v26 = vld [vmem:[%s11350_s18 + $0x2b8] sm:$0xff]  ;;  %909 = vst.msk [vmem:[#allocation2 + $0x29a] sm:$0xff] %vm695_vm0, %v650_v22  ;;  %910 = vst.msk [vmem:[#allocation2 + $0x2a2] sm:$0xff] %vm695_vm0, %v651_v23 }
  0x9a   : > { %911 = vst.msk [vmem:[#allocation2 + $0x2aa] sm:$0xff] %vm695_vm0, %v652_v24  ;;  %912 = vst.msk [vmem:[#allocation2 + $0x2b2] sm:$0xff] %vm695_vm0, %v653_v25  ;;  %v648_v28 = vld [vmem:[%s11350_s18 + $0x288] sm:$0xff]  ;;  %v649_v29 = vld [vmem:[%s11350_s18 + $0x290] sm:$0xff] }
  0x9b   : > { %913 = vst.msk [vmem:[#allocation2 + $0x2ba] sm:$0xff] %vm695_vm0, %v654_v26  ;;  %v1256_v32 = vld [vmem:[#allocation2 + $0x172] ss:$2 sm:$0xff]  ;;  %v1250_v33 = vld [vmem:[#allocation2 + $0x142] ss:$2 sm:$0xff]  ;;  %907 = vst.msk [vmem:[#allocation2 + $0x28a] sm:$0xff] %vm695_vm0, %v648_v28 }
  0x9c   : > { %908 = vst.msk [vmem:[#allocation2 + $0x292] sm:$0xff] %vm695_vm0, %v649_v29  ;;  %v658_v36 = vld [vmem:[%s11350_s18 + $0x2d8] sm:$0xff]  ;;  %v659_v37 = vld [vmem:[%s11350_s18 + $0x2e0] sm:$0xff]  ;;  %v660_v38 = vld [vmem:[%s11350_s18 + $0x2e8] sm:$0xff] }
  0x9d   : > { %9829 = vrot.lane.b32.xlu1 %v9828_v34, %s13658_s22  ;;  %9824 = vrot.lane.b32.xlu0 %v9823_v35, %s13658_s22  ;;  %v1252_v34 = vld [vmem:[#allocation2 + $0x152] ss:$2 sm:$0xff]  ;;  %917 = vst.msk [vmem:[#allocation2 + $0x2da] sm:$0xff] %vm695_vm0, %v658_v36  ;;  %918 = vst.msk [vmem:[#allocation2 + $0x2e2] sm:$0xff] %vm695_vm0, %v659_v37  ;;  %v1382_v41 = vld [vmem:[#allocation2 + $0x163] ss:$2 sm:$0xff] }
  0x9e   : > { %v655_v35 = vld [vmem:[%s11350_s18 + $0x2c0] sm:$0xff]  ;;  %v661_v39 = vld [vmem:[%s11350_s18 + $0x2f0] sm:$0xff]  ;;  %v662_v40 = vld [vmem:[%s11350_s18 + $0x2f8] sm:$0xff]  ;;  %919 = vst.msk [vmem:[#allocation2 + $0x2ea] sm:$0xff] %vm695_vm0, %v660_v38  ;;  %v9893_v45 = vpack.i.bf16 %v1252_v34, %v1250_v33 }
  0x9f   : > { %914 = vst.msk [vmem:[#allocation2 + $0x2c2] sm:$0xff] %vm695_vm0, %v655_v35  ;;  %920 = vst.msk [vmem:[#allocation2 + $0x2f2] sm:$0xff] %vm695_vm0, %v661_v39  ;;  %v656_v42 = vld [vmem:[%s11350_s18 + $0x2c8] sm:$0xff]  ;;  %v1384_v46 = vld [vmem:[#allocation2 + $0x173] ss:$2 sm:$0xff] }
  0xa0   : > { %921 = vst.msk [vmem:[#allocation2 + $0x2fa] sm:$0xff] %vm695_vm0, %v662_v40  ;;  %v1378_v47 = vld [vmem:[#allocation2 + $0x143] ss:$2 sm:$0xff]  ;;  %v1380_v48 = vld [vmem:[#allocation2 + $0x153] ss:$2 sm:$0xff]  ;;  %915 = vst.msk [vmem:[#allocation2 + $0x2ca] sm:$0xff] %vm695_vm0, %v656_v42  ;;  %v9908_v52 = vpack.i.bf16 %v1384_v46, %v1382_v41 }
  0xa1   : > { %9839 = vrot.lane.b32.xlu1 %v9838_v43, %s10937_s23  ;;  %9834 = vrot.lane.b32.xlu0 %v9833_v44, %s10937_s23  ;;  %v657_v43 = vld [vmem:[%s11350_s18 + $0x2d0] sm:$0xff]  ;;  %v9898_v44 = vpack.i.bf16 %v1256_v32, %v1254_v27  ;;  %v663_v49 = vld [vmem:[%s11350_s18 + $0x300] sm:$0xff]  ;;  %v9903_v53 = vpack.i.bf16 %v1380_v48, %v1378_v47  ;;  %3533 = vst.msk [vmem:[#allocation3 + $0x20] sm:$0xff] %vm3528_vm7, %v10933_v0  ;;  %3534 = vst.msk [vmem:[#allocation3 + $0x28] sm:$0xff] %vm3528_vm7, %v10933_v0 }
  0xa2   : > { %916 = vst.msk [vmem:[#allocation2 + $0x2d2] sm:$0xff] %vm695_vm0, %v657_v43  ;;  %v666_v50 = vld [vmem:[%s11350_s18 + $0x318] sm:$0xff]  ;;  %v667_v51 = vld [vmem:[%s11350_s18 + $0x320] sm:$0xff]  ;;  %922 = vst.msk [vmem:[#allocation2 + $0x302] sm:$0xff] %vm695_vm0, %v663_v49 }
  0xa3   : > { %925 = vst.msk [vmem:[#allocation2 + $0x31a] sm:$0xff] %vm695_vm0, %v666_v50  ;;  %926 = vst.msk [vmem:[#allocation2 + $0x322] sm:$0xff] %vm695_vm0, %v667_v51  ;;  %v1510_v54 = vld [vmem:[#allocation2 + $0x164] ss:$2 sm:$0xff]  ;;  %v1512_v55 = vld [vmem:[#allocation2 + $0x174] ss:$2 sm:$0xff] }
  0xa4   : > { %v1506_v56 = vld [vmem:[#allocation2 + $0x144] ss:$2 sm:$0xff]  ;;  %v1134_v60 = vld [vmem:[#allocation2 + $0x1a1] ss:$2 sm:$0xff]  ;;  %v1136_v61 = vld [vmem:[#allocation2 + $0x1b1] ss:$2 sm:$0xff] }
  0xa5   : > { %9849 = vrot.lane.b32.xlu1 %v9848_v57, %s10935_s19  ;;  %9844 = vrot.lane.b32.xlu0 %v9843_v58, %s10935_s19  ;;  %v1508_v57 = vld [vmem:[#allocation2 + $0x154] ss:$2 sm:$0xff]  ;;  %v9918_v58 = vpack.i.bf16 %v1512_v55, %v1510_v54  ;;  %v1130_v62 = vld [vmem:[#allocation2 + $0x181] ss:$2 sm:$0xff]  ;;  %v1132_v63 = vld [vmem:[#allocation2 + $0x191] ss:$2 sm:$0xff]  ;;  %v9928_v3 = vpack.i.bf16 %v1136_v61, %v1134_v60 }
  0xa6   : > { %v9913_v59 = vpack.i.bf16 %v1508_v57, %v1506_v56  ;;  %v1262_v1 = vld [vmem:[#allocation2 + $0x1a2] ss:$2 sm:$0xff]  ;;  %v1264_v2 = vld [vmem:[#allocation2 + $0x1b2] ss:$2 sm:$0xff]  ;;  %v1390_v12 = vld [vmem:[#allocation2 + $0x1a3] ss:$2 sm:$0xff] }
  0xa7   : > { %v1260_v6 = vld [vmem:[#allocation2 + $0x192] ss:$2 sm:$0xff]  ;;  %v668_v7 = vld [vmem:[%s11350_s18 + $0x328] sm:$0xff]  ;;  %v1392_v13 = vld [vmem:[#allocation2 + $0x1b3] ss:$2 sm:$0xff]  ;;  %3535 = vst.msk [vmem:[#allocation3 + $0x30] sm:$0xff] %vm3528_vm7, %v10933_v0 }
  0xa8   : > { %v669_v8 = vld [vmem:[%s11350_s18 + $0x330] sm:$0xff]  ;;  %v670_v9 = vld [vmem:[%s11350_s18 + $0x338] sm:$0xff]  ;;  %927 = vst.msk [vmem:[#allocation2 + $0x32a] sm:$0xff] %vm695_vm0, %v668_v7  ;;  %v671_v15 = vld [vmem:[%s11350_s18 + $0x340] sm:$0xff]  ;;  %v9948_v27 = vpack.i.bf16 %v1392_v13, %v1390_v12 }
  0xa9   : > { %9859 = vrot.lane.b32.xlu1 %v9858_v4, %s13657_s26  ;;  %9854 = vrot.lane.b32.xlu0 %v9853_v5, %s13657_s26  ;;  %v9923_v4 = vpack.i.bf16 %v1132_v63, %v1130_v62  ;;  %v1258_v5 = vld [vmem:[#allocation2 + $0x182] ss:$2 sm:$0xff]  ;;  %928 = vst.msk [vmem:[#allocation2 + $0x332] sm:$0xff] %vm695_vm0, %v669_v8  ;;  %929 = vst.msk [vmem:[#allocation2 + $0x33a] sm:$0xff] %vm695_vm0, %v670_v9  ;;  %v1386_v14 = vld [vmem:[#allocation2 + $0x183] ss:$2 sm:$0xff] }
  0xaa   : > { %v1388_v18 = vld [vmem:[#allocation2 + $0x193] ss:$2 sm:$0xff]  ;;  %930 = vst.msk [vmem:[#allocation2 + $0x342] sm:$0xff] %vm695_vm0, %v671_v15  ;;  %v676_v21 = vld [vmem:[%s11350_s18 + $0x368] sm:$0xff]  ;;  %v1516_v32 = vld [vmem:[#allocation2 + $0x194] ss:$2 sm:$0xff] }
  0xab   : > { %v674_v19 = vld [vmem:[%s11350_s18 + $0x358] sm:$0xff]  ;;  %v675_v20 = vld [vmem:[%s11350_s18 + $0x360] sm:$0xff]  ;;  %v677_v22 = vld [vmem:[%s11350_s18 + $0x370] sm:$0xff]  ;;  %935 = vst.msk [vmem:[#allocation2 + $0x36a] sm:$0xff] %vm695_vm0, %v676_v21  ;;  %v9943_v28 = vpack.i.bf16 %v1388_v18, %v1386_v14 }
  0xac   : > { %v678_v23 = vld [vmem:[%s11350_s18 + $0x378] sm:$0xff]  ;;  %933 = vst.msk [vmem:[#allocation2 + $0x35a] sm:$0xff] %vm695_vm0, %v674_v19  ;;  %934 = vst.msk [vmem:[#allocation2 + $0x362] sm:$0xff] %vm695_vm0, %v675_v20  ;;  %v672_v24 = vld [vmem:[%s11350_s18 + $0x348] sm:$0xff] }
  0xad   : > { %9869 = vrot.lane.b32.xlu1 %v9868_v10, %s13658_s22  ;;  %9864 = vrot.lane.b32.xlu0 %v9863_v11, %s13658_s22  ;;  %v664_v10 = vld [vmem:[%s11350_s18 + $0x308] sm:$0xff]  ;;  %v665_v11 = vld [vmem:[%s11350_s18 + $0x310] sm:$0xff]  ;;  %936 = vst.msk [vmem:[#allocation2 + $0x372] sm:$0xff] %vm695_vm0, %v677_v22  ;;  %937 = vst.msk [vmem:[#allocation2 + $0x37a] sm:$0xff] %vm695_vm0, %v678_v23 }
  0xae   : > { %923 = vst.msk [vmem:[#allocation2 + $0x30a] sm:$0xff] %vm695_vm0, %v664_v10  ;;  %924 = vst.msk [vmem:[#allocation2 + $0x312] sm:$0xff] %vm695_vm0, %v665_v11  ;;  %v673_v25 = vld [vmem:[%s11350_s18 + $0x350] sm:$0xff]  ;;  %v679_v26 = vld [vmem:[%s11350_s18 + $0x380] sm:$0xff] }
  0xaf   : > { %931 = vst.msk [vmem:[#allocation2 + $0x34a] sm:$0xff] %vm695_vm0, %v672_v24  ;;  %932 = vst.msk [vmem:[#allocation2 + $0x352] sm:$0xff] %vm695_vm0, %v673_v25  ;;  %v1518_v29 = vld [vmem:[#allocation2 + $0x1a4] ss:$2 sm:$0xff]  ;;  %v1142_v35 = vld [vmem:[#allocation2 + $0x1e1] ss:$2 sm:$0xff] }
  0xb0   : > { %938 = vst.msk [vmem:[#allocation2 + $0x382] sm:$0xff] %vm695_vm0, %v679_v26  ;;  %v1144_v36 = vld [vmem:[#allocation2 + $0x1f1] ss:$2 sm:$0xff]  ;;  %v1138_v37 = vld [vmem:[#allocation2 + $0x1c1] ss:$2 sm:$0xff] }
  0xb1   : > { %9879 = vrot.lane.b32.xlu1 %v9878_v16, %s10937_s23  ;;  %9874 = vrot.lane.b32.xlu0 %v9873_v17, %s10937_s23  ;;  %v9938_v16 = vpack.i.bf16 %v1264_v2, %v1262_v1  ;;  %v9933_v17 = vpack.i.bf16 %v1260_v6, %v1258_v5  ;;  %v1140_v38 = vld [vmem:[#allocation2 + $0x1d1] ss:$2 sm:$0xff]  ;;  %v9968_v39 = vpack.i.bf16 %v1144_v36, %v1142_v35  ;;  %v1270_v41 = vld [vmem:[#allocation2 + $0x1e2] ss:$2 sm:$0xff]  ;;  %v1272_v42 = vld [vmem:[#allocation2 + $0x1f2] ss:$2 sm:$0xff] }
  0xb2   : > { %v9963_v40 = vpack.i.bf16 %v1140_v38, %v1138_v37  ;;  %v1266_v43 = vld [vmem:[#allocation2 + $0x1c2] ss:$2 sm:$0xff]  ;;  %v1398_v46 = vld [vmem:[#allocation2 + $0x1e3] ss:$2 sm:$0xff]  ;;  %v9978_v50 = vpack.i.bf16 %v1272_v42, %v1270_v41  ;;  %v1396_v56 = vld [vmem:[#allocation2 + $0x1d3] ss:$2 sm:$0xff] }
  0xb3   : > { %v683_v47 = vld [vmem:[%s11350_s18 + $0x3a0] sm:$0xff]  ;;  %v684_v48 = vld [vmem:[%s11350_s18 + $0x3a8] sm:$0xff]  ;;  %v685_v49 = vld [vmem:[%s11350_s18 + $0x3b0] sm:$0xff]  ;;  %3536 = vst.msk [vmem:[#allocation3 + $0x38] sm:$0xff] %vm3528_vm7, %v10933_v0 }
  0xb4   : > { %942 = vst.msk [vmem:[#allocation2 + $0x3a2] sm:$0xff] %vm695_vm0, %v683_v47  ;;  %943 = vst.msk [vmem:[#allocation2 + $0x3aa] sm:$0xff] %vm695_vm0, %v684_v48  ;;  %v680_v54 = vld [vmem:[%s11350_s18 + $0x388] sm:$0xff]  ;;  %v681_v57 = vld [vmem:[%s11350_s18 + $0x390] sm:$0xff] }
  0xb5   : > { %9889 = vrot.lane.b32.xlu1 %v9888_v30, %s10935_s19  ;;  %9884 = vrot.lane.b32.xlu0 %v9883_v31, %s10935_s19  ;;  %v1520_v30 = vld [vmem:[#allocation2 + $0x1b4] ss:$2 sm:$0xff]  ;;  %v1514_v31 = vld [vmem:[#allocation2 + $0x184] ss:$2 sm:$0xff]  ;;  %944 = vst.msk [vmem:[#allocation2 + $0x3b2] sm:$0xff] %vm695_vm0, %v685_v49  ;;  %939 = vst.msk [vmem:[#allocation2 + $0x38a] sm:$0xff] %vm695_vm0, %v680_v54 }
  0xb6   : > { %v9958_v33 = vpack.i.bf16 %v1520_v30, %v1518_v29  ;;  %v9953_v34 = vpack.i.bf16 %v1516_v32, %v1514_v31  ;;  %v1394_v55 = vld [vmem:[#allocation2 + $0x1c3] ss:$2 sm:$0xff]  ;;  %940 = vst.msk [vmem:[#allocation2 + $0x392] sm:$0xff] %vm695_vm0, %v681_v57  ;;  %v690_v61 = vld [vmem:[%s11350_s18 + $0x3d8] sm:$0xff]  ;;  %v1526_v62 = vld [vmem:[#allocation2 + $0x1e4] ss:$2 sm:$0xff] }
  0xb7   : > { %v687_v60 = vld [vmem:[%s11350_s18 + $0x3c0] sm:$0xff]  ;;  %v692_v2 = vld [vmem:[%s11350_s18 + $0x3e8] sm:$0xff]  ;;  %949 = vst.msk [vmem:[#allocation2 + $0x3da] sm:$0xff] %vm695_vm0, %v690_v61  ;;  %v9983_v5 = vpack.i.bf16 %v1396_v56, %v1394_v55  ;;  %v694_v7 = vld [vmem:[%s11350_s18 + $0x3f8] sm:$0xff] }
  0xb8   : > { %v1528_v63 = vld [vmem:[#allocation2 + $0x1f4] ss:$2 sm:$0xff]  ;;  %946 = vst.msk [vmem:[#allocation2 + $0x3c2] sm:$0xff] %vm695_vm0, %v687_v60  ;;  %v1522_v6 = vld [vmem:[#allocation2 + $0x1c4] ss:$2 sm:$0xff]  ;;  %951 = vst.msk [vmem:[#allocation2 + $0x3ea] sm:$0xff] %vm695_vm0, %v692_v2 }
  0xb9   : > { %9899 = vrot.lane.b32.xlu1 %v9898_v44, %s13657_s26  ;;  %9894 = vrot.lane.b32.xlu0 %v9893_v45, %s13657_s26  ;;  %v1268_v44 = vld [vmem:[#allocation2 + $0x1d2] ss:$2 sm:$0xff]  ;;  %v688_v8 = vld [vmem:[%s11350_s18 + $0x3c8] sm:$0xff]  ;;  %953 = vst.msk [vmem:[#allocation2 + $0x3fa] sm:$0xff] %vm695_vm0, %v694_v7  ;;  %v1152_v14 = vld [vmem:[#allocation2 + $0x231] ss:$2 sm:$0xff]  ;;  %v9998_v23 = vpack.i.bf16 %v1528_v63, %v1526_v62 }
  0xba   : > { %v682_v45 = vld [vmem:[%s11350_s18 + $0x398] sm:$0xff]  ;;  %v9973_v51 = vpack.i.bf16 %v1268_v44, %v1266_v43  ;;  %v691_v1 = vld [vmem:[%s11350_s18 + $0x3e0] sm:$0xff]  ;;  %v689_v11 = vld [vmem:[%s11350_s18 + $0x3d0] sm:$0xff]  ;;  %947 = vst.msk [vmem:[#allocation2 + $0x3ca] sm:$0xff] %vm695_vm0, %v688_v8 }
  0xbb   : > { %941 = vst.msk [vmem:[#allocation2 + $0x39a] sm:$0xff] %vm695_vm0, %v682_v45  ;;  %950 = vst.msk [vmem:[#allocation2 + $0x3e2] sm:$0xff] %vm695_vm0, %v691_v1  ;;  %v1524_v9 = vld [vmem:[#allocation2 + $0x1d4] ss:$2 sm:$0xff]  ;;  %v1150_v10 = vld [vmem:[#allocation2 + $0x221] ss:$2 sm:$0xff] }
  0xbc   : > { %948 = vst.msk [vmem:[#allocation2 + $0x3d2] sm:$0xff] %vm695_vm0, %v689_v11  ;;  %v956_v20 = vld [vmem:[#allocation2 + $0x10] ss:$2 sm:$0xff]  ;;  %v954_v21 = vld [vmem:[#allocation2] ss:$2 sm:$0xff]  ;;  %v9993_v24 = vpack.i.bf16 %v1524_v9, %v1522_v6  ;;  %v10008_v26 = vpack.i.bf16 %v1152_v14, %v1150_v10 }
  0xbd   : > { %9909 = vrot.lane.b32.xlu1 %v9908_v52, %s13658_s22  ;;  %9904 = vrot.lane.b32.xlu0 %v9903_v53, %s13658_s22  ;;  %v1400_v52 = vld [vmem:[#allocation2 + $0x1f3] ss:$2 sm:$0xff]  ;;  %v960_v22 = vld [vmem:[#allocation2 + $0x30] ss:$2 sm:$0xff]  ;;  %v1406_v63 = vld [vmem:[#allocation2 + $0x223] ss:$2 sm:$0xff] }
  0xbe   : > { %v686_v53 = vld [vmem:[%s11350_s18 + $0x3b8] sm:$0xff]  ;;  %v1278_v29 = vld [vmem:[#allocation2 + $0x222] ss:$2 sm:$0xff]  ;;  %v1402_v6 = vld [vmem:[#allocation2 + $0x203] ss:$2 sm:$0xff]  ;;  %3537 = vst.msk [vmem:[#allocation3 + $0x40] sm:$0xff] %vm3528_vm7, %v10933_v0 }
  0xbf   : > { %945 = vst.msk [vmem:[#allocation2 + $0x3ba] sm:$0xff] %vm695_vm0, %v686_v53  ;;  %v1280_v36 = vld [vmem:[#allocation2 + $0x232] ss:$2 sm:$0xff]  ;;  %v1274_v37 = vld [vmem:[#allocation2 + $0x202] ss:$2 sm:$0xff] }
  0xc0   : > { %v1276_v38 = vld [vmem:[#allocation2 + $0x212] ss:$2 sm:$0xff]  ;;  %v10018_v48 = vpack.i.bf16 %v1280_v36, %v1278_v29  ;;  %v1404_v7 = vld [vmem:[#allocation2 + $0x213] ss:$2 sm:$0xff]  ;;  %3538 = vst.msk [vmem:[#allocation3 + $0x48] sm:$0xff] %vm3528_vm7, %v10933_v0  ;;  %3539 = vst.msk [vmem:[#allocation3 + $0x50] sm:$0xff] %vm3528_vm7, %v10933_v0 }
  0xc1   : > { %9919 = vrot.lane.b32.xlu1 %v9918_v58, %s10937_s23  ;;  %9914 = vrot.lane.b32.xlu0 %v9913_v59, %s10937_s23  ;;  %v10013_v49 = vpack.i.bf16 %v1276_v38, %v1274_v37  ;;  %v1530_v14 = vld [vmem:[#allocation2 + $0x204] ss:$2 sm:$0xff]  ;;  %3540 = vst.msk [vmem:[#allocation3 + $0x58] sm:$0xff] %vm3528_vm7, %v10933_v0  ;;  %3541 = vst.msk [vmem:[#allocation3 + $0x60] sm:$0xff] %vm3528_vm7, %v10933_v0 }
  0xc2   : > { %3542 = vst.msk [vmem:[#allocation3 + $0x68] sm:$0xff] %vm3528_vm7, %v10933_v0  ;;  %3543 = vst.msk [vmem:[#allocation3 + $0x70] sm:$0xff] %vm3528_vm7, %v10933_v0 }
  0xc3   : > { %3544 = vst.msk [vmem:[#allocation3 + $0x78] sm:$0xff] %vm3528_vm7, %v10933_v0  ;;  %3545 = vst.msk [vmem:[#allocation3 + $0x80] sm:$0xff] %vm3528_vm7, %v10933_v0 }
  0xc4   : > { %3546 = vst.msk [vmem:[#allocation3 + $0x88] sm:$0xff] %vm3528_vm7, %v10933_v0  ;;  %3547 = vst.msk [vmem:[#allocation3 + $0x90] sm:$0xff] %vm3528_vm7, %v10933_v0 }
  0xc5   : > { %9929 = vrot.lane.b32.xlu1 %v9928_v3, %s10935_s19  ;;  %9924 = vrot.lane.b32.xlu0 %v9923_v4, %s10935_s19  ;;  %v693_v3 = vld [vmem:[%s11350_s18 + $0x3f0] sm:$0xff]  ;;  %v9988_v4 = vpack.i.bf16 %v1400_v52, %v1398_v46  ;;  %3548 = vst.msk [vmem:[#allocation3 + $0x98] sm:$0xff] %vm3528_vm7, %v10933_v0  ;;  %3549 = vst.msk [vmem:[#allocation3 + $0xa0] sm:$0xff] %vm3528_vm7, %v10933_v0  ;;  %s13667_s18 = smov 32  }
  0xc6   : > { %952 = vst.msk [vmem:[#allocation2 + $0x3f2] sm:$0xff] %vm695_vm0, %v693_v3 }
  0xc7   : > { %3550 = vst.msk [vmem:[#allocation3 + $0xa8] sm:$0xff] %vm3528_vm7, %v10933_v0  ;;  %3551 = vst.msk [vmem:[#allocation3 + $0xb0] sm:$0xff] %vm3528_vm7, %v10933_v0 }
  0xc8   : > { %3552 = vst.msk [vmem:[#allocation3 + $0xb8] sm:$0xff] %vm3528_vm7, %v10933_v0  ;;  %3553 = vst.msk [vmem:[#allocation3 + $0xc0] sm:$0xff] %vm3528_vm7, %v10933_v0 }
  0xc9   : > { %9939 = vrot.lane.b32.xlu1 %v9938_v16, %s13657_s26  ;;  %9934 = vrot.lane.b32.xlu0 %v9933_v17, %s13657_s26  ;;  %v958_v17 = vld [vmem:[#allocation2 + $0x20] ss:$2 sm:$0xff]  ;;  %3554 = vst.msk [vmem:[#allocation3 + $0xc8] sm:$0xff] %vm3528_vm7, %v10933_v0  ;;  %3555 = vst.msk [vmem:[#allocation3 + $0xd0] sm:$0xff] %vm3528_vm7, %v10933_v0 }
  0xca   : > { %3556 = vst.msk [vmem:[#allocation3 + $0xd8] sm:$0xff] %vm3528_vm7, %v10933_v0  ;;  %3557 = vst.msk [vmem:[#allocation3 + $0xe0] sm:$0xff] %vm3528_vm7, %v10933_v0 }
  0xcb   : > { %3558 = vst.msk [vmem:[#allocation3 + $0xe8] sm:$0xff] %vm3528_vm7, %v10933_v0  ;;  %3559 = vst.msk [vmem:[#allocation3 + $0xf0] sm:$0xff] %vm3528_vm7, %v10933_v0 }
  0xcc   : > { %3560 = vst.msk [vmem:[#allocation3 + $0xf8] sm:$0xff] %vm3528_vm7, %v10933_v0  ;;  %3561 = vst.msk [vmem:[#allocation3 + $0x100] sm:$0xff] %vm3528_vm7, %v10933_v0 }
  0xcd   : > { %9949 = vrot.lane.b32.xlu1 %v9948_v27, %s13658_s22  ;;  %9944 = vrot.lane.b32.xlu0 %v9943_v28, %s13658_s22  ;;  %v1146_v27 = vld [vmem:[#allocation2 + $0x201] ss:$2 sm:$0xff]  ;;  %v1148_v28 = vld [vmem:[#allocation2 + $0x211] ss:$2 sm:$0xff]  ;;  %3562 = vst.msk [vmem:[#allocation3 + $0x108] sm:$0xff] %vm3528_vm7, %v10933_v0  ;;  %3563 = vst.msk [vmem:[#allocation3 + $0x110] sm:$0xff] %vm3528_vm7, %v10933_v0 }
  0xce   : > { %v10003_v46 = vpack.i.bf16 %v1148_v28, %v1146_v27  ;;  %v966_v27 = vld [vmem:[#allocation2 + $0x60] ss:$2 sm:$0xff]  ;;  %v968_v28 = vld [vmem:[#allocation2 + $0x70] ss:$2 sm:$0xff]  ;;  %3564 = vst.msk [vmem:[#allocation3 + $0x118] sm:$0xff] %vm3528_vm7, %v10933_v0  ;;  %3565 = vst.msk [vmem:[#allocation3 + $0x120] sm:$0xff] %vm3528_vm7, %v10933_v0 }
  0xcf   : > { %3566 = vst.msk [vmem:[#allocation3 + $0x128] sm:$0xff] %vm3528_vm7, %v10933_v0  ;;  %3567 = vst.msk [vmem:[#allocation3 + $0x130] sm:$0xff] %vm3528_vm7, %v10933_v0 }
  0xd0   : > { %3568 = vst.msk [vmem:[#allocation3 + $0x138] sm:$0xff] %vm3528_vm7, %v10933_v0  ;;  %3569 = vst.msk [vmem:[#allocation3 + $0x140] sm:$0xff] %vm3528_vm7, %v10933_v0 }
  0xd1   : > { %9959 = vrot.lane.b32.xlu1 %v9958_v33, %s10937_s23  ;;  %9954 = vrot.lane.b32.xlu0 %v9953_v34, %s10937_s23  ;;  %3570 = vst.msk [vmem:[#allocation3 + $0x148] sm:$0xff] %vm3528_vm7, %v10933_v0  ;;  %3571 = vst.msk [vmem:[#allocation3 + $0x150] sm:$0xff] %vm3528_vm7, %v10933_v0 }
  0xd2   : > { %3572 = vst.msk [vmem:[#allocation3 + $0x158] sm:$0xff] %vm3528_vm7, %v10933_v0  ;;  %3573 = vst.msk [vmem:[#allocation3 + $0x160] sm:$0xff] %vm3528_vm7, %v10933_v0 }
  0xd3   : > { %3574 = vst.msk [vmem:[#allocation3 + $0x168] sm:$0xff] %vm3528_vm7, %v10933_v0  ;;  %3575 = vst.msk [vmem:[#allocation3 + $0x170] sm:$0xff] %vm3528_vm7, %v10933_v0 }
  0xd4   : > { %3576 = vst.msk [vmem:[#allocation3 + $0x178] sm:$0xff] %vm3528_vm7, %v10933_v0  ;;  %3577 = vst.msk [vmem:[#allocation3 + $0x180] sm:$0xff] %vm3528_vm7, %v10933_v0 }
  0xd5   : > { %9969 = vrot.lane.b32.xlu1 %v9968_v39, %s10935_s19  ;;  %9964 = vrot.lane.b32.xlu0 %v9963_v40, %s10935_s19  ;;  %3578 = vst.msk [vmem:[#allocation3 + $0x188] sm:$0xff] %vm3528_vm7, %v10933_v0  ;;  %3579 = vst.msk [vmem:[#allocation3 + $0x190] sm:$0xff] %vm3528_vm7, %v10933_v0 }
  0xd6   : > { %3580 = vst.msk [vmem:[#allocation3 + $0x198] sm:$0xff] %vm3528_vm7, %v10933_v0  ;;  %3581 = vst.msk [vmem:[#allocation3 + $0x1a0] sm:$0xff] %vm3528_vm7, %v10933_v0 }
  0xd7   : > { %v11662_v58 = vpop.permute.xlu1 %9694  ;;  %v9685_v59 = vpop.permute.xlu0 %9684  ;;  %3582 = vst.msk [vmem:[#allocation3 + $0x1a8] sm:$0xff] %vm3528_vm7, %v10933_v0  ;;  %3583 = vst.msk [vmem:[#allocation3 + $0x1b0] sm:$0xff] %vm3528_vm7, %v10933_v0 }
  0xd8   : > { %v9687_v15 = vunpack.i.h.bf16 %v9685_v59  ;;  %v9686_v16 = vunpack.i.l.bf16 %v9685_v59  ;;  %v9697_v30 = vunpack.i.h.bf16 %v11662_v58  ;;  %v9696_v31 = vunpack.i.l.bf16 %v11662_v58  ;;  %3584 = vst.msk [vmem:[#allocation3 + $0x1b8] sm:$0xff] %vm3528_vm7, %v10933_v0  ;;  %3585 = vst.msk [vmem:[#allocation3 + $0x1c0] sm:$0xff] %vm3528_vm7, %v10933_v0 }
  0xd9   : > { %9979 = vrot.lane.b32.xlu1 %v9978_v50, %s13657_s26  ;;  %9974 = vrot.lane.b32.xlu0 %v9973_v51, %s13657_s26  ;;  %3586 = vst.msk [vmem:[#allocation3 + $0x1c8] sm:$0xff] %vm3528_vm7, %v10933_v0  ;;  %3587 = vst.msk [vmem:[#allocation3 + $0x1d0] sm:$0xff] %vm3528_vm7, %v10933_v0 }
  0xda   : > { %v2618_v39 = vsel %vm695_vm0, %v956_v20, %v9687_v15  ;;  %v2617_v40 = vsel %vm695_vm0, %v954_v21, %v9686_v16  ;;  %v10023_v16 = vpack.i.bf16 %v1404_v7, %v1402_v6  ;;  %3588 = vst.msk [vmem:[#allocation3 + $0x1d8] sm:$0xff] %vm3528_vm7, %v10933_v0  ;;  %3589 = vst.msk [vmem:[#allocation3 + $0x1e0] sm:$0xff] %vm3528_vm7, %v10933_v0 }
  0xdb   : > { %v9700_v12 = vpop.permute.xlu1 %9699  ;;  %v9690_v13 = vpop.permute.xlu0 %9689  ;;  %v2682_v54 = vsel %vm2681_vm3, %v2617_v40, %v9696_v31  ;;  %v2683_v55 = vsel %vm2681_vm3, %v2618_v39, %v9697_v30  ;;  %v962_v30 = vld [vmem:[#allocation2 + $0x40] ss:$2 sm:$0xff]  ;;  %v964_v31 = vld [vmem:[#allocation2 + $0x50] ss:$2 sm:$0xff]  ;;  %3590 = vst.msk [vmem:[#allocation3 + $0x1e8] sm:$0xff] %vm3528_vm7, %v10933_v0  ;;  %3591 = vst.msk [vmem:[#allocation3 + $0x1f0] sm:$0xff] %vm3528_vm7, %v10933_v0 }
  0xdc   : > { %v9692_v18 = vunpack.i.h.bf16 %v9690_v13  ;;  %v9691_v19 = vunpack.i.l.bf16 %v9690_v13  ;;  %v9701_v25 = vunpack.i.l.bf16 %v9700_v12  ;;  %v9702_v32 = vunpack.i.h.bf16 %v9700_v12  ;;  %v1534_v12 = vld [vmem:[#allocation2 + $0x224] ss:$2 sm:$0xff]  ;;  %v1536_v13 = vld [vmem:[#allocation2 + $0x234] ss:$2 sm:$0xff]  ;;  %3592 = vst.msk [vmem:[#allocation3 + $0x1f8] sm:$0xff] %vm3528_vm7, %v10933_v0  ;;  %5155 = vst.msk [vmem:[#allocation5] sm:$0xff] %vm3528_vm7, %v10933_v0 }
  0xdd   : > { %9989 = vrot.lane.b32.xlu1 %v9988_v4, %s13658_s22  ;;  %9984 = vrot.lane.b32.xlu0 %v9983_v5, %s13658_s22  ;;  %v1408_v5 = vld [vmem:[#allocation2 + $0x233] ss:$2 sm:$0xff]  ;;  %5156 = vst.msk [vmem:[#allocation5 + $0x8] sm:$0xff] %vm3528_vm7, %v10933_v0  ;;  %5157 = vst.msk [vmem:[#allocation5 + $0x10] sm:$0xff] %vm3528_vm7, %v10933_v0 }
  0xde   : > { %v2619_v33 = vsel %vm695_vm0, %v958_v17, %v9691_v19  ;;  %v2620_v41 = vsel %vm695_vm0, %v960_v22, %v9692_v18  ;;  %v10028_v15 = vpack.i.bf16 %v1408_v5, %v1406_v63  ;;  %v1532_v17 = vld [vmem:[#allocation2 + $0x214] ss:$2 sm:$0xff]  ;;  %v1158_v18 = vld [vmem:[#allocation2 + $0x261] ss:$2 sm:$0xff]  ;;  %v1160_v19 = vld [vmem:[#allocation2 + $0x271] ss:$2 sm:$0xff] }
  0xdf   : > { %v9710_v34 = vpop.permute.xlu1 %9709  ;;  %v9705_v35 = vpop.permute.xlu0 %9704  ;;  %v2684_v47 = vsel %vm2681_vm3, %v2619_v33, %v9701_v25  ;;  %v2685_v50 = vsel %vm2681_vm3, %v2620_v41, %v9702_v32  ;;  %v1154_v22 = vld [vmem:[#allocation2 + $0x241] ss:$2 sm:$0xff]  ;;  %v11713_v25 = vld [vmem:[#allocation2 + $0x272] ss:$2 sm:$0xff]  ;;  %v10038_v32 = vpack.i.bf16 %v1536_v13, %v1534_v12  ;;  %v10033_v33 = vpack.i.bf16 %v1532_v17, %v1530_v14  ;;  %5158 = vst.msk [vmem:[#allocation5 + $0x18] sm:$0xff] %vm3528_vm7, %v10933_v0 }
  0xe0   : > { %v9711_v42 = vunpack.i.l.bf16 %v9710_v34  ;;  %v9712_v43 = vunpack.i.h.bf16 %v9710_v34  ;;  %v9707_v44 = vunpack.i.h.bf16 %v9705_v35  ;;  %v9706_v45 = vunpack.i.l.bf16 %v9705_v35  ;;  %v1284_v34 = vld [vmem:[#allocation2 + $0x252] ss:$2 sm:$0xff]  ;;  %v1410_v13 = vld [vmem:[#allocation2 + $0x243] ss:$2 sm:$0xff]  ;;  %v1412_v14 = vld [vmem:[#allocation2 + $0x253] ss:$2 sm:$0xff] }
  0xe1   : > { %9999 = vrot.lane.b32.xlu1 %v9998_v23, %s10937_s23  ;;  %9994 = vrot.lane.b32.xlu0 %v9993_v24, %s10937_s23  ;;  %v1156_v23 = vld [vmem:[#allocation2 + $0x251] ss:$2 sm:$0xff]  ;;  %v11711_v24 = vld [vmem:[#allocation2 + $0x262] ss:$2 sm:$0xff]  ;;  %5159 = vst.msk [vmem:[#allocation5 + $0x20] sm:$0xff] %vm3528_vm7, %v10933_v0  ;;  %5160 = vst.msk [vmem:[#allocation5 + $0x28] sm:$0xff] %vm3528_vm7, %v10933_v0 }
  0xe2   : > { %v2749_v51 = vsel %vm2746_vm4, %v2684_v47, %v9711_v42  ;;  %v2750_v60 = vsel %vm2746_vm4, %v2685_v50, %v9712_v43  ;;  %v2747_v61 = vsel %vm2746_vm4, %v2682_v54, %v9706_v45  ;;  %v2748_v62 = vsel %vm2746_vm4, %v2683_v55, %v9707_v44  ;;  %5161 = vst.msk [vmem:[#allocation5 + $0x30] sm:$0xff] %vm3528_vm7, %v10933_v0 }
  0xe3   : > { %v9720_v52 = vpop.permute.xlu1 %9719  ;;  %v9715_v53 = vpop.permute.xlu0 %9714  ;;  %v10048_v44 = vpack.i.bf16 %v1160_v19, %v1158_v18  ;;  %v10058_v47 = vpack.i.bf16 %v11713_v25, %v11711_v24  ;;  %v1542_v19 = vld [vmem:[#allocation2 + $0x264] ss:$2 sm:$0xff]  ;;  %v1540_v24 = vld [vmem:[#allocation2 + $0x254] ss:$2 sm:$0xff]  ;;  %v1166_v25 = vld [vmem:[#allocation2 + $0x2a1] ss:$2 sm:$0xff] }
  0xe4   : > { %v9722_v56 = vunpack.i.h.bf16 %v9720_v52  ;;  %v9721_v57 = vunpack.i.l.bf16 %v9720_v52  ;;  %v9717_v58 = vunpack.i.h.bf16 %v9715_v53  ;;  %v9716_v59 = vunpack.i.l.bf16 %v9715_v53  ;;  %5162 = vst.msk [vmem:[#allocation5 + $0x38] sm:$0xff] %vm3528_vm7, %v10933_v0  ;;  %5163 = vst.msk [vmem:[#allocation5 + $0x40] sm:$0xff] %vm3528_vm7, %v10933_v0 }
  0xe5   : > { %10009 = vrot.lane.b32.xlu1 %v10008_v26, %s10935_s19  ;;  %10004 = vrot.lane.b32.xlu0 %v10003_v46, %s10935_s19  ;;  %v11715_v26 = vld [vmem:[#allocation2 + $0x242] ss:$2 sm:$0xff]  ;;  %v10043_v46 = vpack.i.bf16 %v1156_v23, %v1154_v22  ;;  %v10063_v23 = vpack.i.bf16 %v1412_v14, %v1410_v13  ;;  %5164 = vst.msk [vmem:[#allocation5 + $0x48] sm:$0xff] %vm3528_vm7, %v10933_v0  ;;  %5165 = vst.msk [vmem:[#allocation5 + $0x50] sm:$0xff] %vm3528_vm7, %v10933_v0 }
  0xe6   : > { %v2814_v1 = vsel %vm2811_vm5, %v2749_v51, %v9721_v57  ;;  %v2815_v2 = vsel %vm2811_vm5, %v2750_v60, %v9722_v56  ;;  %v2812_v3 = vsel %vm2811_vm5, %v2747_v61, %v9716_v59  ;;  %v2813_v4 = vsel %vm2811_vm5, %v2748_v62, %v9717_v58  ;;  %5166 = vst.msk [vmem:[#allocation5 + $0x58] sm:$0xff] %vm3528_vm7, %v10933_v0 }
  0xe7   : > { %v9730_v8 = vpop.permute.xlu1 %9729  ;;  %v9725_v9 = vpop.permute.xlu0 %9724  ;;  %v2876_v10 = vpack.c.bf16 %v2813_v4, %v2812_v3  ;;  %v2877_v11 = vpack.c.bf16 %v2815_v2, %v2814_v1  ;;  %v1414_v4 = vld [vmem:[#allocation2 + $0x263] ss:$2 sm:$0xff]  ;;  %5167 = vst.msk [vmem:[#allocation5 + $0x60] sm:$0xff] %vm3528_vm7, %v10933_v0  ;;  %5168 = vst.msk [vmem:[#allocation5 + $0x68] sm:$0xff] %vm3528_vm7, %v10933_v0 }
  0xe8   : > { %v9731_v29 = vunpack.i.l.bf16 %v9730_v8  ;;  %v9732_v35 = vunpack.i.h.bf16 %v9730_v8  ;;  %v9727_v36 = vunpack.i.h.bf16 %v9725_v9  ;;  %v9726_v37 = vunpack.i.l.bf16 %v9725_v9  ;;  %v1416_v8 = vld [vmem:[#allocation2 + $0x273] ss:$2 sm:$0xff]  ;;  %5169 = vst.msk [vmem:[#allocation5 + $0x70] sm:$0xff] %vm3528_vm7, %v10933_v0  ;;  %5170 = vst.msk [vmem:[#allocation5 + $0x78] sm:$0xff] %vm3528_vm7, %v10933_v0 }
  0xe9   : > { %10019 = vrot.lane.b32.xlu1 %v10018_v48, %s13657_s26  ;;  %10014 = vrot.lane.b32.xlu0 %v10013_v49, %s13657_s26  ;;  %v10053_v48 = vpack.i.bf16 %v1284_v34, %v11715_v26  ;;  %v10068_v22 = vpack.i.bf16 %v1416_v8, %v1414_v4  ;;  %v1168_v26 = vld [vmem:[#allocation2 + $0x2b1] ss:$2 sm:$0xff]  ;;  %v974_v34 = vld [vmem:[#allocation2 + $0xa0] ss:$2 sm:$0xff]  ;;  %5653 = vst.msk [vmem:[#allocation7] sm:$0xff] %vm4394_vm12, %v10933_v0  ;;  %5654 = vst.msk [vmem:[#allocation7 + $0x8] sm:$0xff] %vm4394_vm12, %v10933_v0 }
  0xea   : > { %9162 = vmatprep.mubr.msk.bf16.mxu0 %vm2946_vm6, %v2876_v10  ;;  %v2623_v49 = vsel %vm695_vm0, %v966_v27, %v9731_v29  ;;  %v2624_v53 = vsel %vm695_vm0, %v968_v28, %v9732_v35  ;;  %v2622_v54 = vsel %vm695_vm0, %v964_v31, %v9727_v36  ;;  %v2621_v55 = vsel %vm695_vm0, %v962_v30, %v9726_v37  ;;  %v1162_v29 = vld [vmem:[#allocation2 + $0x281] ss:$2 sm:$0xff]  ;;  %v1164_v30 = vld [vmem:[#allocation2 + $0x291] ss:$2 sm:$0xff]  ;;  %v11746_v31 = vld [vmem:[#allocation2 + $0x2a2] ss:$2 sm:$0xff] }
  0xeb   : > { %9163 = vmatmul.mubr.msk.bf16.vlgmr.msra.gmra.mrb[0].mxu0 %vm2946_vm6, %v2877_v11  ;;  %v9740_v20 = vpop.permute.xlu1 %9739  ;;  %v9735_v21 = vpop.permute.xlu0 %9734  ;;  %v976_v35 = vld [vmem:[#allocation2 + $0xb0] ss:$2 sm:$0xff]  ;;  %v970_v37 = vld [vmem:[#allocation2 + $0x80] ss:$2 sm:$0xff]  ;;  %5655 = vst.msk [vmem:[#allocation7 + $0x10] sm:$0xff] %vm4394_vm12, %v10933_v0  ;;  %5656 = vst.msk [vmem:[#allocation7 + $0x18] sm:$0xff] %vm4394_vm12, %v10933_v0 }
  0xec   : > { %v9741_v38 = vunpack.i.l.bf16 %v9740_v20  ;;  %v9742_v39 = vunpack.i.h.bf16 %v9740_v20  ;;  %v9737_v40 = vunpack.i.h.bf16 %v9735_v21  ;;  %v9736_v41 = vunpack.i.l.bf16 %v9735_v21  ;;  %v1544_v20 = vld [vmem:[#allocation2 + $0x274] ss:$2 sm:$0xff]  ;;  %v1538_v21 = vld [vmem:[#allocation2 + $0x244] ss:$2 sm:$0xff]  ;;  %5964 = vst.msk [vmem:[#allocation8] sm:$0xff] %vm4394_vm12, %v10933_v0  ;;  %5965 = vst.msk [vmem:[#allocation8 + $0x8] sm:$0xff] %vm4394_vm12, %v10933_v0 }
  0xed   : > { %10029 = vrot.lane.b32.xlu1 %v10028_v15, %s13658_s22  ;;  %10024 = vrot.lane.b32.xlu0 %v10023_v16, %s13658_s22 }
  0xee   : > { %v2688_v56 = vsel %vm2681_vm3, %v2623_v49, %v9741_v38  ;;  %v2689_v57 = vsel %vm2681_vm3, %v2624_v53, %v9742_v39  ;;  %v2686_v58 = vsel %vm2681_vm3, %v2621_v55, %v9736_v41  ;;  %v2687_v59 = vsel %vm2681_vm3, %v2622_v54, %v9737_v40  ;;  %v972_v38 = vld [vmem:[#allocation2 + $0x90] ss:$2 sm:$0xff] }
  0xef   : > { %v9750_v42 = vpop.permute.xlu1 %9749  ;;  %v9745_v43 = vpop.permute.xlu0 %9744  ;;  %v10078_v39 = vpack.i.bf16 %v1544_v20, %v1542_v19  ;;  %v10073_v40 = vpack.i.bf16 %v1540_v24, %v1538_v21  ;;  %v1292_v41 = vld [vmem:[#allocation2 + $0x292] ss:$2 sm:$0xff]  ;;  %v10083_v53 = vpack.i.bf16 %v1164_v30, %v1162_v29  ;;  %v1418_v20 = vld [vmem:[#allocation2 + $0x283] ss:$2 sm:$0xff]  ;;  %v1420_v21 = vld [vmem:[#allocation2 + $0x293] ss:$2 sm:$0xff] }
  0xf0   : > { %v9751_v45 = vunpack.i.l.bf16 %v9750_v42  ;;  %v9752_v50 = vunpack.i.h.bf16 %v9750_v42  ;;  %v9747_v51 = vunpack.i.h.bf16 %v9745_v43  ;;  %v9746_v52 = vunpack.i.l.bf16 %v9745_v43 }
  0xf1   : > { %10039 = vrot.lane.b32.xlu1 %v10038_v32, %s10937_s23  ;;  %10034 = vrot.lane.b32.xlu0 %v10033_v33, %s10937_s23  ;;  %v11748_v32 = vld [vmem:[#allocation2 + $0x2b2] ss:$2 sm:$0xff]  ;;  %v11750_v33 = vld [vmem:[#allocation2 + $0x282] ss:$2 sm:$0xff]  ;;  %v10103_v30 = vpack.i.bf16 %v1420_v21, %v1418_v20  ;;  %v1430_v21 = vld [vmem:[#allocation2 + $0x2e3] ss:$2 sm:$0xff] }
  0xf2   : > { %v2753_v60 = vsel %vm2746_vm4, %v2688_v56, %v9751_v45  ;;  %v2754_v5 = vsel %vm2746_vm4, %v2689_v57, %v9752_v50  ;;  %v2751_v6 = vsel %vm2746_vm4, %v2686_v58, %v9746_v52  ;;  %v2752_v7 = vsel %vm2746_vm4, %v2687_v59, %v9747_v51 }
  0xf3   : > { %v9760_v61 = vpop.permute.xlu1 %9759  ;;  %v9755_v62 = vpop.permute.xlu0 %9754  ;;  %v10088_v51 = vpack.i.bf16 %v1168_v26, %v1166_v25  ;;  %v10098_v54 = vpack.i.bf16 %v11748_v32, %v11746_v31  ;;  %v10093_v55 = vpack.i.bf16 %v1292_v41, %v11750_v33  ;;  %v1550_v26 = vld [vmem:[#allocation2 + $0x2a4] ss:$2 sm:$0xff]  ;;  %v1548_v31 = vld [vmem:[#allocation2 + $0x294] ss:$2 sm:$0xff]  ;;  %v1174_v32 = vld [vmem:[#allocation2 + $0x2e1] ss:$2 sm:$0xff] }
  0xf4   : > { %v9762_v63 = vunpack.i.h.bf16 %v9760_v61  ;;  %v9761_v1 = vunpack.i.l.bf16 %v9760_v61  ;;  %v9757_v2 = vunpack.i.h.bf16 %v9755_v62  ;;  %v9756_v3 = vunpack.i.l.bf16 %v9755_v62  ;;  %v1176_v33 = vld [vmem:[#allocation2 + $0x2f1] ss:$2 sm:$0xff]  ;;  %v982_v41 = vld [vmem:[#allocation2 + $0xe0] ss:$2 sm:$0xff] }
  0xf5   : > { %10049 = vrot.lane.b32.xlu1 %v10048_v44, %s10935_s19  ;;  %10044 = vrot.lane.b32.xlu0 %v10043_v46, %s10935_s19 }
  0xf6   : > { %v2818_v9 = vsel %vm2811_vm5, %v2753_v60, %v9761_v1  ;;  %v2819_v10 = vsel %vm2811_vm5, %v2754_v5, %v9762_v63  ;;  %v2816_v11 = vsel %vm2811_vm5, %v2751_v6, %v9756_v3  ;;  %v2817_v12 = vsel %vm2811_vm5, %v2752_v7, %v9757_v2 }
  0xf7   : > { %v9770_v15 = vpop.permute.xlu1 %9769  ;;  %v9765_v16 = vpop.permute.xlu0 %9764  ;;  %v2878_v17 = vpack.c.bf16 %v2817_v12, %v2816_v11  ;;  %v2879_v18 = vpack.c.bf16 %v2819_v10, %v2818_v9  ;;  %v1422_v11 = vld [vmem:[#allocation2 + $0x2a3] ss:$2 sm:$0xff] }
  0xf8   : > { %v9771_v36 = vunpack.i.l.bf16 %v9770_v15  ;;  %v9772_v42 = vunpack.i.h.bf16 %v9770_v15  ;;  %v9767_v43 = vunpack.i.h.bf16 %v9765_v16  ;;  %v9766_v44 = vunpack.i.l.bf16 %v9765_v16  ;;  %v1424_v15 = vld [vmem:[#allocation2 + $0x2b3] ss:$2 sm:$0xff] }
  0xf9   : > { %10059 = vrot.lane.b32.xlu1 %v10058_v47, %s13657_s26  ;;  %10054 = vrot.lane.b32.xlu0 %v10053_v48, %s13657_s26  ;;  %v10108_v29 = vpack.i.bf16 %v1424_v15, %v1422_v11 }
  0xfa   : > { %9166 = vmatprep.mubr.msk.bf16.mxu0 %vm2946_vm6, %v2878_v17  ;;  %v2627_v56 = vsel %vm695_vm0, %v974_v34, %v9771_v36  ;;  %v2628_v60 = vsel %vm695_vm0, %v976_v35, %v9772_v42  ;;  %v2626_v61 = vsel %vm695_vm0, %v972_v38, %v9767_v43  ;;  %v2625_v62 = vsel %vm695_vm0, %v970_v37, %v9766_v44  ;;  %v1170_v36 = vld [vmem:[#allocation2 + $0x2c1] ss:$2 sm:$0xff]  ;;  %v1172_v37 = vld [vmem:[#allocation2 + $0x2d1] ss:$2 sm:$0xff]  ;;  %v11781_v38 = vld [vmem:[#allocation2 + $0x2e2] ss:$2 sm:$0xff] }
  0xfb   : > { %9167 = vmatmul.mubr.msk.bf16.gmra.mrb[4].mxu0 %vm2946_vm6, %v2879_v18  ;;  %v9780_v27 = vpop.permute.xlu1 %9779  ;;  %v9775_v28 = vpop.permute.xlu0 %9774  ;;  %v984_v42 = vld [vmem:[#allocation2 + $0xf0] ss:$2 sm:$0xff]  ;;  %v978_v44 = vld [vmem:[#allocation2 + $0xc0] ss:$2 sm:$0xff] }
  0xfc   : > { %v9781_v45 = vunpack.i.l.bf16 %v9780_v27  ;;  %v9782_v46 = vunpack.i.h.bf16 %v9780_v27  ;;  %v9777_v47 = vunpack.i.h.bf16 %v9775_v28  ;;  %v9776_v48 = vunpack.i.l.bf16 %v9775_v28  ;;  %v1552_v27 = vld [vmem:[#allocation2 + $0x2b4] ss:$2 sm:$0xff]  ;;  %v1546_v28 = vld [vmem:[#allocation2 + $0x284] ss:$2 sm:$0xff] }
  0xfd   : > { %10069 = vrot.lane.b32.xlu1 %v10068_v22, %s13658_s22  ;;  %10064 = vrot.lane.b32.xlu0 %v10063_v23, %s13658_s22 }
  0xfe   : > { %v2692_v63 = vsel %vm2681_vm3, %v2627_v56, %v9781_v45  ;;  %v2693_v1 = vsel %vm2681_vm3, %v2628_v60, %v9782_v46  ;;  %v2690_v2 = vsel %vm2681_vm3, %v2625_v62, %v9776_v48  ;;  %v2691_v3 = vsel %vm2681_vm3, %v2626_v61, %v9777_v47  ;;  %v980_v45 = vld [vmem:[#allocation2 + $0xd0] ss:$2 sm:$0xff] }
  0xff   : > { %v9790_v49 = vpop.permute.xlu1 %9789  ;;  %v9785_v50 = vpop.permute.xlu0 %9784  ;;  %v10118_v46 = vpack.i.bf16 %v1552_v27, %v1550_v26  ;;  %v10113_v47 = vpack.i.bf16 %v1548_v31, %v1546_v28  ;;  %v1300_v48 = vld [vmem:[#allocation2 + $0x2d2] ss:$2 sm:$0xff]  ;;  %v10123_v60 = vpack.i.bf16 %v1172_v37, %v1170_v36  ;;  %v1432_v26 = vld [vmem:[#allocation2 + $0x2f3] ss:$2 sm:$0xff]  ;;  %v1426_v27 = vld [vmem:[#allocation2 + $0x2c3] ss:$2 sm:$0xff] }
 0x100   : > { %v9791_v52 = vunpack.i.l.bf16 %v9790_v49  ;;  %v9792_v57 = vunpack.i.h.bf16 %v9790_v49  ;;  %v9787_v58 = vunpack.i.h.bf16 %v9785_v50  ;;  %v9786_v59 = vunpack.i.l.bf16 %v9785_v50  ;;  %v1428_v28 = vld [vmem:[#allocation2 + $0x2d3] ss:$2 sm:$0xff]  ;;  %v1560_v36 = vld [vmem:[#allocation2 + $0x2f4] ss:$2 sm:$0xff]  ;;  %v1554_v37 = vld [vmem:[#allocation2 + $0x2c4] ss:$2 sm:$0xff] }
 0x101   : > { %10079 = vrot.lane.b32.xlu1 %v10078_v39, %s10937_s23  ;;  %10074 = vrot.lane.b32.xlu0 %v10073_v40, %s10937_s23  ;;  %v11783_v39 = vld [vmem:[#allocation2 + $0x2f2] ss:$2 sm:$0xff]  ;;  %v11785_v40 = vld [vmem:[#allocation2 + $0x2c2] ss:$2 sm:$0xff] }
 0x102   : > { %v2757_v4 = vsel %vm2746_vm4, %v2692_v63, %v9791_v52  ;;  %v2758_v12 = vsel %vm2746_vm4, %v2693_v1, %v9792_v57  ;;  %v2755_v13 = vsel %vm2746_vm4, %v2690_v2, %v9786_v59  ;;  %v2756_v14 = vsel %vm2746_vm4, %v2691_v3, %v9787_v58 }
 0x103   : > { %v9800_v5 = vpop.permute.xlu1 %9799  ;;  %v9795_v6 = vpop.permute.xlu0 %9794  ;;  %v10128_v58 = vpack.i.bf16 %v1176_v33, %v1174_v32  ;;  %v10138_v61 = vpack.i.bf16 %v11783_v39, %v11781_v38  ;;  %v10133_v62 = vpack.i.bf16 %v1300_v48, %v11785_v40  ;;  %v10148_v33 = vpack.i.bf16 %v1432_v26, %v1430_v21  ;;  %v1556_v38 = vld [vmem:[#allocation2 + $0x2d4] ss:$2 sm:$0xff] }
 0x104   : > { %v9802_v7 = vunpack.i.h.bf16 %v9800_v5  ;;  %v9801_v8 = vunpack.i.l.bf16 %v9800_v5  ;;  %v9797_v9 = vunpack.i.h.bf16 %v9795_v6  ;;  %v9796_v10 = vunpack.i.l.bf16 %v9795_v6 }
 0x105   : > { %10089 = vrot.lane.b32.xlu1 %v10088_v51, %s10935_s19  ;;  %10084 = vrot.lane.b32.xlu0 %v10083_v53, %s10935_s19  ;;  %v10153_v48 = vpack.i.bf16 %v1556_v38, %v1554_v37 }
 0x106   : > { %v2822_v16 = vsel %vm2811_vm5, %v2757_v4, %v9801_v8  ;;  %v2823_v17 = vsel %vm2811_vm5, %v2758_v12, %v9802_v7  ;;  %v2820_v18 = vsel %vm2811_vm5, %v2755_v13, %v9796_v10  ;;  %v2821_v19 = vsel %vm2811_vm5, %v2756_v14, %v9797_v9 }
 0x107   : > { %v9810_v22 = vpop.permute.xlu1 %9809  ;;  %v9805_v23 = vpop.permute.xlu0 %9804  ;;  %v2880_v24 = vpack.c.bf16 %v2821_v19, %v2820_v18  ;;  %v2881_v25 = vpack.c.bf16 %v2823_v17, %v2822_v16 }
 0x108   : > { %v9811_v43 = vunpack.i.l.bf16 %v9810_v22  ;;  %v9812_v49 = vunpack.i.h.bf16 %v9810_v22  ;;  %v9807_v50 = vunpack.i.h.bf16 %v9805_v23  ;;  %v9806_v51 = vunpack.i.l.bf16 %v9805_v23 }
 0x109   : > { %10099 = vrot.lane.b32.xlu1 %v10098_v54, %s13657_s26  ;;  %10094 = vrot.lane.b32.xlu0 %v10093_v55, %s13657_s26 }
 0x10a   : > { %9170 = vmatprep.mubr.msk.bf16.mxu0 %vm2946_vm6, %v2880_v24  ;;  %v2631_v63 = vsel %vm695_vm0, %v982_v41, %v9811_v43  ;;  %v2632_v4 = vsel %vm695_vm0, %v984_v42, %v9812_v49  ;;  %v2630_v5 = vsel %vm695_vm0, %v980_v45, %v9807_v50  ;;  %v2629_v6 = vsel %vm695_vm0, %v978_v44, %v9806_v51  ;;  %v1182_v41 = vld [vmem:[#allocation2 + $0x321] ss:$2 sm:$0xff]  ;;  %v11816_v42 = vld [vmem:[#allocation2 + $0x322] ss:$2 sm:$0xff]  ;;  %v1184_v43 = vld [vmem:[#allocation2 + $0x331] ss:$2 sm:$0xff] }
 0x10b   : > { %9171 = vmatmul.mubr.msk.bf16.gmra.mrb[8].mxu0 %vm2946_vm6, %v2881_v25  ;;  %v9820_v34 = vpop.permute.xlu1 %9819  ;;  %v9815_v35 = vpop.permute.xlu0 %9814  ;;  %v1178_v44 = vld [vmem:[#allocation2 + $0x301] ss:$2 sm:$0xff]  ;;  %v11818_v45 = vld [vmem:[#allocation2 + $0x332] ss:$2 sm:$0xff]  ;;  %v1180_v49 = vld [vmem:[#allocation2 + $0x311] ss:$2 sm:$0xff] }
 0x10c   : > { %v9821_v52 = vunpack.i.l.bf16 %v9820_v34  ;;  %v9822_v53 = vunpack.i.h.bf16 %v9820_v34  ;;  %v9817_v54 = vunpack.i.h.bf16 %v9815_v35  ;;  %v9816_v55 = vunpack.i.l.bf16 %v9815_v35  ;;  %v1558_v35 = vld [vmem:[#allocation2 + $0x2e4] ss:$2 sm:$0xff] }
 0x10d   : > { %10109 = vrot.lane.b32.xlu1 %v10108_v29, %s13658_s22  ;;  %10104 = vrot.lane.b32.xlu0 %v10103_v30, %s13658_s22  ;;  %v10143_v34 = vpack.i.bf16 %v1428_v28, %v1426_v27  ;;  %v1306_v50 = vld [vmem:[#allocation2 + $0x302] ss:$2 sm:$0xff]  ;;  %v1308_v51 = vld [vmem:[#allocation2 + $0x312] ss:$2 sm:$0xff]  ;;  %v1438_v28 = vld [vmem:[#allocation2 + $0x323] ss:$2 sm:$0xff] }
 0x10e   : > { %v2696_v7 = vsel %vm2681_vm3, %v2631_v63, %v9821_v52  ;;  %v2697_v8 = vsel %vm2681_vm3, %v2632_v4, %v9822_v53  ;;  %v2694_v9 = vsel %vm2681_vm3, %v2629_v6, %v9816_v55  ;;  %v2695_v10 = vsel %vm2681_vm3, %v2630_v5, %v9817_v54  ;;  %v990_v52 = vld [vmem:[#allocation2 + $0x120] ss:$2 sm:$0xff] }
 0x10f   : > { %v9830_v56 = vpop.permute.xlu1 %9829  ;;  %v9825_v57 = vpop.permute.xlu0 %9824  ;;  %v10163_v4 = vpack.i.bf16 %v1180_v49, %v1178_v44  ;;  %v10178_v5 = vpack.i.bf16 %v11818_v45, %v11816_v42  ;;  %v10173_v6 = vpack.i.bf16 %v1308_v51, %v1306_v50  ;;  %v1566_v42 = vld [vmem:[#allocation2 + $0x324] ss:$2 sm:$0xff]  ;;  %v1564_v45 = vld [vmem:[#allocation2 + $0x314] ss:$2 sm:$0xff]  ;;  %v1192_v49 = vld [vmem:[#allocation2 + $0x371] ss:$2 sm:$0xff] }
 0x110   : > { %v9831_v59 = vunpack.i.l.bf16 %v9830_v56  ;;  %v9832_v1 = vunpack.i.h.bf16 %v9830_v56  ;;  %v9827_v2 = vunpack.i.h.bf16 %v9825_v57  ;;  %v9826_v3 = vunpack.i.l.bf16 %v9825_v57  ;;  %v992_v57 = vld [vmem:[#allocation2 + $0x130] ss:$2 sm:$0xff]  ;;  %v1186_v50 = vld [vmem:[#allocation2 + $0x341] ss:$2 sm:$0xff]  ;;  %v1188_v51 = vld [vmem:[#allocation2 + $0x351] ss:$2 sm:$0xff] }
 0x111   : > { %10119 = vrot.lane.b32.xlu1 %v10118_v46, %s10937_s23  ;;  %10114 = vrot.lane.b32.xlu0 %v10113_v47, %s10937_s23  ;;  %v10158_v47 = vpack.i.bf16 %v1560_v36, %v1558_v35  ;;  %v1436_v35 = vld [vmem:[#allocation2 + $0x313] ss:$2 sm:$0xff]  ;;  %v1562_v44 = vld [vmem:[#allocation2 + $0x304] ss:$2 sm:$0xff] }
 0x112   : > { %v2761_v11 = vsel %vm2746_vm4, %v2696_v7, %v9831_v59  ;;  %v2762_v18 = vsel %vm2746_vm4, %v2697_v8, %v9832_v1  ;;  %v2759_v19 = vsel %vm2746_vm4, %v2694_v9, %v9826_v3  ;;  %v2760_v20 = vsel %vm2746_vm4, %v2695_v10, %v9827_v2  ;;  %v988_v59 = vld [vmem:[#allocation2 + $0x110] ss:$2 sm:$0xff] }
 0x113   : > { %v9840_v12 = vpop.permute.xlu1 %9839  ;;  %v9835_v13 = vpop.permute.xlu0 %9834  ;;  %v10168_v2 = vpack.i.bf16 %v1184_v43, %v1182_v41  ;;  %v1568_v43 = vld [vmem:[#allocation2 + $0x334] ss:$2 sm:$0xff] }
 0x114   : > { %v9842_v14 = vunpack.i.h.bf16 %v9840_v12  ;;  %v9841_v15 = vunpack.i.l.bf16 %v9840_v12  ;;  %v9837_v16 = vunpack.i.h.bf16 %v9835_v13  ;;  %v9836_v17 = vunpack.i.l.bf16 %v9835_v13 }
 0x115   : > { %10129 = vrot.lane.b32.xlu1 %v10128_v58, %s10935_s19  ;;  %10124 = vrot.lane.b32.xlu0 %v10123_v60, %s10935_s19  ;;  %v986_v58 = vld [vmem:[#allocation2 + $0x100] ss:$2 sm:$0xff] }
 0x116   : > { %v2826_v22 = vsel %vm2811_vm5, %v2761_v11, %v9841_v15  ;;  %v2827_v23 = vsel %vm2811_vm5, %v2762_v18, %v9842_v14  ;;  %v2824_v24 = vsel %vm2811_vm5, %v2759_v19, %v9836_v17  ;;  %v2825_v25 = vsel %vm2811_vm5, %v2760_v20, %v9837_v16 }
 0x117   : > { %v9850_v29 = vpop.permute.xlu1 %9849  ;;  %v9845_v30 = vpop.permute.xlu0 %9844  ;;  %v2882_v31 = vpack.c.bf16 %v2825_v25, %v2824_v24  ;;  %v2883_v32 = vpack.c.bf16 %v2827_v23, %v2826_v22 }
 0x118   : > { %v9851_v46 = vunpack.i.l.bf16 %v9850_v29  ;;  %v9852_v53 = vunpack.i.h.bf16 %v9850_v29  ;;  %v9847_v54 = vunpack.i.h.bf16 %v9845_v30  ;;  %v9846_v55 = vunpack.i.l.bf16 %v9845_v30 }
 0x119   : > { %10139 = vrot.lane.b32.xlu1 %v10138_v61, %s13657_s26  ;;  %10134 = vrot.lane.b32.xlu0 %v10133_v62, %s13657_s26 }
 0x11a   : > { %9174 = vmatprep.mubr.msk.bf16.mxu0 %vm2946_vm6, %v2882_v31  ;;  %v2635_v7 = vsel %vm695_vm0, %v990_v52, %v9851_v46  ;;  %v2636_v11 = vsel %vm695_vm0, %v992_v57, %v9852_v53  ;;  %v2634_v12 = vsel %vm695_vm0, %v988_v59, %v9847_v54  ;;  %v2633_v13 = vsel %vm695_vm0, %v986_v58, %v9846_v55  ;;  %v11848_v52 = vld [vmem:[#allocation2 + $0x362] ss:$2 sm:$0xff]  ;;  %v1316_v58 = vld [vmem:[#allocation2 + $0x352] ss:$2 sm:$0xff] }
 0x11b   : > { %9175 = vmatmul.mubr.msk.bf16.gmra.mrb[12].mxu0 %vm2946_vm6, %v2883_v32  ;;  %v9860_v39 = vpop.permute.xlu1 %9859  ;;  %v9855_v40 = vpop.permute.xlu0 %9854  ;;  %v10198_v54 = vpack.i.bf16 %v1568_v43, %v1566_v42  ;;  %v10193_v55 = vpack.i.bf16 %v1564_v45, %v1562_v44  ;;  %v1314_v57 = vld [vmem:[#allocation2 + $0x342] ss:$2 sm:$0xff]  ;;  %v1444_v42 = vld [vmem:[#allocation2 + $0x353] ss:$2 sm:$0xff] }
 0x11c   : > { %v9861_v56 = vunpack.i.l.bf16 %v9860_v39  ;;  %v9862_v60 = vunpack.i.h.bf16 %v9860_v39  ;;  %v9857_v61 = vunpack.i.h.bf16 %v9855_v40  ;;  %v9856_v62 = vunpack.i.l.bf16 %v9855_v40  ;;  %v998_v59 = vld [vmem:[#allocation2 + $0x160] ss:$2 sm:$0xff] }
 0x11d   : > { %10149 = vrot.lane.b32.xlu1 %v10148_v33, %s13658_s22  ;;  %10144 = vrot.lane.b32.xlu0 %v10143_v34, %s13658_s22  ;;  %v1440_v33 = vld [vmem:[#allocation2 + $0x333] ss:$2 sm:$0xff]  ;;  %v1434_v34 = vld [vmem:[#allocation2 + $0x303] ss:$2 sm:$0xff] }
 0x11e   : > { %v2700_v14 = vsel %vm2681_vm3, %v2635_v7, %v9861_v56  ;;  %v2701_v15 = vsel %vm2681_vm3, %v2636_v11, %v9862_v60  ;;  %v2698_v16 = vsel %vm2681_vm3, %v2633_v13, %v9856_v62  ;;  %v2699_v17 = vsel %vm2681_vm3, %v2634_v12, %v9857_v61  ;;  %v1320_v56 = vld [vmem:[#allocation2 + $0x372] ss:$2 sm:$0xff] }
 0x11f   : > { %v9870_v63 = vpop.permute.xlu1 %9869  ;;  %v9865_v1 = vpop.permute.xlu0 %9864  ;;  %v10188_v40 = vpack.i.bf16 %v1440_v33, %v1438_v28  ;;  %v10183_v41 = vpack.i.bf16 %v1436_v35, %v1434_v34  ;;  %v10203_v11 = vpack.i.bf16 %v1188_v51, %v1186_v50  ;;  %v10218_v12 = vpack.i.bf16 %v1320_v56, %v11848_v52  ;;  %v1446_v35 = vld [vmem:[#allocation2 + $0x363] ss:$2 sm:$0xff]  ;;  %v1576_v50 = vld [vmem:[#allocation2 + $0x374] ss:$2 sm:$0xff]  ;;  %v1570_v51 = vld [vmem:[#allocation2 + $0x344] ss:$2 sm:$0xff] }
 0x120   : > { %v9871_v3 = vunpack.i.l.bf16 %v9870_v63  ;;  %v9872_v8 = vunpack.i.h.bf16 %v9870_v63  ;;  %v9867_v9 = vunpack.i.h.bf16 %v9865_v1  ;;  %v9866_v10 = vunpack.i.l.bf16 %v9865_v1  ;;  %v1000_v1 = vld [vmem:[#allocation2 + $0x170] ss:$2 sm:$0xff]  ;;  %v11877_v56 = vld [vmem:[#allocation2 + $0x3a1] ss:$2 sm:$0xff] }
 0x121   : > { %10159 = vrot.lane.b32.xlu1 %v10158_v47, %s10937_s23  ;;  %10154 = vrot.lane.b32.xlu0 %v10153_v48, %s10937_s23  ;;  %v1190_v48 = vld [vmem:[#allocation2 + $0x361] ss:$2 sm:$0xff]  ;;  %v10213_v13 = vpack.i.bf16 %v1316_v58, %v1314_v57  ;;  %v1572_v52 = vld [vmem:[#allocation2 + $0x354] ss:$2 sm:$0xff] }
 0x122   : > { %v2765_v18 = vsel %vm2746_vm4, %v2700_v14, %v9871_v3  ;;  %v2766_v25 = vsel %vm2746_vm4, %v2701_v15, %v9872_v8  ;;  %v2763_v26 = vsel %vm2746_vm4, %v2698_v16, %v9866_v10  ;;  %v2764_v27 = vsel %vm2746_vm4, %v2699_v17, %v9867_v9  ;;  %v996_v3 = vld [vmem:[#allocation2 + $0x150] ss:$2 sm:$0xff] }
 0x123   : > { %v9880_v19 = vpop.permute.xlu1 %9879  ;;  %v9875_v20 = vpop.permute.xlu0 %9874  ;;  %v10208_v9 = vpack.i.bf16 %v1192_v49, %v1190_v48  ;;  %v1574_v49 = vld [vmem:[#allocation2 + $0x364] ss:$2 sm:$0xff] }
 0x124   : > { %v9882_v21 = vunpack.i.h.bf16 %v9880_v19  ;;  %v9881_v22 = vunpack.i.l.bf16 %v9880_v19  ;;  %v9877_v23 = vunpack.i.h.bf16 %v9875_v20  ;;  %v9876_v24 = vunpack.i.l.bf16 %v9875_v20  ;;  %v11879_v57 = vld [vmem:[#allocation2 + $0x3a2] ss:$2 sm:$0xff] }
 0x125   : > { %10169 = vrot.lane.b32.xlu1 %v10168_v2, %s10935_s19  ;;  %10164 = vrot.lane.b32.xlu0 %v10163_v4, %s10935_s19  ;;  %v994_v2 = vld [vmem:[#allocation2 + $0x140] ss:$2 sm:$0xff] }
 0x126   : > { %v2830_v29 = vsel %vm2811_vm5, %v2765_v18, %v9881_v22  ;;  %v2831_v30 = vsel %vm2811_vm5, %v2766_v25, %v9882_v21  ;;  %v2828_v31 = vsel %vm2811_vm5, %v2763_v26, %v9876_v24  ;;  %v2829_v32 = vsel %vm2811_vm5, %v2764_v27, %v9877_v23 }
 0x127   : > { %v9890_v36 = vpop.permute.xlu1 %9889  ;;  %v9885_v37 = vpop.permute.xlu0 %9884  ;;  %v2884_v38 = vpack.c.bf16 %v2829_v32, %v2828_v31  ;;  %v2885_v39 = vpack.c.bf16 %v2831_v30, %v2830_v29 }
 0x128   : > { %v9891_v53 = vunpack.i.l.bf16 %v9890_v36  ;;  %v9892_v60 = vunpack.i.h.bf16 %v9890_v36  ;;  %v9887_v61 = vunpack.i.h.bf16 %v9885_v37  ;;  %v9886_v62 = vunpack.i.l.bf16 %v9885_v37 }
 0x129   : > { %10179 = vrot.lane.b32.xlu1 %v10178_v5, %s13657_s26  ;;  %10174 = vrot.lane.b32.xlu0 %v10173_v6, %s13657_s26 }
 0x12a   : > { %9178 = vmatprep.mubr.msk.bf16.mxu0 %vm2946_vm6, %v2884_v38  ;;  %v2639_v14 = vsel %vm695_vm0, %v998_v59, %v9891_v53  ;;  %v2640_v18 = vsel %vm695_vm0, %v1000_v1, %v9892_v60  ;;  %v2638_v19 = vsel %vm695_vm0, %v996_v3, %v9887_v61  ;;  %v2637_v20 = vsel %vm695_vm0, %v994_v2, %v9886_v62  ;;  %v1008_v53 = vld [vmem:[#allocation2 + $0x1b0] ss:$2 sm:$0xff]  ;;  %v11881_v59 = vld [vmem:[#allocation2 + $0x3b1] ss:$2 sm:$0xff]  ;;  %v11883_v60 = vld [vmem:[#allocation2 + $0x381] ss:$2 sm:$0xff] }
 0x12b   : > { %9179 = vmatmul.mubr.msk.bf16.gmra.mrb[16].mxu0 %vm2946_vm6, %v2885_v39  ;;  %v9900_v46 = vpop.permute.xlu1 %9899  ;;  %v9895_v47 = vpop.permute.xlu0 %9894  ;;  %v11885_v61 = vld [vmem:[#allocation2 + $0x3b2] ss:$2 sm:$0xff]  ;;  %v10233_v1 = vpack.i.bf16 %v1572_v52, %v1570_v51  ;;  %v11889_v2 = vld [vmem:[#allocation2 + $0x391] ss:$2 sm:$0xff]  ;;  %v11891_v3 = vld [vmem:[#allocation2 + $0x382] ss:$2 sm:$0xff] }
 0x12c   : > { %v9901_v63 = vunpack.i.l.bf16 %v9900_v46  ;;  %v9902_v4 = vunpack.i.h.bf16 %v9900_v46  ;;  %v9897_v5 = vunpack.i.h.bf16 %v9895_v47  ;;  %v9896_v6 = vunpack.i.l.bf16 %v9895_v47 }
 0x12d   : > { %10189 = vrot.lane.b32.xlu1 %v10188_v40, %s13658_s22  ;;  %10184 = vrot.lane.b32.xlu0 %v10183_v41, %s13658_s22  ;;  %v1448_v40 = vld [vmem:[#allocation2 + $0x373] ss:$2 sm:$0xff]  ;;  %v1442_v41 = vld [vmem:[#allocation2 + $0x343] ss:$2 sm:$0xff] }
 0x12e   : > { %v2704_v21 = vsel %vm2681_vm3, %v2639_v14, %v9901_v63  ;;  %v2705_v22 = vsel %vm2681_vm3, %v2640_v18, %v9902_v4  ;;  %v2702_v23 = vsel %vm2681_vm3, %v2637_v20, %v9896_v6  ;;  %v2703_v24 = vsel %vm2681_vm3, %v2638_v19, %v9897_v5  ;;  %v11893_v4 = vld [vmem:[#allocation2 + $0x392] ss:$2 sm:$0xff] }
 0x12f   : > { %v9910_v7 = vpop.permute.xlu1 %9909  ;;  %v9905_v8 = vpop.permute.xlu0 %9904  ;;  %v10228_v47 = vpack.i.bf16 %v1448_v40, %v1446_v35  ;;  %v10223_v48 = vpack.i.bf16 %v1444_v42, %v1442_v41  ;;  %v10238_v63 = vpack.i.bf16 %v1576_v50, %v1574_v49  ;;  %v1006_v5 = vld [vmem:[#allocation2 + $0x1a0] ss:$2 sm:$0xff]  ;;  %v10243_v20 = vpack.i.bf16 %v11889_v2, %v11883_v60  ;;  %v1454_v42 = vld [vmem:[#allocation2 + $0x3a3] ss:$2 sm:$0xff]  ;;  %v1452_v49 = vld [vmem:[#allocation2 + $0x393] ss:$2 sm:$0xff] }
 0x130   : > { %v9911_v10 = vunpack.i.l.bf16 %v9910_v7  ;;  %v9912_v15 = vunpack.i.h.bf16 %v9910_v7  ;;  %v9907_v16 = vunpack.i.h.bf16 %v9905_v8  ;;  %v9906_v17 = vunpack.i.l.bf16 %v9905_v8  ;;  %v1580_v60 = vld [vmem:[#allocation2 + $0x394] ss:$2 sm:$0xff]  ;;  %v1204_v2 = vld [vmem:[#allocation2 + $0x3d1] ss:$2 sm:$0xff] }
 0x131   : > { %10199 = vrot.lane.b32.xlu1 %v10198_v54, %s10937_s23  ;;  %10194 = vrot.lane.b32.xlu0 %v10193_v55, %s10937_s23 }
 0x132   : > { %v2769_v25 = vsel %vm2746_vm4, %v2704_v21, %v9911_v10  ;;  %v2770_v32 = vsel %vm2746_vm4, %v2705_v22, %v9912_v15  ;;  %v2767_v33 = vsel %vm2746_vm4, %v2702_v23, %v9906_v17  ;;  %v2768_v34 = vsel %vm2746_vm4, %v2703_v24, %v9907_v16  ;;  %v1002_v10 = vld [vmem:[#allocation2 + $0x180] ss:$2 sm:$0xff] }
 0x133   : > { %v9920_v26 = vpop.permute.xlu1 %9919  ;;  %v9915_v27 = vpop.permute.xlu0 %9914  ;;  %v10248_v16 = vpack.i.bf16 %v11881_v59, %v11877_v56  ;;  %v10258_v17 = vpack.i.bf16 %v11885_v61, %v11879_v57  ;;  %v10253_v21 = vpack.i.bf16 %v11893_v4, %v11891_v3  ;;  %v1582_v56 = vld [vmem:[#allocation2 + $0x3a4] ss:$2 sm:$0xff]  ;;  %v1208_v57 = vld [vmem:[#allocation2 + $0x3f1] ss:$2 sm:$0xff]  ;;  %v1202_v61 = vld [vmem:[#allocation2 + $0x3c1] ss:$2 sm:$0xff] }
 0x134   : > { %v9922_v28 = vunpack.i.h.bf16 %v9920_v26  ;;  %v9921_v29 = vunpack.i.l.bf16 %v9920_v26  ;;  %v9917_v30 = vunpack.i.h.bf16 %v9915_v27  ;;  %v9916_v31 = vunpack.i.l.bf16 %v9915_v27  ;;  %v1578_v59 = vld [vmem:[#allocation2 + $0x384] ss:$2 sm:$0xff] }
 0x135   : > { %10209 = vrot.lane.b32.xlu1 %v10208_v9, %s10935_s19  ;;  %10204 = vrot.lane.b32.xlu0 %v10203_v11, %s10935_s19  ;;  %v1004_v11 = vld [vmem:[#allocation2 + $0x190] ss:$2 sm:$0xff] }
 0x136   : > { %v2834_v36 = vsel %vm2811_vm5, %v2769_v25, %v9921_v29  ;;  %v2835_v37 = vsel %vm2811_vm5, %v2770_v32, %v9922_v28  ;;  %v2832_v38 = vsel %vm2811_vm5, %v2767_v33, %v9916_v31  ;;  %v2833_v39 = vsel %vm2811_vm5, %v2768_v34, %v9917_v30 }
 0x137   : > { %v9930_v43 = vpop.permute.xlu1 %9929  ;;  %v9925_v44 = vpop.permute.xlu0 %9924  ;;  %v2886_v45 = vpack.c.bf16 %v2833_v39, %v2832_v38  ;;  %v2887_v46 = vpack.c.bf16 %v2835_v37, %v2834_v36 }
 0x138   : > { %v9932_v58 = vunpack.i.h.bf16 %v9930_v43  ;;  %v9931_v62 = vunpack.i.l.bf16 %v9930_v43  ;;  %v9927_v6 = vunpack.i.h.bf16 %v9925_v44  ;;  %v9926_v7 = vunpack.i.l.bf16 %v9925_v44 }
 0x139   : > { %10219 = vrot.lane.b32.xlu1 %v10218_v12, %s13657_s26  ;;  %10214 = vrot.lane.b32.xlu0 %v10213_v13, %s13657_s26 }
 0x13a   : > { %9182 = vmatprep.mubr.msk.bf16.mxu0 %vm2946_vm6, %v2886_v45  ;;  %v2644_v18 = vsel %vm695_vm0, %v1008_v53, %v9932_v58  ;;  %v2643_v22 = vsel %vm695_vm0, %v1006_v5, %v9931_v62  ;;  %v2642_v26 = vsel %vm695_vm0, %v1004_v11, %v9927_v6  ;;  %v2641_v27 = vsel %vm695_vm0, %v1002_v10, %v9926_v7  ;;  %v1584_v58 = vld [vmem:[#allocation2 + $0x3b4] ss:$2 sm:$0xff] }
 0x13b   : > { %9183 = vmatmul.mubr.msk.bf16.gmra.mrb[20].mxu0 %vm2946_vm6, %v2887_v46  ;;  %v9940_v54 = vpop.permute.xlu1 %9939  ;;  %v9935_v55 = vpop.permute.xlu0 %9934  ;;  %v12141_v5 = vld [vmem:[#allocation2 + $0x3e2] ss:$2 sm:$0xff]  ;;  %v10278_v4 = vpack.i.bf16 %v1584_v58, %v1582_v56  ;;  %v10273_v6 = vpack.i.bf16 %v1580_v60, %v1578_v59  ;;  %v1336_v7 = vld [vmem:[#allocation2 + $0x3f2] ss:$2 sm:$0xff]  ;;  %v1460_v56 = vld [vmem:[#allocation2 + $0x3d3] ss:$2 sm:$0xff] }
 0x13c   : > { %v9942_v8 = vunpack.i.h.bf16 %v9940_v54  ;;  %v9941_v9 = vunpack.i.l.bf16 %v9940_v54  ;;  %v9937_v12 = vunpack.i.h.bf16 %v9935_v55  ;;  %v9936_v13 = vunpack.i.l.bf16 %v9935_v55  ;;  %v1014_v10 = vld [vmem:[#allocation2 + $0x1e0] ss:$2 sm:$0xff] }
 0x13d   : > { %10229 = vrot.lane.b32.xlu1 %v10228_v47, %s13658_s22  ;;  %10224 = vrot.lane.b32.xlu0 %v10223_v48, %s13658_s22  ;;  %v1456_v47 = vld [vmem:[#allocation2 + $0x3b3] ss:$2 sm:$0xff]  ;;  %v1450_v48 = vld [vmem:[#allocation2 + $0x383] ss:$2 sm:$0xff] }
 0x13e   : > { %v2708_v28 = vsel %vm2681_vm3, %v2643_v22, %v9941_v9  ;;  %v11919_v29 = vsel %vm2681_vm3, %v2644_v18, %v9942_v8  ;;  %v11922_v30 = vsel %vm2681_vm3, %v2641_v27, %v9936_v13  ;;  %v11925_v31 = vsel %vm2681_vm3, %v2642_v26, %v9937_v12  ;;  %v1330_v8 = vld [vmem:[#allocation2 + $0x3c2] ss:$2 sm:$0xff]  ;;  %v1332_v9 = vld [vmem:[#allocation2 + $0x3d2] ss:$2 sm:$0xff] }
 0x13f   : > { %v11895_v14 = vpop.permute.xlu1 %9949  ;;  %v11897_v15 = vpop.permute.xlu0 %9944  ;;  %v10268_v54 = vpack.i.bf16 %v1456_v47, %v1454_v42  ;;  %v10263_v55 = vpack.i.bf16 %v1452_v49, %v1450_v48  ;;  %v10298_v26 = vpack.i.bf16 %v1336_v7, %v12141_v5  ;;  %v10293_v27 = vpack.i.bf16 %v1332_v9, %v1330_v8  ;;  %v1462_v49 = vld [vmem:[#allocation2 + $0x3e3] ss:$2 sm:$0xff]  ;;  %v1588_v5 = vld [vmem:[#allocation2 + $0x3d4] ss:$2 sm:$0xff] }
 0x140   : > { %v9951_v19 = vunpack.i.l.bf16 %v11895_v14  ;;  %v9952_v23 = vunpack.i.h.bf16 %v11895_v14  ;;  %v9947_v24 = vunpack.i.h.bf16 %v11897_v15  ;;  %v9946_v25 = vunpack.i.l.bf16 %v11897_v15  ;;  %v1016_v15 = vld [vmem:[#allocation2 + $0x1f0] ss:$2 sm:$0xff]  ;;  %v1022_v8 = vld [vmem:[#allocation2 + $0x220] ss:$2 sm:$0xff] }
 0x141   : > { %10239 = vrot.lane.b32.xlu1 %v10238_v63, %s10937_s23  ;;  %10234 = vrot.lane.b32.xlu0 %v10233_v1, %s10937_s23  ;;  %v1206_v1 = vld [vmem:[#allocation2 + $0x3e1] ss:$2 sm:$0xff] }
 0x142   : > { %v11928_v32 = vsel %vm2746_vm4, %v2708_v28, %v9951_v19  ;;  %v2774_v39 = vsel %vm2746_vm4, %v11919_v29, %v9952_v23  ;;  %v2771_v40 = vsel %vm2746_vm4, %v11922_v30, %v9946_v25  ;;  %v2772_v41 = vsel %vm2746_vm4, %v11925_v31, %v9947_v24 }
 0x143   : > { %v11930_v33 = vpop.permute.xlu1 %9959  ;;  %v11932_v34 = vpop.permute.xlu0 %9954  ;;  %v10288_v23 = vpack.i.bf16 %v1208_v57, %v1206_v1  ;;  %v10283_v25 = vpack.i.bf16 %v1204_v2, %v1202_v61  ;;  %v1590_v57 = vld [vmem:[#allocation2 + $0x3e4] ss:$2 sm:$0xff]  ;;  %v1592_v61 = vld [vmem:[#allocation2 + $0x3f4] ss:$2 sm:$0xff] }
 0x144   : > { %v9962_v35 = vunpack.i.h.bf16 %v11930_v33  ;;  %v9961_v36 = vunpack.i.l.bf16 %v11930_v33  ;;  %v9957_v37 = vunpack.i.h.bf16 %v11932_v34  ;;  %v9956_v38 = vunpack.i.l.bf16 %v11932_v34  ;;  %v1586_v2 = vld [vmem:[#allocation2 + $0x3c4] ss:$2 sm:$0xff] }
 0x145   : > { %10249 = vrot.lane.b32.xlu1 %v10248_v16, %s10935_s19  ;;  %10244 = vrot.lane.b32.xlu0 %v10243_v20, %s10935_s19  ;;  %v1010_v16 = vld [vmem:[#allocation2 + $0x1c0] ss:$2 sm:$0xff]  ;;  %v10313_v7 = vpack.i.bf16 %v1588_v5, %v1586_v2 }
 0x146   : > { %v2838_v43 = vsel %vm2811_vm5, %v11928_v32, %v9961_v36  ;;  %v2839_v44 = vsel %vm2811_vm5, %v2774_v39, %v9962_v35  ;;  %v2836_v45 = vsel %vm2811_vm5, %v2771_v40, %v9956_v38  ;;  %v2837_v46 = vsel %vm2811_vm5, %v2772_v41, %v9957_v37 }
 0x147   : > { %v9970_v50 = vpop.permute.xlu1 %9969  ;;  %v9965_v51 = vpop.permute.xlu0 %9964  ;;  %v2888_v52 = vpack.c.bf16 %v2837_v46, %v2836_v45  ;;  %v2889_v53 = vpack.c.bf16 %v2839_v44, %v2838_v43 }
 0x148   : > { %v9971_v3 = vunpack.i.l.bf16 %v9970_v50  ;;  %v9972_v11 = vunpack.i.h.bf16 %v9970_v50  ;;  %v9967_v12 = vunpack.i.h.bf16 %v9965_v51  ;;  %v9966_v13 = vunpack.i.l.bf16 %v9965_v51 }
 0x149   : > { %10259 = vrot.lane.b32.xlu1 %v10258_v17, %s13657_s26  ;;  %10254 = vrot.lane.b32.xlu0 %v10253_v21, %s13657_s26  ;;  %v1012_v17 = vld [vmem:[#allocation2 + $0x1d0] ss:$2 sm:$0xff] }
 0x14a   : > { %9186 = vmatprep.mubr.msk.bf16.mxu0 %vm2946_vm6, %v2888_v52  ;;  %v2647_v28 = vsel %vm695_vm0, %v1014_v10, %v9971_v3  ;;  %v2648_v32 = vsel %vm695_vm0, %v1016_v15, %v9972_v11  ;;  %v2646_v33 = vsel %vm695_vm0, %v1012_v17, %v9967_v12  ;;  %v2645_v34 = vsel %vm695_vm0, %v1010_v16, %v9966_v13  ;;  %v1024_v13 = vld [vmem:[#allocation2 + $0x230] ss:$2 sm:$0xff] }
 0x14b   : > { %9187 = vmatmul.mubr.msk.bf16.gmra.mrb[24].mxu0 %vm2946_vm6, %v2889_v53  ;;  %v9980_v62 = vpop.permute.xlu1 %9979  ;;  %v9975_v63 = vpop.permute.xlu0 %9974  ;;  %v1020_v15 = vld [vmem:[#allocation2 + $0x210] ss:$2 sm:$0xff] }
 0x14c   : > { %v9981_v14 = vunpack.i.l.bf16 %v9980_v62  ;;  %v9982_v18 = vunpack.i.h.bf16 %v9980_v62  ;;  %v9977_v19 = vunpack.i.h.bf16 %v9975_v63  ;;  %v9976_v20 = vunpack.i.l.bf16 %v9975_v63 }
 0x14d   : > { %10269 = vrot.lane.b32.xlu1 %v10268_v54, %s13658_s22  ;;  %10264 = vrot.lane.b32.xlu0 %v10263_v55, %s13658_s22  ;;  %v1464_v54 = vld [vmem:[#allocation2 + $0x3f3] ss:$2 sm:$0xff]  ;;  %v1458_v55 = vld [vmem:[#allocation2 + $0x3c3] ss:$2 sm:$0xff] }
 0x14e   : > { %v2712_v35 = vsel %vm2681_vm3, %v2647_v28, %v9981_v14  ;;  %v2713_v36 = vsel %vm2681_vm3, %v2648_v32, %v9982_v18  ;;  %v2710_v37 = vsel %vm2681_vm3, %v2645_v34, %v9976_v20  ;;  %v2711_v38 = vsel %vm2681_vm3, %v2646_v33, %v9977_v19  ;;  %v1018_v14 = vld [vmem:[#allocation2 + $0x200] ss:$2 sm:$0xff] }
 0x14f   : > { %v9990_v21 = vpop.permute.xlu1 %9989  ;;  %v9985_v22 = vpop.permute.xlu0 %9984  ;;  %v10308_v63 = vpack.i.bf16 %v1464_v54, %v1462_v49  ;;  %v10303_v1 = vpack.i.bf16 %v1460_v56, %v1458_v55  ;;  %v1030_v54 = vld [vmem:[#allocation2 + $0x260] ss:$2 sm:$0xff] }
 0x150   : > { %v9991_v24 = vunpack.i.l.bf16 %v9990_v21  ;;  %v9992_v29 = vunpack.i.h.bf16 %v9990_v21  ;;  %v9987_v30 = vunpack.i.h.bf16 %v9985_v22  ;;  %v9986_v31 = vunpack.i.l.bf16 %v9985_v22 }
 0x151   : > { %10279 = vrot.lane.b32.xlu1 %v10278_v4, %s10937_s23  ;;  %10274 = vrot.lane.b32.xlu0 %v10273_v6, %s10937_s23  ;;  %v10318_v6 = vpack.i.bf16 %v1592_v61, %v1590_v57 }
 0x152   : > { %v2777_v39 = vsel %vm2746_vm4, %v2712_v35, %v9991_v24  ;;  %v2778_v46 = vsel %vm2746_vm4, %v2713_v36, %v9992_v29  ;;  %v2775_v47 = vsel %vm2746_vm4, %v2710_v37, %v9986_v31  ;;  %v2776_v48 = vsel %vm2746_vm4, %v2711_v38, %v9987_v30 }
 0x153   : > { %v10000_v40 = vpop.permute.xlu1 %9999  ;;  %v9995_v41 = vpop.permute.xlu0 %9994 }
 0x154   : > { %v10002_v42 = vunpack.i.h.bf16 %v10000_v40  ;;  %v10001_v43 = vunpack.i.l.bf16 %v10000_v40  ;;  %v9997_v44 = vunpack.i.h.bf16 %v9995_v41  ;;  %v9996_v45 = vunpack.i.l.bf16 %v9995_v41 }
 0x155   : > { %10289 = vrot.lane.b32.xlu1 %v10288_v23, %s10935_s19  ;;  %10284 = vrot.lane.b32.xlu0 %v10283_v25, %s10935_s19  ;;  %s13637_s19 = smov 64  }
 0x156   : > { %v2842_v50 = vsel %vm2811_vm5, %v2777_v39, %v10001_v43  ;;  %v2843_v51 = vsel %vm2811_vm5, %v2778_v46, %v10002_v42  ;;  %v2840_v52 = vsel %vm2811_vm5, %v2775_v47, %v9996_v45  ;;  %v2841_v53 = vsel %vm2811_vm5, %v2776_v48, %v9997_v44 }
 0x157   : > { %v10010_v58 = vpop.permute.xlu1 %10009  ;;  %v10005_v59 = vpop.permute.xlu0 %10004  ;;  %v2890_v60 = vpack.c.bf16 %v2841_v53, %v2840_v52  ;;  %v2891_v62 = vpack.c.bf16 %v2843_v51, %v2842_v50 }
 0x158   : > { %v10012_v9 = vunpack.i.h.bf16 %v10010_v58  ;;  %v10011_v10 = vunpack.i.l.bf16 %v10010_v58  ;;  %v10007_v11 = vunpack.i.h.bf16 %v10005_v59  ;;  %v10006_v12 = vunpack.i.l.bf16 %v10005_v59 }
 0x159   : > { %10299 = vrot.lane.b32.xlu1 %v10298_v26, %s13657_s26  ;;  %10294 = vrot.lane.b32.xlu0 %v10293_v27, %s13657_s26  ;;  %s10941_s26 = smov 96  }
 0x15a   : > { %9190 = vmatprep.mubr.msk.bf16.mxu0 %vm2946_vm6, %v2890_v60  ;;  %v2652_v26 = vsel %vm695_vm0, %v1024_v13, %v10012_v9  ;;  %v2651_v27 = vsel %vm695_vm0, %v1022_v8, %v10011_v10  ;;  %v2650_v28 = vsel %vm695_vm0, %v1020_v15, %v10007_v11  ;;  %v2649_v29 = vsel %vm695_vm0, %v1018_v14, %v10006_v12  ;;  %v1032_v60 = vld [vmem:[#allocation2 + $0x270] ss:$2 sm:$0xff] }
 0x15b   : > { %9191 = vmatmul.mubr.msk.bf16.gmra.mrb[28].mxu0 %vm2946_vm6, %v2891_v62  ;;  %v10020_v3 = vpop.permute.xlu1 %10019  ;;  %v10015_v4 = vpop.permute.xlu0 %10014  ;;  %v1026_v62 = vld [vmem:[#allocation2 + $0x240] ss:$2 sm:$0xff] }
 0x15c   : > { %v10022_v16 = vunpack.i.h.bf16 %v10020_v3  ;;  %v10021_v17 = vunpack.i.l.bf16 %v10020_v3  ;;  %v10017_v18 = vunpack.i.h.bf16 %v10015_v4  ;;  %v10016_v19 = vunpack.i.l.bf16 %v10015_v4 }
 0x15d   : > { %10309 = vrot.lane.b32.xlu1 %v10308_v63, %s13658_s22  ;;  %10304 = vrot.lane.b32.xlu0 %v10303_v1, %s13658_s22  ;;  %v1028_v63 = vld [vmem:[#allocation2 + $0x250] ss:$2 sm:$0xff] }
 0x15e   : > { %v2716_v30 = vsel %vm2681_vm3, %v2651_v27, %v10021_v17  ;;  %v2717_v31 = vsel %vm2681_vm3, %v2652_v26, %v10022_v16  ;;  %v2714_v32 = vsel %vm2681_vm3, %v2649_v29, %v10016_v19  ;;  %v2715_v33 = vsel %vm2681_vm3, %v2650_v28, %v10017_v18 }
 0x15f   : > { %v10030_v20 = vpop.permute.xlu1 %10029  ;;  %v10025_v21 = vpop.permute.xlu0 %10024 }
 0x160   : > { %v10032_v22 = vunpack.i.h.bf16 %v10030_v20  ;;  %v10031_v23 = vunpack.i.l.bf16 %v10030_v20  ;;  %v10027_v24 = vunpack.i.h.bf16 %v10025_v21  ;;  %v10026_v25 = vunpack.i.l.bf16 %v10025_v21 }
 0x161   : > { %10319 = vrot.lane.b32.xlu1 %v10318_v6, %s10937_s23  ;;  %10314 = vrot.lane.b32.xlu0 %v10313_v7, %s10937_s23  ;;  %s13635_s23 = smov 32  }
 0x162   : > { %v2781_v40 = vsel %vm2746_vm4, %v2716_v30, %v10031_v23  ;;  %v2782_v41 = vsel %vm2746_vm4, %v2717_v31, %v10032_v22  ;;  %v2779_v42 = vsel %vm2746_vm4, %v2714_v32, %v10026_v25  ;;  %v2780_v43 = vsel %vm2746_vm4, %v2715_v33, %v10027_v24 }
 0x163   : > { %v10040_v34 = vpop.permute.xlu1 %10039  ;;  %v10035_v35 = vpop.permute.xlu0 %10034 }
 0x164   : > { %v10042_v36 = vunpack.i.h.bf16 %v10040_v34  ;;  %v10041_v37 = vunpack.i.l.bf16 %v10040_v34  ;;  %v10037_v38 = vunpack.i.h.bf16 %v10035_v35  ;;  %v10036_v39 = vunpack.i.l.bf16 %v10035_v35 }
 0x166   : > { %v2846_v44 = vsel %vm2811_vm5, %v2781_v40, %v10041_v37  ;;  %v2847_v45 = vsel %vm2811_vm5, %v2782_v41, %v10042_v36  ;;  %v2844_v46 = vsel %vm2811_vm5, %v2779_v42, %v10036_v39  ;;  %v2845_v47 = vsel %vm2811_vm5, %v2780_v43, %v10037_v38  ;;  %v1038_v37 = vld [vmem:[#allocation2 + $0x2a0] ss:$2 sm:$0xff]  ;;  %v1040_v42 = vld [vmem:[#allocation2 + $0x2b0] ss:$2 sm:$0xff] }
 0x167   : > { %v10050_v48 = vpop.permute.xlu1 %10049  ;;  %v10045_v49 = vpop.permute.xlu0 %10044  ;;  %v2892_v50 = vpack.c.bf16 %v2845_v47, %v2844_v46  ;;  %v2893_v51 = vpack.c.bf16 %v2847_v45, %v2846_v44  ;;  %v1034_v43 = vld [vmem:[#allocation2 + $0x280] ss:$2 sm:$0xff]  ;;  %v1036_v44 = vld [vmem:[#allocation2 + $0x290] ss:$2 sm:$0xff] }
 0x168   : > { %v10052_v55 = vunpack.i.h.bf16 %v10050_v48  ;;  %v10051_v56 = vunpack.i.l.bf16 %v10050_v48  ;;  %v10047_v58 = vunpack.i.h.bf16 %v10045_v49  ;;  %v10046_v59 = vunpack.i.l.bf16 %v10045_v49 }
 0x169   : > { %9194 = vmatprep.mubr.msk.bf16.mxu0 %vm2946_vm6, %v2892_v50 }
 0x16a   : > { %9195 = vmatmul.mubr.msk.bf16.gmra.mrb[32].mxu0 %vm2946_vm6, %v2893_v51  ;;  %v2656_v9 = vsel %vm695_vm0, %v1032_v60, %v10052_v55  ;;  %v2655_v10 = vsel %vm695_vm0, %v1030_v54, %v10051_v56  ;;  %v2654_v11 = vsel %vm695_vm0, %v1028_v63, %v10047_v58  ;;  %v2653_v12 = vsel %vm695_vm0, %v1026_v62, %v10046_v59 }
 0x16b   : > { %v10060_v52 = vpop.permute.xlu1 %10059  ;;  %v10055_v53 = vpop.permute.xlu0 %10054 }
 0x16c   : > { %v10062_v1 = vunpack.i.h.bf16 %v10060_v52  ;;  %v10061_v57 = vunpack.i.l.bf16 %v10060_v52  ;;  %v10057_v61 = vunpack.i.h.bf16 %v10055_v53  ;;  %v10056_v2 = vunpack.i.l.bf16 %v10055_v53 }
 0x16e   : > { %v2720_v13 = vsel %vm2681_vm3, %v2655_v10, %v10061_v57  ;;  %v2721_v14 = vsel %vm2681_vm3, %v2656_v9, %v10062_v1  ;;  %v2718_v15 = vsel %vm2681_vm3, %v2653_v12, %v10056_v2  ;;  %v2719_v16 = vsel %vm2681_vm3, %v2654_v11, %v10057_v61 }
 0x16f   : > { %v10070_v5 = vpop.permute.xlu1 %10069  ;;  %v10065_v3 = vpop.permute.xlu0 %10064 }
 0x170   : > { %v10072_v4 = vunpack.i.h.bf16 %v10070_v5  ;;  %v10071_v6 = vunpack.i.l.bf16 %v10070_v5  ;;  %v10067_v7 = vunpack.i.h.bf16 %v10065_v3  ;;  %v10066_v8 = vunpack.i.l.bf16 %v10065_v3 }
 0x172   : > { %v2785_v23 = vsel %vm2746_vm4, %v2720_v13, %v10071_v6  ;;  %v2786_v24 = vsel %vm2746_vm4, %v2721_v14, %v10072_v4  ;;  %v2783_v25 = vsel %vm2746_vm4, %v2718_v15, %v10066_v8  ;;  %v2784_v26 = vsel %vm2746_vm4, %v2719_v16, %v10067_v7 }
 0x173   : > { %v10080_v17 = vpop.permute.xlu1 %10079  ;;  %v10075_v18 = vpop.permute.xlu0 %10074 }
 0x174   : > { %v10082_v19 = vunpack.i.h.bf16 %v10080_v17  ;;  %v10081_v20 = vunpack.i.l.bf16 %v10080_v17  ;;  %v10077_v21 = vunpack.i.h.bf16 %v10075_v18  ;;  %v10076_v22 = vunpack.i.l.bf16 %v10075_v18 }
 0x176   : > { %v2850_v27 = vsel %vm2811_vm5, %v2785_v23, %v10081_v20  ;;  %v2851_v28 = vsel %vm2811_vm5, %v2786_v24, %v10082_v19  ;;  %v2848_v29 = vsel %vm2811_vm5, %v2783_v25, %v10076_v22  ;;  %v2849_v30 = vsel %vm2811_vm5, %v2784_v26, %v10077_v21  ;;  %v1046_v20 = vld [vmem:[#allocation2 + $0x2e0] ss:$2 sm:$0xff]  ;;  %v1048_v25 = vld [vmem:[#allocation2 + $0x2f0] ss:$2 sm:$0xff] }
 0x177   : > { %v10090_v31 = vpop.permute.xlu1 %10089  ;;  %v10085_v32 = vpop.permute.xlu0 %10084  ;;  %v2894_v33 = vpack.c.bf16 %v2849_v30, %v2848_v29  ;;  %v2895_v34 = vpack.c.bf16 %v2851_v28, %v2850_v27  ;;  %v1042_v26 = vld [vmem:[#allocation2 + $0x2c0] ss:$2 sm:$0xff]  ;;  %v1044_v27 = vld [vmem:[#allocation2 + $0x2d0] ss:$2 sm:$0xff] }
 0x178   : > { %v10092_v38 = vunpack.i.h.bf16 %v10090_v31  ;;  %v10091_v39 = vunpack.i.l.bf16 %v10090_v31  ;;  %v10087_v40 = vunpack.i.h.bf16 %v10085_v32  ;;  %v10086_v41 = vunpack.i.l.bf16 %v10085_v32 }
 0x179   : > { %9198 = vmatprep.mubr.msk.bf16.mxu0 %vm2946_vm6, %v2894_v33 }
 0x17a   : > { %9199 = vmatmul.mubr.msk.bf16.gmra.mrb[36].mxu0 %vm2946_vm6, %v2895_v34  ;;  %v2660_v55 = vsel %vm695_vm0, %v1040_v42, %v10092_v38  ;;  %v2659_v56 = vsel %vm695_vm0, %v1038_v37, %v10091_v39  ;;  %v2658_v58 = vsel %vm695_vm0, %v1036_v44, %v10087_v40  ;;  %v2657_v59 = vsel %vm695_vm0, %v1034_v43, %v10086_v41 }
 0x17b   : > { %v10100_v35 = vpop.permute.xlu1 %10099  ;;  %v10095_v36 = vpop.permute.xlu0 %10094 }
 0x17c   : > { %v10102_v45 = vunpack.i.h.bf16 %v10100_v35  ;;  %v10101_v46 = vunpack.i.l.bf16 %v10100_v35  ;;  %v10097_v47 = vunpack.i.h.bf16 %v10095_v36  ;;  %v10096_v48 = vunpack.i.l.bf16 %v10095_v36 }
 0x17e   : > { %v2724_v60 = vsel %vm2681_vm3, %v2659_v56, %v10101_v46  ;;  %v2725_v62 = vsel %vm2681_vm3, %v2660_v55, %v10102_v45  ;;  %v2722_v63 = vsel %vm2681_vm3, %v2657_v59, %v10096_v48  ;;  %v2723_v1 = vsel %vm2681_vm3, %v2658_v58, %v10097_v47 }
 0x17f   : > { %v10110_v49 = vpop.permute.xlu1 %10109  ;;  %v10105_v50 = vpop.permute.xlu0 %10104 }
 0x180   : > { %v10112_v51 = vunpack.i.h.bf16 %v10110_v49  ;;  %v10111_v52 = vunpack.i.l.bf16 %v10110_v49  ;;  %v10107_v53 = vunpack.i.h.bf16 %v10105_v50  ;;  %v10106_v54 = vunpack.i.l.bf16 %v10105_v50 }
 0x182   : > { %v2789_v6 = vsel %vm2746_vm4, %v2724_v60, %v10111_v52  ;;  %v2790_v7 = vsel %vm2746_vm4, %v2725_v62, %v10112_v51  ;;  %v2787_v8 = vsel %vm2746_vm4, %v2722_v63, %v10106_v54  ;;  %v2788_v9 = vsel %vm2746_vm4, %v2723_v1, %v10107_v53 }
 0x183   : > { %v10120_v57 = vpop.permute.xlu1 %10119  ;;  %v10115_v61 = vpop.permute.xlu0 %10114 }
 0x184   : > { %v10122_v2 = vunpack.i.h.bf16 %v10120_v57  ;;  %v10121_v5 = vunpack.i.l.bf16 %v10120_v57  ;;  %v10117_v3 = vunpack.i.h.bf16 %v10115_v61  ;;  %v10116_v4 = vunpack.i.l.bf16 %v10115_v61 }
 0x186   : > { %v2854_v10 = vsel %vm2811_vm5, %v2789_v6, %v10121_v5  ;;  %v2855_v11 = vsel %vm2811_vm5, %v2790_v7, %v10122_v2  ;;  %v2852_v12 = vsel %vm2811_vm5, %v2787_v8, %v10116_v4  ;;  %v2853_v13 = vsel %vm2811_vm5, %v2788_v9, %v10117_v3  ;;  %v1054_v5 = vld [vmem:[#allocation2 + $0x320] ss:$2 sm:$0xff]  ;;  %v1056_v8 = vld [vmem:[#allocation2 + $0x330] ss:$2 sm:$0xff] }
 0x187   : > { %v10130_v14 = vpop.permute.xlu1 %10129  ;;  %v10125_v15 = vpop.permute.xlu0 %10124  ;;  %v2896_v16 = vpack.c.bf16 %v2853_v13, %v2852_v12  ;;  %v2897_v17 = vpack.c.bf16 %v2855_v11, %v2854_v10  ;;  %v1050_v9 = vld [vmem:[#allocation2 + $0x300] ss:$2 sm:$0xff]  ;;  %v1052_v10 = vld [vmem:[#allocation2 + $0x310] ss:$2 sm:$0xff] }
 0x188   : > { %v10132_v21 = vunpack.i.h.bf16 %v10130_v14  ;;  %v10131_v22 = vunpack.i.l.bf16 %v10130_v14  ;;  %v10127_v23 = vunpack.i.h.bf16 %v10125_v15  ;;  %v10126_v24 = vunpack.i.l.bf16 %v10125_v15 }
 0x189   : > { %9202 = vmatprep.mubr.msk.bf16.mxu0 %vm2946_vm6, %v2896_v16 }
 0x18a   : > { %9203 = vmatmul.mubr.msk.bf16.gmra.mrb[40].mxu0 %vm2946_vm6, %v2897_v17  ;;  %v2664_v38 = vsel %vm695_vm0, %v1048_v25, %v10132_v21  ;;  %v2663_v39 = vsel %vm695_vm0, %v1046_v20, %v10131_v22  ;;  %v2662_v40 = vsel %vm695_vm0, %v1044_v27, %v10127_v23  ;;  %v2661_v41 = vsel %vm695_vm0, %v1042_v26, %v10126_v24 }
 0x18b   : > { %v10140_v18 = vpop.permute.xlu1 %10139  ;;  %v10135_v19 = vpop.permute.xlu0 %10134 }
 0x18c   : > { %v10142_v28 = vunpack.i.h.bf16 %v10140_v18  ;;  %v10141_v29 = vunpack.i.l.bf16 %v10140_v18  ;;  %v10137_v30 = vunpack.i.h.bf16 %v10135_v19  ;;  %v10136_v31 = vunpack.i.l.bf16 %v10135_v19 }
 0x18e   : > { %v2728_v42 = vsel %vm2681_vm3, %v2663_v39, %v10141_v29  ;;  %v2729_v43 = vsel %vm2681_vm3, %v2664_v38, %v10142_v28  ;;  %v2726_v44 = vsel %vm2681_vm3, %v2661_v41, %v10136_v31  ;;  %v2727_v45 = vsel %vm2681_vm3, %v2662_v40, %v10137_v30 }
 0x18f   : > { %v10150_v32 = vpop.permute.xlu1 %10149  ;;  %v10145_v33 = vpop.permute.xlu0 %10144 }
 0x190   : > { %v10152_v34 = vunpack.i.h.bf16 %v10150_v32  ;;  %v10151_v35 = vunpack.i.l.bf16 %v10150_v32  ;;  %v10147_v36 = vunpack.i.h.bf16 %v10145_v33  ;;  %v10146_v37 = vunpack.i.l.bf16 %v10145_v33 }
 0x192   : > { %v2793_v52 = vsel %vm2746_vm4, %v2728_v42, %v10151_v35  ;;  %v2794_v53 = vsel %vm2746_vm4, %v2729_v43, %v10152_v34  ;;  %v2791_v54 = vsel %vm2746_vm4, %v2726_v44, %v10146_v37  ;;  %v2792_v55 = vsel %vm2746_vm4, %v2727_v45, %v10147_v36 }
 0x193   : > { %v10160_v46 = vpop.permute.xlu1 %10159  ;;  %v10155_v47 = vpop.permute.xlu0 %10154 }
 0x194   : > { %v10162_v48 = vunpack.i.h.bf16 %v10160_v46  ;;  %v10161_v49 = vunpack.i.l.bf16 %v10160_v46  ;;  %v10157_v50 = vunpack.i.h.bf16 %v10155_v47  ;;  %v10156_v51 = vunpack.i.l.bf16 %v10155_v47  ;;  %v10642_v47 = vld [vmem:[%s13659_s3] sm:$0xff]  }
 0x196   : > { %v2858_v56 = vsel %vm2811_vm5, %v2793_v52, %v10161_v49  ;;  %v2859_v58 = vsel %vm2811_vm5, %v2794_v53, %v10162_v48  ;;  %v2856_v59 = vsel %vm2811_vm5, %v2791_v54, %v10156_v51  ;;  %v2857_v60 = vsel %vm2811_vm5, %v2792_v55, %v10157_v50  ;;  %v10643_v49 = vld [vmem:[%s13659_s3 + $0x8] sm:$0xff]  }
 0x197   : > { %v10170_v62 = vpop.permute.xlu1 %10169  ;;  %v10165_v63 = vpop.permute.xlu0 %10164  ;;  %v2898_v1 = vpack.c.bf16 %v2857_v60, %v2856_v59  ;;  %v2899_v57 = vpack.c.bf16 %v2859_v58, %v2858_v56  ;;  %v10938_v48 = vmov 0   ;;  %v1062_v52 = vld [vmem:[#allocation2 + $0x360] ss:$2 sm:$0xff]  ;;  %v1064_v58 = vld [vmem:[#allocation2 + $0x370] ss:$2 sm:$0xff] }
 0x198   : > { %v10172_v3 = vunpack.i.h.bf16 %v10170_v62  ;;  %v10171_v4 = vunpack.i.l.bf16 %v10170_v62  ;;  %v10167_v6 = vunpack.i.h.bf16 %v10165_v63  ;;  %v10166_v7 = vunpack.i.l.bf16 %v10165_v63  ;;  %4627 = vmatprep.subr.bf16.mxu1 %v10938_v48  ;;  %5496 = vmatprep.subr.bf16.mxu0 %v10938_v48  ;;  %v1058_v59 = vld [vmem:[#allocation2 + $0x340] ss:$2 sm:$0xff]  ;;  %v1060_v60 = vld [vmem:[#allocation2 + $0x350] ss:$2 sm:$0xff] }
 0x199   : > { %9206 = vmatprep.mubr.msk.bf16.mxu0 %vm2946_vm6, %v2898_v1  ;;  %4628 = vmatpush1.bf16.msra.mxu1 %v10642_v47 }
 0x19a   : > { %9207 = vmatmul.mubr.msk.bf16.gmra.mrb[44].mxu0 %vm2946_vm6, %v2899_v57  ;;  %v2668_v21 = vsel %vm695_vm0, %v1056_v8, %v10172_v3  ;;  %v2667_v22 = vsel %vm695_vm0, %v1054_v5, %v10171_v4  ;;  %v2666_v23 = vsel %vm695_vm0, %v1052_v10, %v10167_v6  ;;  %v2665_v24 = vsel %vm695_vm0, %v1050_v9, %v10166_v7 }
 0x19b   : > { %v10180_v61 = vpop.permute.xlu1 %10179  ;;  %v10175_v2 = vpop.permute.xlu0 %10174  ;;  %4629 = vmatprep.subr.bf16.mxu1 %v10938_v48 }
 0x19c   : > { %v10182_v11 = vunpack.i.h.bf16 %v10180_v61  ;;  %v10181_v12 = vunpack.i.l.bf16 %v10180_v61  ;;  %v10177_v13 = vunpack.i.h.bf16 %v10175_v2  ;;  %v10176_v14 = vunpack.i.l.bf16 %v10175_v2 }
 0x19d   : > { %4630 = vmatpush1.bf16.msra.mxu1 %v10643_v49 }
 0x19e   : > { %v2732_v25 = vsel %vm2681_vm3, %v2667_v22, %v10181_v12  ;;  %v2733_v26 = vsel %vm2681_vm3, %v2668_v21, %v10182_v11  ;;  %v2730_v27 = vsel %vm2681_vm3, %v2665_v24, %v10176_v14  ;;  %v2731_v28 = vsel %vm2681_vm3, %v2666_v23, %v10177_v13  ;;  %4631 = vmatprep.subr.bf16.mxu1 %v10938_v48  ;;  %v10644_v21 = vld [vmem:[%s13659_s3 + $0x10] sm:$0xff]  }
 0x19f   : > { %v10190_v15 = vpop.permute.xlu1 %10189  ;;  %v10185_v16 = vpop.permute.xlu0 %10184 }
 0x1a0   : > { %v10192_v17 = vunpack.i.h.bf16 %v10190_v15  ;;  %v10191_v18 = vunpack.i.l.bf16 %v10190_v15  ;;  %v10187_v19 = vunpack.i.h.bf16 %v10185_v16  ;;  %v10186_v20 = vunpack.i.l.bf16 %v10185_v16 }
 0x1a1   : > { %4632 = vmatpush1.bf16.msra.mxu1 %v10644_v21 }
 0x1a2   : > { %v2797_v35 = vsel %vm2746_vm4, %v2732_v25, %v10191_v18  ;;  %v2798_v36 = vsel %vm2746_vm4, %v2733_v26, %v10192_v17  ;;  %v2795_v37 = vsel %vm2746_vm4, %v2730_v27, %v10186_v20  ;;  %v2796_v38 = vsel %vm2746_vm4, %v2731_v28, %v10187_v19  ;;  %4633 = vmatprep.subr.bf16.mxu1 %v10938_v48 }
 0x1a3   : > { %v10200_v29 = vpop.permute.xlu1 %10199  ;;  %v10195_v30 = vpop.permute.xlu0 %10194 }
 0x1a4   : > { %v10202_v31 = vunpack.i.h.bf16 %v10200_v29  ;;  %v10201_v32 = vunpack.i.l.bf16 %v10200_v29  ;;  %v10197_v33 = vunpack.i.h.bf16 %v10195_v30  ;;  %v10196_v34 = vunpack.i.l.bf16 %v10195_v30 }
 0x1a6   : > { %v2862_v39 = vsel %vm2811_vm5, %v2797_v35, %v10201_v32  ;;  %v2863_v40 = vsel %vm2811_vm5, %v2798_v36, %v10202_v31  ;;  %v2860_v41 = vsel %vm2811_vm5, %v2795_v37, %v10196_v34  ;;  %v2861_v42 = vsel %vm2811_vm5, %v2796_v38, %v10197_v33  ;;  %v10645_v34 = vld [vmem:[%s13659_s3 + $0x18] sm:$0xff]   ;;  %v1070_v35 = vld [vmem:[#allocation2 + $0x3a0] ss:$2 sm:$0xff] }
 0x1a7   : > { %v10210_v43 = vpop.permute.xlu1 %10209  ;;  %v10205_v44 = vpop.permute.xlu0 %10204  ;;  %v2900_v45 = vpack.c.bf16 %v2861_v42, %v2860_v41  ;;  %v2901_v46 = vpack.c.bf16 %v2863_v40, %v2862_v39  ;;  %v1072_v36 = vld [vmem:[#allocation2 + $0x3b0] ss:$2 sm:$0xff]  ;;  %v1066_v41 = vld [vmem:[#allocation2 + $0x380] ss:$2 sm:$0xff]  ;;  %4634 = vmatpush1.bf16.msra.mxu1 %v10645_v34 }
 0x1a8   : > { %v10212_v53 = vunpack.i.h.bf16 %v10210_v43  ;;  %v10211_v54 = vunpack.i.l.bf16 %v10210_v43  ;;  %v10207_v55 = vunpack.i.h.bf16 %v10205_v44  ;;  %v10206_v56 = vunpack.i.l.bf16 %v10205_v44  ;;  %v1068_v42 = vld [vmem:[#allocation2 + $0x390] ss:$2 sm:$0xff]  ;;  %4635 = vmatprep.subr.bf16.mxu1 %v10938_v48 }
 0x1a9   : > { %9210 = vmatprep.mubr.msk.bf16.mxu0 %vm2946_vm6, %v2900_v45  ;;  %v10646_v45 = vld [vmem:[%s13659_s3 + $0x20] sm:$0xff]  }
 0x1aa   : > { %9211 = vmatmul.mubr.msk.bf16.gmra.mrb[48].mxu0 %vm2946_vm6, %v2901_v46  ;;  %v2672_v7 = vsel %vm695_vm0, %v1064_v58, %v10212_v53  ;;  %v2671_v8 = vsel %vm695_vm0, %v1062_v52, %v10211_v54  ;;  %v2670_v9 = vsel %vm695_vm0, %v1060_v60, %v10207_v55  ;;  %v2669_v10 = vsel %vm695_vm0, %v1058_v59, %v10206_v56 }
 0x1ab   : > { %v10220_v50 = vpop.permute.xlu1 %10219  ;;  %v10215_v51 = vpop.permute.xlu0 %10214  ;;  %4636 = vmatpush1.bf16.msra.mxu1 %v10646_v45 }
 0x1ac   : > { %v10222_v62 = vunpack.i.h.bf16 %v10220_v50  ;;  %v10221_v63 = vunpack.i.l.bf16 %v10220_v50  ;;  %v10217_v1 = vunpack.i.h.bf16 %v10215_v51  ;;  %v10216_v57 = vunpack.i.l.bf16 %v10215_v51  ;;  %v12305_v51 = vld [vmem:[%s13660_s2] ss:$0 sm:$0xff]  ;;  %4637 = vmatprep.subr.bf16.mxu1 %v10938_v48 }
 0x1ae   : > { %v2736_v11 = vsel %vm2681_vm3, %v2671_v8, %v10221_v63  ;;  %v2737_v12 = vsel %vm2681_vm3, %v2672_v7, %v10222_v62  ;;  %v2734_v13 = vsel %vm2681_vm3, %v2669_v10, %v10216_v57  ;;  %v2735_v14 = vsel %vm2681_vm3, %v2670_v9, %v10217_v1  ;;  %v10647_v57 = vld [vmem:[%s13659_s3 + $0x28] sm:$0xff]  }
 0x1af   : > { %v10230_v61 = vpop.permute.xlu1 %10229  ;;  %v10225_v2 = vpop.permute.xlu0 %10224  ;;  %4638 = vmatpush1.bf16.msra.mxu1 %v10647_v57 }
 0x1b0   : > { %v10232_v5 = vunpack.i.h.bf16 %v10230_v61  ;;  %v10231_v3 = vunpack.i.l.bf16 %v10230_v61  ;;  %v10227_v4 = vunpack.i.h.bf16 %v10225_v2  ;;  %v10226_v6 = vunpack.i.l.bf16 %v10225_v2  ;;  %4639 = vmatprep.subr.bf16.mxu1 %v10938_v48 }
 0x1b2   : > { %v2801_v22 = vsel %vm2746_vm4, %v2736_v11, %v10231_v3  ;;  %v2802_v23 = vsel %vm2746_vm4, %v2737_v12, %v10232_v5  ;;  %v2799_v24 = vsel %vm2746_vm4, %v2734_v13, %v10226_v6  ;;  %v2800_v25 = vsel %vm2746_vm4, %v2735_v14, %v10227_v4 }
 0x1b3   : > { %v10240_v15 = vpop.permute.xlu1 %10239  ;;  %v10235_v16 = vpop.permute.xlu0 %10234 }
 0x1b4   : > { %v10242_v17 = vunpack.i.h.bf16 %v10240_v15  ;;  %v10241_v18 = vunpack.i.l.bf16 %v10240_v15  ;;  %v10237_v19 = vunpack.i.h.bf16 %v10235_v16  ;;  %v10236_v20 = vunpack.i.l.bf16 %v10235_v16 }
 0x1b6   : > { %v2866_v26 = vsel %vm2811_vm5, %v2801_v22, %v10241_v18  ;;  %v2867_v27 = vsel %vm2811_vm5, %v2802_v23, %v10242_v17  ;;  %v2864_v28 = vsel %vm2811_vm5, %v2799_v24, %v10236_v20  ;;  %v2865_v29 = vsel %vm2811_vm5, %v2800_v25, %v10237_v19  ;;  %v10648_v19 = vld [vmem:[%s13659_s3 + $0x30] sm:$0xff]  }
 0x1b7   : > { %v10250_v30 = vpop.permute.xlu1 %10249  ;;  %v10245_v31 = vpop.permute.xlu0 %10244  ;;  %v2902_v32 = vpack.c.bf16 %v2865_v29, %v2864_v28  ;;  %v2903_v33 = vpack.c.bf16 %v2867_v27, %v2866_v26  ;;  %4640 = vmatpush1.bf16.msra.mxu1 %v10648_v19 }
 0x1b8   : > { %v10252_v37 = vunpack.i.h.bf16 %v10250_v30  ;;  %v10251_v38 = vunpack.i.l.bf16 %v10250_v30  ;;  %v10247_v39 = vunpack.i.h.bf16 %v10245_v31  ;;  %v10246_v40 = vunpack.i.l.bf16 %v10245_v31  ;;  %4641 = vmatprep.subr.bf16.mxu1 %v10938_v48 }
 0x1b9   : > { %9214 = vmatprep.mubr.msk.bf16.mxu0 %vm2946_vm6, %v2902_v32 }
 0x1ba   : > { %9215 = vmatmul.mubr.msk.bf16.gmra.mrb[52].mxu0 %vm2946_vm6, %v2903_v33  ;;  %v2676_v52 = vsel %vm695_vm0, %v1072_v36, %v10252_v37  ;;  %v2675_v53 = vsel %vm695_vm0, %v1070_v35, %v10251_v38  ;;  %v2674_v54 = vsel %vm695_vm0, %v1068_v42, %v10247_v39  ;;  %v2673_v55 = vsel %vm695_vm0, %v1066_v41, %v10246_v40  ;;  %v10649_v36 = vld [vmem:[%s13659_s3 + $0x38] sm:$0xff]   ;;  %v1078_v40 = vld [vmem:[#allocation2 + $0x3e0] ss:$2 sm:$0xff] }
 0x1bb   : > { %v10260_v43 = vpop.permute.xlu1 %10259  ;;  %v10255_v44 = vpop.permute.xlu0 %10254  ;;  %v1080_v41 = vld [vmem:[#allocation2 + $0x3f0] ss:$2 sm:$0xff]  ;;  %4642 = vmatpush1.bf16.msra.mxu1 %v10649_v36 }
 0x1bc   : > { %v10262_v46 = vunpack.i.h.bf16 %v10260_v43  ;;  %v10261_v47 = vunpack.i.l.bf16 %v10260_v43  ;;  %v10257_v49 = vunpack.i.h.bf16 %v10255_v44  ;;  %v10256_v50 = vunpack.i.l.bf16 %v10255_v44  ;;  %4643 = vmatprep.subr.bf16.mxu1 %v10938_v48 }
 0x1be   : > { %v9164_v56 = vpop.f32.mrb[0].mxu0  ;;  %v2740_v58 = vsel %vm2681_vm3, %v2675_v53, %v10261_v47  ;;  %v2741_v59 = vsel %vm2681_vm3, %v2676_v52, %v10262_v46  ;;  %v2738_v60 = vsel %vm2681_vm3, %v2673_v55, %v10256_v50  ;;  %v2739_v61 = vsel %vm2681_vm3, %v2674_v54, %v10257_v49  ;;  %v1074_v46 = vld [vmem:[#allocation2 + $0x3c0] ss:$2 sm:$0xff]  ;;  %v1076_v47 = vld [vmem:[#allocation2 + $0x3d0] ss:$2 sm:$0xff] }
 0x1bf   : > { %v3090_v62 = vadd.f32 %v9164_v56, %v12305_v51  ;;  %v3081_v63 = vpop.f32.mrb[1].mxu0  ;;  %v10270_v1 = vpop.permute.xlu1 %10269  ;;  %v10650_v50 = vld [vmem:[%s13659_s3 + $0x40] sm:$0xff]  }
 0x1c0   : > { %v3082_v2 = vadd.f32 %v12305_v51, %v3081_v63  ;;  %v10272_v5 = vunpack.i.h.bf16 %v10270_v1  ;;  %v10271_v3 = vunpack.i.l.bf16 %v10270_v1  ;;  %v10265_v4 = vpop.permute.xlu0 %10264  ;;  %v9165_v6 = vpop.f32.mrb[2].mxu0  ;;  %4644 = vmatpush1.bf16.msra.mxu1 %v10650_v50 }
 0x1c1   : > { %vm3338_vm8 = vcmp.gt.f32.partialorder %v3090_v62, 0.0  ;;  %v3402_v7 = vmul.f32 0.1, %v3090_v62  ;;  %v10267_v8 = vunpack.i.h.bf16 %v10265_v4  ;;  %v10266_v9 = vunpack.i.l.bf16 %v10265_v4  ;;  %v3084_v10 = vpop.f32.mrb[3].mxu0  ;;  %4645 = vmatprep.subr.bf16.mxu1 %v10938_v48 }
 0x1c2   : > { %vm3336_vm9 = vcmp.gt.f32.partialorder %v3082_v2, 0.0  ;;  %v3400_v11 = vmul.f32 0.1, %v3082_v2  ;;  %v2805_v12 = vsel %vm2746_vm4, %v2740_v58, %v10271_v3  ;;  %v2806_v13 = vsel %vm2746_vm4, %v2741_v59, %v10272_v5 }
 0x1c3   : > { %v3466_v14 = vsel %vm3338_vm8, %v3090_v62, %v3402_v7  ;;  %v2803_v15 = vsel %vm2746_vm4, %v2738_v60, %v10266_v9  ;;  %v2804_v16 = vsel %vm2746_vm4, %v2739_v61, %v10267_v8  ;;  %v3093_v17 = vadd.f32 %v9165_v6, %v12305_v51  ;;  %v10280_v18 = vpop.permute.xlu1 %10279  ;;  %v10651_v6 = vld [vmem:[%s13659_s3 + $0x48] sm:$0xff]   ;;  %s8946_s3 = sshll.u32 %s11057_s28, 4 }
 0x1c4   : > { %3597 = vst.msk [vmem:[#allocation3 + $0x12] sm:$0xff] %vm3528_vm7, %v3466_v14  ;;  %v3464_v20 = vsel %vm3336_vm9, %v3082_v2, %v3400_v11  ;;  %v3085_v21 = vadd.f32 %v12305_v51, %v3084_v10  ;;  %v10282_v22 = vunpack.i.h.bf16 %v10280_v18  ;;  %v10281_v23 = vunpack.i.l.bf16 %v10280_v18  ;;  %v10275_v24 = vpop.permute.xlu0 %10274  ;;  %4646 = vmatpush1.bf16.msra.mxu1 %v10651_v6 }
 0x1c5   : > { %3595 = vst.msk [vmem:[#allocation3 + $0x2] sm:$0xff] %vm3528_vm7, %v3464_v20  ;;  %vm3339_vm10 = vcmp.gt.f32.partialorder %v3093_v17, 0.0  ;;  %v3403_v25 = vmul.f32 0.1, %v3093_v17  ;;  %v10277_v26 = vunpack.i.h.bf16 %v10275_v24  ;;  %v10276_v27 = vunpack.i.l.bf16 %v10275_v24 }
 0x1c6   : > { %vm3337_vm11 = vcmp.gt.f32.partialorder %v3085_v21, 0.0  ;;  %v3401_v28 = vmul.f32 0.1, %v3085_v21  ;;  %v2870_v29 = vsel %vm2811_vm5, %v2805_v12, %v10281_v23  ;;  %v2871_v30 = vsel %vm2811_vm5, %v2806_v13, %v10282_v22 }
 0x1c7   : > { %v3467_v31 = vsel %vm3339_vm10, %v3093_v17, %v3403_v25  ;;  %v2868_v32 = vsel %vm2811_vm5, %v2803_v15, %v10276_v27  ;;  %v2869_v33 = vsel %vm2811_vm5, %v2804_v16, %v10277_v26  ;;  %v10290_v34 = vpop.permute.xlu1 %10289  ;;  %v2905_v35 = vpack.c.bf16 %v2871_v30, %v2870_v29 }
 0x1c8   : > { %3598 = vst.msk [vmem:[#allocation3 + $0x1a] sm:$0xff] %vm3528_vm7, %v3467_v31  ;;  %v3465_v37 = vsel %vm3337_vm11, %v3085_v21, %v3401_v28  ;;  %v10285_v38 = vpop.permute.xlu0 %10284  ;;  %v2904_v39 = vpack.c.bf16 %v2869_v33, %v2868_v32  ;;  %v10292_v42 = vunpack.i.h.bf16 %v10290_v34  ;;  %v10291_v43 = vunpack.i.l.bf16 %v10290_v34 }
 0x1c9   : > { %3596 = vst.msk [vmem:[#allocation3 + $0xa] sm:$0xff] %vm3528_vm7, %v3465_v37  ;;  %v10287_v44 = vunpack.i.h.bf16 %v10285_v38  ;;  %v10286_v45 = vunpack.i.l.bf16 %v10285_v38 }
 0x1ca   : > { %9218 = vmatprep.mubr.msk.bf16.mxu0 %vm2946_vm6, %v2904_v39  ;;  %v2680_v58 = vsel %vm695_vm0, %v1080_v41, %v10292_v42  ;;  %v2679_v59 = vsel %vm695_vm0, %v1078_v40, %v10291_v43 }
 0x1cb   : > { %9219 = vmatmul.mubr.msk.bf16.gmra.mrb[56].mxu0 %vm2946_vm6, %v2905_v35  ;;  %v10300_v49 = vpop.permute.xlu1 %10299  ;;  %v2678_v60 = vsel %vm695_vm0, %v1076_v47, %v10287_v44  ;;  %v2677_v62 = vsel %vm695_vm0, %v1074_v46, %v10286_v45 }
 0x1cc   : > { %v10302_v52 = vunpack.i.h.bf16 %v10300_v49  ;;  %v10301_v53 = vunpack.i.l.bf16 %v10300_v49  ;;  %v10295_v54 = vpop.permute.xlu0 %10294 }
 0x1cd   : > { %v10297_v55 = vunpack.i.h.bf16 %v10295_v54  ;;  %v10296_v56 = vunpack.i.l.bf16 %v10295_v54 }
 0x1ce   : > { %v9168_v63 = vpop.f32.mrb[4].mxu0  ;;  %v2744_v1 = vsel %vm2681_vm3, %v2679_v59, %v10301_v53  ;;  %v2745_v57 = vsel %vm2681_vm3, %v2680_v58, %v10302_v52 }
 0x1cf   : > { %v2742_v61 = vsel %vm2681_vm3, %v2677_v62, %v10296_v56  ;;  %v3106_v2 = vadd.f32 %v9168_v63, %v12305_v51  ;;  %v3097_v5 = vpop.f32.mrb[5].mxu0  ;;  %v10310_v3 = vpop.permute.xlu1 %10309  ;;  %v3789_v4 = vld [vmem:[#allocation3 + $0x12] ss:$2 sm:$0xff]  ;;  %v2743_v7 = vsel %vm2681_vm3, %v2678_v60, %v10297_v55  ;;  %v3853_v34 = vld [vmem:[#allocation3 + $0x13] ss:$2 sm:$0xff] }
 0x1d0   : > { %v3098_v8 = vadd.f32 %v12305_v51, %v3097_v5  ;;  %v10312_v9 = vunpack.i.h.bf16 %v10310_v3  ;;  %v10311_v10 = vunpack.i.l.bf16 %v10310_v3  ;;  %v10305_v11 = vpop.permute.xlu0 %10304  ;;  %v9169_v12 = vpop.f32.mrb[6].mxu0  ;;  %v3787_v13 = vld [vmem:[#allocation3 + $0x2] ss:$2 sm:$0xff]  ;;  %v3723_v14 = vld [vmem:[#allocation3 + $0x1] ss:$2 sm:$0xff] }
 0x1d1   : > { %vm3342_vm13 = vcmp.gt.f32.partialorder %v3106_v2, 0.0  ;;  %v3406_v15 = vmul.f32 0.1, %v3106_v2  ;;  %v10307_v16 = vunpack.i.h.bf16 %v10305_v11  ;;  %v10306_v17 = vunpack.i.l.bf16 %v10305_v11  ;;  %v3100_v18 = vpop.f32.mrb[7].mxu0  ;;  %v3725_v19 = vld [vmem:[#allocation3 + $0x11] ss:$2 sm:$0xff] }
 0x1d2   : > { %vm3340_vm14 = vcmp.gt.f32.partialorder %v3098_v8, 0.0  ;;  %v3404_v20 = vmul.f32 0.1, %v3098_v8  ;;  %v2809_v21 = vsel %vm2746_vm4, %v2744_v1, %v10311_v10  ;;  %v2810_v22 = vsel %vm2746_vm4, %v2745_v57, %v10312_v9  ;;  %v3851_v33 = vld [vmem:[#allocation3 + $0x3] ss:$2 sm:$0xff] }
 0x1d3   : > { %v3470_v23 = vsel %vm3342_vm13, %v3106_v2, %v3406_v15  ;;  %v2807_v24 = vsel %vm2746_vm4, %v2742_v61, %v10306_v17  ;;  %v2808_v25 = vsel %vm2746_vm4, %v2743_v7, %v10307_v16  ;;  %v3109_v26 = vadd.f32 %v9169_v12, %v12305_v51  ;;  %v10320_v27 = vpop.permute.xlu1 %10319  ;;  %v3915_v52 = vld [vmem:[#allocation3 + $0x4] ss:$2 sm:$0xff] }
 0x1d4   : > { %3601 = vst.msk [vmem:[#allocation3 + $0x32] sm:$0xff] %vm3528_vm7, %v3470_v23  ;;  %v3468_v28 = vsel %vm3340_vm14, %v3098_v8, %v3404_v20  ;;  %v3101_v29 = vadd.f32 %v12305_v51, %v3100_v18  ;;  %v10328_v30 = vpack.i.bf16 %v3789_v4, %v3787_v13  ;;  %v10323_v31 = vpack.i.bf16 %v3725_v19, %v3723_v14  ;;  %v10315_v32 = vpop.permute.xlu0 %10314 }
 0x1d5   : > { %3599 = vst.msk [vmem:[#allocation3 + $0x22] sm:$0xff] %vm3528_vm7, %v3468_v28  ;;  %vm3343_vm15 = vcmp.gt.f32.partialorder %v3109_v26, 0.0  ;;  %v3407_v35 = vmul.f32 0.1, %v3109_v26  ;;  %v10322_v36 = vunpack.i.h.bf16 %v10320_v27  ;;  %v10321_v37 = vunpack.i.l.bf16 %v10320_v27 }
 0x1d6   : > { %vm3341_vm0 = vcmp.gt.f32.partialorder %v3101_v29, 0.0  ;;  %v3405_v38 = vmul.f32 0.1, %v3101_v29  ;;  %10329 = vrot.lane.b32.xlu1 %v10328_v30, %s13637_s19  ;;  %10324 = vrot.lane.b32.xlu0 %v10323_v31, %s13635_s23  ;;  %v10317_v39 = vunpack.i.h.bf16 %v10315_v32  ;;  %v10316_v40 = vunpack.i.l.bf16 %v10315_v32 }
 0x1d7   : > { %v3471_v41 = vsel %vm3343_vm15, %v3109_v26, %v3407_v35  ;;  %v2874_v42 = vsel %vm2811_vm5, %v2809_v21, %v10321_v37  ;;  %v2875_v43 = vsel %vm2811_vm5, %v2810_v22, %v10322_v36  ;;  %v10333_v44 = vpack.i.bf16 %v3853_v34, %v3851_v33 }
 0x1d8   : > { %3602 = vst.msk [vmem:[#allocation3 + $0x3a] sm:$0xff] %vm3528_vm7, %v3471_v41  ;;  %v3469_v45 = vsel %vm3341_vm0, %v3101_v29, %v3405_v38  ;;  %v2872_v46 = vsel %vm2811_vm5, %v2807_v24, %v10316_v40  ;;  %v2873_v47 = vsel %vm2811_vm5, %v2808_v25, %v10317_v39  ;;  %v2907_v49 = vpack.c.bf16 %v2875_v43, %v2874_v42 }
 0x1d9   : > { %3600 = vst.msk [vmem:[#allocation3 + $0x2a] sm:$0xff] %vm3528_vm7, %v3469_v45  ;;  %v2906_v50 = vpack.c.bf16 %v2873_v47, %v2872_v46 }
 0x1da   : > { %10334 = vrot.lane.b32.xlu0 %v10333_v44, %s10941_s26 }
 0x1db   : > { %9222 = vmatprep.mubr.msk.bf16.mxu0 %vm2946_vm6, %v2906_v50 }
 0x1dc   : > { %9223 = vmatmul.mubr.msk.bf16.gmra.mrb[60].mxu0 %vm2946_vm6, %v2907_v49  ;;  %v3917_v53 = vld [vmem:[#allocation3 + $0x14] ss:$2 sm:$0xff] }
 0x1dd   : > { %v4461_v54 = vpack.c.bf16 %v3917_v53, %v3915_v52 }
 0x1de   : > { %v9172_v55 = vpop.f32.mrb[8].mxu0 }
 0x1df   : > { %v3122_v56 = vadd.f32 %v9172_v55, %v12305_v51  ;;  %v3113_v58 = vpop.f32.mrb[9].mxu0  ;;  %8831 = vmatprep.mubr.msk.bf16.mxu1 %vm3528_vm7, %v4461_v54  ;;  %v3793_v59 = vld [vmem:[#allocation3 + $0x32] ss:$2 sm:$0xff]  ;;  %v3857_v57 = vld [vmem:[#allocation3 + $0x33] ss:$2 sm:$0xff] }
 0x1e0   : > { %v3114_v60 = vadd.f32 %v12305_v51, %v3113_v58  ;;  %v9173_v62 = vpop.f32.mrb[10].mxu0  ;;  %v3727_v63 = vld [vmem:[#allocation3 + $0x21] ss:$2 sm:$0xff]  ;;  %v3729_v1 = vld [vmem:[#allocation3 + $0x31] ss:$2 sm:$0xff] }
 0x1e1   : > { %vm3346_vm1 = vcmp.gt.f32.partialorder %v3122_v56, 0.0  ;;  %v3410_v61 = vmul.f32 0.1, %v3122_v56  ;;  %v3125_v2 = vadd.f32 %v9173_v62, %v12305_v51  ;;  %v3116_v5 = vpop.f32.mrb[11].mxu0  ;;  %v10338_v3 = vpack.i.bf16 %v3729_v1, %v3727_v63  ;;  %v3791_v4 = vld [vmem:[#allocation3 + $0x22] ss:$2 sm:$0xff] }
 0x1e2   : > { %vm3344_vm2 = vcmp.gt.f32.partialorder %v3114_v60, 0.0  ;;  %v3408_v6 = vmul.f32 0.1, %v3114_v60  ;;  %v3117_v7 = vadd.f32 %v12305_v51, %v3116_v5  ;;  %v10343_v8 = vpack.i.bf16 %v3793_v59, %v3791_v4  ;;  %v3855_v9 = vld [vmem:[#allocation3 + $0x23] ss:$2 sm:$0xff] }
 0x1e3   : > { %v3474_v10 = vsel %vm3346_vm1, %v3122_v56, %v3410_v61  ;;  %vm3347_vm3 = vcmp.gt.f32.partialorder %v3125_v2, 0.0  ;;  %v3411_v11 = vmul.f32 0.1, %v3125_v2  ;;  %10339 = vrot.lane.b32.xlu1 %v10338_v3, %s13635_s23  ;;  %v10348_v15 = vpack.i.bf16 %v3857_v57, %v3855_v9 }
 0x1e4   : > { %3605 = vst.msk [vmem:[#allocation3 + $0x52] sm:$0xff] %vm3528_vm7, %v3474_v10  ;;  %v3472_v12 = vsel %vm3344_vm2, %v3114_v60, %v3408_v6  ;;  %vm3345_vm4 = vcmp.gt.f32.partialorder %v3117_v7, 0.0  ;;  %v3409_v13 = vmul.f32 0.1, %v3117_v7  ;;  %10344 = vrot.lane.b32.xlu0 %v10343_v8, %s13637_s19 }
 0x1e5   : > { %3603 = vst.msk [vmem:[#allocation3 + $0x42] sm:$0xff] %vm3528_vm7, %v3472_v12  ;;  %v3475_v14 = vsel %vm3347_vm3, %v3125_v2, %v3411_v11 }
 0x1e6   : > { %3606 = vst.msk [vmem:[#allocation3 + $0x5a] sm:$0xff] %vm3528_vm7, %v3475_v14  ;;  %v3473_v16 = vsel %vm3345_vm4, %v3117_v7, %v3409_v13 }
 0x1e7   : > { %3604 = vst.msk [vmem:[#allocation3 + $0x4a] sm:$0xff] %vm3528_vm7, %v3473_v16  ;;  %10349 = vrot.lane.b32.xlu1 %v10348_v15, %s10941_s26 }
 0x1ed   : > { %v3797_v17 = vld [vmem:[#allocation3 + $0x52] ss:$2 sm:$0xff]  ;;  %v3861_v28 = vld [vmem:[#allocation3 + $0x53] ss:$2 sm:$0xff] }
 0x1ee   : > { %v9176_v18 = vpop.f32.mrb[12].mxu0  ;;  %v3795_v19 = vld [vmem:[#allocation3 + $0x42] ss:$2 sm:$0xff]  ;;  %v3731_v20 = vld [vmem:[#allocation3 + $0x41] ss:$2 sm:$0xff] }
 0x1ef   : > { %v3138_v21 = vadd.f32 %v9176_v18, %v12305_v51  ;;  %v3129_v22 = vpop.f32.mrb[13].mxu0  ;;  %v10358_v23 = vpack.i.bf16 %v3797_v17, %v3795_v19  ;;  %v3733_v24 = vld [vmem:[#allocation3 + $0x51] ss:$2 sm:$0xff] }
 0x1f0   : > { %v3130_v25 = vadd.f32 %v12305_v51, %v3129_v22  ;;  %v9177_v26 = vpop.f32.mrb[14].mxu0  ;;  %v10353_v27 = vpack.i.bf16 %v3733_v24, %v3731_v20  ;;  %v3859_v32 = vld [vmem:[#allocation3 + $0x43] ss:$2 sm:$0xff] }
 0x1f1   : > { %vm3350_vm5 = vcmp.gt.f32.partialorder %v3138_v21, 0.0  ;;  %v3414_v29 = vmul.f32 0.1, %v3138_v21  ;;  %v3141_v30 = vadd.f32 %v9177_v26, %v12305_v51  ;;  %v3132_v31 = vpop.f32.mrb[15].mxu0  ;;  %10359 = vrot.lane.b32.xlu1 %v10358_v23, %s13637_s19  ;;  %v10363_v39 = vpack.i.bf16 %v3861_v28, %v3859_v32 }
 0x1f2   : > { %vm3348_vm6 = vcmp.gt.f32.partialorder %v3130_v25, 0.0  ;;  %v3412_v33 = vmul.f32 0.1, %v3130_v25  ;;  %v3133_v34 = vadd.f32 %v12305_v51, %v3132_v31  ;;  %10354 = vrot.lane.b32.xlu0 %v10353_v27, %s13635_s23 }
 0x1f3   : > { %v3478_v35 = vsel %vm3350_vm5, %v3138_v21, %v3414_v29  ;;  %vm3351_vm8 = vcmp.gt.f32.partialorder %v3141_v30, 0.0  ;;  %v3415_v36 = vmul.f32 0.1, %v3141_v30 }
 0x1f4   : > { %3609 = vst.msk [vmem:[#allocation3 + $0x72] sm:$0xff] %vm3528_vm7, %v3478_v35  ;;  %v3476_v37 = vsel %vm3348_vm6, %v3130_v25, %v3412_v33  ;;  %vm3349_vm9 = vcmp.gt.f32.partialorder %v3133_v34, 0.0  ;;  %v3413_v38 = vmul.f32 0.1, %v3133_v34 }
 0x1f5   : > { %3607 = vst.msk [vmem:[#allocation3 + $0x62] sm:$0xff] %vm3528_vm7, %v3476_v37  ;;  %v3479_v40 = vsel %vm3351_vm8, %v3141_v30, %v3415_v36 }
 0x1f6   : > { %3610 = vst.msk [vmem:[#allocation3 + $0x7a] sm:$0xff] %vm3528_vm7, %v3479_v40  ;;  %v3477_v41 = vsel %vm3349_vm9, %v3133_v34, %v3413_v38  ;;  %10364 = vrot.lane.b32.xlu0 %v10363_v39, %s10941_s26 }
 0x1f7   : > { %3608 = vst.msk [vmem:[#allocation3 + $0x6a] sm:$0xff] %vm3528_vm7, %v3477_v41 }
 0x1fd   : > { %v3801_v42 = vld [vmem:[#allocation3 + $0x72] ss:$2 sm:$0xff]  ;;  %v3865_v56 = vld [vmem:[#allocation3 + $0x73] ss:$2 sm:$0xff] }
 0x1fe   : > { %v9180_v43 = vpop.f32.mrb[16].mxu0  ;;  %v3735_v44 = vld [vmem:[#allocation3 + $0x61] ss:$2 sm:$0xff]  ;;  %v3737_v45 = vld [vmem:[#allocation3 + $0x71] ss:$2 sm:$0xff] }
 0x1ff   : > { %v3154_v46 = vadd.f32 %v9180_v43, %v12305_v51  ;;  %v3145_v47 = vpop.f32.mrb[17].mxu0  ;;  %v10368_v49 = vpack.i.bf16 %v3737_v45, %v3735_v44  ;;  %v3799_v50 = vld [vmem:[#allocation3 + $0x62] ss:$2 sm:$0xff]  ;;  %v3863_v55 = vld [vmem:[#allocation3 + $0x63] ss:$2 sm:$0xff] }
 0x200   : > { %v3146_v52 = vadd.f32 %v12305_v51, %v3145_v47  ;;  %v9181_v53 = vpop.f32.mrb[18].mxu0  ;;  %v10373_v54 = vpack.i.bf16 %v3801_v42, %v3799_v50  ;;  %v10378_v61 = vpack.i.bf16 %v3865_v56, %v3863_v55 }
 0x201   : > { %vm3354_vm10 = vcmp.gt.f32.partialorder %v3154_v46, 0.0  ;;  %v3418_v58 = vmul.f32 0.1, %v3154_v46  ;;  %v3157_v59 = vadd.f32 %v9181_v53, %v12305_v51  ;;  %v3148_v60 = vpop.f32.mrb[19].mxu0  ;;  %10369 = vrot.lane.b32.xlu1 %v10368_v49, %s13635_s23 }
 0x202   : > { %vm3352_vm11 = vcmp.gt.f32.partialorder %v3146_v52, 0.0  ;;  %v3416_v62 = vmul.f32 0.1, %v3146_v52  ;;  %v3149_v63 = vadd.f32 %v12305_v51, %v3148_v60  ;;  %10374 = vrot.lane.b32.xlu0 %v10373_v54, %s13637_s19 }
 0x203   : > { %v3482_v1 = vsel %vm3354_vm10, %v3154_v46, %v3418_v58  ;;  %vm3355_vm13 = vcmp.gt.f32.partialorder %v3157_v59, 0.0  ;;  %v3419_v57 = vmul.f32 0.1, %v3157_v59 }
 0x204   : > { %3613 = vst.msk [vmem:[#allocation3 + $0x92] sm:$0xff] %vm3528_vm7, %v3482_v1  ;;  %v3480_v2 = vsel %vm3352_vm11, %v3146_v52, %v3416_v62  ;;  %vm3353_vm14 = vcmp.gt.f32.partialorder %v3149_v63, 0.0  ;;  %v3417_v5 = vmul.f32 0.1, %v3149_v63 }
 0x205   : > { %3611 = vst.msk [vmem:[#allocation3 + $0x82] sm:$0xff] %vm3528_vm7, %v3480_v2  ;;  %v3483_v3 = vsel %vm3355_vm13, %v3157_v59, %v3419_v57  ;;  %10379 = vrot.lane.b32.xlu1 %v10378_v61, %s10941_s26  ;;  %vm3593_vm13 = vcmask 257024  }
 0x206   : > { %3614 = vst.msk [vmem:[#allocation3 + $0x9a] sm:$0xff] %vm3528_vm7, %v3483_v3  ;;  %v3481_v4 = vsel %vm3353_vm14, %v3149_v63, %v3417_v5 }
 0x207   : > { %3612 = vst.msk [vmem:[#allocation3 + $0x8a] sm:$0xff] %vm3528_vm7, %v3481_v4 }
 0x208   : > { %3594 = vst.msk [vmem:[#allocation3 + $0x200] sm:$0xf] %vm3593_vm13, %v10933_v0 }
 0x20d   : > { %v3805_v6 = vld [vmem:[#allocation3 + $0x92] ss:$2 sm:$0xff]  ;;  %v3869_v17 = vld [vmem:[#allocation3 + $0x93] ss:$2 sm:$0xff] }
 0x20e   : > { %v9184_v7 = vpop.f32.mrb[20].mxu0  ;;  %v3803_v8 = vld [vmem:[#allocation3 + $0x82] ss:$2 sm:$0xff]  ;;  %v3739_v9 = vld [vmem:[#allocation3 + $0x81] ss:$2 sm:$0xff] }
 0x20f   : > { %v3170_v10 = vadd.f32 %v9184_v7, %v12305_v51  ;;  %v3161_v11 = vpop.f32.mrb[21].mxu0  ;;  %v10388_v12 = vpack.i.bf16 %v3805_v6, %v3803_v8  ;;  %v3741_v13 = vld [vmem:[#allocation3 + $0x91] ss:$2 sm:$0xff] }
 0x210   : > { %v3162_v14 = vadd.f32 %v12305_v51, %v3161_v11  ;;  %v9185_v15 = vpop.f32.mrb[22].mxu0  ;;  %v10383_v16 = vpack.i.bf16 %v3741_v13, %v3739_v9  ;;  %v3867_v21 = vld [vmem:[#allocation3 + $0x83] ss:$2 sm:$0xff] }
 0x211   : > { %vm3358_vm15 = vcmp.gt.f32.partialorder %v3170_v10, 0.0  ;;  %v3422_v18 = vmul.f32 0.1, %v3170_v10  ;;  %v3173_v19 = vadd.f32 %v9185_v15, %v12305_v51  ;;  %v3164_v20 = vpop.f32.mrb[23].mxu0  ;;  %10389 = vrot.lane.b32.xlu1 %v10388_v12, %s13637_s19  ;;  %v10393_v28 = vpack.i.bf16 %v3869_v17, %v3867_v21 }
 0x212   : > { %vm3356_vm0 = vcmp.gt.f32.partialorder %v3162_v14, 0.0  ;;  %v3420_v22 = vmul.f32 0.1, %v3162_v14  ;;  %v3165_v23 = vadd.f32 %v12305_v51, %v3164_v20  ;;  %10384 = vrot.lane.b32.xlu0 %v10383_v16, %s13635_s23 }
 0x213   : > { %v3486_v24 = vsel %vm3358_vm15, %v3170_v10, %v3422_v18  ;;  %vm3359_vm1 = vcmp.gt.f32.partialorder %v3173_v19, 0.0  ;;  %v3423_v25 = vmul.f32 0.1, %v3173_v19 }
 0x214   : > { %3617 = vst.msk [vmem:[#allocation3 + $0xb2] sm:$0xff] %vm3528_vm7, %v3486_v24  ;;  %v3484_v26 = vsel %vm3356_vm0, %v3162_v14, %v3420_v22  ;;  %vm3357_vm2 = vcmp.gt.f32.partialorder %v3165_v23, 0.0  ;;  %v3421_v27 = vmul.f32 0.1, %v3165_v23 }
 0x215   : > { %3615 = vst.msk [vmem:[#allocation3 + $0xa2] sm:$0xff] %vm3528_vm7, %v3484_v26  ;;  %v3487_v29 = vsel %vm3359_vm1, %v3173_v19, %v3423_v25 }
 0x216   : > { %3618 = vst.msk [vmem:[#allocation3 + $0xba] sm:$0xff] %vm3528_vm7, %v3487_v29  ;;  %v3485_v30 = vsel %vm3357_vm2, %v3165_v23, %v3421_v27  ;;  %10394 = vrot.lane.b32.xlu0 %v10393_v28, %s10941_s26  ;;  %vm4427_vm2 = vcmask 785408  }
 0x217   : > { %3616 = vst.msk [vmem:[#allocation3 + $0xaa] sm:$0xff] %vm3528_vm7, %v3485_v30 }
 0x21d   : > { %v3809_v31 = vld [vmem:[#allocation3 + $0xb2] ss:$2 sm:$0xff]  ;;  %v3873_v43 = vld [vmem:[#allocation3 + $0xb3] ss:$2 sm:$0xff] }
 0x21e   : > { %v9188_v32 = vpop.f32.mrb[24].mxu0  ;;  %v3743_v33 = vld [vmem:[#allocation3 + $0xa1] ss:$2 sm:$0xff]  ;;  %v3745_v34 = vld [vmem:[#allocation3 + $0xb1] ss:$2 sm:$0xff] }
 0x21f   : > { %v3186_v35 = vadd.f32 %v9188_v32, %v12305_v51  ;;  %v3177_v36 = vpop.f32.mrb[25].mxu0  ;;  %v10398_v37 = vpack.i.bf16 %v3745_v34, %v3743_v33  ;;  %v3807_v38 = vld [vmem:[#allocation3 + $0xa2] ss:$2 sm:$0xff]  ;;  %v3871_v42 = vld [vmem:[#allocation3 + $0xa3] ss:$2 sm:$0xff] }
 0x220   : > { %v3178_v39 = vadd.f32 %v12305_v51, %v3177_v36  ;;  %v9189_v40 = vpop.f32.mrb[26].mxu0  ;;  %v10403_v41 = vpack.i.bf16 %v3809_v31, %v3807_v38  ;;  %v10408_v53 = vpack.i.bf16 %v3873_v43, %v3871_v42 }
 0x221   : > { %vm3362_vm3 = vcmp.gt.f32.partialorder %v3186_v35, 0.0  ;;  %v3426_v44 = vmul.f32 0.1, %v3186_v35  ;;  %v3189_v45 = vadd.f32 %v9189_v40, %v12305_v51  ;;  %v3180_v46 = vpop.f32.mrb[27].mxu0  ;;  %10399 = vrot.lane.b32.xlu1 %v10398_v37, %s13635_s23 }
 0x222   : > { %vm3360_vm4 = vcmp.gt.f32.partialorder %v3178_v39, 0.0  ;;  %v3424_v47 = vmul.f32 0.1, %v3178_v39  ;;  %v3181_v49 = vadd.f32 %v12305_v51, %v3180_v46  ;;  %10404 = vrot.lane.b32.xlu0 %v10403_v41, %s13637_s19 }
 0x223   : > { %v3490_v50 = vsel %vm3362_vm3, %v3186_v35, %v3426_v44  ;;  %vm3363_vm5 = vcmp.gt.f32.partialorder %v3189_v45, 0.0  ;;  %v3427_v52 = vmul.f32 0.1, %v3189_v45 }
 0x224   : > { %3621 = vst.msk [vmem:[#allocation3 + $0xd2] sm:$0xff] %vm3528_vm7, %v3490_v50  ;;  %v3488_v54 = vsel %vm3360_vm4, %v3178_v39, %v3424_v47  ;;  %vm3361_vm6 = vcmp.gt.f32.partialorder %v3181_v49, 0.0  ;;  %v3425_v55 = vmul.f32 0.1, %v3181_v49 }
 0x225   : > { %3619 = vst.msk [vmem:[#allocation3 + $0xc2] sm:$0xff] %vm3528_vm7, %v3488_v54  ;;  %v3491_v56 = vsel %vm3363_vm5, %v3189_v45, %v3427_v52  ;;  %10409 = vrot.lane.b32.xlu1 %v10408_v53, %s10941_s26  ;;  %v3661_v53 = vld [vmem:[#allocation3 + $0x10] ss:$2 sm:$0xff]  ;;  %v3659_v54 = vld [vmem:[#allocation3] ss:$2 sm:$0xff] }
 0x226   : > { %3622 = vst.msk [vmem:[#allocation3 + $0xda] sm:$0xff] %vm3528_vm7, %v3491_v56  ;;  %v3489_v58 = vsel %vm3361_vm6, %v3181_v49, %v3425_v55 }
 0x227   : > { %3620 = vst.msk [vmem:[#allocation3 + $0xca] sm:$0xff] %vm3528_vm7, %v3489_v58 }
 0x22d   : > { %v3813_v59 = vld [vmem:[#allocation3 + $0xd2] ss:$2 sm:$0xff]  ;;  %v3877_v6 = vld [vmem:[#allocation3 + $0xd3] ss:$2 sm:$0xff] }
 0x22e   : > { %v9192_v60 = vpop.f32.mrb[28].mxu0  ;;  %v3811_v62 = vld [vmem:[#allocation3 + $0xc2] ss:$2 sm:$0xff]  ;;  %v3747_v63 = vld [vmem:[#allocation3 + $0xc1] ss:$2 sm:$0xff] }
 0x22f   : > { %v3202_v1 = vadd.f32 %v9192_v60, %v12305_v51  ;;  %v3193_v57 = vpop.f32.mrb[29].mxu0  ;;  %v10418_v61 = vpack.i.bf16 %v3813_v59, %v3811_v62  ;;  %v3749_v2 = vld [vmem:[#allocation3 + $0xd1] ss:$2 sm:$0xff] }
 0x230   : > { %v3194_v5 = vadd.f32 %v12305_v51, %v3193_v57  ;;  %v9193_v3 = vpop.f32.mrb[30].mxu0  ;;  %v10413_v4 = vpack.i.bf16 %v3749_v2, %v3747_v63  ;;  %v3875_v10 = vld [vmem:[#allocation3 + $0xc3] ss:$2 sm:$0xff] }
 0x231   : > { %vm3366_vm8 = vcmp.gt.f32.partialorder %v3202_v1, 0.0  ;;  %v3430_v7 = vmul.f32 0.1, %v3202_v1  ;;  %v3205_v8 = vadd.f32 %v9193_v3, %v12305_v51  ;;  %v3196_v9 = vpop.f32.mrb[31].mxu0  ;;  %10419 = vrot.lane.b32.xlu1 %v10418_v61, %s13637_s19  ;;  %v10423_v17 = vpack.i.bf16 %v3877_v6, %v3875_v10  ;;  %v3921_v3 = vld [vmem:[#allocation3 + $0x34] ss:$2 sm:$0xff] }
 0x232   : > { %vm3364_vm9 = vcmp.gt.f32.partialorder %v3194_v5, 0.0  ;;  %v3428_v11 = vmul.f32 0.1, %v3194_v5  ;;  %v3197_v12 = vadd.f32 %v12305_v51, %v3196_v9  ;;  %10414 = vrot.lane.b32.xlu0 %v10413_v4, %s13635_s23  ;;  %v3919_v10 = vld [vmem:[#allocation3 + $0x24] ss:$2 sm:$0xff] }
 0x233   : > { %v3494_v13 = vsel %vm3366_vm8, %v3202_v1, %v3430_v7  ;;  %vm3367_vm10 = vcmp.gt.f32.partialorder %v3205_v8, 0.0  ;;  %v3431_v14 = vmul.f32 0.1, %v3205_v8 }
 0x234   : > { %3625 = vst.msk [vmem:[#allocation3 + $0xf2] sm:$0xff] %vm3528_vm7, %v3494_v13  ;;  %v3492_v15 = vsel %vm3364_vm9, %v3194_v5, %v3428_v11  ;;  %vm3365_vm11 = vcmp.gt.f32.partialorder %v3197_v12, 0.0  ;;  %v3429_v16 = vmul.f32 0.1, %v3197_v12 }
 0x235   : > { %3623 = vst.msk [vmem:[#allocation3 + $0xe2] sm:$0xff] %vm3528_vm7, %v3492_v15  ;;  %v3495_v18 = vsel %vm3367_vm10, %v3205_v8, %v3431_v14 }
 0x236   : > { %3626 = vst.msk [vmem:[#allocation3 + $0xfa] sm:$0xff] %vm3528_vm7, %v3495_v18  ;;  %v3493_v19 = vsel %vm3365_vm11, %v3197_v12, %v3429_v16  ;;  %10424 = vrot.lane.b32.xlu0 %v10423_v17, %s10941_s26 }
 0x237   : > { %3624 = vst.msk [vmem:[#allocation3 + $0xea] sm:$0xff] %vm3528_vm7, %v3493_v19 }
 0x23d   : > { %v9196_v20 = vpop.f32.mrb[32].mxu0  ;;  %v3817_v21 = vld [vmem:[#allocation3 + $0xf2] ss:$2 sm:$0xff]  ;;  %v3881_v30 = vld [vmem:[#allocation3 + $0xf3] ss:$2 sm:$0xff] }
 0x23e   : > { %v3218_v22 = vadd.f32 %v9196_v20, %v12305_v51  ;;  %v3209_v23 = vpop.f32.mrb[33].mxu0  ;;  %v3751_v24 = vld [vmem:[#allocation3 + $0xe1] ss:$2 sm:$0xff]  ;;  %v3753_v25 = vld [vmem:[#allocation3 + $0xf1] ss:$2 sm:$0xff]  ;;  %v4463_v20 = vpack.c.bf16 %v3921_v3, %v3919_v10 }
 0x23f   : > { %v3210_v26 = vadd.f32 %v12305_v51, %v3209_v23  ;;  %v9197_v27 = vpop.f32.mrb[34].mxu0  ;;  %v10428_v28 = vpack.i.bf16 %v3753_v25, %v3751_v24  ;;  %v3815_v29 = vld [vmem:[#allocation3 + $0xe2] ss:$2 sm:$0xff]  ;;  %v3879_v35 = vld [vmem:[#allocation3 + $0xe3] ss:$2 sm:$0xff] }
 0x240   : > { %vm3370_vm14 = vcmp.gt.f32.partialorder %v3218_v22, 0.0  ;;  %v3434_v31 = vmul.f32 0.1, %v3218_v22  ;;  %v3221_v32 = vadd.f32 %v9197_v27, %v12305_v51  ;;  %v3212_v33 = vpop.f32.mrb[35].mxu0  ;;  %v10433_v34 = vpack.i.bf16 %v3817_v21, %v3815_v29 }
 0x241   : > { %vm3368_vm15 = vcmp.gt.f32.partialorder %v3210_v26, 0.0  ;;  %v3432_v36 = vmul.f32 0.1, %v3210_v26  ;;  %v3213_v37 = vadd.f32 %v12305_v51, %v3212_v33  ;;  %10429 = vrot.lane.b32.xlu1 %v10428_v28, %s13635_s23  ;;  %v10438_v42 = vpack.i.bf16 %v3881_v30, %v3879_v35  ;;  %v3665_v35 = vld [vmem:[#allocation3 + $0x30] ss:$2 sm:$0xff] }
 0x242   : > { %v3498_v38 = vsel %vm3370_vm14, %v3218_v22, %v3434_v31  ;;  %vm3371_vm0 = vcmp.gt.f32.partialorder %v3221_v32, 0.0  ;;  %v3435_v39 = vmul.f32 0.1, %v3221_v32  ;;  %10434 = vrot.lane.b32.xlu0 %v10433_v34, %s13637_s19  ;;  %v3663_v34 = vld [vmem:[#allocation3 + $0x20] ss:$2 sm:$0xff] }
 0x243   : > { %3629 = vst.msk [vmem:[#allocation3 + $0x112] sm:$0xff] %vm3528_vm7, %v3498_v38  ;;  %v3496_v40 = vsel %vm3368_vm15, %v3210_v26, %v3432_v36  ;;  %vm3369_vm1 = vcmp.gt.f32.partialorder %v3213_v37, 0.0  ;;  %v3433_v41 = vmul.f32 0.1, %v3213_v37 }
 0x244   : > { %3627 = vst.msk [vmem:[#allocation3 + $0x102] sm:$0xff] %vm3528_vm7, %v3496_v40  ;;  %v3499_v43 = vsel %vm3371_vm0, %v3221_v32, %v3435_v39 }
 0x245   : > { %3630 = vst.msk [vmem:[#allocation3 + $0x11a] sm:$0xff] %vm3528_vm7, %v3499_v43  ;;  %v3497_v44 = vsel %vm3369_vm1, %v3213_v37, %v3433_v41  ;;  %10439 = vrot.lane.b32.xlu1 %v10438_v42, %s10941_s26 }
 0x246   : > { %3628 = vst.msk [vmem:[#allocation3 + $0x10a] sm:$0xff] %vm3528_vm7, %v3497_v44 }
 0x248   : > { %v10330_v45 = vpop.permute.xlu1 %10329  ;;  %v10325_v46 = vpop.permute.xlu0 %10324 }
 0x249   : > { %v10327_v47 = vunpack.i.h.bf16 %v10325_v46  ;;  %v10326_v49 = vunpack.i.l.bf16 %v10325_v46  ;;  %v10332_v50 = vunpack.i.h.bf16 %v10330_v45  ;;  %v10331_v52 = vunpack.i.l.bf16 %v10330_v45  ;;  %v3925_v45 = vld [vmem:[#allocation3 + $0x54] ss:$2 sm:$0xff] }
 0x24b   : > { %v4363_v55 = vsel %vm3528_vm7, %v3661_v53, %v10327_v47  ;;  %v4362_v56 = vsel %vm3528_vm7, %v3659_v54, %v10326_v49  ;;  %v3923_v49 = vld [vmem:[#allocation3 + $0x44] ss:$2 sm:$0xff] }
 0x24c   : > { %v10335_v58 = vpop.permute.xlu0 %10334  ;;  %v3821_v59 = vld [vmem:[#allocation3 + $0x112] ss:$2 sm:$0xff]  ;;  %v4395_v61 = vsel %vm4394_vm12, %v4362_v56, %v10331_v52  ;;  %v4396_v2 = vsel %vm4394_vm12, %v4363_v55, %v10332_v50  ;;  %v3885_v14 = vld [vmem:[#allocation3 + $0x113] ss:$2 sm:$0xff] }
 0x24d   : > { %v10337_v60 = vunpack.i.h.bf16 %v10335_v58  ;;  %v10336_v62 = vunpack.i.l.bf16 %v10335_v58  ;;  %v9200_v63 = vpop.f32.mrb[36].mxu0  ;;  %v3819_v1 = vld [vmem:[#allocation3 + $0x102] ss:$2 sm:$0xff]  ;;  %v3755_v57 = vld [vmem:[#allocation3 + $0x101] ss:$2 sm:$0xff]  ;;  %v4465_v58 = vpack.c.bf16 %v3925_v45, %v3923_v49 }
 0x24e   : > { %v3234_v5 = vadd.f32 %v9200_v63, %v12305_v51  ;;  %v3225_v4 = vpop.f32.mrb[37].mxu0  ;;  %v10448_v6 = vpack.i.bf16 %v3821_v59, %v3819_v1  ;;  %v3757_v7 = vld [vmem:[#allocation3 + $0x111] ss:$2 sm:$0xff]  ;;  %v12502_v63 = vld [vmem:[%s13660_s2] ss:$0 sm:$0xff] }
 0x24f   : > { %v4428_v8 = vsel %vm4427_vm2, %v4395_v61, %v10336_v62  ;;  %v4429_v9 = vsel %vm4427_vm2, %v4396_v2, %v10337_v60  ;;  %v3226_v11 = vadd.f32 %v12305_v51, %v3225_v4  ;;  %v9201_v12 = vpop.f32.mrb[38].mxu0  ;;  %v10443_v13 = vpack.i.bf16 %v3757_v7, %v3755_v57  ;;  %v3883_v19 = vld [vmem:[#allocation3 + $0x103] ss:$2 sm:$0xff] }
 0x250   : > { %v4460_v15 = vpack.c.bf16 %v4429_v9, %v4428_v8  ;;  %vm3374_vm3 = vcmp.gt.f32.partialorder %v3234_v5, 0.0  ;;  %v3438_v16 = vmul.f32 0.1, %v3234_v5  ;;  %v3237_v17 = vadd.f32 %v9201_v12, %v12305_v51  ;;  %v3228_v18 = vpop.f32.mrb[39].mxu0  ;;  %10449 = vrot.lane.b32.xlu1 %v10448_v6, %s13637_s19 }
 0x251   : > { %vm3372_vm4 = vcmp.gt.f32.partialorder %v3226_v11, 0.0  ;;  %v3436_v21 = vmul.f32 0.1, %v3226_v11  ;;  %v3229_v22 = vadd.f32 %v12305_v51, %v3228_v18  ;;  %10444 = vrot.lane.b32.xlu0 %v10443_v13, %s13635_s23  ;;  %v10453_v27 = vpack.i.bf16 %v3885_v14, %v3883_v19 }
 0x252   : > { %4660 = vmatmul.mubr.bf16.vlgmr.msra.gmra.mrb[0].mxu1 %v4460_v15  ;;  %v3502_v23 = vsel %vm3374_vm3, %v3234_v5, %v3438_v16  ;;  %vm3375_vm5 = vcmp.gt.f32.partialorder %v3237_v17, 0.0  ;;  %v3439_v24 = vmul.f32 0.1, %v3237_v17 }
 0x253   : > { %3633 = vst.msk [vmem:[#allocation3 + $0x132] sm:$0xff] %vm3528_vm7, %v3502_v23  ;;  %8832 = vmatprep.mubr.msk.bf16.mxu1 %vm3528_vm7, %v4463_v20  ;;  %v3500_v25 = vsel %vm3372_vm4, %v3226_v11, %v3436_v21  ;;  %vm3373_vm6 = vcmp.gt.f32.partialorder %v3229_v22, 0.0  ;;  %v3437_v26 = vmul.f32 0.1, %v3229_v22  ;;  %v3667_v21 = vld [vmem:[#allocation3 + $0x40] ss:$2 sm:$0xff] }
 0x254   : > { %3631 = vst.msk [vmem:[#allocation3 + $0x122] sm:$0xff] %vm3528_vm7, %v3500_v25  ;;  %v3503_v28 = vsel %vm3375_vm5, %v3237_v17, %v3439_v24 }
 0x255   : > { %3634 = vst.msk [vmem:[#allocation3 + $0x13a] sm:$0xff] %vm3528_vm7, %v3503_v28  ;;  %v3501_v29 = vsel %vm3373_vm6, %v3229_v22, %v3437_v26  ;;  %v10340_v30 = vpop.permute.xlu1 %10339  ;;  %10454 = vrot.lane.b32.xlu0 %v10453_v27, %s10941_s26  ;;  %v3669_v22 = vld [vmem:[#allocation3 + $0x50] ss:$2 sm:$0xff] }
 0x256   : > { %3632 = vst.msk [vmem:[#allocation3 + $0x12a] sm:$0xff] %vm3528_vm7, %v3501_v29  ;;  %v10342_v31 = vunpack.i.h.bf16 %v10340_v30  ;;  %v10341_v32 = vunpack.i.l.bf16 %v10340_v30  ;;  %v10345_v33 = vpop.permute.xlu0 %10344  ;;  %v3929_v30 = vld [vmem:[#allocation3 + $0x74] ss:$2 sm:$0xff] }
 0x257   : > { %v10347_v36 = vunpack.i.h.bf16 %v10345_v33  ;;  %v10346_v37 = vunpack.i.l.bf16 %v10345_v33 }
 0x258   : > { %v4365_v38 = vsel %vm3528_vm7, %v3665_v35, %v10342_v31  ;;  %v4364_v39 = vsel %vm3528_vm7, %v3663_v34, %v10341_v32  ;;  %v3927_v34 = vld [vmem:[#allocation3 + $0x64] ss:$2 sm:$0xff] }
 0x259   : > { %v10350_v40 = vpop.permute.xlu1 %10349  ;;  %v4397_v43 = vsel %vm4394_vm12, %v4364_v39, %v10346_v37  ;;  %v4398_v44 = vsel %vm4394_vm12, %v4365_v38, %v10347_v36  ;;  %v4467_v37 = vpack.c.bf16 %v3929_v30, %v3927_v34 }
 0x25a   : > { %v10352_v41 = vunpack.i.h.bf16 %v10350_v40  ;;  %v10351_v42 = vunpack.i.l.bf16 %v10350_v40 }
 0x25c   : > { %v4430_v46 = vsel %vm4427_vm2, %v4397_v43, %v10351_v42  ;;  %v4431_v47 = vsel %vm4427_vm2, %v4398_v44, %v10352_v41  ;;  %v3825_v50 = vld [vmem:[#allocation3 + $0x132] ss:$2 sm:$0xff]  ;;  %v3889_v5 = vld [vmem:[#allocation3 + $0x133] ss:$2 sm:$0xff] }
 0x25d   : > { %v4462_v52 = vpack.c.bf16 %v4431_v47, %v4430_v46  ;;  %v9204_v53 = vpop.f32.mrb[40].mxu0  ;;  %v3759_v54 = vld [vmem:[#allocation3 + $0x121] ss:$2 sm:$0xff]  ;;  %v3761_v55 = vld [vmem:[#allocation3 + $0x131] ss:$2 sm:$0xff] }
 0x25e   : > { %v3250_v56 = vadd.f32 %v9204_v53, %v12305_v51  ;;  %v3241_v59 = vpop.f32.mrb[41].mxu0  ;;  %v10458_v60 = vpack.i.bf16 %v3761_v55, %v3759_v54  ;;  %v3823_v62 = vld [vmem:[#allocation3 + $0x122] ss:$2 sm:$0xff]  ;;  %v3887_v2 = vld [vmem:[#allocation3 + $0x123] ss:$2 sm:$0xff] }
 0x25f   : > { %4668 = vmatmul.mubr.bf16.gmra.mrb[4].mxu1 %v4462_v52  ;;  %v3242_v1 = vadd.f32 %v12502_v63, %v3241_v59  ;;  %v9205_v57 = vpop.f32.mrb[42].mxu0  ;;  %v10463_v61 = vpack.i.bf16 %v3825_v50, %v3823_v62  ;;  %v10468_v10 = vpack.i.bf16 %v3889_v5, %v3887_v2 }
 0x260   : > { %vm3378_vm8 = vcmp.gt.f32.partialorder %v3250_v56, 0.0  ;;  %v3442_v3 = vmul.f32 0.1, %v3250_v56  ;;  %8833 = vmatprep.mubr.msk.bf16.mxu1 %vm3528_vm7, %v4465_v58  ;;  %v3253_v51 = vadd.f32 %v12502_v63, %v9205_v57  ;;  %v3244_v4 = vpop.f32.mrb[43].mxu0  ;;  %10459 = vrot.lane.b32.xlu1 %v10458_v60, %s13635_s23 }
 0x261   : > { %vm3376_vm9 = vcmp.gt.f32.partialorder %v3242_v1, 0.0  ;;  %v3440_v6 = vmul.f32 0.1, %v3242_v1  ;;  %v3245_v7 = vadd.f32 %v12502_v63, %v3244_v4  ;;  %10464 = vrot.lane.b32.xlu0 %v10463_v61, %s13637_s19  ;;  %v3673_v4 = vld [vmem:[#allocation3 + $0x70] ss:$2 sm:$0xff] }
 0x262   : > { %v3506_v8 = vsel %vm3378_vm8, %v3250_v56, %v3442_v3  ;;  %vm3379_vm10 = vcmp.gt.f32.partialorder %v3253_v51, 0.0  ;;  %v3443_v9 = vmul.f32 0.1, %v3253_v51 }
 0x263   : > { %3637 = vst.msk [vmem:[#allocation3 + $0x152] sm:$0xff] %vm3528_vm7, %v3506_v8  ;;  %v3504_v11 = vsel %vm3376_vm9, %v3242_v1, %v3440_v6  ;;  %vm3377_vm11 = vcmp.gt.f32.partialorder %v3245_v7, 0.0  ;;  %v3441_v12 = vmul.f32 0.1, %v3245_v7  ;;  %v10360_v13 = vpop.permute.xlu1 %10359 }
 0x264   : > { %3635 = vst.msk [vmem:[#allocation3 + $0x142] sm:$0xff] %vm3528_vm7, %v3504_v11  ;;  %v3507_v14 = vsel %vm3379_vm10, %v3253_v51, %v3443_v9  ;;  %v10355_v15 = vpop.permute.xlu0 %10354  ;;  %10469 = vrot.lane.b32.xlu1 %v10468_v10, %s10941_s26  ;;  %v10362_v19 = vunpack.i.h.bf16 %v10360_v13  ;;  %v10361_v20 = vunpack.i.l.bf16 %v10360_v13  ;;  %v3671_v51 = vld [vmem:[#allocation3 + $0x60] ss:$2 sm:$0xff] }
 0x265   : > { %3638 = vst.msk [vmem:[#allocation3 + $0x15a] sm:$0xff] %vm3528_vm7, %v3507_v14  ;;  %v3505_v16 = vsel %vm3377_vm11, %v3245_v7, %v3441_v12  ;;  %v10357_v17 = vunpack.i.h.bf16 %v10355_v15  ;;  %v10356_v18 = vunpack.i.l.bf16 %v10355_v15  ;;  %v3933_v15 = vld [vmem:[#allocation3 + $0x94] ss:$2 sm:$0xff] }
 0x266   : > { %3636 = vst.msk [vmem:[#allocation3 + $0x14a] sm:$0xff] %vm3528_vm7, %v3505_v16 }
 0x267   : > { %v4367_v23 = vsel %vm3528_vm7, %v3669_v22, %v10357_v17  ;;  %v4366_v24 = vsel %vm3528_vm7, %v3667_v21, %v10356_v18 }
 0x268   : > { %v10365_v25 = vpop.permute.xlu0 %10364  ;;  %v4399_v28 = vsel %vm4394_vm12, %v4366_v24, %v10361_v20  ;;  %v4400_v29 = vsel %vm4394_vm12, %v4367_v23, %v10362_v19  ;;  %v3931_v19 = vld [vmem:[#allocation3 + $0x84] ss:$2 sm:$0xff] }
 0x269   : > { %v10367_v26 = vunpack.i.h.bf16 %v10365_v25  ;;  %v10366_v27 = vunpack.i.l.bf16 %v10365_v25  ;;  %v4469_v20 = vpack.c.bf16 %v3933_v15, %v3931_v19 }
 0x26b   : > { %v4432_v31 = vsel %vm4427_vm2, %v4399_v28, %v10366_v27  ;;  %v4433_v32 = vsel %vm4427_vm2, %v4400_v29, %v10367_v26 }
 0x26c   : > { %v4464_v33 = vpack.c.bf16 %v4433_v32, %v4432_v31  ;;  %v3829_v35 = vld [vmem:[#allocation3 + $0x152] ss:$2 sm:$0xff]  ;;  %v3893_v47 = vld [vmem:[#allocation3 + $0x153] ss:$2 sm:$0xff] }
 0x26d   : > { %v9208_v36 = vpop.f32.mrb[44].mxu0  ;;  %v3827_v38 = vld [vmem:[#allocation3 + $0x142] ss:$2 sm:$0xff]  ;;  %v3763_v39 = vld [vmem:[#allocation3 + $0x141] ss:$2 sm:$0xff] }
 0x26e   : > { %4676 = vmatmul.mubr.bf16.gmra.mrb[8].mxu1 %v4464_v33  ;;  %v3266_v40 = vadd.f32 %v12502_v63, %v9208_v36  ;;  %v3257_v41 = vpop.f32.mrb[45].mxu0  ;;  %v10478_v42 = vpack.i.bf16 %v3829_v35, %v3827_v38  ;;  %v3765_v43 = vld [vmem:[#allocation3 + $0x151] ss:$2 sm:$0xff] }
 0x26f   : > { %8834 = vmatprep.mubr.msk.bf16.mxu1 %vm3528_vm7, %v4467_v37  ;;  %v3258_v44 = vadd.f32 %v12502_v63, %v3257_v41  ;;  %v9209_v45 = vpop.f32.mrb[46].mxu0  ;;  %v10473_v46 = vpack.i.bf16 %v3765_v43, %v3763_v39  ;;  %v3891_v53 = vld [vmem:[#allocation3 + $0x143] ss:$2 sm:$0xff] }
 0x270   : > { %vm3382_vm13 = vcmp.gt.f32.partialorder %v3266_v40, 0.0  ;;  %v3446_v49 = vmul.f32 0.1, %v3266_v40  ;;  %v3269_v50 = vadd.f32 %v12502_v63, %v9209_v45  ;;  %v3260_v52 = vpop.f32.mrb[47].mxu0  ;;  %10479 = vrot.lane.b32.xlu1 %v10478_v42, %s13637_s19  ;;  %v10483_v1 = vpack.i.bf16 %v3893_v47, %v3891_v53 }
 0x271   : > { %vm3380_vm14 = vcmp.gt.f32.partialorder %v3258_v44, 0.0  ;;  %v3444_v54 = vmul.f32 0.1, %v3258_v44  ;;  %v3261_v55 = vadd.f32 %v12502_v63, %v3260_v52  ;;  %10474 = vrot.lane.b32.xlu0 %v10473_v46, %s13635_s23 }
 0x272   : > { %v3510_v56 = vsel %vm3382_vm13, %v3266_v40, %v3446_v49  ;;  %vm3383_vm15 = vcmp.gt.f32.partialorder %v3269_v50, 0.0  ;;  %v3447_v58 = vmul.f32 0.1, %v3269_v50 }
 0x273   : > { %3641 = vst.msk [vmem:[#allocation3 + $0x172] sm:$0xff] %vm3528_vm7, %v3510_v56  ;;  %v3508_v59 = vsel %vm3380_vm14, %v3258_v44, %v3444_v54  ;;  %vm3381_vm0 = vcmp.gt.f32.partialorder %v3261_v55, 0.0  ;;  %v3445_v60 = vmul.f32 0.1, %v3261_v55  ;;  %v10370_v62 = vpop.permute.xlu1 %10369  ;;  %v3675_v54 = vld [vmem:[#allocation3 + $0x80] ss:$2 sm:$0xff] }
 0x274   : > { %3639 = vst.msk [vmem:[#allocation3 + $0x162] sm:$0xff] %vm3528_vm7, %v3508_v59  ;;  %v3511_v57 = vsel %vm3383_vm15, %v3269_v50, %v3447_v58  ;;  %v10372_v61 = vunpack.i.h.bf16 %v10370_v62  ;;  %v10371_v2 = vunpack.i.l.bf16 %v10370_v62  ;;  %v10375_v5 = vpop.permute.xlu0 %10374 }
 0x275   : > { %3642 = vst.msk [vmem:[#allocation3 + $0x17a] sm:$0xff] %vm3528_vm7, %v3511_v57  ;;  %v3509_v3 = vsel %vm3381_vm0, %v3261_v55, %v3445_v60  ;;  %v10377_v6 = vunpack.i.h.bf16 %v10375_v5  ;;  %v10376_v7 = vunpack.i.l.bf16 %v10375_v5  ;;  %10484 = vrot.lane.b32.xlu0 %v10483_v1, %s10941_s26  ;;  %v3677_v55 = vld [vmem:[#allocation3 + $0x90] ss:$2 sm:$0xff] }
 0x276   : > { %3640 = vst.msk [vmem:[#allocation3 + $0x16a] sm:$0xff] %vm3528_vm7, %v3509_v3  ;;  %v4369_v8 = vsel %vm3528_vm7, %v3673_v4, %v10372_v61  ;;  %v4368_v9 = vsel %vm3528_vm7, %v3671_v51, %v10371_v2  ;;  %v3937_v61 = vld [vmem:[#allocation3 + $0xb4] ss:$2 sm:$0xff]  ;;  %v3935_v51 = vld [vmem:[#allocation3 + $0xa4] ss:$2 sm:$0xff] }
 0x277   : > { %v10380_v10 = vpop.permute.xlu1 %10379  ;;  %v4401_v13 = vsel %vm4394_vm12, %v4368_v9, %v10376_v7  ;;  %v4402_v14 = vsel %vm4394_vm12, %v4369_v8, %v10377_v6  ;;  %v4471_v7 = vpack.c.bf16 %v3937_v61, %v3935_v51 }
 0x278   : > { %v10382_v11 = vunpack.i.h.bf16 %v10380_v10  ;;  %v10381_v12 = vunpack.i.l.bf16 %v10380_v10 }
 0x27a   : > { %v4434_v16 = vsel %vm4427_vm2, %v4401_v13, %v10381_v12  ;;  %v4435_v17 = vsel %vm4427_vm2, %v4402_v14, %v10382_v11 }
 0x27b   : > { %v4466_v18 = vpack.c.bf16 %v4435_v17, %v4434_v16 }
 0x27c   : > { %v3833_v21 = vld [vmem:[#allocation3 + $0x172] ss:$2 sm:$0xff]  ;;  %v3897_v33 = vld [vmem:[#allocation3 + $0x173] ss:$2 sm:$0xff] }
 0x27d   : > { %4684 = vmatmul.mubr.bf16.gmra.mrb[12].mxu1 %v4466_v18  ;;  %v9212_v22 = vpop.f32.mrb[48].mxu0  ;;  %v3767_v23 = vld [vmem:[#allocation3 + $0x161] ss:$2 sm:$0xff]  ;;  %v3769_v24 = vld [vmem:[#allocation3 + $0x171] ss:$2 sm:$0xff] }
 0x27e   : > { %v3282_v25 = vadd.f32 %v12502_v63, %v9212_v22  ;;  %8835 = vmatprep.mubr.msk.bf16.mxu1 %vm3528_vm7, %v4469_v20  ;;  %v3273_v26 = vpop.f32.mrb[49].mxu0  ;;  %v10488_v27 = vpack.i.bf16 %v3769_v24, %v3767_v23  ;;  %v3831_v28 = vld [vmem:[#allocation3 + $0x162] ss:$2 sm:$0xff]  ;;  %v3895_v32 = vld [vmem:[#allocation3 + $0x163] ss:$2 sm:$0xff] }
 0x27f   : > { %v3274_v29 = vadd.f32 %v12502_v63, %v3273_v26  ;;  %v9213_v30 = vpop.f32.mrb[50].mxu0  ;;  %v10493_v31 = vpack.i.bf16 %v3833_v21, %v3831_v28  ;;  %v10498_v41 = vpack.i.bf16 %v3897_v33, %v3895_v32 }
 0x280   : > { %vm3386_vm1 = vcmp.gt.f32.partialorder %v3282_v25, 0.0  ;;  %v3450_v34 = vmul.f32 0.1, %v3282_v25  ;;  %v3285_v35 = vadd.f32 %v12502_v63, %v9213_v30  ;;  %v3276_v36 = vpop.f32.mrb[51].mxu0  ;;  %10489 = vrot.lane.b32.xlu1 %v10488_v27, %s13635_s23 }
 0x281   : > { %vm3384_vm3 = vcmp.gt.f32.partialorder %v3274_v29, 0.0  ;;  %v3448_v37 = vmul.f32 0.1, %v3274_v29  ;;  %v3277_v38 = vadd.f32 %v12502_v63, %v3276_v36  ;;  %10494 = vrot.lane.b32.xlu0 %v10493_v31, %s13637_s19  ;;  %v3681_v36 = vld [vmem:[#allocation3 + $0xb0] ss:$2 sm:$0xff] }
 0x282   : > { %v3514_v39 = vsel %vm3386_vm1, %v3282_v25, %v3450_v34  ;;  %vm3387_vm4 = vcmp.gt.f32.partialorder %v3285_v35, 0.0  ;;  %v3451_v40 = vmul.f32 0.1, %v3285_v35 }
 0x283   : > { %3645 = vst.msk [vmem:[#allocation3 + $0x192] sm:$0xff] %vm3528_vm7, %v3514_v39  ;;  %v3512_v42 = vsel %vm3384_vm3, %v3274_v29, %v3448_v37  ;;  %vm3385_vm5 = vcmp.gt.f32.partialorder %v3277_v38, 0.0  ;;  %v3449_v43 = vmul.f32 0.1, %v3277_v38  ;;  %v10390_v44 = vpop.permute.xlu1 %10389 }
 0x284   : > { %3643 = vst.msk [vmem:[#allocation3 + $0x182] sm:$0xff] %vm3528_vm7, %v3512_v42  ;;  %v3515_v45 = vsel %vm3387_vm4, %v3285_v35, %v3451_v40  ;;  %v10385_v46 = vpop.permute.xlu0 %10384  ;;  %10499 = vrot.lane.b32.xlu1 %v10498_v41, %s10941_s26  ;;  %v10392_v52 = vunpack.i.h.bf16 %v10390_v44  ;;  %v10391_v53 = vunpack.i.l.bf16 %v10390_v44  ;;  %v3679_v35 = vld [vmem:[#allocation3 + $0xa0] ss:$2 sm:$0xff] }
 0x285   : > { %3646 = vst.msk [vmem:[#allocation3 + $0x19a] sm:$0xff] %vm3528_vm7, %v3515_v45  ;;  %v3513_v47 = vsel %vm3385_vm5, %v3277_v38, %v3449_v43  ;;  %v10387_v49 = vunpack.i.h.bf16 %v10385_v46  ;;  %v10386_v50 = vunpack.i.l.bf16 %v10385_v46  ;;  %v3941_v46 = vld [vmem:[#allocation3 + $0xd4] ss:$2 sm:$0xff] }
 0x286   : > { %3644 = vst.msk [vmem:[#allocation3 + $0x18a] sm:$0xff] %vm3528_vm7, %v3513_v47 }
 0x287   : > { %v4371_v56 = vsel %vm3528_vm7, %v3677_v55, %v10387_v49  ;;  %v4370_v58 = vsel %vm3528_vm7, %v3675_v54, %v10386_v50 }
 0x288   : > { %v10395_v59 = vpop.permute.xlu0 %10394  ;;  %v4403_v1 = vsel %vm4394_vm12, %v4370_v58, %v10391_v53  ;;  %v4404_v57 = vsel %vm4394_vm12, %v4371_v56, %v10392_v52  ;;  %v3939_v52 = vld [vmem:[#allocation3 + $0xc4] ss:$2 sm:$0xff] }
 0x289   : > { %v10397_v60 = vunpack.i.h.bf16 %v10395_v59  ;;  %v10396_v62 = vunpack.i.l.bf16 %v10395_v59  ;;  %v4473_v53 = vpack.c.bf16 %v3941_v46, %v3939_v52 }
 0x28b   : > { %v4436_v2 = vsel %vm4427_vm2, %v4403_v1, %v10396_v62  ;;  %v4437_v5 = vsel %vm4427_vm2, %v4404_v57, %v10397_v60 }
 0x28c   : > { %v4468_v3 = vpack.c.bf16 %v4437_v5, %v4436_v2  ;;  %v3837_v4 = vld [vmem:[#allocation3 + $0x192] ss:$2 sm:$0xff]  ;;  %v3901_v17 = vld [vmem:[#allocation3 + $0x193] ss:$2 sm:$0xff] }
 0x28d   : > { %v9216_v6 = vpop.f32.mrb[52].mxu0  ;;  %v3835_v8 = vld [vmem:[#allocation3 + $0x182] ss:$2 sm:$0xff]  ;;  %v3771_v9 = vld [vmem:[#allocation3 + $0x181] ss:$2 sm:$0xff] }
 0x28e   : > { %4692 = vmatmul.mubr.bf16.gmra.mrb[16].mxu1 %v4468_v3  ;;  %v3298_v10 = vadd.f32 %v12502_v63, %v9216_v6  ;;  %v3289_v11 = vpop.f32.mrb[53].mxu0  ;;  %v10508_v12 = vpack.i.bf16 %v3837_v4, %v3835_v8  ;;  %v3773_v13 = vld [vmem:[#allocation3 + $0x191] ss:$2 sm:$0xff] }
 0x28f   : > { %8836 = vmatprep.mubr.msk.bf16.mxu1 %vm3528_vm7, %v4471_v7  ;;  %v3290_v14 = vadd.f32 %v12502_v63, %v3289_v11  ;;  %v9217_v15 = vpop.f32.mrb[54].mxu0  ;;  %v10503_v16 = vpack.i.bf16 %v3773_v13, %v3771_v9  ;;  %v3899_v21 = vld [vmem:[#allocation3 + $0x183] ss:$2 sm:$0xff] }
 0x290   : > { %vm3390_vm6 = vcmp.gt.f32.partialorder %v3298_v10, 0.0  ;;  %v3454_v18 = vmul.f32 0.1, %v3298_v10  ;;  %v3301_v19 = vadd.f32 %v12502_v63, %v9217_v15  ;;  %v3292_v20 = vpop.f32.mrb[55].mxu0  ;;  %10509 = vrot.lane.b32.xlu1 %v10508_v12, %s13637_s19  ;;  %v10513_v29 = vpack.i.bf16 %v3901_v17, %v3899_v21 }
 0x291   : > { %vm3388_vm8 = vcmp.gt.f32.partialorder %v3290_v14, 0.0  ;;  %v3452_v22 = vmul.f32 0.1, %v3290_v14  ;;  %v3293_v23 = vadd.f32 %v12502_v63, %v3292_v20  ;;  %10504 = vrot.lane.b32.xlu0 %v10503_v16, %s13635_s23 }
 0x292   : > { %v3518_v24 = vsel %vm3390_vm6, %v3298_v10, %v3454_v18  ;;  %vm3391_vm9 = vcmp.gt.f32.partialorder %v3301_v19, 0.0  ;;  %v3455_v25 = vmul.f32 0.1, %v3301_v19 }
 0x293   : > { %3649 = vst.msk [vmem:[#allocation3 + $0x1b2] sm:$0xff] %vm3528_vm7, %v3518_v24  ;;  %v3516_v26 = vsel %vm3388_vm8, %v3290_v14, %v3452_v22  ;;  %vm3389_vm10 = vcmp.gt.f32.partialorder %v3293_v23, 0.0  ;;  %v3453_v27 = vmul.f32 0.1, %v3293_v23  ;;  %v10400_v28 = vpop.permute.xlu1 %10399  ;;  %v3683_v22 = vld [vmem:[#allocation3 + $0xc0] ss:$2 sm:$0xff] }
 0x294   : > { %3647 = vst.msk [vmem:[#allocation3 + $0x1a2] sm:$0xff] %vm3528_vm7, %v3516_v26  ;;  %v3519_v30 = vsel %vm3391_vm9, %v3301_v19, %v3455_v25  ;;  %v10402_v31 = vunpack.i.h.bf16 %v10400_v28  ;;  %v10401_v32 = vunpack.i.l.bf16 %v10400_v28  ;;  %v10405_v33 = vpop.permute.xlu0 %10404 }
 0x295   : > { %3650 = vst.msk [vmem:[#allocation3 + $0x1ba] sm:$0xff] %vm3528_vm7, %v3519_v30  ;;  %v3517_v34 = vsel %vm3389_vm10, %v3293_v23, %v3453_v27  ;;  %v10407_v37 = vunpack.i.h.bf16 %v10405_v33  ;;  %v10406_v38 = vunpack.i.l.bf16 %v10405_v33  ;;  %10514 = vrot.lane.b32.xlu0 %v10513_v29, %s10941_s26  ;;  %v3685_v23 = vld [vmem:[#allocation3 + $0xd0] ss:$2 sm:$0xff] }
 0x296   : > { %3648 = vst.msk [vmem:[#allocation3 + $0x1aa] sm:$0xff] %vm3528_vm7, %v3517_v34  ;;  %v4373_v39 = vsel %vm3528_vm7, %v3681_v36, %v10402_v31  ;;  %v4372_v40 = vsel %vm3528_vm7, %v3679_v35, %v10401_v32  ;;  %v3945_v31 = vld [vmem:[#allocation3 + $0xf4] ss:$2 sm:$0xff]  ;;  %v3943_v35 = vld [vmem:[#allocation3 + $0xe4] ss:$2 sm:$0xff] }
 0x297   : > { %v10410_v41 = vpop.permute.xlu1 %10409  ;;  %v4405_v44 = vsel %vm4394_vm12, %v4372_v40, %v10406_v38  ;;  %v4406_v45 = vsel %vm4394_vm12, %v4373_v39, %v10407_v37  ;;  %v4475_v36 = vpack.c.bf16 %v3945_v31, %v3943_v35 }
 0x298   : > { %v10412_v42 = vunpack.i.h.bf16 %v10410_v41  ;;  %v10411_v43 = vunpack.i.l.bf16 %v10410_v41 }
 0x29a   : > { %v4438_v47 = vsel %vm4427_vm2, %v4405_v44, %v10411_v43  ;;  %v4439_v49 = vsel %vm4427_vm2, %v4406_v45, %v10412_v42 }
 0x29b   : > { %v4470_v50 = vpack.c.bf16 %v4439_v49, %v4438_v47 }
 0x29c   : > { %v3841_v54 = vld [vmem:[#allocation3 + $0x1b2] ss:$2 sm:$0xff]  ;;  %v3905_v2 = vld [vmem:[#allocation3 + $0x1b3] ss:$2 sm:$0xff] }
 0x29d   : > { %4700 = vmatmul.mubr.bf16.gmra.mrb[20].mxu1 %v4470_v50  ;;  %v3775_v55 = vld [vmem:[#allocation3 + $0x1a1] ss:$2 sm:$0xff]  ;;  %v3777_v56 = vld [vmem:[#allocation3 + $0x1b1] ss:$2 sm:$0xff]  ;;  %v3839_v58 = vld [vmem:[#allocation3 + $0x1a2] ss:$2 sm:$0xff] }
 0x29e   : > { %v9220_v59 = vpop.f32.mrb[56].mxu0  ;;  %8837 = vmatprep.mubr.msk.bf16.mxu1 %vm3528_vm7, %v4473_v53  ;;  %v10518_v60 = vpack.i.bf16 %v3777_v56, %v3775_v55  ;;  %v10523_v62 = vpack.i.bf16 %v3841_v54, %v3839_v58  ;;  %v3903_v61 = vld [vmem:[#allocation3 + $0x1a3] ss:$2 sm:$0xff] }
 0x29f   : > { %v3314_v1 = vadd.f32 %v12502_v63, %v9220_v59  ;;  %v3305_v57 = vpop.f32.mrb[57].mxu0  ;;  %v10528_v9 = vpack.i.bf16 %v3905_v2, %v3903_v61 }
 0x2a0   : > { %v3306_v5 = vadd.f32 %v12502_v63, %v3305_v57  ;;  %v9221_v3 = vpop.f32.mrb[58].mxu0  ;;  %10519 = vrot.lane.b32.xlu1 %v10518_v60, %s13635_s23  ;;  %10524 = vrot.lane.b32.xlu0 %v10523_v62, %s13637_s19 }
 0x2a1   : > { %vm3394_vm11 = vcmp.gt.f32.partialorder %v3314_v1, 0.0  ;;  %v3458_v51 = vmul.f32 0.1, %v3314_v1  ;;  %v3317_v4 = vadd.f32 %v12502_v63, %v9221_v3  ;;  %v3308_v6 = vpop.f32.mrb[59].mxu0 }
 0x2a2   : > { %vm3392_vm13 = vcmp.gt.f32.partialorder %v3306_v5, 0.0  ;;  %v3456_v7 = vmul.f32 0.1, %v3306_v5  ;;  %v3309_v8 = vadd.f32 %v12502_v63, %v3308_v6 }
 0x2a3   : > { %v3522_v10 = vsel %vm3394_vm11, %v3314_v1, %v3458_v51  ;;  %vm3395_vm14 = vcmp.gt.f32.partialorder %v3317_v4, 0.0  ;;  %v3459_v11 = vmul.f32 0.1, %v3317_v4  ;;  %v10420_v12 = vpop.permute.xlu1 %10419 }
 0x2a4   : > { %3653 = vst.msk [vmem:[#allocation3 + $0x1d2] sm:$0xff] %vm3528_vm7, %v3522_v10  ;;  %v3520_v13 = vsel %vm3392_vm13, %v3306_v5, %v3456_v7  ;;  %vm3393_vm15 = vcmp.gt.f32.partialorder %v3309_v8, 0.0  ;;  %v3457_v14 = vmul.f32 0.1, %v3309_v8  ;;  %v10415_v15 = vpop.permute.xlu0 %10414  ;;  %10529 = vrot.lane.b32.xlu1 %v10528_v9, %s10941_s26  ;;  %v10422_v20 = vunpack.i.h.bf16 %v10420_v12  ;;  %v3689_v5 = vld [vmem:[#allocation3 + $0xf0] ss:$2 sm:$0xff] }
 0x2a5   : > { %3651 = vst.msk [vmem:[#allocation3 + $0x1c2] sm:$0xff] %vm3528_vm7, %v3520_v13  ;;  %v3523_v16 = vsel %vm3395_vm14, %v3317_v4, %v3459_v11  ;;  %v10417_v17 = vunpack.i.h.bf16 %v10415_v15  ;;  %v10416_v18 = vunpack.i.l.bf16 %v10415_v15  ;;  %v10421_v21 = vunpack.i.l.bf16 %v10420_v12  ;;  %v3949_v15 = vld [vmem:[#allocation3 + $0x114] ss:$2 sm:$0xff] }
 0x2a6   : > { %3654 = vst.msk [vmem:[#allocation3 + $0x1da] sm:$0xff] %vm3528_vm7, %v3523_v16  ;;  %v3521_v19 = vsel %vm3393_vm15, %v3309_v8, %v3457_v14 }
 0x2a7   : > { %3652 = vst.msk [vmem:[#allocation3 + $0x1ca] sm:$0xff] %vm3528_vm7, %v3521_v19  ;;  %v4375_v24 = vsel %vm3528_vm7, %v3685_v23, %v10417_v17  ;;  %v4374_v25 = vsel %vm3528_vm7, %v3683_v22, %v10416_v18  ;;  %v3947_v19 = vld [vmem:[#allocation3 + $0x104] ss:$2 sm:$0xff] }
 0x2a8   : > { %v10425_v26 = vpop.permute.xlu0 %10424  ;;  %v4407_v29 = vsel %vm4394_vm12, %v4374_v25, %v10421_v21  ;;  %v4408_v30 = vsel %vm4394_vm12, %v4375_v24, %v10422_v20  ;;  %v4477_v20 = vpack.c.bf16 %v3949_v15, %v3947_v19 }
 0x2a9   : > { %v10427_v27 = vunpack.i.h.bf16 %v10425_v26  ;;  %v10426_v28 = vunpack.i.l.bf16 %v10425_v26 }
 0x2ab   : > { %v4440_v32 = vsel %vm4427_vm2, %v4407_v29, %v10426_v28  ;;  %v4441_v33 = vsel %vm4427_vm2, %v4408_v30, %v10427_v27 }
 0x2ac   : > { %v4472_v34 = vpack.c.bf16 %v4441_v33, %v4440_v32 }
 0x2ad   : > { %v3845_v37 = vld [vmem:[#allocation3 + $0x1d2] ss:$2 sm:$0xff]  ;;  %v3909_v47 = vld [vmem:[#allocation3 + $0x1d3] ss:$2 sm:$0xff] }
 0x2ae   : > { %4708 = vmatmul.mubr.bf16.gmra.mrb[24].mxu1 %v4472_v34  ;;  %v3843_v38 = vld [vmem:[#allocation3 + $0x1c2] ss:$2 sm:$0xff]  ;;  %v3779_v39 = vld [vmem:[#allocation3 + $0x1c1] ss:$2 sm:$0xff]  ;;  %v3781_v40 = vld [vmem:[#allocation3 + $0x1d1] ss:$2 sm:$0xff] }
 0x2af   : > { %v9224_v41 = vpop.f32.mrb[60].mxu0  ;;  %8838 = vmatprep.mubr.msk.bf16.mxu1 %vm3528_vm7, %v4475_v36  ;;  %v10538_v42 = vpack.i.bf16 %v3845_v37, %v3843_v38  ;;  %v10533_v43 = vpack.i.bf16 %v3781_v40, %v3779_v39  ;;  %v3907_v46 = vld [vmem:[#allocation3 + $0x1c3] ss:$2 sm:$0xff]  ;;  %v3691_v36 = vld [vmem:[#allocation3 + $0x100] ss:$2 sm:$0xff] }
 0x2b0   : > { %v3330_v44 = vadd.f32 %v12502_v63, %v9224_v41  ;;  %v3321_v45 = vpop.f32.mrb[61].mxu0  ;;  %v10543_v59 = vpack.i.bf16 %v3909_v47, %v3907_v46  ;;  %v3693_v37 = vld [vmem:[#allocation3 + $0x110] ss:$2 sm:$0xff] }
 0x2b1   : > { %v3322_v49 = vadd.f32 %v12502_v63, %v3321_v45  ;;  %v9225_v50 = vpop.f32.mrb[62].mxu0  ;;  %10539 = vrot.lane.b32.xlu1 %v10538_v42, %s13637_s19  ;;  %10534 = vrot.lane.b32.xlu0 %v10533_v43, %s13635_s23  ;;  %v3953_v45 = vld [vmem:[#allocation3 + $0x134] ss:$2 sm:$0xff] }
 0x2b2   : > { %vm3398_vm0 = vcmp.gt.f32.partialorder %v3330_v44, 0.0  ;;  %v3462_v52 = vmul.f32 0.1, %v3330_v44  ;;  %v3333_v53 = vadd.f32 %v12502_v63, %v9225_v50  ;;  %v3324_v54 = vpop.f32.mrb[63].mxu0  ;;  %v3951_v50 = vld [vmem:[#allocation3 + $0x124] ss:$2 sm:$0xff] }
 0x2b3   : > { %vm3396_vm1 = vcmp.gt.f32.partialorder %v3322_v49, 0.0  ;;  %v3460_v55 = vmul.f32 0.1, %v3322_v49  ;;  %v3325_v56 = vadd.f32 %v12502_v63, %v3324_v54  ;;  %v10430_v58 = vpop.permute.xlu1 %10429  ;;  %v3687_v63 = vld [vmem:[#allocation3 + $0xe0] ss:$2 sm:$0xff] }
 0x2b4   : > { %v3526_v60 = vsel %vm3398_vm0, %v3330_v44, %v3462_v52  ;;  %vm3399_vm3 = vcmp.gt.f32.partialorder %v3333_v53, 0.0  ;;  %v3463_v62 = vmul.f32 0.1, %v3333_v53  ;;  %v10432_v1 = vunpack.i.h.bf16 %v10430_v58  ;;  %v10435_v57 = vpop.permute.xlu0 %10434 }
 0x2b5   : > { %3657 = vst.msk [vmem:[#allocation3 + $0x1f2] sm:$0xff] %vm3528_vm7, %v3526_v60  ;;  %v3524_v61 = vsel %vm3396_vm1, %v3322_v49, %v3460_v55  ;;  %vm3397_vm4 = vcmp.gt.f32.partialorder %v3325_v56, 0.0  ;;  %v3461_v2 = vmul.f32 0.1, %v3325_v56  ;;  %v10431_v3 = vunpack.i.l.bf16 %v10430_v58  ;;  %10544 = vrot.lane.b32.xlu0 %v10543_v59, %s10941_s26  ;;  %v3695_v58 = vld [vmem:[#allocation3 + $0x120] ss:$2 sm:$0xff] }
 0x2b6   : > { %3655 = vst.msk [vmem:[#allocation3 + $0x1e2] sm:$0xff] %vm3528_vm7, %v3524_v61  ;;  %v3527_v51 = vsel %vm3399_vm3, %v3333_v53, %v3463_v62  ;;  %v4377_v4 = vsel %vm3528_vm7, %v3689_v5, %v10432_v1  ;;  %v10437_v6 = vunpack.i.h.bf16 %v10435_v57  ;;  %v10436_v7 = vunpack.i.l.bf16 %v10435_v57  ;;  %v3697_v59 = vld [vmem:[#allocation3 + $0x130] ss:$2 sm:$0xff] }
 0x2b7   : > { %3658 = vst.msk [vmem:[#allocation3 + $0x1fa] sm:$0xff] %vm3528_vm7, %v3527_v51  ;;  %v3525_v8 = vsel %vm3397_vm4, %v3325_v56, %v3461_v2  ;;  %v4376_v9 = vsel %vm3528_vm7, %v3687_v63, %v10431_v3  ;;  %v10440_v10 = vpop.permute.xlu1 %10439  ;;  %v4479_v52 = vpack.c.bf16 %v3953_v45, %v3951_v50  ;;  %v3957_v63 = vld [vmem:[#allocation3 + $0x154] ss:$2 sm:$0xff] }
 0x2b8   : > { %3656 = vst.msk [vmem:[#allocation3 + $0x1ea] sm:$0xff] %vm3528_vm7, %v3525_v8  ;;  %v10442_v11 = vunpack.i.h.bf16 %v10440_v10  ;;  %v10441_v12 = vunpack.i.l.bf16 %v10440_v10  ;;  %v4409_v13 = vsel %vm4394_vm12, %v4376_v9, %v10436_v7  ;;  %v4410_v14 = vsel %vm4394_vm12, %v4377_v4, %v10437_v6  ;;  %v3955_v8 = vld [vmem:[#allocation3 + $0x144] ss:$2 sm:$0xff] }
 0x2b9   : > { %v4481_v9 = vpack.c.bf16 %v3957_v63, %v3955_v8 }
 0x2ba   : > { %v4442_v16 = vsel %vm4427_vm2, %v4409_v13, %v10441_v12  ;;  %v4443_v17 = vsel %vm4427_vm2, %v4410_v14, %v10442_v11 }
 0x2bb   : > { %v4474_v18 = vpack.c.bf16 %v4443_v17, %v4442_v16  ;;  %v3699_v16 = vld [vmem:[#allocation3 + $0x140] ss:$2 sm:$0xff]  ;;  %v3701_v17 = vld [vmem:[#allocation3 + $0x150] ss:$2 sm:$0xff] }
 0x2bd   : > { %4716 = vmatmul.mubr.bf16.gmra.mrb[28].mxu1 %v4474_v18 }
 0x2be   : > { %8839 = vmatprep.mubr.msk.bf16.mxu1 %vm3528_vm7, %v4477_v20  ;;  %v3849_v21 = vld [vmem:[#allocation3 + $0x1f2] ss:$2 sm:$0xff]  ;;  %v3913_v28 = vld [vmem:[#allocation3 + $0x1f3] ss:$2 sm:$0xff] }
 0x2bf   : > { %v3783_v22 = vld [vmem:[#allocation3 + $0x1e1] ss:$2 sm:$0xff]  ;;  %v3785_v23 = vld [vmem:[#allocation3 + $0x1f1] ss:$2 sm:$0xff]  ;;  %v3847_v24 = vld [vmem:[#allocation3 + $0x1e2] ss:$2 sm:$0xff] }
 0x2c0   : > { %v10548_v25 = vpack.i.bf16 %v3785_v23, %v3783_v22  ;;  %v10553_v26 = vpack.i.bf16 %v3849_v21, %v3847_v24  ;;  %v3911_v27 = vld [vmem:[#allocation3 + $0x1e3] ss:$2 sm:$0xff] }
 0x2c1   : > { %v10558_v33 = vpack.i.bf16 %v3913_v28, %v3911_v27 }
 0x2c2   : > { %10549 = vrot.lane.b32.xlu1 %v10548_v25, %s13635_s23  ;;  %10554 = vrot.lane.b32.xlu0 %v10553_v26, %s13637_s19  ;;  %v10450_v29 = vpop.permute.xlu1 %10449  ;;  %v3961_v25 = vld [vmem:[#allocation3 + $0x174] ss:$2 sm:$0xff] }
 0x2c3   : > { %v10445_v30 = vpop.permute.xlu0 %10444  ;;  %v10452_v34 = vunpack.i.h.bf16 %v10450_v29  ;;  %v10451_v35 = vunpack.i.l.bf16 %v10450_v29  ;;  %v3959_v29 = vld [vmem:[#allocation3 + $0x164] ss:$2 sm:$0xff] }
 0x2c4   : > { %v10447_v31 = vunpack.i.h.bf16 %v10445_v30  ;;  %v10446_v32 = vunpack.i.l.bf16 %v10445_v30  ;;  %v4483_v30 = vpack.c.bf16 %v3961_v25, %v3959_v29 }
 0x2c6   : > { %v4379_v38 = vsel %vm3528_vm7, %v3693_v37, %v10447_v31  ;;  %v4378_v39 = vsel %vm3528_vm7, %v3691_v36, %v10446_v32  ;;  %10559 = vrot.lane.b32.xlu1 %v10558_v33, %s10941_s26  ;;  %v3705_v36 = vld [vmem:[#allocation3 + $0x170] ss:$2 sm:$0xff] }
 0x2c7   : > { %v10455_v40 = vpop.permute.xlu0 %10454  ;;  %v4411_v43 = vsel %vm4394_vm12, %v4378_v39, %v10451_v35  ;;  %v4412_v44 = vsel %vm4394_vm12, %v4379_v38, %v10452_v34  ;;  %v3703_v35 = vld [vmem:[#allocation3 + $0x160] ss:$2 sm:$0xff] }
 0x2c8   : > { %v10457_v41 = vunpack.i.h.bf16 %v10455_v40  ;;  %v10456_v42 = vunpack.i.l.bf16 %v10455_v40 }
 0x2ca   : > { %v4444_v46 = vsel %vm4427_vm2, %v4411_v43, %v10456_v42  ;;  %v4445_v47 = vsel %vm4427_vm2, %v4412_v44, %v10457_v41 }
 0x2cb   : > { %v4476_v49 = vpack.c.bf16 %v4445_v47, %v4444_v46  ;;  %v3965_v46 = vld [vmem:[#allocation3 + $0x194] ss:$2 sm:$0xff] }
 0x2cd   : > { %4724 = vmatmul.mubr.bf16.gmra.mrb[32].mxu1 %v4476_v49 }
 0x2ce   : > { %8840 = vmatprep.mubr.msk.bf16.mxu1 %vm3528_vm7, %v4479_v52  ;;  %v3963_v52 = vld [vmem:[#allocation3 + $0x184] ss:$2 sm:$0xff] }
 0x2d2   : > { %v10460_v53 = vpop.permute.xlu1 %10459 }
 0x2d3   : > { %v10462_v54 = vunpack.i.h.bf16 %v10460_v53  ;;  %v10461_v55 = vunpack.i.l.bf16 %v10460_v53  ;;  %v10465_v56 = vpop.permute.xlu0 %10464  ;;  %v4485_v53 = vpack.c.bf16 %v3965_v46, %v3963_v52 }
 0x2d4   : > { %v10467_v60 = vunpack.i.h.bf16 %v10465_v56  ;;  %v10466_v62 = vunpack.i.l.bf16 %v10465_v56 }
 0x2d5   : > { %v4381_v1 = vsel %vm3528_vm7, %v3697_v59, %v10462_v54  ;;  %v4380_v57 = vsel %vm3528_vm7, %v3695_v58, %v10461_v55 }
 0x2d6   : > { %v10470_v61 = vpop.permute.xlu1 %10469  ;;  %v4413_v3 = vsel %vm4394_vm12, %v4380_v57, %v10466_v62  ;;  %v4414_v51 = vsel %vm4394_vm12, %v4381_v1, %v10467_v60  ;;  %v3707_v62 = vld [vmem:[#allocation3 + $0x180] ss:$2 sm:$0xff]  ;;  %v3709_v1 = vld [vmem:[#allocation3 + $0x190] ss:$2 sm:$0xff] }
 0x2d7   : > { %v10472_v2 = vunpack.i.h.bf16 %v10470_v61  ;;  %v10471_v5 = vunpack.i.l.bf16 %v10470_v61 }
 0x2d9   : > { %v4446_v4 = vsel %vm4427_vm2, %v4413_v3, %v10471_v5  ;;  %v4447_v6 = vsel %vm4427_vm2, %v4414_v51, %v10472_v2 }
 0x2da   : > { %v4478_v7 = vpack.c.bf16 %v4447_v6, %v4446_v4  ;;  %v3969_v4 = vld [vmem:[#allocation3 + $0x1b4] ss:$2 sm:$0xff] }
 0x2dc   : > { %4732 = vmatmul.mubr.bf16.gmra.mrb[36].mxu1 %v4478_v7 }
 0x2dd   : > { %8841 = vmatprep.mubr.msk.bf16.mxu1 %vm3528_vm7, %v4481_v9  ;;  %v3967_v9 = vld [vmem:[#allocation3 + $0x1a4] ss:$2 sm:$0xff] }
 0x2e2   : > { %v10480_v10 = vpop.permute.xlu1 %10479 }
 0x2e3   : > { %v10475_v11 = vpop.permute.xlu0 %10474  ;;  %v10482_v14 = vunpack.i.h.bf16 %v10480_v10  ;;  %v10481_v15 = vunpack.i.l.bf16 %v10480_v10  ;;  %v4487_v10 = vpack.c.bf16 %v3969_v4, %v3967_v9 }
 0x2e4   : > { %v10477_v12 = vunpack.i.h.bf16 %v10475_v11  ;;  %v10476_v13 = vunpack.i.l.bf16 %v10475_v11 }
 0x2e6   : > { %v4383_v18 = vsel %vm3528_vm7, %v3701_v17, %v10477_v12  ;;  %v4382_v19 = vsel %vm3528_vm7, %v3699_v16, %v10476_v13  ;;  %v3713_v16 = vld [vmem:[#allocation3 + $0x1b0] ss:$2 sm:$0xff] }
 0x2e7   : > { %v10485_v20 = vpop.permute.xlu0 %10484  ;;  %v4415_v23 = vsel %vm4394_vm12, %v4382_v19, %v10481_v15  ;;  %v4416_v24 = vsel %vm4394_vm12, %v4383_v18, %v10482_v14  ;;  %v3711_v15 = vld [vmem:[#allocation3 + $0x1a0] ss:$2 sm:$0xff] }
 0x2e8   : > { %v10487_v21 = vunpack.i.h.bf16 %v10485_v20  ;;  %v10486_v22 = vunpack.i.l.bf16 %v10485_v20 }
 0x2ea   : > { %v4448_v26 = vsel %vm4427_vm2, %v4415_v23, %v10486_v22  ;;  %v4449_v27 = vsel %vm4427_vm2, %v4416_v24, %v10487_v21 }
 0x2eb   : > { %v4480_v28 = vpack.c.bf16 %v4449_v27, %v4448_v26  ;;  %v3973_v26 = vld [vmem:[#allocation3 + $0x1d4] ss:$2 sm:$0xff] }
 0x2ed   : > { %4740 = vmatmul.mubr.bf16.gmra.mrb[40].mxu1 %v4480_v28 }
 0x2ee   : > { %8842 = vmatprep.mubr.msk.bf16.mxu1 %vm3528_vm7, %v4483_v30  ;;  %v3971_v30 = vld [vmem:[#allocation3 + $0x1c4] ss:$2 sm:$0xff] }
 0x2f2   : > { %v10490_v31 = vpop.permute.xlu1 %10489 }
 0x2f3   : > { %v10492_v32 = vunpack.i.h.bf16 %v10490_v31  ;;  %v10491_v33 = vunpack.i.l.bf16 %v10490_v31  ;;  %v10495_v34 = vpop.permute.xlu0 %10494  ;;  %v4489_v31 = vpack.c.bf16 %v3973_v26, %v3971_v30 }
 0x2f4   : > { %v10497_v37 = vunpack.i.h.bf16 %v10495_v34  ;;  %v10496_v38 = vunpack.i.l.bf16 %v10495_v34 }
 0x2f5   : > { %v4385_v39 = vsel %vm3528_vm7, %v3705_v36, %v10492_v32  ;;  %v4384_v40 = vsel %vm3528_vm7, %v3703_v35, %v10491_v33  ;;  %v12660_v32 = vld [vmem:[%s13661_s4] ss:$0 sm:$0xff] }
 0x2f6   : > { %v10500_v41 = vpop.permute.xlu1 %10499  ;;  %v4417_v44 = vsel %vm4394_vm12, %v4384_v40, %v10496_v38  ;;  %v4418_v45 = vsel %vm4394_vm12, %v4385_v39, %v10497_v37  ;;  %v3715_v40 = vld [vmem:[#allocation3 + $0x1c0] ss:$2 sm:$0xff] }
 0x2f7   : > { %v10502_v42 = vunpack.i.h.bf16 %v10500_v41  ;;  %v10501_v43 = vunpack.i.l.bf16 %v10500_v41  ;;  %v3717_v41 = vld [vmem:[#allocation3 + $0x1d0] ss:$2 sm:$0xff] }
 0x2f9   : > { %v4450_v47 = vsel %vm4427_vm2, %v4417_v44, %v10501_v43  ;;  %v4451_v49 = vsel %vm4427_vm2, %v4418_v45, %v10502_v42 }
 0x2fa   : > { %v4482_v50 = vpack.c.bf16 %v4451_v49, %v4450_v47 }
 0x2fc   : > { %4748 = vmatmul.mubr.bf16.gmra.mrb[44].mxu1 %v4482_v50 }
 0x2fd   : > { %8843 = vmatprep.mubr.msk.bf16.mxu1 %vm3528_vm7, %v4485_v53 }
 0x302   : > { %v10510_v54 = vpop.permute.xlu1 %10509 }
 0x303   : > { %v10505_v55 = vpop.permute.xlu0 %10504  ;;  %v10512_v59 = vunpack.i.h.bf16 %v10510_v54  ;;  %v10511_v60 = vunpack.i.l.bf16 %v10510_v54 }
 0x304   : > { %v10507_v56 = vunpack.i.h.bf16 %v10505_v55  ;;  %v10506_v58 = vunpack.i.l.bf16 %v10505_v55 }
 0x306   : > { %v4387_v57 = vsel %vm3528_vm7, %v3709_v1, %v10507_v56  ;;  %v4386_v61 = vsel %vm3528_vm7, %v3707_v62, %v10506_v58  ;;  %v3977_v58 = vld [vmem:[#allocation3 + $0x1f4] ss:$2 sm:$0xff]  ;;  %v3975_v1 = vld [vmem:[#allocation3 + $0x1e4] ss:$2 sm:$0xff] }
 0x307   : > { %v10515_v2 = vpop.permute.xlu0 %10514  ;;  %v4419_v51 = vsel %vm4394_vm12, %v4386_v61, %v10511_v60  ;;  %v4420_v63 = vsel %vm4394_vm12, %v4387_v57, %v10512_v59 }
 0x308   : > { %v10517_v5 = vunpack.i.h.bf16 %v10515_v2  ;;  %v10516_v3 = vunpack.i.l.bf16 %v10515_v2 }
 0x30a   : > { %v4452_v6 = vsel %vm4427_vm2, %v4419_v51, %v10516_v3  ;;  %v4453_v7 = vsel %vm4427_vm2, %v4420_v63, %v10517_v5  ;;  %v4491_v5 = vpack.c.bf16 %v3977_v58, %v3975_v1 }
 0x30b   : > { %v4484_v8 = vpack.c.bf16 %v4453_v7, %v4452_v6 }
 0x30d   : > { %4756 = vmatmul.mubr.bf16.gmra.mrb[48].mxu1 %v4484_v8 }
 0x30e   : > { %8844 = vmatprep.mubr.msk.bf16.mxu1 %vm3528_vm7, %v4487_v10 }
 0x312   : > { %v10520_v11 = vpop.permute.xlu1 %10519  ;;  %v10525_v12 = vpop.permute.xlu0 %10524 }
 0x313   : > { %v10522_v13 = vunpack.i.h.bf16 %v10520_v11  ;;  %v10521_v14 = vunpack.i.l.bf16 %v10520_v11  ;;  %v10527_v17 = vunpack.i.h.bf16 %v10525_v12  ;;  %v10526_v18 = vunpack.i.l.bf16 %v10525_v12  ;;  %v3719_v11 = vld [vmem:[#allocation3 + $0x1e0] ss:$2 sm:$0xff] }
 0x315   : > { %v4389_v19 = vsel %vm3528_vm7, %v3713_v16, %v10522_v13  ;;  %v4388_v20 = vsel %vm3528_vm7, %v3711_v15, %v10521_v14 }
 0x316   : > { %v10530_v21 = vpop.permute.xlu1 %10529  ;;  %v4421_v24 = vsel %vm4394_vm12, %v4388_v20, %v10526_v18  ;;  %v4422_v25 = vsel %vm4394_vm12, %v4389_v19, %v10527_v17  ;;  %v3721_v17 = vld [vmem:[#allocation3 + $0x1f0] ss:$2 sm:$0xff] }
 0x317   : > { %v10532_v22 = vunpack.i.h.bf16 %v10530_v21  ;;  %v10531_v23 = vunpack.i.l.bf16 %v10530_v21 }
 0x319   : > { %v4454_v27 = vsel %vm4427_vm2, %v4421_v24, %v10531_v23  ;;  %v4455_v28 = vsel %vm4427_vm2, %v4422_v25, %v10532_v22 }
 0x31a   : > { %v4486_v29 = vpack.c.bf16 %v4455_v28, %v4454_v27 }
 0x31c   : > { %4764 = vmatmul.mubr.bf16.gmra.mrb[52].mxu1 %v4486_v29 }
 0x31d   : > { %8845 = vmatprep.mubr.msk.bf16.mxu1 %vm3528_vm7, %v4489_v31 }
 0x323   : > { %v10540_v33 = vpop.permute.xlu1 %10539  ;;  %v10535_v34 = vpop.permute.xlu0 %10534 }
 0x324   : > { %v10537_v35 = vunpack.i.h.bf16 %v10535_v34  ;;  %v10536_v36 = vunpack.i.l.bf16 %v10535_v34  ;;  %v10542_v38 = vunpack.i.h.bf16 %v10540_v33  ;;  %v10541_v39 = vunpack.i.l.bf16 %v10540_v33 }
 0x325   : > { %v4661_v37 = vpop.f32.mrb[0].mxu1 }
 0x326   : > { %v4662_v42 = vadd.f32 %v12660_v32, %v4661_v37  ;;  %v4663_v43 = vpop.f32.mrb[1].mxu1  ;;  %v4391_v44 = vsel %vm3528_vm7, %v3717_v41, %v10537_v35  ;;  %v4390_v45 = vsel %vm3528_vm7, %v3715_v40, %v10536_v36 }
 0x327   : > { %v4664_v46 = vpop.f32.mrb[2].mxu1  ;;  %v10545_v47 = vpop.permute.xlu0 %10544  ;;  %v4423_v55 = vsel %vm4394_vm12, %v4390_v45, %v10541_v39  ;;  %v4424_v56 = vsel %vm4394_vm12, %v4391_v44, %v10542_v38 }
 0x328   : > { %vm4788_vm5 = vcmp.gt.f32.partialorder %v4662_v42, 0.0  ;;  %v4820_v49 = vmul.f32 0.1, %v4662_v42  ;;  %v4665_v50 = vadd.f32 %v12660_v32, %v4664_v46  ;;  %v4666_v52 = vpop.f32.mrb[3].mxu1  ;;  %v10547_v53 = vunpack.i.h.bf16 %v10545_v47 }
 0x329   : > { %v10546_v54 = vunpack.i.l.bf16 %v10545_v47 }
 0x32a   : > { %v4852_v59 = vsel %vm4788_vm5, %v4662_v42, %v4820_v49  ;;  %vm4789_vm6 = vcmp.gt.f32.partialorder %v4665_v50, 0.0  ;;  %v4821_v60 = vmul.f32 0.1, %v4665_v50  ;;  %v4457_v62 = vsel %vm4427_vm2, %v4424_v56, %v10547_v53 }
 0x32b   : > { %4884 = vst.msk [vmem:[#allocation4] sm:$0xff] %vm3528_vm7, %v4852_v59  ;;  %v4456_v57 = vsel %vm4427_vm2, %v4423_v55, %v10546_v54 }
 0x32c   : > { %v4853_v61 = vsel %vm4789_vm6, %v4665_v50, %v4821_v60  ;;  %v4488_v2 = vpack.c.bf16 %v4457_v62, %v4456_v57 }
 0x32d   : > { %4885 = vst.msk [vmem:[#allocation4 + $0x8] sm:$0xff] %vm3528_vm7, %v4853_v61 }
 0x32e   : > { %4772 = vmatmul.mubr.bf16.gmra.mrb[56].mxu1 %v4488_v2 }
 0x32f   : > { %8846 = vmatprep.mubr.msk.bf16.mxu1 %vm3528_vm7, %v4491_v5 }
 0x332   : > { %v4669_v3 = vpop.f32.mrb[4].mxu1 }
 0x333   : > { %v4670_v51 = vadd.f32 %v12660_v32, %v4669_v3  ;;  %v4671_v63 = vpop.f32.mrb[5].mxu1 }
 0x334   : > { %v4672_v4 = vpop.f32.mrb[6].mxu1  ;;  %v10550_v6 = vpop.permute.xlu1 %10549  ;;  %v4916_v26 = vld [vmem:[#allocation4] ss:$2 sm:$0xff]  ;;  %v4948_v27 = vld [vmem:[#allocation4 + $0x1] ss:$2 sm:$0xff] }
 0x335   : > { %vm4790_vm8 = vcmp.gt.f32.partialorder %v4670_v51, 0.0  ;;  %v4822_v7 = vmul.f32 0.1, %v4670_v51  ;;  %v4673_v8 = vadd.f32 %v12660_v32, %v4672_v4  ;;  %v10555_v9 = vpop.permute.xlu0 %10554  ;;  %v4674_v10 = vpop.f32.mrb[7].mxu1  ;;  %v10552_v12 = vunpack.i.h.bf16 %v10550_v6 }
 0x336   : > { %v10551_v13 = vunpack.i.l.bf16 %v10550_v6  ;;  %v10557_v14 = vunpack.i.h.bf16 %v10555_v9  ;;  %v10556_v18 = vunpack.i.l.bf16 %v10555_v9  ;;  %v4979_v33 = vadd.f32 %v4948_v27, %v4916_v26 }
 0x337   : > { %v4854_v15 = vsel %vm4790_vm8, %v4670_v51, %v4822_v7  ;;  %vm4791_vm9 = vcmp.gt.f32.partialorder %v4673_v8, 0.0  ;;  %v4823_v16 = vmul.f32 0.1, %v4673_v8  ;;  %v4393_v19 = vsel %vm3528_vm7, %v3721_v17, %v10552_v12 }
 0x338   : > { %4886 = vst.msk [vmem:[#allocation4 + $0x10] sm:$0xff] %vm3528_vm7, %v4854_v15  ;;  %v4392_v20 = vsel %vm3528_vm7, %v3719_v11, %v10551_v13  ;;  %v10560_v21 = vpop.permute.xlu1 %10559  ;;  %v4426_v24 = vsel %vm4394_vm12, %v4393_v19, %v10557_v14  ;;  %v10652_v11 = vld [vmem:[%s13662_s5] sm:$0xff]  }
 0x339   : > { %v4855_v22 = vsel %vm4791_vm9, %v4673_v8, %v4823_v16  ;;  %v10562_v23 = vunpack.i.h.bf16 %v10560_v21  ;;  %v10561_v25 = vunpack.i.l.bf16 %v10560_v21  ;;  %v4425_v28 = vsel %vm4394_vm12, %v4392_v20, %v10556_v18  ;;  %5497 = vmatpush1.bf16.msra.mxu0 %v10652_v11  ;;  %v10653_v16 = vld [vmem:[%s13662_s5 + $0x8] sm:$0xff]  }
 0x33a   : > { %4887 = vst.msk [vmem:[#allocation4 + $0x18] sm:$0xff] %vm3528_vm7, %v4855_v22  ;;  %5498 = vmatprep.subr.bf16.mxu0 %v10938_v48  ;;  %v10661_v11 = vld [vmem:[%s13662_s5 + $0x48] sm:$0xff]  }
 0x33b   : > { %v4459_v29 = vsel %vm4427_vm2, %v4426_v24, %v10562_v23  ;;  %v4458_v30 = vsel %vm4427_vm2, %v4425_v28, %v10561_v25  ;;  %v10654_v24 = vld [vmem:[%s13662_s5 + $0x10] sm:$0xff]  }
 0x33c   : > { %v4490_v31 = vpack.c.bf16 %v4459_v29, %v4458_v30 }
 0x33d   : > { %5499 = vmatpush1.bf16.msra.mxu0 %v10653_v16 }
 0x33e   : > { %4780 = vmatmul.mubr.bf16.gmra.mrb[60].mxu1 %v4490_v31  ;;  %5500 = vmatprep.subr.bf16.mxu0 %v10938_v48  ;;  %v10655_v31 = vld [vmem:[%s13662_s5 + $0x18] sm:$0xff]  }
 0x33f   : > { %v4996_v34 = vld [vmem:[#allocation4 + $0x2] ss:$2 sm:$0xff]  ;;  %v5044_v36 = vld [vmem:[#allocation4 + $0x3] ss:$2 sm:$0xff] }
 0x340   : > { %v5027_v35 = vadd.f32 %v4996_v34, %v4979_v33  ;;  %v5092_v41 = vld [vmem:[#allocation4 + $0x4] ss:$2 sm:$0xff] }
 0x341   : > { %v4677_v37 = vpop.f32.mrb[8].mxu1  ;;  %v4918_v53 = vld [vmem:[#allocation4 + $0x10] ss:$2 sm:$0xff]  ;;  %v4950_v54 = vld [vmem:[#allocation4 + $0x11] ss:$2 sm:$0xff]  ;;  %5501 = vmatpush1.bf16.msra.mxu0 %v10654_v24 }
 0x342   : > { %v5075_v38 = vadd.f32 %v5044_v36, %v5027_v35  ;;  %v4678_v39 = vadd.f32 %v12660_v32, %v4677_v37  ;;  %v4679_v40 = vpop.f32.mrb[9].mxu1  ;;  %v4980_v55 = vadd.f32 %v4950_v54, %v4918_v53  ;;  %5502 = vmatprep.subr.bf16.mxu0 %v10938_v48  ;;  %v10656_v36 = vld [vmem:[%s13662_s5 + $0x20] sm:$0xff]   ;;  %v10658_v54 = vld [vmem:[%s13662_s5 + $0x30] sm:$0xff]  }
 0x343   : > { %v4680_v42 = vpop.f32.mrb[10].mxu1  ;;  %v10657_v40 = vld [vmem:[%s13662_s5 + $0x28] sm:$0xff]  }
 0x344   : > { %v5123_v43 = vadd.f32 %v5092_v41, %v5075_v38  ;;  %vm4792_vm10 = vcmp.gt.f32.partialorder %v4678_v39, 0.0  ;;  %v4824_v44 = vmul.f32 0.1, %v4678_v39  ;;  %v4681_v45 = vadd.f32 %v12660_v32, %v4680_v42  ;;  %v4682_v46 = vpop.f32.mrb[11].mxu1 }
 0x345   : > { %5503 = vmatpush1.bf16.msra.mxu0 %v10655_v31 }
 0x346   : > { %v5139_v47 = vmul.f32 0.2, %v5123_v43  ;;  %v4856_v49 = vsel %vm4792_vm10, %v4678_v39, %v4824_v44  ;;  %vm4793_vm11 = vcmp.gt.f32.partialorder %v4681_v45, 0.0  ;;  %v4825_v50 = vmul.f32 0.1, %v4681_v45  ;;  %5504 = vmatprep.subr.bf16.mxu0 %v10938_v48 }
 0x347   : > { %4888 = vst.msk [vmem:[#allocation4 + $0x20] sm:$0xff] %vm3528_vm7, %v4856_v49 }
 0x348   : > { %5173 = vst.msk [vmem:[#allocation5 + $0x2] sm:$0xff] %vm3528_vm7, %v5139_v47  ;;  %v4857_v52 = vsel %vm4793_vm11, %v4681_v45, %v4825_v50  ;;  %vm5171_vm11 = vcmask 254976  }
 0x349   : > { %4889 = vst.msk [vmem:[#allocation4 + $0x28] sm:$0xff] %vm3528_vm7, %v4857_v52  ;;  %5505 = vmatpush1.bf16.msra.mxu0 %v10656_v36 }
 0x34a   : > { %5506 = vmatprep.subr.bf16.mxu0 %v10938_v48  ;;  %5172 = vst.msk [vmem:[#allocation5 + $0x80] sm:$0x3] %vm5171_vm11, %v10933_v0 }
 0x34d   : > { %5507 = vmatpush1.bf16.msra.mxu0 %v10657_v40 }
 0x34e   : > { %v4998_v56 = vld [vmem:[#allocation4 + $0x12] ss:$2 sm:$0xff]  ;;  %v5046_v59 = vld [vmem:[#allocation4 + $0x13] ss:$2 sm:$0xff]  ;;  %5508 = vmatprep.subr.bf16.mxu0 %v10938_v48 }
 0x34f   : > { %v5028_v58 = vadd.f32 %v4998_v56, %v4980_v55  ;;  %v5094_v61 = vld [vmem:[#allocation4 + $0x14] ss:$2 sm:$0xff] }
 0x350   : > { %v4685_v60 = vpop.f32.mrb[12].mxu1  ;;  %v4920_v9 = vld [vmem:[#allocation4 + $0x20] ss:$2 sm:$0xff]  ;;  %v4952_v10 = vld [vmem:[#allocation4 + $0x21] ss:$2 sm:$0xff] }
 0x351   : > { %v5076_v62 = vadd.f32 %v5046_v59, %v5028_v58  ;;  %v4686_v1 = vadd.f32 %v12660_v32, %v4685_v60  ;;  %v4687_v57 = vpop.f32.mrb[13].mxu1  ;;  %v4981_v12 = vadd.f32 %v4952_v10, %v4920_v9  ;;  %5509 = vmatpush1.bf16.msra.mxu0 %v10658_v54  ;;  %v10659_v60 = vld [vmem:[%s13662_s5 + $0x38] sm:$0xff]  }
 0x352   : > { %v4688_v2 = vpop.f32.mrb[14].mxu1  ;;  %5510 = vmatprep.subr.bf16.mxu0 %v10938_v48  ;;  %v10660_v57 = vld [vmem:[%s13662_s5 + $0x40] sm:$0xff]  }
 0x353   : > { %v5124_v5 = vadd.f32 %v5094_v61, %v5076_v62  ;;  %vm4794_vm13 = vcmp.gt.f32.partialorder %v4686_v1, 0.0  ;;  %v4826_v3 = vmul.f32 0.1, %v4686_v1  ;;  %v4689_v51 = vadd.f32 %v12660_v32, %v4688_v2  ;;  %v4690_v63 = vpop.f32.mrb[15].mxu1 }
 0x355   : > { %v5140_v4 = vmul.f32 0.2, %v5124_v5  ;;  %v4858_v6 = vsel %vm4794_vm13, %v4686_v1, %v4826_v3  ;;  %vm4795_vm14 = vcmp.gt.f32.partialorder %v4689_v51, 0.0  ;;  %v4827_v7 = vmul.f32 0.1, %v4689_v51  ;;  %5511 = vmatpush1.bf16.msra.mxu0 %v10659_v60 }
 0x356   : > { %4890 = vst.msk [vmem:[#allocation4 + $0x30] sm:$0xff] %vm3528_vm7, %v4858_v6  ;;  %5512 = vmatprep.subr.bf16.mxu0 %v10938_v48 }
 0x357   : > { %5174 = vst.msk [vmem:[#allocation5 + $0xa] sm:$0xff] %vm3528_vm7, %v5140_v4  ;;  %v4859_v8 = vsel %vm4795_vm14, %v4689_v51, %v4827_v7 }
 0x358   : > { %4891 = vst.msk [vmem:[#allocation4 + $0x38] sm:$0xff] %vm3528_vm7, %v4859_v8 }
 0x359   : > { %5513 = vmatpush1.bf16.msra.mxu0 %v10660_v57 }
 0x35a   : > { %5514 = vmatprep.subr.bf16.mxu0 %v10938_v48 }
 0x35d   : > { %v5000_v13 = vld [vmem:[#allocation4 + $0x22] ss:$2 sm:$0xff]  ;;  %v5048_v15 = vld [vmem:[#allocation4 + $0x23] ss:$2 sm:$0xff]  ;;  %5515 = vmatpush1.bf16.msra.mxu0 %v10661_v11 }
 0x35e   : > { %v5029_v14 = vadd.f32 %v5000_v13, %v4981_v12  ;;  %v5096_v18 = vld [vmem:[#allocation4 + $0x24] ss:$2 sm:$0xff]  ;;  %v5206_v63 = vld [vmem:[#allocation5 + $0x1] ss:$2 sm:$0xff]  ;;  %9226 = vmatprep.subr.bf16.mxu0 %v10933_v0 }
 0x35f   : > { %v4922_v34 = vld [vmem:[#allocation4 + $0x30] ss:$2 sm:$0xff]  ;;  %v4954_v35 = vld [vmem:[#allocation4 + $0x31] ss:$2 sm:$0xff] }
 0x360   : > { %v5077_v17 = vadd.f32 %v5048_v15, %v5029_v14  ;;  %v4982_v37 = vadd.f32 %v4954_v35, %v4922_v34  ;;  %v5222_v5 = vld [vmem:[#allocation5 + $0x2] ss:$2 sm:$0xff]  ;;  %v5238_v48 = vld [vmem:[#allocation5 + $0x3] ss:$2 sm:$0xff] }
 0x361   : > { %v4693_v19 = vpop.f32.mrb[16].mxu1 }
 0x362   : > { %v5125_v20 = vadd.f32 %v5096_v18, %v5077_v17  ;;  %v4694_v21 = vadd.f32 %v12660_v32, %v4693_v19  ;;  %v4695_v22 = vpop.f32.mrb[17].mxu1 }
 0x363   : > { %v4696_v23 = vpop.f32.mrb[18].mxu1 }
 0x364   : > { %v5141_v25 = vmul.f32 0.2, %v5125_v20  ;;  %vm4796_vm15 = vcmp.gt.f32.partialorder %v4694_v21, 0.0  ;;  %v4828_v26 = vmul.f32 0.1, %v4694_v21  ;;  %v4697_v27 = vadd.f32 %v12660_v32, %v4696_v23  ;;  %v4698_v28 = vpop.f32.mrb[19].mxu1 }
 0x366   : > { %5175 = vst.msk [vmem:[#allocation5 + $0x12] sm:$0xff] %vm3528_vm7, %v5141_v25  ;;  %v4860_v29 = vsel %vm4796_vm15, %v4694_v21, %v4828_v26  ;;  %vm4797_vm0 = vcmp.gt.f32.partialorder %v4697_v27, 0.0  ;;  %v4829_v30 = vmul.f32 0.1, %v4697_v27 }
 0x367   : > { %4892 = vst.msk [vmem:[#allocation4 + $0x40] sm:$0xff] %vm3528_vm7, %v4860_v29 }
 0x368   : > { %v4861_v33 = vsel %vm4797_vm0, %v4697_v27, %v4829_v30 }
 0x369   : > { %4893 = vst.msk [vmem:[#allocation4 + $0x48] sm:$0xff] %vm3528_vm7, %v4861_v33 }
 0x36d   : > { %v5254_v29 = vld [vmem:[#allocation5 + $0x4] ss:$2 sm:$0xff] }
 0x36e   : > { %v5002_v38 = vld [vmem:[#allocation4 + $0x32] ss:$2 sm:$0xff]  ;;  %v5050_v41 = vld [vmem:[#allocation4 + $0x33] ss:$2 sm:$0xff] }
 0x36f   : > { %v5030_v39 = vadd.f32 %v5002_v38, %v4982_v37  ;;  %v5098_v46 = vld [vmem:[#allocation4 + $0x34] ss:$2 sm:$0xff] }
 0x370   : > { %v4701_v42 = vpop.f32.mrb[20].mxu1  ;;  %v4924_v62 = vld [vmem:[#allocation4 + $0x40] ss:$2 sm:$0xff]  ;;  %v4956_v1 = vld [vmem:[#allocation4 + $0x41] ss:$2 sm:$0xff] }
 0x371   : > { %v5078_v43 = vadd.f32 %v5050_v41, %v5030_v39  ;;  %v4702_v44 = vadd.f32 %v12660_v32, %v4701_v42  ;;  %v4703_v45 = vpop.f32.mrb[21].mxu1  ;;  %v4983_v61 = vadd.f32 %v4956_v1, %v4924_v62 }
 0x372   : > { %v4704_v47 = vpop.f32.mrb[22].mxu1 }
 0x373   : > { %v5126_v49 = vadd.f32 %v5098_v46, %v5078_v43  ;;  %vm4798_vm1 = vcmp.gt.f32.partialorder %v4702_v44, 0.0  ;;  %v4830_v50 = vmul.f32 0.1, %v4702_v44  ;;  %v4705_v52 = vadd.f32 %v12660_v32, %v4704_v47  ;;  %v4706_v53 = vpop.f32.mrb[23].mxu1 }
 0x375   : > { %v5142_v55 = vmul.f32 0.2, %v5126_v49  ;;  %v4862_v56 = vsel %vm4798_vm1, %v4702_v44, %v4830_v50  ;;  %vm4799_vm3 = vcmp.gt.f32.partialorder %v4705_v52, 0.0  ;;  %v4831_v58 = vmul.f32 0.1, %v4705_v52 }
 0x376   : > { %4894 = vst.msk [vmem:[#allocation4 + $0x50] sm:$0xff] %vm3528_vm7, %v4862_v56 }
 0x377   : > { %5176 = vst.msk [vmem:[#allocation5 + $0x1a] sm:$0xff] %vm3528_vm7, %v5142_v55  ;;  %v4863_v59 = vsel %vm4799_vm3, %v4705_v52, %v4831_v58 }
 0x378   : > { %4895 = vst.msk [vmem:[#allocation4 + $0x58] sm:$0xff] %vm3528_vm7, %v4863_v59 }
 0x37d   : > { %v5004_v2 = vld [vmem:[#allocation4 + $0x42] ss:$2 sm:$0xff]  ;;  %v5052_v6 = vld [vmem:[#allocation4 + $0x43] ss:$2 sm:$0xff] }
 0x37e   : > { %v5031_v3 = vadd.f32 %v5004_v2, %v4983_v61  ;;  %v5224_v51 = vld [vmem:[#allocation5 + $0x12] ss:$2 sm:$0xff]  ;;  %v5208_v4 = vld [vmem:[#allocation5 + $0x11] ss:$2 sm:$0xff] }
 0x37f   : > { %v10568_v7 = vpack.i.bf16 %v5224_v51, %v5222_v5  ;;  %v10563_v8 = vpack.i.bf16 %v5208_v4, %v5206_v63  ;;  %v5240_v10 = vld [vmem:[#allocation5 + $0x13] ss:$2 sm:$0xff]  ;;  %v5100_v12 = vld [vmem:[#allocation4 + $0x44] ss:$2 sm:$0xff] }
 0x380   : > { %v5079_v9 = vadd.f32 %v5052_v6, %v5031_v3  ;;  %v10573_v18 = vpack.i.bf16 %v5240_v10, %v5238_v48  ;;  %v4926_v26 = vld [vmem:[#allocation4 + $0x50] ss:$2 sm:$0xff]  ;;  %v4958_v27 = vld [vmem:[#allocation4 + $0x51] ss:$2 sm:$0xff] }
 0x381   : > { %v4709_v13 = vpop.f32.mrb[24].mxu1  ;;  %10569 = vrot.lane.b32.xlu1 %v10568_v7, %s13637_s19  ;;  %10564 = vrot.lane.b32.xlu0 %v10563_v8, %s13635_s23  ;;  %v4984_v28 = vadd.f32 %v4958_v27, %v4926_v26 }
 0x382   : > { %v5127_v14 = vadd.f32 %v5100_v12, %v5079_v9  ;;  %v4710_v15 = vadd.f32 %v12660_v32, %v4709_v13  ;;  %v4711_v16 = vpop.f32.mrb[25].mxu1 }
 0x383   : > { %v4712_v17 = vpop.f32.mrb[26].mxu1 }
 0x384   : > { %v5143_v19 = vmul.f32 0.2, %v5127_v14  ;;  %vm4800_vm4 = vcmp.gt.f32.partialorder %v4710_v15, 0.0  ;;  %v4832_v20 = vmul.f32 0.1, %v4710_v15  ;;  %v4713_v21 = vadd.f32 %v12660_v32, %v4712_v17  ;;  %v4714_v22 = vpop.f32.mrb[27].mxu1 }
 0x385   : > { %10574 = vrot.lane.b32.xlu0 %v10573_v18, %s10941_s26 }
 0x386   : > { %5177 = vst.msk [vmem:[#allocation5 + $0x22] sm:$0xff] %vm3528_vm7, %v5143_v19  ;;  %v4864_v23 = vsel %vm4800_vm4, %v4710_v15, %v4832_v20  ;;  %vm4801_vm5 = vcmp.gt.f32.partialorder %v4713_v21, 0.0  ;;  %v4833_v24 = vmul.f32 0.1, %v4713_v21 }
 0x387   : > { %4896 = vst.msk [vmem:[#allocation4 + $0x60] sm:$0xff] %vm3528_vm7, %v4864_v23 }
 0x388   : > { %v4865_v25 = vsel %vm4801_vm5, %v4713_v21, %v4833_v24 }
 0x389   : > { %4897 = vst.msk [vmem:[#allocation4 + $0x68] sm:$0xff] %vm3528_vm7, %v4865_v25 }
 0x38d   : > { %v5256_v30 = vld [vmem:[#allocation5 + $0x14] ss:$2 sm:$0xff] }
 0x38e   : > { %v5006_v31 = vld [vmem:[#allocation4 + $0x52] ss:$2 sm:$0xff]  ;;  %v5390_v33 = vpack.c.bf16 %v5256_v30, %v5254_v29  ;;  %v5054_v35 = vld [vmem:[#allocation4 + $0x53] ss:$2 sm:$0xff] }
 0x38f   : > { %v5032_v34 = vadd.f32 %v5006_v31, %v4984_v28  ;;  %v5102_v40 = vld [vmem:[#allocation4 + $0x54] ss:$2 sm:$0xff] }
 0x390   : > { %v4717_v36 = vpop.f32.mrb[28].mxu1  ;;  %8858 = vmatprep.mubr.msk.bf16.mxu0 %vm3528_vm7, %v5390_v33  ;;  %v4928_v52 = vld [vmem:[#allocation4 + $0x60] ss:$2 sm:$0xff]  ;;  %v4960_v53 = vld [vmem:[#allocation4 + $0x61] ss:$2 sm:$0xff] }
 0x391   : > { %v5080_v37 = vadd.f32 %v5054_v35, %v5032_v34  ;;  %v4718_v38 = vadd.f32 %v12660_v32, %v4717_v36  ;;  %v4719_v39 = vpop.f32.mrb[29].mxu1  ;;  %v4985_v54 = vadd.f32 %v4960_v53, %v4928_v52 }
 0x392   : > { %v4720_v41 = vpop.f32.mrb[30].mxu1 }
 0x393   : > { %v5128_v42 = vadd.f32 %v5102_v40, %v5080_v37  ;;  %vm4802_vm6 = vcmp.gt.f32.partialorder %v4718_v38, 0.0  ;;  %v4834_v43 = vmul.f32 0.1, %v4718_v38  ;;  %v4721_v44 = vadd.f32 %v12660_v32, %v4720_v41  ;;  %v4722_v45 = vpop.f32.mrb[31].mxu1 }
 0x395   : > { %v5144_v46 = vmul.f32 0.2, %v5128_v42  ;;  %v4866_v47 = vsel %vm4802_vm6, %v4718_v38, %v4834_v43  ;;  %vm4803_vm8 = vcmp.gt.f32.partialorder %v4721_v44, 0.0  ;;  %v4835_v49 = vmul.f32 0.1, %v4721_v44 }
 0x396   : > { %4898 = vst.msk [vmem:[#allocation4 + $0x70] sm:$0xff] %vm3528_vm7, %v4866_v47 }
 0x397   : > { %5178 = vst.msk [vmem:[#allocation5 + $0x2a] sm:$0xff] %vm3528_vm7, %v5144_v46  ;;  %v4867_v50 = vsel %vm4803_vm8, %v4721_v44, %v4835_v49 }
 0x398   : > { %4899 = vst.msk [vmem:[#allocation4 + $0x78] sm:$0xff] %vm3528_vm7, %v4867_v50 }
 0x39d   : > { %v5008_v55 = vld [vmem:[#allocation4 + $0x62] ss:$2 sm:$0xff]  ;;  %v5056_v58 = vld [vmem:[#allocation4 + $0x63] ss:$2 sm:$0xff] }
 0x39e   : > { %v5033_v56 = vadd.f32 %v5008_v55, %v4985_v54  ;;  %v5104_v62 = vld [vmem:[#allocation4 + $0x64] ss:$2 sm:$0xff]  ;;  %v5210_v31 = vld [vmem:[#allocation5 + $0x21] ss:$2 sm:$0xff] }
 0x39f   : > { %v4930_v8 = vld [vmem:[#allocation4 + $0x70] ss:$2 sm:$0xff]  ;;  %v4962_v9 = vld [vmem:[#allocation4 + $0x71] ss:$2 sm:$0xff] }
 0x3a0   : > { %v5081_v59 = vadd.f32 %v5056_v58, %v5033_v56  ;;  %v4725_v60 = vpop.f32.mrb[32].mxu1  ;;  %v4986_v10 = vadd.f32 %v4962_v9, %v4930_v8  ;;  %v5226_v35 = vld [vmem:[#allocation5 + $0x22] ss:$2 sm:$0xff]  ;;  %v5242_v47 = vld [vmem:[#allocation5 + $0x23] ss:$2 sm:$0xff] }
 0x3a1   : > { %v4726_v1 = vadd.f32 %v12660_v32, %v4725_v60  ;;  %v4727_v57 = vpop.f32.mrb[33].mxu1 }
 0x3a2   : > { %v5129_v61 = vadd.f32 %v5104_v62, %v5081_v59  ;;  %v4728_v2 = vpop.f32.mrb[34].mxu1 }
 0x3a3   : > { %vm4804_vm9 = vcmp.gt.f32.partialorder %v4726_v1, 0.0  ;;  %v4836_v5 = vmul.f32 0.1, %v4726_v1  ;;  %v4729_v3 = vadd.f32 %v12660_v32, %v4728_v2  ;;  %v4730_v51 = vpop.f32.mrb[35].mxu1 }
 0x3a4   : > { %v5145_v63 = vmul.f32 0.2, %v5129_v61 }
 0x3a5   : > { %v4868_v4 = vsel %vm4804_vm9, %v4726_v1, %v4836_v5  ;;  %vm4805_vm10 = vcmp.gt.f32.partialorder %v4729_v3, 0.0  ;;  %v4837_v6 = vmul.f32 0.1, %v4729_v3 }
 0x3a6   : > { %5179 = vst.msk [vmem:[#allocation5 + $0x32] sm:$0xff] %vm3528_vm7, %v5145_v63  ;;  %4900 = vst.msk [vmem:[#allocation4 + $0x80] sm:$0xff] %vm3528_vm7, %v4868_v4 }
 0x3a7   : > { %v4869_v7 = vsel %vm4805_vm10, %v4729_v3, %v4837_v6 }
 0x3a8   : > { %4901 = vst.msk [vmem:[#allocation4 + $0x88] sm:$0xff] %vm3528_vm7, %v4869_v7 }
 0x3ad   : > { %v5010_v11 = vld [vmem:[#allocation4 + $0x72] ss:$2 sm:$0xff]  ;;  %v5058_v13 = vld [vmem:[#allocation4 + $0x73] ss:$2 sm:$0xff] }
 0x3ae   : > { %v5034_v12 = vadd.f32 %v5010_v11, %v4986_v10  ;;  %v5106_v17 = vld [vmem:[#allocation4 + $0x74] ss:$2 sm:$0xff] }
 0x3af   : > { %v4733_v14 = vpop.f32.mrb[36].mxu1  ;;  %v4932_v27 = vld [vmem:[#allocation4 + $0x80] ss:$2 sm:$0xff]  ;;  %v4964_v28 = vld [vmem:[#allocation4 + $0x81] ss:$2 sm:$0xff] }
 0x3b0   : > { %v5082_v15 = vadd.f32 %v5058_v13, %v5034_v12  ;;  %v4734_v16 = vadd.f32 %v12660_v32, %v4733_v14  ;;  %v4735_v48 = vpop.f32.mrb[37].mxu1  ;;  %v4987_v29 = vadd.f32 %v4964_v28, %v4932_v27 }
 0x3b1   : > { %v4736_v18 = vpop.f32.mrb[38].mxu1 }
 0x3b2   : > { %v5130_v19 = vadd.f32 %v5106_v17, %v5082_v15  ;;  %vm4806_vm13 = vcmp.gt.f32.partialorder %v4734_v16, 0.0  ;;  %v4838_v20 = vmul.f32 0.1, %v4734_v16  ;;  %v4737_v21 = vadd.f32 %v12660_v32, %v4736_v18  ;;  %v4738_v22 = vpop.f32.mrb[39].mxu1 }
 0x3b4   : > { %v5146_v23 = vmul.f32 0.2, %v5130_v19  ;;  %v4870_v24 = vsel %vm4806_vm13, %v4734_v16, %v4838_v20  ;;  %vm4807_vm14 = vcmp.gt.f32.partialorder %v4737_v21, 0.0  ;;  %v4839_v25 = vmul.f32 0.1, %v4737_v21 }
 0x3b5   : > { %4902 = vst.msk [vmem:[#allocation4 + $0x90] sm:$0xff] %vm3528_vm7, %v4870_v24 }
 0x3b6   : > { %5180 = vst.msk [vmem:[#allocation5 + $0x3a] sm:$0xff] %vm3528_vm7, %v5146_v23  ;;  %v4871_v26 = vsel %vm4807_vm14, %v4737_v21, %v4839_v25  ;;  %vm5188_vm14 = vcmask 259072  }
 0x3b7   : > { %4903 = vst.msk [vmem:[#allocation4 + $0x98] sm:$0xff] %vm3528_vm7, %v4871_v26 }
 0x3bc   : > { %v5012_v30 = vld [vmem:[#allocation4 + $0x82] ss:$2 sm:$0xff]  ;;  %v5060_v37 = vld [vmem:[#allocation4 + $0x83] ss:$2 sm:$0xff] }
 0x3bd   : > { %v5035_v33 = vadd.f32 %v5012_v30, %v4987_v29  ;;  %v5212_v34 = vld [vmem:[#allocation5 + $0x31] ss:$2 sm:$0xff]  ;;  %v5228_v36 = vld [vmem:[#allocation5 + $0x32] ss:$2 sm:$0xff] }
 0x3be   : > { %v10578_v38 = vpack.i.bf16 %v5212_v34, %v5210_v31  ;;  %v10583_v39 = vpack.i.bf16 %v5228_v36, %v5226_v35  ;;  %v5244_v41 = vld [vmem:[#allocation5 + $0x33] ss:$2 sm:$0xff]  ;;  %v5108_v42 = vld [vmem:[#allocation4 + $0x84] ss:$2 sm:$0xff] }
 0x3bf   : > { %v5083_v40 = vadd.f32 %v5060_v37, %v5035_v33  ;;  %v10588_v50 = vpack.i.bf16 %v5244_v41, %v5242_v47  ;;  %v4934_v60 = vld [vmem:[#allocation4 + $0x90] ss:$2 sm:$0xff]  ;;  %v4966_v62 = vld [vmem:[#allocation4 + $0x91] ss:$2 sm:$0xff] }
 0x3c0   : > { %v4741_v43 = vpop.f32.mrb[40].mxu1  ;;  %10579 = vrot.lane.b32.xlu1 %v10578_v38, %s13635_s23  ;;  %10584 = vrot.lane.b32.xlu0 %v10583_v39, %s13637_s19  ;;  %v4988_v1 = vadd.f32 %v4966_v62, %v4934_v60 }
 0x3c1   : > { %v5131_v44 = vadd.f32 %v5108_v42, %v5083_v40  ;;  %v4742_v45 = vadd.f32 %v12660_v32, %v4741_v43  ;;  %v4743_v46 = vpop.f32.mrb[41].mxu1 }
 0x3c2   : > { %v4744_v49 = vpop.f32.mrb[42].mxu1 }
 0x3c3   : > { %v5147_v52 = vmul.f32 0.2, %v5131_v44  ;;  %vm4808_vm15 = vcmp.gt.f32.partialorder %v4742_v45, 0.0  ;;  %v4840_v53 = vmul.f32 0.1, %v4742_v45  ;;  %v4745_v54 = vadd.f32 %v12660_v32, %v4744_v49  ;;  %v4746_v55 = vpop.f32.mrb[43].mxu1 }
 0x3c4   : > { %10589 = vrot.lane.b32.xlu1 %v10588_v50, %s10941_s26 }
 0x3c5   : > { %5181 = vst.msk [vmem:[#allocation5 + $0x42] sm:$0xff] %vm3528_vm7, %v5147_v52  ;;  %v4872_v56 = vsel %vm4808_vm15, %v4742_v45, %v4840_v53  ;;  %vm4809_vm0 = vcmp.gt.f32.partialorder %v4745_v54, 0.0  ;;  %v4841_v58 = vmul.f32 0.1, %v4745_v54 }
 0x3c6   : > { %4904 = vst.msk [vmem:[#allocation4 + $0xa0] sm:$0xff] %vm3528_vm7, %v4872_v56 }
 0x3c7   : > { %v4873_v59 = vsel %vm4809_vm0, %v4745_v54, %v4841_v58 }
 0x3c8   : > { %4905 = vst.msk [vmem:[#allocation4 + $0xa8] sm:$0xff] %vm3528_vm7, %v4873_v59 }
 0x3cd   : > { %v5014_v57 = vld [vmem:[#allocation4 + $0x92] ss:$2 sm:$0xff]  ;;  %v5062_v2 = vld [vmem:[#allocation4 + $0x93] ss:$2 sm:$0xff] }
 0x3ce   : > { %v5036_v61 = vadd.f32 %v5014_v57, %v4988_v1  ;;  %v5110_v4 = vld [vmem:[#allocation4 + $0x94] ss:$2 sm:$0xff] }
 0x3cf   : > { %v4749_v5 = vpop.f32.mrb[44].mxu1  ;;  %v4936_v15 = vld [vmem:[#allocation4 + $0xa0] ss:$2 sm:$0xff]  ;;  %v4968_v16 = vld [vmem:[#allocation4 + $0xa1] ss:$2 sm:$0xff] }
 0x3d0   : > { %v5084_v3 = vadd.f32 %v5062_v2, %v5036_v61  ;;  %v4750_v51 = vadd.f32 %v12660_v32, %v4749_v5  ;;  %v4751_v63 = vpop.f32.mrb[45].mxu1  ;;  %v4989_v48 = vadd.f32 %v4968_v16, %v4936_v15  ;;  %v5192_v61 = vld [vmem:[#allocation5 + $0x10] ss:$2 sm:$0xff]  ;;  %v5190_v2 = vld [vmem:[#allocation5] ss:$2 sm:$0xff] }
 0x3d1   : > { %v4752_v6 = vpop.f32.mrb[46].mxu1  ;;  %v5258_v15 = vld [vmem:[#allocation5 + $0x24] ss:$2 sm:$0xff] }
 0x3d2   : > { %v5132_v7 = vadd.f32 %v5110_v4, %v5084_v3  ;;  %vm4810_vm1 = vcmp.gt.f32.partialorder %v4750_v51, 0.0  ;;  %v4842_v8 = vmul.f32 0.1, %v4750_v51  ;;  %v4753_v9 = vadd.f32 %v12660_v32, %v4752_v6  ;;  %v4754_v10 = vpop.f32.mrb[47].mxu1 }
 0x3d3   : > { %v5260_v10 = vld [vmem:[#allocation5 + $0x34] ss:$2 sm:$0xff] }
 0x3d4   : > { %v5148_v11 = vmul.f32 0.2, %v5132_v7  ;;  %v4874_v12 = vsel %vm4810_vm1, %v4750_v51, %v4842_v8  ;;  %vm4811_vm3 = vcmp.gt.f32.partialorder %v4753_v9, 0.0  ;;  %v4843_v13 = vmul.f32 0.1, %v4753_v9 }
 0x3d5   : > { %4906 = vst.msk [vmem:[#allocation4 + $0xb0] sm:$0xff] %vm3528_vm7, %v4874_v12 }
 0x3d6   : > { %5182 = vst.msk [vmem:[#allocation5 + $0x4a] sm:$0xff] %vm3528_vm7, %v5148_v11  ;;  %v4875_v14 = vsel %vm4811_vm3, %v4753_v9, %v4843_v13  ;;  %vm5657_vm3 = vcmask 517120  }
 0x3d7   : > { %4907 = vst.msk [vmem:[#allocation4 + $0xb8] sm:$0xff] %vm3528_vm7, %v4875_v14 }
 0x3d8   : > { %5658 = vst.msk [vmem:[#allocation7 + $0x20] sm:$0x3] %vm5657_vm3, %v10933_v0  ;;  %vm6545_vm3 = vcmask 123905  }
 0x3dc   : > { %v5016_v17 = vld [vmem:[#allocation4 + $0xa2] ss:$2 sm:$0xff]  ;;  %v5064_v19 = vld [vmem:[#allocation4 + $0xa3] ss:$2 sm:$0xff] }
 0x3dd   : > { %v5037_v18 = vadd.f32 %v5016_v17, %v4989_v48  ;;  %v5112_v21 = vld [vmem:[#allocation4 + $0xa4] ss:$2 sm:$0xff]  ;;  %v5392_v48 = vpack.c.bf16 %v5260_v10, %v5258_v15 }
 0x3de   : > { %v4938_v35 = vld [vmem:[#allocation4 + $0xb0] ss:$2 sm:$0xff]  ;;  %v4970_v36 = vld [vmem:[#allocation4 + $0xb1] ss:$2 sm:$0xff] }
 0x3df   : > { %v5085_v20 = vadd.f32 %v5064_v19, %v5037_v18  ;;  %v4990_v37 = vadd.f32 %v4970_v36, %v4938_v35  ;;  %v5230_v17 = vld [vmem:[#allocation5 + $0x42] ss:$2 sm:$0xff] }
 0x3e0   : > { %v4757_v22 = vpop.f32.mrb[48].mxu1 }
 0x3e1   : > { %v5133_v23 = vadd.f32 %v5112_v21, %v5085_v20  ;;  %v4758_v24 = vadd.f32 %v12660_v32, %v4757_v22  ;;  %v4759_v25 = vpop.f32.mrb[49].mxu1  ;;  %v5214_v20 = vld [vmem:[#allocation5 + $0x41] ss:$2 sm:$0xff] }
 0x3e2   : > { %v4760_v26 = vpop.f32.mrb[50].mxu1 }
 0x3e3   : > { %v5149_v27 = vmul.f32 0.2, %v5133_v23  ;;  %vm4812_vm4 = vcmp.gt.f32.partialorder %v4758_v24, 0.0  ;;  %v4844_v28 = vmul.f32 0.1, %v4758_v24  ;;  %v4761_v29 = vadd.f32 %v12660_v32, %v4760_v26  ;;  %v4762_v30 = vpop.f32.mrb[51].mxu1 }
 0x3e4   : > { %v5246_v30 = vld [vmem:[#allocation5 + $0x43] ss:$2 sm:$0xff] }
 0x3e5   : > { %5183 = vst.msk [vmem:[#allocation5 + $0x52] sm:$0xff] %vm3528_vm7, %v5149_v27  ;;  %v4876_v31 = vsel %vm4812_vm4, %v4758_v24, %v4844_v28  ;;  %vm4813_vm5 = vcmp.gt.f32.partialorder %v4761_v29, 0.0  ;;  %v4845_v33 = vmul.f32 0.1, %v4761_v29  ;;  %vm10942_vm4 = vmmov 0  }
 0x3e6   : > { %4908 = vst.msk [vmem:[#allocation4 + $0xc0] sm:$0xff] %vm3528_vm7, %v4876_v31 }
 0x3e7   : > { %v4877_v34 = vsel %vm4813_vm5, %v4761_v29, %v4845_v33 }
 0x3e8   : > { %4909 = vst.msk [vmem:[#allocation4 + $0xc8] sm:$0xff] %vm3528_vm7, %v4877_v34 }
 0x3ed   : > { %v5018_v38 = vld [vmem:[#allocation4 + $0xb2] ss:$2 sm:$0xff]  ;;  %v5066_v40 = vld [vmem:[#allocation4 + $0xb3] ss:$2 sm:$0xff] }
 0x3ee   : > { %v5038_v39 = vadd.f32 %v5018_v38, %v4990_v37  ;;  %v5114_v45 = vld [vmem:[#allocation4 + $0xb4] ss:$2 sm:$0xff] }
 0x3ef   : > { %v4765_v41 = vpop.f32.mrb[52].mxu1  ;;  %v4940_v63 = vld [vmem:[#allocation4 + $0xc0] ss:$2 sm:$0xff]  ;;  %v4972_v4 = vld [vmem:[#allocation4 + $0xc1] ss:$2 sm:$0xff] }
 0x3f0   : > { %v5086_v42 = vadd.f32 %v5066_v40, %v5038_v39  ;;  %v4766_v43 = vadd.f32 %v12660_v32, %v4765_v41  ;;  %v4767_v44 = vpop.f32.mrb[53].mxu1  ;;  %v4991_v13 = vadd.f32 %v4972_v4, %v4940_v63 }
 0x3f1   : > { %v4768_v46 = vpop.f32.mrb[54].mxu1 }
 0x3f2   : > { %v5134_v47 = vadd.f32 %v5114_v45, %v5086_v42  ;;  %vm4814_vm6 = vcmp.gt.f32.partialorder %v4766_v43, 0.0  ;;  %v4846_v49 = vmul.f32 0.1, %v4766_v43  ;;  %v4769_v50 = vadd.f32 %v12660_v32, %v4768_v46  ;;  %v4770_v52 = vpop.f32.mrb[55].mxu1 }
 0x3f3   : > { %v10570_v53 = vpop.permute.xlu1 %10569  ;;  %v10565_v54 = vpop.permute.xlu0 %10564 }
 0x3f4   : > { %v5150_v55 = vmul.f32 0.2, %v5134_v47  ;;  %v4878_v56 = vsel %vm4814_vm6, %v4766_v43, %v4846_v49  ;;  %vm4815_vm8 = vcmp.gt.f32.partialorder %v4769_v50, 0.0  ;;  %v4847_v58 = vmul.f32 0.1, %v4769_v50 }
 0x3f5   : > { %4910 = vst.msk [vmem:[#allocation4 + $0xd0] sm:$0xff] %vm3528_vm7, %v4878_v56  ;;  %v10572_v59 = vunpack.i.h.bf16 %v10570_v53  ;;  %v10571_v60 = vunpack.i.l.bf16 %v10570_v53  ;;  %v10567_v62 = vunpack.i.h.bf16 %v10565_v54  ;;  %v10566_v1 = vunpack.i.l.bf16 %v10565_v54 }
 0x3f6   : > { %5184 = vst.msk [vmem:[#allocation5 + $0x5a] sm:$0xff] %vm3528_vm7, %v5150_v55  ;;  %v4879_v57 = vsel %vm4815_vm8, %v4769_v50, %v4847_v58 }
 0x3f7   : > { %4911 = vst.msk [vmem:[#allocation4 + $0xd8] sm:$0xff] %vm3528_vm7, %v4879_v57  ;;  %v5366_v5 = vsel %vm3528_vm7, %v5192_v61, %v10567_v62  ;;  %v5365_v3 = vsel %vm3528_vm7, %v5190_v2, %v10566_v1  ;;  %v10575_v51 = vpop.permute.xlu0 %10574 }
 0x3f8   : > { %v10577_v6 = vunpack.i.h.bf16 %v10575_v51  ;;  %v10576_v7 = vunpack.i.l.bf16 %v10575_v51  ;;  %v5373_v8 = vsel %vm4394_vm12, %v5365_v3, %v10571_v60  ;;  %v5374_v9 = vsel %vm4394_vm12, %v5366_v5, %v10572_v59 }
 0x3fa   : > { %v5381_v11 = vsel %vm4427_vm2, %v5373_v8, %v10576_v7  ;;  %v5382_v12 = vsel %vm4427_vm2, %v5374_v9, %v10577_v6 }
 0x3fb   : > { %v5389_v14 = vpack.c.bf16 %v5382_v12, %v5381_v11 }
 0x3fc   : > { %v5020_v16 = vld [vmem:[#allocation4 + $0xc2] ss:$2 sm:$0xff]  ;;  %v5068_v22 = vld [vmem:[#allocation4 + $0xc3] ss:$2 sm:$0xff] }
 0x3fd   : > { %v5039_v18 = vadd.f32 %v5020_v16, %v4991_v13  ;;  %5529 = vmatmul.mubr.bf16.vlgmr.msra.gmra.mrb[64].mxu0 %v5389_v14  ;;  %v5232_v19 = vld [vmem:[#allocation5 + $0x52] ss:$2 sm:$0xff]  ;;  %v5216_v21 = vld [vmem:[#allocation5 + $0x51] ss:$2 sm:$0xff] }
 0x3fe   : > { %8859 = vmatprep.mubr.msk.bf16.mxu0 %vm3528_vm7, %v5392_v48  ;;  %v10598_v23 = vpack.i.bf16 %v5232_v19, %v5230_v17  ;;  %v10593_v24 = vpack.i.bf16 %v5216_v21, %v5214_v20  ;;  %v5248_v26 = vld [vmem:[#allocation5 + $0x53] ss:$2 sm:$0xff]  ;;  %v5116_v27 = vld [vmem:[#allocation4 + $0xc4] ss:$2 sm:$0xff] }
 0x3ff   : > { %v5087_v25 = vadd.f32 %v5068_v22, %v5039_v18  ;;  %v10603_v34 = vpack.i.bf16 %v5248_v26, %v5246_v30  ;;  %v4942_v43 = vld [vmem:[#allocation4 + $0xd0] ss:$2 sm:$0xff]  ;;  %v4974_v44 = vld [vmem:[#allocation4 + $0xd1] ss:$2 sm:$0xff] }
 0x400   : > { %10599 = vrot.lane.b32.xlu1 %v10598_v23, %s13637_s19  ;;  %10594 = vrot.lane.b32.xlu0 %v10593_v24, %s13635_s23  ;;  %v4992_v45 = vadd.f32 %v4974_v44, %v4942_v43 }
 0x401   : > { %v5135_v28 = vadd.f32 %v5116_v27, %v5087_v25  ;;  %v4773_v29 = vpop.f32.mrb[56].mxu1  ;;  %v5194_v27 = vld [vmem:[#allocation5 + $0x20] ss:$2 sm:$0xff] }
 0x402   : > { %v4774_v31 = vadd.f32 %v12660_v32, %v4773_v29  ;;  %v4775_v33 = vpop.f32.mrb[57].mxu1 }
 0x403   : > { %v5151_v35 = vmul.f32 0.2, %v5135_v28  ;;  %v4776_v36 = vpop.f32.mrb[58].mxu1  ;;  %v5196_v28 = vld [vmem:[#allocation5 + $0x30] ss:$2 sm:$0xff] }
 0x404   : > { %vm4816_vm9 = vcmp.gt.f32.partialorder %v4774_v31, 0.0  ;;  %v4848_v37 = vmul.f32 0.1, %v4774_v31  ;;  %v4777_v38 = vadd.f32 %v12660_v32, %v4776_v36  ;;  %v4778_v39 = vpop.f32.mrb[59].mxu1  ;;  %10604 = vrot.lane.b32.xlu0 %v10603_v34, %s10941_s26 }
 0x405   : > { %5185 = vst.msk [vmem:[#allocation5 + $0x62] sm:$0xff] %vm3528_vm7, %v5151_v35 }
 0x406   : > { %v4880_v40 = vsel %vm4816_vm9, %v4774_v31, %v4848_v37  ;;  %vm4817_vm10 = vcmp.gt.f32.partialorder %v4777_v38, 0.0  ;;  %v4849_v41 = vmul.f32 0.1, %v4777_v38 }
 0x407   : > { %4912 = vst.msk [vmem:[#allocation4 + $0xe0] sm:$0xff] %vm3528_vm7, %v4880_v40 }
 0x408   : > { %v4881_v42 = vsel %vm4817_vm10, %v4777_v38, %v4849_v41  ;;  %vm5592_vm10 = vcmask 522240  }
 0x409   : > { %4913 = vst.msk [vmem:[#allocation4 + $0xe8] sm:$0xff] %vm3528_vm7, %v4881_v42 }
 0x40c   : > { %v5264_v44 = vld [vmem:[#allocation5 + $0x54] ss:$2 sm:$0xff] }
 0x40e   : > { %v5022_v46 = vld [vmem:[#allocation4 + $0xd2] ss:$2 sm:$0xff]  ;;  %v5070_v49 = vld [vmem:[#allocation4 + $0xd3] ss:$2 sm:$0xff] }
 0x40f   : > { %v5040_v47 = vadd.f32 %v5022_v46, %v4992_v45  ;;  %v5118_v52 = vld [vmem:[#allocation4 + $0xd4] ss:$2 sm:$0xff] }
 0x410   : > { %v4944_v5 = vld [vmem:[#allocation4 + $0xe0] ss:$2 sm:$0xff]  ;;  %v4976_v3 = vld [vmem:[#allocation4 + $0xe1] ss:$2 sm:$0xff] }
 0x411   : > { %v5088_v50 = vadd.f32 %v5070_v49, %v5040_v47  ;;  %v4781_v53 = vpop.f32.mrb[60].mxu1  ;;  %v4993_v51 = vadd.f32 %v4976_v3, %v4944_v5  ;;  %v5262_v49 = vld [vmem:[#allocation5 + $0x44] ss:$2 sm:$0xff] }
 0x412   : > { %v4782_v55 = vadd.f32 %v12660_v32, %v4781_v53  ;;  %v4783_v56 = vpop.f32.mrb[61].mxu1 }
 0x413   : > { %v5136_v54 = vadd.f32 %v5118_v52, %v5088_v50  ;;  %v4784_v58 = vpop.f32.mrb[62].mxu1  ;;  %v5394_v50 = vpack.c.bf16 %v5264_v44, %v5262_v49 }
 0x414   : > { %vm4818_vm11 = vcmp.gt.f32.partialorder %v4782_v55, 0.0  ;;  %v4850_v60 = vmul.f32 0.1, %v4782_v55  ;;  %v4785_v62 = vadd.f32 %v12660_v32, %v4784_v58  ;;  %v4786_v1 = vpop.f32.mrb[63].mxu1 }
 0x415   : > { %v5152_v59 = vmul.f32 0.2, %v5136_v54 }
 0x416   : > { %v4882_v57 = vsel %vm4818_vm11, %v4782_v55, %v4850_v60  ;;  %vm4819_vm13 = vcmp.gt.f32.partialorder %v4785_v62, 0.0  ;;  %v4851_v61 = vmul.f32 0.1, %v4785_v62  ;;  %v5200_v60 = vld [vmem:[#allocation5 + $0x50] ss:$2 sm:$0xff]  ;;  %vm5662_vm11 = vcmask 521216  }
 0x417   : > { %5186 = vst.msk [vmem:[#allocation5 + $0x6a] sm:$0xff] %vm3528_vm7, %v5152_v59  ;;  %4914 = vst.msk [vmem:[#allocation4 + $0xf0] sm:$0xff] %vm3528_vm7, %v4882_v57  ;;  %v5198_v59 = vld [vmem:[#allocation5 + $0x40] ss:$2 sm:$0xff] }
 0x418   : > { %v4883_v2 = vsel %vm4819_vm13, %v4785_v62, %v4851_v61  ;;  %vm5966_vm13 = vcmask 518144  }
 0x419   : > { %4915 = vst.msk [vmem:[#allocation4 + $0xf8] sm:$0xff] %vm3528_vm7, %v4883_v2 }
 0x41a   : > { %5967 = vst.msk [vmem:[#allocation8 + $0x10] sm:$0x7] %vm5966_vm13, %v10933_v0  ;;  %vm7009_vm13 = vcmask 259205  }
 0x41e   : > { %v5024_v63 = vld [vmem:[#allocation4 + $0xe2] ss:$2 sm:$0xff]  ;;  %v5072_v6 = vld [vmem:[#allocation4 + $0xe3] ss:$2 sm:$0xff] }
 0x41f   : > { %v5041_v4 = vadd.f32 %v5024_v63, %v4993_v51  ;;  %v5120_v10 = vld [vmem:[#allocation4 + $0xe4] ss:$2 sm:$0xff]  ;;  %v5218_v21 = vld [vmem:[#allocation5 + $0x61] ss:$2 sm:$0xff] }
 0x420   : > { %v4946_v7 = vld [vmem:[#allocation4 + $0xf0] ss:$2 sm:$0x3f]  ;;  %v4978_v8 = vld [vmem:[#allocation4 + $0xf1] ss:$2 sm:$0x3f] }
 0x421   : > { %v5089_v32 = vadd.f32 %v5072_v6, %v5041_v4  ;;  %v4994_v9 = vadd.f32 %v4978_v8, %v4946_v7  ;;  %v5026_v11 = vld [vmem:[#allocation4 + $0xf2] ss:$2 sm:$0x3f]  ;;  %v5074_v14 = vld [vmem:[#allocation4 + $0xf3] ss:$2 sm:$0x3f] }
 0x422   : > { %v5122_v48 = vld [vmem:[#allocation4 + $0xf4] ss:$2 sm:$0x3f]  ;;  %v5234_v22 = vld [vmem:[#allocation5 + $0x62] ss:$2 sm:$0xff] }
 0x423   : > { %v5137_v12 = vadd.f32 %v5120_v10, %v5089_v32  ;;  %v5042_v13 = vadd.f32 %v5026_v11, %v4994_v9  ;;  %v5250_v40 = vld [vmem:[#allocation5 + $0x63] ss:$2 sm:$0xff] }
 0x425   : > { %v5153_v15 = vmul.f32 0.2, %v5137_v12  ;;  %v5090_v16 = vadd.f32 %v5074_v14, %v5042_v13  ;;  %v5202_v12 = vld [vmem:[#allocation5 + $0x60] ss:$2 sm:$0xff] }
 0x427   : > { %5187 = vst.msk [vmem:[#allocation5 + $0x72] sm:$0xff] %vm3528_vm7, %v5153_v15  ;;  %v5138_v17 = vadd.f32 %v5122_v48, %v5090_v16 }
 0x429   : > { %v5154_v18 = vmul.f32 0.2, %v5138_v17 }
 0x42b   : > { %5189 = vst.msk [vmem:[#allocation5 + $0x7a] sm:$0x3f] %vm5188_vm14, %v5154_v18 }
 0x42e   : > { %v5266_v7 = vld [vmem:[#allocation5 + $0x64] ss:$2 sm:$0xff] }
 0x432   : > { %v10580_v19 = vpop.permute.xlu1 %10579  ;;  %v10585_v20 = vpop.permute.xlu0 %10584  ;;  %v5220_v25 = vld [vmem:[#allocation5 + $0x71] ss:$2 sm:$0x7f]  ;;  %v5236_v26 = vld [vmem:[#allocation5 + $0x72] ss:$2 sm:$0x7f] }
 0x433   : > { %v10582_v23 = vunpack.i.h.bf16 %v10580_v19  ;;  %v10581_v24 = vunpack.i.l.bf16 %v10580_v19  ;;  %v10587_v29 = vunpack.i.h.bf16 %v10585_v20  ;;  %v10586_v30 = vunpack.i.l.bf16 %v10585_v20  ;;  %v5252_v36 = vld [vmem:[#allocation5 + $0x73] ss:$2 sm:$0x7f]  ;;  %v5268_v51 = vld [vmem:[#allocation5 + $0x74] ss:$2 sm:$0x7f] }
 0x434   : > { %v10608_v31 = vpack.i.bf16 %v5220_v25, %v5218_v21  ;;  %v10613_v33 = vpack.i.bf16 %v5236_v26, %v5234_v22  ;;  %v10618_v43 = vpack.i.bf16 %v5252_v36, %v5250_v40  ;;  %v5396_v8 = vpack.c.bf16 %v5268_v51, %v5266_v7  ;;  %v5204_v13 = vld [vmem:[#allocation5 + $0x70] ss:$2 sm:$0x7f]  ;;  %v10670_v51 = vld [vmem:[%s13616_s7 + $0x50] sm:$0xff]  }
 0x435   : > { %v5368_v34 = vsel %vm3528_vm7, %v5196_v28, %v10582_v23  ;;  %v5367_v35 = vsel %vm3528_vm7, %v5194_v27, %v10581_v24  ;;  %v12838_v25 = vld [vmem:[%s13663_s6] ss:$0 sm:$0xff] }
 0x436   : > { %10609 = vrot.lane.b32.xlu1 %v10608_v31, %s13635_s23  ;;  %10614 = vrot.lane.b32.xlu0 %v10613_v33, %s13637_s19  ;;  %v10590_v37 = vpop.permute.xlu1 %10589  ;;  %v5376_v41 = vsel %vm4394_vm12, %v5368_v34, %v10587_v29  ;;  %v5375_v42 = vsel %vm4394_vm12, %v5367_v35, %v10586_v30  ;;  %v10674_v7 = vld [vmem:[%s13616_s7 + $0x60] sm:$0xff]   ;;  %s13664_s19 = smov 64  }
 0x437   : > { %v10592_v38 = vunpack.i.h.bf16 %v10590_v37  ;;  %v10591_v39 = vunpack.i.l.bf16 %v10590_v37 }
 0x439   : > { %v5383_v45 = vsel %vm4427_vm2, %v5375_v42, %v10591_v39  ;;  %v5384_v46 = vsel %vm4427_vm2, %v5376_v41, %v10592_v38 }
 0x43a   : > { %10619 = vrot.lane.b32.xlu1 %v10618_v43, %s10941_s26  ;;  %v5391_v47 = vpack.c.bf16 %v5384_v46, %v5383_v45 }
 0x43c   : > { %5537 = vmatmul.mubr.bf16.gmra.mrb[68].mxu0 %v5391_v47 }
 0x43d   : > { %8860 = vmatprep.mubr.msk.bf16.mxu0 %vm3528_vm7, %v5394_v50 }
 0x472   : > { %v10600_v52 = vpop.permute.xlu1 %10599  ;;  %v10595_v53 = vpop.permute.xlu0 %10594 }
 0x473   : > { %v10597_v54 = vunpack.i.h.bf16 %v10595_v53  ;;  %v10596_v55 = vunpack.i.l.bf16 %v10595_v53  ;;  %v10602_v56 = vunpack.i.h.bf16 %v10600_v52  ;;  %v10601_v58 = vunpack.i.l.bf16 %v10600_v52 }
 0x475   : > { %v5370_v62 = vsel %vm3528_vm7, %v5200_v60, %v10597_v54  ;;  %v5369_v1 = vsel %vm3528_vm7, %v5198_v59, %v10596_v55  ;;  %v10662_v55 = vld [vmem:[%s13616_s7 + $0x80] sm:$0xff]  }
 0x476   : > { %v10605_v57 = vpop.permute.xlu0 %10604  ;;  %v5377_v5 = vsel %vm4394_vm12, %v5369_v1, %v10601_v58  ;;  %v5378_v3 = vsel %vm4394_vm12, %v5370_v62, %v10602_v56  ;;  %v10664_v58 = vld [vmem:[%s13616_s7 + $0x40] sm:$0xff]   ;;  %9227 = vmatpush3.bf16.msra.mxu0 %v10662_v55  ;;  %v10663_v62 = vld [vmem:[%s13616_s7 + $0x88] sm:$0xff]  }
 0x477   : > { %v10607_v61 = vunpack.i.h.bf16 %v10605_v57  ;;  %v10606_v2 = vunpack.i.l.bf16 %v10605_v57  ;;  %v10665_v59 = vld [vmem:[%s13616_s7] sm:$0xff]   ;;  %9228 = vmatprep.subr.bf16.mxu0 %v10933_v0  ;;  %8987 = vmatprep.subr.bf16.mxu1 %v10664_v58 }
 0x478   : > { %8988 = vmatpush3.bf16.msra.mxu1 %v10665_v59 }
 0x479   : > { %v5385_v63 = vsel %vm4427_vm2, %v5377_v5, %v10606_v2  ;;  %v5386_v4 = vsel %vm4427_vm2, %v5378_v3, %v10607_v61  ;;  %v10666_v61 = vld [vmem:[%s13616_s7 + $0x90] sm:$0xff]   ;;  %v10667_v2 = vld [vmem:[%s13616_s7 + $0x98] sm:$0xff]   ;;  %v10668_v5 = vld [vmem:[%s13616_s7 + $0x48] sm:$0xff]  }
 0x47a   : > { %v5393_v6 = vpack.c.bf16 %v5386_v4, %v5385_v63  ;;  %9229 = vmatpush3.bf16.msra.mxu0 %v10663_v62  ;;  %v10669_v3 = vld [vmem:[%s13616_s7 + $0x8] sm:$0xff]   ;;  %8989 = vmatprep.subr.bf16.mxu1 %v10668_v5  ;;  %v10671_v63 = vld [vmem:[%s13616_s7 + $0x10] sm:$0xff]   ;;  %v10672_v4 = vld [vmem:[%s13616_s7 + $0x58] sm:$0xff]  }
 0x47b   : > { %9230 = vmatprep.subr.bf16.mxu0 %v10933_v0 }
 0x47c   : > { %5545 = vmatmul.mubr.bf16.gmra.mrb[72].mxu0 %v5393_v6  ;;  %8990 = vmatpush3.bf16.msra.mxu1 %v10669_v3  ;;  %v10673_v6 = vld [vmem:[%s13616_s7 + $0x18] sm:$0xff]  }
 0x47d   : > { %8861 = vmatprep.mubr.msk.bf16.mxu0 %vm3528_vm7, %v5396_v8  ;;  %8991 = vmatprep.subr.bf16.mxu1 %v10670_v51  ;;  %v10675_v8 = vld [vmem:[%s13616_s7 + $0x20] sm:$0xff]  }
 0x47e   : > { %9231 = vmatpush3.bf16.msra.mxu0 %v10666_v61 }
 0x47f   : > { %9232 = vmatprep.subr.bf16.mxu0 %v10933_v0 }
 0x480   : > { %8992 = vmatpush3.bf16.msra.mxu1 %v10671_v63 }
 0x481   : > { %8993 = vmatprep.subr.bf16.mxu1 %v10672_v4 }
 0x482   : > { %9233 = vmatpush3.bf16.msra.mxu0 %v10667_v2 }
 0x483   : > { %9238 = vmatprep.subr.bf16.mxu0 %v10933_v0 }
 0x484   : > { %8994 = vmatpush3.bf16.msra.mxu1 %v10673_v6 }
 0x485   : > { %8995 = vmatprep.subr.bf16.mxu1 %v10674_v7 }
 0x488   : > { %8996 = vmatpush3.bf16.msra.mxu1 %v10675_v8 }
 0x4a8   : > { %v10610_v32 = vpop.permute.xlu1 %10609  ;;  %v10615_v9 = vpop.permute.xlu0 %10614 }
 0x4a9   : > { %v10612_v10 = vunpack.i.h.bf16 %v10610_v32  ;;  %v10611_v11 = vunpack.i.l.bf16 %v10610_v32  ;;  %v10617_v14 = vunpack.i.h.bf16 %v10615_v9  ;;  %v10616_v15 = vunpack.i.l.bf16 %v10615_v9  ;;  %v10676_v32 = vld [vmem:[%s13616_s7 + $0x68] sm:$0xff]  }
 0x4aa   : > { %v10677_v9 = vld [vmem:[%s13616_s7 + $0x28] sm:$0xff]   ;;  %8997 = vmatprep.subr.bf16.mxu1 %v10676_v32 }
 0x4ab   : > { %v5372_v16 = vsel %vm3528_vm7, %v5204_v13, %v10612_v10  ;;  %v5371_v48 = vsel %vm3528_vm7, %v5202_v12, %v10611_v11  ;;  %v10678_v10 = vld [vmem:[%s13616_s7 + $0x70] sm:$0xff]   ;;  %8998 = vmatpush3.bf16.msra.mxu1 %v10677_v9  ;;  %v10680_v12 = vld [vmem:[%s13616_s7 + $0x78] sm:$0xff]  }
 0x4ac   : > { %v10620_v17 = vpop.permute.xlu1 %10619  ;;  %v5380_v20 = vsel %vm4394_vm12, %v5372_v16, %v10617_v14  ;;  %v5379_v21 = vsel %vm4394_vm12, %v5371_v48, %v10616_v15  ;;  %v10679_v11 = vld [vmem:[%s13616_s7 + $0x30] sm:$0xff]   ;;  %8999 = vmatprep.subr.bf16.mxu1 %v10678_v10  ;;  %v10681_v13 = vld [vmem:[%s13616_s7 + $0x38] sm:$0xff]  }
 0x4ad   : > { %v10622_v18 = vunpack.i.h.bf16 %v10620_v17  ;;  %v10621_v19 = vunpack.i.l.bf16 %v10620_v17 }
 0x4af   : > { %v5387_v22 = vsel %vm4427_vm2, %v5379_v21, %v10621_v19  ;;  %v5388_v23 = vsel %vm4427_vm2, %v5380_v20, %v10622_v18  ;;  %9000 = vmatpush3.bf16.msra.mxu1 %v10679_v11 }
 0x4b0   : > { %v5395_v24 = vpack.c.bf16 %v5388_v23, %v5387_v22  ;;  %9001 = vmatprep.subr.bf16.mxu1 %v10680_v12 }
 0x4b2   : > { %5553 = vmatmul.mubr.bf16.gmra.mrb[76].mxu0 %v5395_v24 }
 0x4b3   : > { %9234 = vmatprep.mubr.msk.bf16.mxu0 %vm10942_vm4, %v10933_v0  ;;  %9002 = vmatpush3.bf16.msra.mxu1 %v10681_v13 }
 0x4d0   : > { %v5530_v26 = vpop.f32.mrb[64].mxu0 }
 0x4d1   : > { %v5531_v27 = vadd.f32 %v12838_v25, %v5530_v26  ;;  %v5532_v28 = vpop.f32.mrb[65].mxu0 }
 0x4d2   : > { %v5533_v29 = vpop.f32.mrb[66].mxu0 }
 0x4d3   : > { %vm5561_vm15 = vcmp.gt.f32.partialorder %v5531_v27, 0.0  ;;  %v5569_v30 = vmul.f32 0.1, %v5531_v27  ;;  %v5534_v31 = vadd.f32 %v12838_v25, %v5533_v29  ;;  %v5535_v33 = vpop.f32.mrb[67].mxu0 }
 0x4d5   : > { %v5577_v34 = vsel %vm5561_vm15, %v5531_v27, %v5569_v30  ;;  %vm5562_vm0 = vcmp.gt.f32.partialorder %v5534_v31, 0.0  ;;  %v5570_v35 = vmul.f32 0.1, %v5534_v31 }
 0x4d6   : > { %5585 = vst.msk [vmem:[#allocation6] sm:$0xff] %vm4394_vm12, %v5577_v34 }
 0x4d7   : > { %v5578_v36 = vsel %vm5562_vm0, %v5534_v31, %v5570_v35 }
 0x4d8   : > { %5586 = vst.msk [vmem:[#allocation6 + $0x8] sm:$0xff] %vm4394_vm12, %v5578_v36 }
 0x4df   : > { %v5594_v47 = vld [vmem:[#allocation6] ss:$2 sm:$0xff]  ;;  %v5602_v49 = vld [vmem:[#allocation6 + $0x1] ss:$2 sm:$0xff] }
 0x4e0   : > { %v5609_v50 = vadd.f32 %v5602_v49, %v5594_v47 }
 0x50f   : > { %v5538_v37 = vpop.f32.mrb[68].mxu0 }
 0x510   : > { %v5539_v38 = vadd.f32 %v12838_v25, %v5538_v37  ;;  %v5540_v39 = vpop.f32.mrb[69].mxu0 }
 0x511   : > { %v5541_v40 = vpop.f32.mrb[70].mxu0 }
 0x512   : > { %vm5563_vm2 = vcmp.gt.f32.partialorder %v5539_v38, 0.0  ;;  %v5571_v41 = vmul.f32 0.1, %v5539_v38  ;;  %v5542_v42 = vadd.f32 %v12838_v25, %v5541_v40  ;;  %v5543_v43 = vpop.f32.mrb[71].mxu0 }
 0x514   : > { %v5579_v44 = vsel %vm5563_vm2, %v5539_v38, %v5571_v41  ;;  %vm5564_vm1 = vcmp.gt.f32.partialorder %v5542_v42, 0.0  ;;  %v5572_v45 = vmul.f32 0.1, %v5542_v42  ;;  %vm6431_vm2 = vcmask 122880  }
 0x515   : > { %5587 = vst.msk [vmem:[#allocation6 + $0x10] sm:$0xff] %vm4394_vm12, %v5579_v44 }
 0x516   : > { %v5580_v46 = vsel %vm5564_vm1, %v5542_v42, %v5572_v45  ;;  %vm6433_vm1 = vcmask 254080  }
 0x517   : > { %5588 = vst.msk [vmem:[#allocation6 + $0x18] sm:$0xff] %vm4394_vm12, %v5580_v46 }
 0x51c   : > { %v5614_v52 = vld [vmem:[#allocation6 + $0x2] ss:$2 sm:$0xff]  ;;  %v5626_v54 = vld [vmem:[#allocation6 + $0x3] ss:$2 sm:$0xff] }
 0x51d   : > { %v5621_v53 = vadd.f32 %v5614_v52, %v5609_v50  ;;  %v5638_v60 = vld [vmem:[#allocation6 + $0x4] ss:$2 sm:$0xff] }
 0x51e   : > { %v5596_v23 = vld [vmem:[#allocation6 + $0x10] ss:$2 sm:$0xff]  ;;  %v5604_v24 = vld [vmem:[#allocation6 + $0x11] ss:$2 sm:$0xff] }
 0x51f   : > { %v5633_v56 = vadd.f32 %v5626_v54, %v5621_v53  ;;  %v5610_v26 = vadd.f32 %v5604_v24, %v5596_v23 }
 0x521   : > { %v5645_v1 = vadd.f32 %v5638_v60, %v5633_v56 }
 0x523   : > { %v5649_v57 = vmul.f32 0.2, %v5645_v1 }
 0x525   : > { %5659 = vst.msk [vmem:[#allocation7 + $0x2] sm:$0xff] %vm4394_vm12, %v5649_v57 }
 0x54f   : > { %v5546_v14 = vpop.f32.mrb[72].mxu0 }
 0x550   : > { %v5547_v15 = vadd.f32 %v12838_v25, %v5546_v14  ;;  %v5548_v16 = vpop.f32.mrb[73].mxu0 }
 0x551   : > { %v5549_v48 = vpop.f32.mrb[74].mxu0 }
 0x552   : > { %vm5565_vm5 = vcmp.gt.f32.partialorder %v5547_v15, 0.0  ;;  %v5573_v17 = vmul.f32 0.1, %v5547_v15  ;;  %v5550_v18 = vadd.f32 %v12838_v25, %v5549_v48  ;;  %v5551_v19 = vpop.f32.mrb[75].mxu0 }
 0x554   : > { %v5581_v20 = vsel %vm5565_vm5, %v5547_v15, %v5573_v17  ;;  %vm5566_vm6 = vcmp.gt.f32.partialorder %v5550_v18, 0.0  ;;  %v5574_v21 = vmul.f32 0.1, %v5550_v18  ;;  %vm6547_vm5 = vcmask 255105  }
 0x555   : > { %5589 = vst.msk [vmem:[#allocation6 + $0x20] sm:$0xff] %vm4394_vm12, %v5581_v20 }
 0x556   : > { %v5582_v22 = vsel %vm5566_vm6, %v5550_v18, %v5574_v21  ;;  %vm6779_vm6 = vcmask 125955  }
 0x557   : > { %5590 = vst.msk [vmem:[#allocation6 + $0x28] sm:$0xff] %vm4394_vm12, %v5582_v22 }
 0x55c   : > { %v5616_v27 = vld [vmem:[#allocation6 + $0x12] ss:$2 sm:$0xff]  ;;  %v5628_v29 = vld [vmem:[#allocation6 + $0x13] ss:$2 sm:$0xff] }
 0x55d   : > { %v5622_v28 = vadd.f32 %v5616_v27, %v5610_v26  ;;  %v5640_v31 = vld [vmem:[#allocation6 + $0x14] ss:$2 sm:$0xff] }
 0x55e   : > { %v5598_v45 = vld [vmem:[#allocation6 + $0x20] ss:$2 sm:$0xff]  ;;  %v5606_v46 = vld [vmem:[#allocation6 + $0x21] ss:$2 sm:$0xff] }
 0x55f   : > { %v5634_v30 = vadd.f32 %v5628_v29, %v5622_v28  ;;  %v5611_v47 = vadd.f32 %v5606_v46, %v5598_v45  ;;  %v10696_v45 = vld [vmem:[%s13618_s9 + $0x68] sm:$0xff]  }
 0x560   : > { %v10697_v46 = vld [vmem:[%s13618_s9 + $0x28] sm:$0xff]  }
 0x561   : > { %v5646_v33 = vadd.f32 %v5640_v31, %v5634_v30  ;;  %v10682_v30 = vld [vmem:[%s13618_s9 + $0x80] sm:$0xff]   ;;  %v10683_v31 = vld [vmem:[%s13618_s9 + $0x88] sm:$0xff]  }
 0x563   : > { %v5650_v34 = vmul.f32 0.2, %v5646_v33  ;;  %v10684_v33 = vld [vmem:[%s13618_s9 + $0x90] sm:$0xff]  }
 0x565   : > { %5660 = vst.msk [vmem:[#allocation7 + $0xa] sm:$0xff] %vm4394_vm12, %v5650_v34  ;;  %v10685_v34 = vld [vmem:[%s13618_s9 + $0x98] sm:$0xff]  }
 0x56c   : > { %v5676_v51 = vld [vmem:[#allocation7 + $0x3] ss:$2 sm:$0xff]  ;;  %v5672_v16 = vld [vmem:[#allocation7 + $0x2] ss:$2 sm:$0xff] }
 0x56d   : > { %v5668_v8 = vld [vmem:[#allocation7 + $0x1] ss:$2 sm:$0xff]  ;;  %v5664_v18 = vld [vmem:[#allocation7] ss:$2 sm:$0xff] }
 0x585   : > { %v5554_v35 = vpop.f32.mrb[76].mxu0 }
 0x586   : > { %v5555_v36 = vadd.f32 %v12838_v25, %v5554_v35  ;;  %v5556_v37 = vpop.f32.mrb[77].mxu0  ;;  %v10686_v35 = vld [vmem:[%s13618_s9 + $0x40] sm:$0xff]  }
 0x587   : > { %v5557_v38 = vpop.f32.mrb[78].mxu0  ;;  %v10688_v37 = vld [vmem:[%s13618_s9 + $0x48] sm:$0xff]   ;;  %9014 = vmatprep.subr.bf16.mxu1 %v10686_v35 }
 0x588   : > { %vm5567_vm8 = vcmp.gt.f32.partialorder %v5555_v36, 0.0  ;;  %v5575_v39 = vmul.f32 0.1, %v5555_v36  ;;  %v5558_v40 = vadd.f32 %v12838_v25, %v5557_v38  ;;  %v5559_v41 = vpop.f32.mrb[79].mxu0  ;;  %v10689_v38 = vld [vmem:[%s13618_s9 + $0x8] sm:$0xff]  }
 0x589   : > { %v10692_v41 = vld [vmem:[%s13618_s9 + $0x58] sm:$0xff]   ;;  %v6269_v35 = vld [vmem:[%s13620_s11 + $0x48] sm:$0xff] }
 0x58a   : > { %v5583_v42 = vsel %vm5567_vm8, %v5555_v36, %v5575_v39  ;;  %vm5568_vm9 = vcmp.gt.f32.partialorder %v5558_v40, 0.0  ;;  %v5576_v43 = vmul.f32 0.1, %v5558_v40  ;;  %v10687_v36 = vld [vmem:[%s13618_s9] sm:$0xff]   ;;  %v10690_v39 = vld [vmem:[%s13618_s9 + $0x50] sm:$0xff]   ;;  %vm6781_vm8 = vcmask 257155  }
 0x58b   : > { %5591 = vst.msk [vmem:[#allocation6 + $0x30] sm:$0xff] %vm4394_vm12, %v5583_v42  ;;  %v10693_v42 = vld [vmem:[%s13618_s9 + $0x18] sm:$0xff]  }
 0x58c   : > { %v5584_v44 = vsel %vm5568_vm9, %v5558_v40, %v5576_v43  ;;  %v10691_v40 = vld [vmem:[%s13618_s9 + $0x10] sm:$0xff]   ;;  %v10694_v43 = vld [vmem:[%s13618_s9 + $0x60] sm:$0xff]   ;;  %vm6662_vm9 = vcmask 124930  }
 0x58d   : > { %5593 = vst.msk [vmem:[#allocation6 + $0x38] sm:$0x7f] %vm5592_vm10, %v5584_v44  ;;  %v10695_v44 = vld [vmem:[%s13618_s9 + $0x20] sm:$0xff]  }
 0x592   : > { %v5618_v49 = vld [vmem:[#allocation6 + $0x22] ss:$2 sm:$0xff]  ;;  %v5630_v52 = vld [vmem:[#allocation6 + $0x23] ss:$2 sm:$0xff] }
 0x593   : > { %v5623_v50 = vadd.f32 %v5618_v49, %v5611_v47  ;;  %v5642_v56 = vld [vmem:[#allocation6 + $0x24] ss:$2 sm:$0xff]  ;;  %v10698_v47 = vld [vmem:[%s13618_s9 + $0x70] sm:$0xff]  }
 0x594   : > { %v5600_v53 = vld [vmem:[#allocation6 + $0x30] ss:$2 sm:$0x3f]  ;;  %v5608_v54 = vld [vmem:[#allocation6 + $0x31] ss:$2 sm:$0x3f] }
 0x595   : > { %v5635_v55 = vadd.f32 %v5630_v52, %v5623_v50  ;;  %v5612_v25 = vadd.f32 %v5608_v54, %v5600_v53  ;;  %v5620_v58 = vld [vmem:[#allocation6 + $0x32] ss:$2 sm:$0x3f]  ;;  %v5632_v62 = vld [vmem:[#allocation6 + $0x33] ss:$2 sm:$0x3f] }
 0x596   : > { %v5644_v61 = vld [vmem:[#allocation6 + $0x34] ss:$2 sm:$0x3f]  ;;  %v8862_v52 = vld [vmem:[%s13617_s8] ss:$0 sm:$0xff] }
 0x597   : > { %v5647_v59 = vadd.f32 %v5642_v56, %v5635_v55  ;;  %v5624_v60 = vadd.f32 %v5620_v58, %v5612_v25  ;;  %v10699_v49 = vld [vmem:[%s13618_s9 + $0x30] sm:$0xff]  }
 0x599   : > { %v5651_v1 = vmul.f32 0.2, %v5647_v59  ;;  %v5636_v57 = vadd.f32 %v5632_v62, %v5624_v60 }
 0x59b   : > { %5661 = vst.msk [vmem:[#allocation7 + $0x12] sm:$0xff] %vm4394_vm12, %v5651_v1  ;;  %v5648_v2 = vadd.f32 %v5644_v61, %v5636_v57 }
 0x59d   : > { %v5652_v5 = vmul.f32 0.2, %v5648_v2 }
 0x59f   : > { %5663 = vst.msk [vmem:[#allocation7 + $0x1a] sm:$0x3f] %vm5662_vm11, %v5652_v5  ;;  %v10700_v5 = vld [vmem:[%s13618_s9 + $0x78] sm:$0xff]   ;;  %vm13640_vm11 = vcmask 128005  }
 0x5a2   : > { %v5680_v3 = vld [vmem:[#allocation7 + $0x4] ss:$2 sm:$0xff] }
 0x5a6   : > { %v5682_v63 = vld [vmem:[#allocation7 + $0x14] ss:$2 sm:$0x7f]  ;;  %v5678_v4 = vld [vmem:[#allocation7 + $0x13] ss:$2 sm:$0x7f] }
 0x5a7   : > { %v5705_v6 = vpack.c.bf16 %v5682_v63, %v5680_v3  ;;  %v10623_v7 = vpack.i.bf16 %v5678_v4, %v5676_v51  ;;  %v5670_v32 = vld [vmem:[#allocation7 + $0x11] ss:$2 sm:$0x7f]  ;;  %v5674_v48 = vld [vmem:[#allocation7 + $0x12] ss:$2 sm:$0x7f] }
 0x5a8   : > { %v10628_v9 = vpack.i.bf16 %v5670_v32, %v5668_v8  ;;  %v5666_v17 = vld [vmem:[#allocation7 + $0x10] ss:$2 sm:$0x7f]  ;;  %v10701_v3 = vld [vmem:[%s13618_s9 + $0x38] sm:$0xff]   ;;  %v6260_v8 = vld [vmem:[%s13620_s11] sm:$0xff] }
 0x5a9   : > { %9235 = vmatmul.mubr.msk.bf16.vlgmr.msra.gmra.mrb[80].mxu0 %vm4394_vm12, %v5705_v6  ;;  %10624 = vrot.lane.b32.xlu0 %v10623_v7, %s13664_s19  ;;  %v6261_v32 = vld [vmem:[%s13620_s11 + $0x8] sm:$0xff] }
 0x5aa   : > { %10629 = vrot.lane.b32.xlu1 %v10628_v9, %s13664_s19  ;;  %9246 = vmatprep.mubr.msk.bf16.mxu0 %vm10942_vm4, %v10933_v0  ;;  %v6274_v9 = vpack.c.bf16 %v6261_v32, %v6260_v8 }
 0x5ab   : > { %9239 = vmatpush3.bf16.msra.mxu0 %v10682_v30  ;;  %v6267_v30 = vld [vmem:[%s13620_s11 + $0x38] sm:$0xff] }
 0x5ac   : > { %9240 = vmatprep.subr.bf16.mxu0 %v10933_v0 }
 0x5af   : > { %9241 = vmatpush3.bf16.msra.mxu0 %v10683_v31  ;;  %v6268_v31 = vld [vmem:[%s13620_s11 + $0x40] sm:$0xff] }
 0x5b0   : > { %9242 = vmatprep.subr.bf16.mxu0 %v10933_v0 }
 0x5b3   : > { %9243 = vmatpush3.bf16.msra.mxu0 %v10684_v33  ;;  %v10943_v33 = vmov 0.0|0.0  }
 0x5b4   : > { %9244 = vmatprep.subr.bf16.mxu0 %v10933_v0 }
 0x5b7   : > { %9245 = vmatpush3.bf16.msra.mxu0 %v10685_v34 }
 0x5b8   : > { %9250 = vmatprep.subr.bf16.mxu0 %v10933_v0 }
 0x61b   : > { %v10625_v10 = vpop.permute.xlu0 %10624 }
 0x61c   : > { %v10627_v11 = vunpack.i.h.bf16 %v10625_v10  ;;  %v10626_v12 = vunpack.i.l.bf16 %v10625_v10  ;;  %v10630_v13 = vpop.permute.xlu1 %10629 }
 0x61d   : > { %v10632_v14 = vunpack.i.h.bf16 %v10630_v13  ;;  %v10631_v15 = vunpack.i.l.bf16 %v10630_v13 }
 0x61e   : > { %v5701_v19 = vsel %vm4394_vm12, %v5672_v16, %v10626_v12  ;;  %v5702_v20 = vsel %vm4394_vm12, %v5674_v48, %v10627_v11 }
 0x61f   : > { %v5700_v21 = vsel %vm4394_vm12, %v5666_v17, %v10632_v14  ;;  %v5699_v22 = vsel %vm4394_vm12, %v5664_v18, %v10631_v15  ;;  %v5704_v23 = vpack.c.bf16 %v5702_v20, %v5701_v19  ;;  %v6262_v18 = vld [vmem:[%s13620_s11 + $0x10] sm:$0xff]  ;;  %v6263_v19 = vld [vmem:[%s13620_s11 + $0x18] sm:$0xff] }
 0x620   : > { %v5703_v24 = vpack.c.bf16 %v5700_v21, %v5699_v22  ;;  %v6275_v20 = vpack.c.bf16 %v6263_v19, %v6262_v18 }
 0x621   : > { %5908 = vmatprep.mubr.bf16.mxu1 %v5704_v23 }
 0x622   : > { %5909 = vmatmul.mubr.bf16.vlgmr.msra.gmra.mrb[64].mxu1 %v5703_v24  ;;  %v6264_v24 = vld [vmem:[%s13620_s11 + $0x20] sm:$0xff] }
 0x623   : > { %9015 = vmatpush3.bf16.msra.mxu1 %v10687_v36  ;;  %v13047_v36 = vpack.c.bf16 %v6269_v35, %v6268_v31 }
 0x624   : > { %9016 = vmatprep.subr.bf16.mxu1 %v10688_v37  ;;  %v6270_v37 = vld [vmem:[%s13620_s11 + $0x50] sm:$0xff] }
 0x627   : > { %9017 = vmatpush3.bf16.msra.mxu1 %v10689_v38  ;;  %v6271_v38 = vld [vmem:[%s13620_s11 + $0x58] sm:$0xff] }
 0x628   : > { %9018 = vmatprep.subr.bf16.mxu1 %v10690_v39  ;;  %v13056_v39 = vpack.c.bf16 %v6271_v38, %v6270_v37 }
 0x62b   : > { %9019 = vmatpush3.bf16.msra.mxu1 %v10691_v40 }
 0x62c   : > { %9020 = vmatprep.subr.bf16.mxu1 %v10692_v41  ;;  %v8884_v41 = vld [vmem:[%s13619_s10] ss:$0 sm:$0xff] }
 0x62f   : > { %9021 = vmatpush3.bf16.msra.mxu1 %v10693_v42 }
 0x630   : > { %9022 = vmatprep.subr.bf16.mxu1 %v10694_v43 }
 0x633   : > { %9023 = vmatpush3.bf16.msra.mxu1 %v10695_v44 }
 0x634   : > { %9024 = vmatprep.subr.bf16.mxu1 %v10696_v45 }
 0x637   : > { %9025 = vmatpush3.bf16.msra.mxu1 %v10697_v46 }
 0x638   : > { %9026 = vmatprep.subr.bf16.mxu1 %v10698_v47 }
 0x63b   : > { %9027 = vmatpush3.bf16.msra.mxu1 %v10699_v49 }
 0x63c   : > { %9028 = vmatprep.subr.bf16.mxu1 %v10700_v5 }
 0x63f   : > { %9029 = vmatpush3.bf16.msra.mxu1 %v10701_v3 }
 0x640   : > { %9501 = vmatprep.subr.bf16.mxu1 %v10943_v33 }
 0x67c   : > { %v5951_v26 = vpop.f32.mrb[80].mxu0 }
 0x67d   : > { %v9236_v27 = vpop.f32.mrb[81].mxu0 }
 0x67e   : > { %v5954_v28 = vpop.f32.mrb[82].mxu0 }
 0x67f   : > { %v9237_v29 = vpop.f32.mrb[83].mxu0 }
 0x680   : > { %v6266_v29 = vld [vmem:[%s13620_s11 + $0x30] sm:$0xff] }
 0x681   : > { %v6277_v34 = vpack.c.bf16 %v6267_v30, %v6266_v29 }
 0x6f5   : > { %v9003_v50 = vpop.f32.mrb[64].mxu1 }
 0x6f6   : > { %v9004_v53 = vpop.f32.mrb[65].mxu1 }
 0x6f7   : > { %v9005_v54 = vadd.f32 %v9004_v53, %v9003_v50  ;;  %v9006_v55 = vpop.f32.mrb[66].mxu1 }
 0x6f8   : > { %v9007_v25 = vpop.f32.mrb[67].mxu1 }
 0x6f9   : > { %v5911_v56 = vadd.f32 %v9005_v54, %v8862_v52  ;;  %v9008_v58 = vadd.f32 %v9007_v25, %v9006_v55  ;;  %v6245_v55 = vlaneseq }
 0x6fb   : > { %v5952_v59 = vadd.f32 %v5951_v26, %v5911_v56  ;;  %v5914_v60 = vadd.f32 %v9008_v58, %v8862_v52  ;;  %v6265_v26 = vld [vmem:[%s13620_s11 + $0x28] sm:$0xff]  ;;  %v6246_v25 = vand.u32 127, %v6245_v55  ;;  %v8906_v56 = vld [vmem:[%s13621_s12] ss:$0 sm:$0xff] }
 0x6fd   : > { %vm5958_vm14 = vcmp.gt.f32.partialorder %v5952_v59, 0.0  ;;  %v5960_v62 = vmul.f32 0.1, %v5952_v59  ;;  %v5955_v1 = vadd.f32 %v5954_v28, %v5914_v60  ;;  %v6276_v28 = vpack.c.bf16 %v6265_v26, %v6264_v24 }
 0x6fe   : > { %v6251_v58 = vand.u32 31, %v6246_v25 }
 0x6ff   : > { %v5962_v57 = vsel %vm5958_vm14, %v5952_v59, %v5960_v62  ;;  %vm5959_vm15 = vcmp.gt.f32.partialorder %v5955_v1, 0.0  ;;  %v5961_v61 = vmul.f32 0.1, %v5955_v1  ;;  %vm13641_vm14 = vcmask 126980  }
 0x700   : > { %5968 = vst.msk [vmem:[#allocation8 + $0x2] sm:$0xff] %vm4394_vm12, %v5962_v57 }
 0x701   : > { %v5963_v2 = vsel %vm5959_vm15, %v5955_v1, %v5961_v61  ;;  %vm13642_vm15 = vcmask 258180  }
 0x702   : > { %5969 = vst.msk [vmem:[#allocation8 + $0xa] sm:$0x7f] %vm5592_vm10, %v5963_v2  ;;  %vm6664_vm10 = vcmask 256130  }
 0x709   : > { %v5978_v51 = vld [vmem:[#allocation8 + $0x4] ss:$2 sm:$0xff]  ;;  %v5972_v63 = vld [vmem:[#allocation8 + $0x1] ss:$2 sm:$0xff] }
 0x70a   : > { %v5976_v4 = vld [vmem:[#allocation8 + $0x3] ss:$2 sm:$0xff]  ;;  %v5991_v6 = vpack.c.bf16 %v5978_v51, %v5978_v51  ;;  %v5970_v13 = vld [vmem:[#allocation8] ss:$2 sm:$0xff] }
 0x70b   : > { %v10633_v7 = vpack.i.bf16 %v5972_v63, %v5976_v4  ;;  %v5974_v14 = vld [vmem:[#allocation8 + $0x2] ss:$2 sm:$0xff] }
 0x70c   : > { %9247 = vmatmul.mubr.msk.bf16.vlgmr.msra.gmra.mrb[84].mxu0 %vm4394_vm12, %v5991_v6 }
 0x70d   : > { %10634 = vrot.lane.b32.xlu0 %v10633_v7, %s13664_s19  ;;  %9258 = vmatprep.mubr.msk.bf16.mxu0 %vm10942_vm4, %v10933_v0 }
 0x70e   : > { %9251 = vmatpush3.bf16.msra.mxu0 %v6274_v9 }
 0x70f   : > { %9252 = vmatprep.subr.bf16.mxu0 %v10933_v0 }
 0x712   : > { %9253 = vmatpush3.bf16.msra.mxu0 %v6275_v20 }
 0x713   : > { %9254 = vmatprep.subr.bf16.mxu0 %v10933_v0 }
 0x716   : > { %9255 = vmatpush3.bf16.msra.mxu0 %v6276_v28 }
 0x717   : > { %9256 = vmatprep.subr.bf16.mxu0 %v10933_v0 }
 0x71a   : > { %9257 = vmatpush3.bf16.msra.mxu0 %v6277_v34 }
 0x71b   : > { %9507 = vmatprep.subr.bf16.mxu0 %v10943_v33 }
 0x77f   : > { %v10635_v10 = vpop.permute.xlu0 %10634 }
 0x780   : > { %v10637_v11 = vunpack.i.h.bf16 %v10635_v10  ;;  %v10636_v12 = vunpack.i.l.bf16 %v10635_v10 }
 0x782   : > { %v5987_v15 = vsel %vm4394_vm12, %v5970_v13, %v10637_v11  ;;  %v5988_v16 = vsel %vm4394_vm12, %v5974_v14, %v10636_v12 }
 0x783   : > { %v5989_v48 = vpack.c.bf16 %v5987_v15, %v5987_v15  ;;  %v5990_v17 = vpack.c.bf16 %v5988_v16, %v5988_v16 }
 0x785   : > { %6194 = vmatprep.mubr.bf16.mxu1 %v5990_v17 }
 0x786   : > { %6195 = vmatmul.mubr.bf16.vlgmr.msra.gmra.mrb[68].mxu1 %v5989_v48 }
 0x787   : > { %9270 = vmatprep.mubr.msk.f32.mxu1 %vm10942_vm4, %v10933_v0  ;;  %9503 = vmatpush3.bf16.msra.mxu1 %v13047_v36 }
 0x788   : > { %9504 = vmatprep.subr.bf16.mxu1 %v10943_v33 }
 0x78b   : > { %9506 = vmatpush3.bf16.msra.mxu1 %v13056_v39 }
 0x78c   : > { %9513 = vmatprep.subr.bf16.mxu1 %v10943_v33 }
 0x78e   : > { %9271 = vmatmul.mubr.f32.vlgmr.msra.gmra.mrb[72].mxu1 %v10933_v0 }
 0x78f   : > { %9515 = vmatpush3.bf16.msra.mxu1 %v13047_v36  ;;  %9292 = vmatprep.mubr.msk.f32.mxu1 %vm10942_vm4, %v10933_v0 }
 0x790   : > { %9516 = vmatprep.subr.bf16.mxu1 %v10943_v33 }
 0x793   : > { %9518 = vmatpush3.bf16.msra.mxu1 %v13056_v39 }
 0x794   : > { %9525 = vmatprep.subr.bf16.mxu1 %v10943_v33 }
 0x7df   : > { %v6236_v21 = vpop.f32.mrb[84].mxu0 }
 0x7e0   : > { %v9248_v22 = vpop.f32.mrb[85].mxu0 }
 0x7e1   : > { %v6239_v23 = vpop.f32.mrb[86].mxu0 }
 0x7e2   : > { %v9249_v27 = vpop.f32.mrb[87].mxu0 }
 0x859   : > { %v9030_v40 = vpop.f32.mrb[68].mxu1 }
 0x85a   : > { %v9031_v42 = vpop.f32.mrb[69].mxu1 }
 0x85b   : > { %v9032_v43 = vadd.f32 %v9031_v42, %v9030_v40  ;;  %v9033_v44 = vpop.f32.mrb[70].mxu1 }
 0x85c   : > { %v9034_v45 = vpop.f32.mrb[71].mxu1 }
 0x85d   : > { %v6197_v46 = vadd.f32 %v9032_v43, %v8884_v41 }
 0x85f   : > { %v6237_v47 = vadd.f32 %v6236_v21, %v6197_v46 }
 0x861   : > { %vm6242_vm0 = vcmp.gt.f32.partialorder %v6237_v47, 0.0  ;;  %v6243_v49 = vmul.f32 0.1, %v6237_v47  ;;  %v6398_v53 = vpop.f32.mrb[72].mxu1 }
 0x862   : > { %v9272_v54 = vpop.f32.mrb[73].mxu1 }
 0x863   : > { %v6244_v50 = vsel %vm6242_vm0, %v6237_v47, %v6243_v49  ;;  %vm7121_vm0 = vcmask 129030  }
 0x864   : > { %v6273_v52 = vpack.c.bf16 %v6244_v50, %v6244_v50 }
 0x866   : > { %9259 = vmatmul.mubr.msk.bf16.vlgmr.msra.gmra.mrb[88].mxu0 %vm4394_vm12, %v6273_v52  ;;  %vm13085_vm12 = vcmp.lt.s32.totalorder %v6251_v58, 16 }
 0x867   : > { %9509 = vmatpush3.bf16.msra.mxu0 %v13047_v36  ;;  %9281 = vmatprep.mubr.msk.f32.mxu0 %vm10942_vm4, %v10933_v0 }
 0x868   : > { %9510 = vmatprep.subr.bf16.mxu0 %v10943_v33 }
 0x86b   : > { %9512 = vmatpush3.bf16.msra.mxu0 %v13056_v39 }
 0x86c   : > { %9519 = vmatprep.subr.bf16.mxu0 %v10943_v33 }
 0x939   : > { %v6319_v59 = vpop.f32.mrb[88].mxu0 }
 0x93a   : > { %v13083_v60 = vadd.f32 %v8906_v56, %v6319_v59  ;;  %v9260_v62 = vpop.f32.mrb[89].mxu0 }
 0x93b   : > { %v6322_v1 = vpop.f32.mrb[90].mxu0 }
 0x93c   : > { %v9261_v61 = vpop.f32.mrb[91].mxu0  ;;  %v6326_v2 = vrot.slane %v13083_v60, 7  ;;  %v6435_v16 = vrot.slane %v13083_v60, 5  ;;  %v6549_v42 = vrot.slane %v13083_v60, 3 }
 0x93e   : > { %v13093_v5 = vsel %vm13085_vm12, %v13083_v60, %v6326_v2  ;;  %v13113_v19 = vsel %vm13085_vm12, %v13083_v60, %v6435_v16  ;;  %v13134_v46 = vsel %vm13085_vm12, %v13083_v60, %v6549_v42 }
 0x93f   : > { %v6402_v3 = vadd.f32 %v6398_v53, %v13093_v5 }
 0x941   : > { %10702 = vtanh.f32 %v6402_v3  ;;  %v8908_v63 = vmul.f32 -1.442695, %v6402_v3 }
 0x943   : > { %10704 = vpow2.f32 %v8908_v63 }
 0x94b   : > { %v10703_v51 = vpop.eup %10702 }
 0x94c   : > { %6412 = vrot.lane.b32.xlu1 %v10703_v51, %s13664_s19 }
 0x94d   : > { %v10705_v4 = vpop.eup %10704 }
 0x94e   : > { %v6406_v6 = vadd.f32 1.0, %v10705_v4  ;;  %v6666_v4 = vrot.slane %v13083_v60, 1 }
 0x950   : > { %10706 = vrcp.f32 %v6406_v6 }
 0x95a   : > { %v10707_v7 = vpop.eup %10706 }
 0x95b   : > { %v6410_v9 = vmul.f32 0.0, %v10707_v7 }
 0x9be   : > { %v6413_v8 = vpop.permute.xlu1 %6412 }
 0x9bf   : > { %v6415_v32 = vmul.f32 %v10707_v7, %v6413_v8 }
 0x9c1   : > { %6417 = vrot.lane.b32.xlu0 %v6415_v32, %s13667_s18  ;;  %v13155_v32 = vsel %vm13085_vm12, %v13083_v60, %v6666_v4 }
 0xa33   : > { %v6418_v10 = vpop.permute.xlu0 %6417 }
 0xa34   : > { %v6420_v11 = vadd.f32 %v6418_v10, %v6410_v9 }
 0xa36   : > { %10708 = vtanh.f32 %v6420_v11  ;;  %v6522_v29 = vrot.slane %v6420_v11, 7 }
 0xa40   : > { %v10709_v12 = vpop.eup %10708 }
 0xa41   : > { %6423 = vrot.lane.b32.xlu1 %v10709_v12, %s13664_s19 }
 0xab3   : > { %v6424_v13 = vpop.permute.xlu1 %6423 }
 0xab4   : > { %v6426_v14 = vmul.f32 %v10707_v7, %v6424_v13 }
 0xab6   : > { %6428 = vrot.lane.b32.xlu0 %v6426_v14, %s13667_s18 }
 0xb28   : > { %v6429_v15 = vpop.permute.xlu0 %6428 }
 0xb29   : > { %6432 = vst.msk [vmem:[#allocation9] sm:$0x1] %vm6431_vm2, %v6429_v15  ;;  %9282 = vmatmul.mubr.msk.f32.vlgmr.msra.gmra.mrb[92].mxu0 %vm3528_vm7, %v6429_v15 }
 0xb2a   : > { %6434 = vst.msk [vmem:[#allocation9 + $0x7] sm:$0x1] %vm6433_vm1, %v6429_v15  ;;  %9521 = vmatpush3.bf16.msra.mxu0 %v13047_v36  ;;  %9303 = vmatprep.mubr.msk.f32.mxu0 %vm10942_vm4, %v10933_v0 }
 0xb2b   : > { %9522 = vmatprep.subr.bf16.mxu0 %v10943_v33 }
 0xb2e   : > { %9524 = vmatpush3.bf16.msra.mxu0 %v13056_v39 }
 0xb2f   : > { %9531 = vmatprep.subr.bf16.mxu0 %v10943_v33 }
 0xbfc   : > { %v6506_v48 = vpop.f32.mrb[92].mxu0 }
 0xbfd   : > { %v6511_v17 = vrot.slane %v6506_v48, 7  ;;  %v9283_v18 = vpop.f32.mrb[93].mxu0 }
 0xbff   : > { %v6513_v20 = vadd.f32 %v6511_v17, %v13113_v19 }
 0xc01   : > { %10710 = vtanh.f32 %v6513_v20  ;;  %v8910_v22 = vmul.f32 -1.442695, %v6513_v20 }
 0xc03   : > { %10712 = vpow2.f32 %v8910_v22 }
 0xc0b   : > { %v10711_v21 = vpop.eup %10710 }
 0xc0c   : > { %6526 = vrot.lane.b32.xlu1 %v10711_v21, %s13664_s19 }
 0xc0d   : > { %v10713_v23 = vpop.eup %10712 }
 0xc0e   : > { %v6517_v24 = vadd.f32 1.0, %v10713_v23 }
 0xc10   : > { %10714 = vrcp.f32 %v6517_v24 }
 0xc1a   : > { %v10715_v26 = vpop.eup %10714 }
 0xc1b   : > { %v6524_v30 = vmul.f32 %v10715_v26, %v6522_v29 }
 0xc7e   : > { %v6527_v27 = vpop.permute.xlu1 %6526 }
 0xc7f   : > { %v6529_v28 = vmul.f32 %v10715_v26, %v6527_v27 }
 0xc81   : > { %6531 = vrot.lane.b32.xlu0 %v6529_v28, %s13667_s18 }
 0xcf3   : > { %v6532_v31 = vpop.permute.xlu0 %6531 }
 0xcf4   : > { %v6534_v34 = vadd.f32 %v6532_v31, %v6524_v30 }
 0xcf6   : > { %10716 = vtanh.f32 %v6534_v34  ;;  %v6639_v58 = vrot.slane %v6534_v34, 7 }
 0xd00   : > { %v10717_v35 = vpop.eup %10716 }
 0xd01   : > { %6537 = vrot.lane.b32.xlu1 %v10717_v35, %s13664_s19 }
 0xd73   : > { %v6538_v37 = vpop.permute.xlu1 %6537 }
 0xd74   : > { %v13119_v38 = vmul.f32 %v10715_v26, %v6538_v37 }
 0xd76   : > { %v6552_v40 = vrot.slane %v13119_v38, 1 }
 0xd78   : > { %6553 = vrot.lane.b32.xlu0 %v6552_v40, %s13667_s18 }
 0xdea   : > { %v6554_v41 = vpop.permute.xlu0 %6553 }
 0xdeb   : > { %9293 = vmatmul.mubr.msk.f32.vlgmr.msra.gmra.mrb[74].mxu1 %vm3528_vm7, %v6554_v41 }
 0xdec   : > { %9527 = vmatpush3.bf16.msra.mxu1 %v13047_v36  ;;  %9314 = vmatprep.mubr.msk.f32.mxu1 %vm10942_vm4, %v10933_v0 }
 0xded   : > { %9528 = vmatprep.subr.bf16.mxu1 %v10943_v33 }
 0xdf0   : > { %9530 = vmatpush3.bf16.msra.mxu1 %v13056_v39 }
 0xdf1   : > { %9537 = vmatprep.subr.bf16.mxu1 %v10943_v33 }
 0xebe   : > { %v6623_v43 = vpop.f32.mrb[74].mxu1 }
 0xebf   : > { %v6628_v44 = vrot.slane %v6623_v43, 6  ;;  %v9294_v45 = vpop.f32.mrb[75].mxu1 }
 0xec1   : > { %v6630_v47 = vadd.f32 %v6628_v44, %v13134_v46 }
 0xec3   : > { %10718 = vtanh.f32 %v6630_v47  ;;  %v8912_v50 = vmul.f32 -1.442695, %v6630_v47 }
 0xec5   : > { %10720 = vpow2.f32 %v8912_v50 }
 0xecd   : > { %v10719_v49 = vpop.eup %10718 }
 0xece   : > { %6643 = vrot.lane.b32.xlu1 %v10719_v49, %s13664_s19 }
 0xecf   : > { %v10721_v52 = vpop.eup %10720 }
 0xed0   : > { %v6634_v53 = vadd.f32 1.0, %v10721_v52 }
 0xed2   : > { %10722 = vrcp.f32 %v6634_v53 }
 0xedc   : > { %v10723_v54 = vpop.eup %10722 }
 0xedd   : > { %v6641_v59 = vmul.f32 %v10723_v54, %v6639_v58 }
 0xf40   : > { %v6644_v25 = vpop.permute.xlu1 %6643 }
 0xf41   : > { %v6646_v56 = vmul.f32 %v10723_v54, %v6644_v25 }
 0xf43   : > { %6648 = vrot.lane.b32.xlu0 %v6646_v56, %s13667_s18 }
 0xfb5   : > { %v6649_v62 = vpop.permute.xlu0 %6648 }
 0xfb6   : > { %v6651_v1 = vadd.f32 %v6649_v62, %v6641_v59 }
 0xfb8   : > { %10724 = vtanh.f32 %v6651_v1  ;;  %v6756_v48 = vrot.slane %v6651_v1, 7 }
 0xfc2   : > { %v10725_v61 = vpop.eup %10724 }
 0xfc3   : > { %6654 = vrot.lane.b32.xlu1 %v10725_v61, %s13664_s19 }
0x1035   : > { %v6655_v2 = vpop.permute.xlu1 %6654 }
0x1036   : > { %v13140_v3 = vmul.f32 %v10723_v54, %v6655_v2 }
0x1038   : > { %v6669_v51 = vrot.slane %v13140_v3, 2 }
0x103a   : > { %6670 = vrot.lane.b32.xlu0 %v6669_v51, %s13667_s18 }
0x10ac   : > { %v6671_v63 = vpop.permute.xlu0 %6670 }
0x10ad   : > { %9304 = vmatmul.mubr.msk.f32.vlgmr.msra.gmra.mrb[94].mxu0 %vm3528_vm7, %v6671_v63 }
0x10ae   : > { %9533 = vmatpush3.bf16.msra.mxu0 %v13047_v36  ;;  %9325 = vmatprep.mubr.msk.f32.mxu0 %vm10942_vm4, %v10933_v0 }
0x10af   : > { %9534 = vmatprep.subr.bf16.mxu0 %v10943_v33 }
0x10b2   : > { %9536 = vmatpush3.bf16.msra.mxu0 %v13056_v39 }
0x10b3   : > { %9543 = vmatprep.subr.bf16.mxu0 %v10943_v33 }
0x1180   : > { %v6740_v6 = vpop.f32.mrb[94].mxu0 }
0x1181   : > { %v6745_v7 = vrot.slane %v6740_v6, 5  ;;  %v9305_v8 = vpop.f32.mrb[95].mxu0 }
0x1183   : > { %v6747_v9 = vadd.f32 %v6745_v7, %v13155_v32 }
0x1185   : > { %10726 = vtanh.f32 %v6747_v9  ;;  %v8914_v11 = vmul.f32 -1.442695, %v6747_v9 }
0x1187   : > { %10728 = vpow2.f32 %v8914_v11 }
0x118f   : > { %v10727_v10 = vpop.eup %10726 }
0x1190   : > { %6760 = vrot.lane.b32.xlu1 %v10727_v10, %s13664_s19 }
0x1191   : > { %v10729_v12 = vpop.eup %10728 }
0x1192   : > { %v6751_v13 = vadd.f32 1.0, %v10729_v12 }
0x1194   : > { %10730 = vrcp.f32 %v6751_v13 }
0x119e   : > { %v10731_v14 = vpop.eup %10730 }
0x119f   : > { %v6758_v17 = vmul.f32 %v10731_v14, %v6756_v48 }
0x1202   : > { %v6761_v15 = vpop.permute.xlu1 %6760 }
0x1203   : > { %v6763_v16 = vmul.f32 %v10731_v14, %v6761_v15 }
0x1205   : > { %6765 = vrot.lane.b32.xlu0 %v6763_v16, %s13667_s18 }
0x1277   : > { %v6766_v60 = vpop.permute.xlu0 %6765 }
0x1278   : > { %v6768_v18 = vadd.f32 %v6766_v60, %v6758_v17 }
0x127a   : > { %10732 = vtanh.f32 %v6768_v18  ;;  %v6870_v42 = vrot.slane %v6768_v18, 7 }
0x1284   : > { %v10733_v20 = vpop.eup %10732 }
0x1285   : > { %6771 = vrot.lane.b32.xlu1 %v10733_v20, %s13664_s19 }
0x12f7   : > { %v6772_v21 = vpop.permute.xlu1 %6771 }
0x12f8   : > { %v13161_v22 = vmul.f32 %v10731_v14, %v6772_v21 }
0x12fa   : > { %v6783_v23 = vrot.slane %v13161_v22, 3 }
0x12fc   : > { %6784 = vrot.lane.b32.xlu0 %v6783_v23, %s13667_s18 }
0x136e   : > { %v6785_v24 = vpop.permute.xlu0 %6784 }
0x136f   : > { %9315 = vmatmul.mubr.msk.f32.vlgmr.msra.gmra.mrb[76].mxu1 %vm3528_vm7, %v6785_v24 }
0x1370   : > { %9539 = vmatpush3.bf16.msra.mxu1 %v13047_v36  ;;  %9336 = vmatprep.mubr.msk.f32.mxu1 %vm10942_vm4, %v10933_v0 }
0x1371   : > { %9540 = vmatprep.subr.bf16.mxu1 %v10943_v33 }
0x1374   : > { %9542 = vmatpush3.bf16.msra.mxu1 %v13056_v39 }
0x1375   : > { %9350 = vmatprep.subr.bf16.mxu1 %v10933_v0 }
0x1442   : > { %v6854_v26 = vpop.f32.mrb[76].mxu1 }
0x1443   : > { %v6859_v27 = vrot.slane %v6854_v26, 4  ;;  %v9316_v28 = vpop.f32.mrb[77].mxu1 }
0x1445   : > { %v6861_v29 = vadd.f32 %v6859_v27, %v13093_v5 }
0x1447   : > { %10734 = vtanh.f32 %v6861_v29  ;;  %v8916_v31 = vmul.f32 -1.442695, %v6861_v29 }
0x1449   : > { %10736 = vpow2.f32 %v8916_v31 }
0x1451   : > { %v10735_v30 = vpop.eup %10734 }
0x1452   : > { %6874 = vrot.lane.b32.xlu1 %v10735_v30, %s13664_s19 }
0x1453   : > { %v10737_v34 = vpop.eup %10736 }
0x1454   : > { %v6865_v35 = vadd.f32 1.0, %v10737_v34 }
0x1456   : > { %10738 = vrcp.f32 %v6865_v35 }
0x1460   : > { %v10739_v37 = vpop.eup %10738 }
0x1461   : > { %v6872_v43 = vmul.f32 %v10739_v37, %v6870_v42 }
0x14c4   : > { %v6875_v40 = vpop.permute.xlu1 %6874 }
0x14c5   : > { %v6877_v41 = vmul.f32 %v10739_v37, %v6875_v40 }
0x14c7   : > { %6879 = vrot.lane.b32.xlu0 %v6877_v41, %s13667_s18 }
0x1539   : > { %v6880_v44 = vpop.permute.xlu0 %6879 }
0x153a   : > { %v6882_v45 = vadd.f32 %v6880_v44, %v6872_v43 }
0x153c   : > { %10740 = vtanh.f32 %v6882_v45 }
0x1546   : > { %v10741_v5 = vpop.eup %10740 }
0x1547   : > { %6885 = vrot.lane.b32.xlu1 %v10741_v5, %s13664_s19 }
0x15b9   : > { %v6886_v47 = vpop.permute.xlu1 %6885 }
0x15ba   : > { %v13176_v49 = vmul.f32 %v10739_v37, %v6886_v47 }
0x15bc   : > { %v6897_v50 = vrot.slane %v13176_v49, 4 }
0x15be   : > { %6898 = vrot.lane.b32.xlu0 %v6897_v50, %s13667_s18 }
0x1630   : > { %v6899_v52 = vpop.permute.xlu0 %6898 }
0x1631   : > { %9326 = vmatmul.mubr.msk.f32.vlgmr.msra.gmra.mrb[96].mxu0 %vm3528_vm7, %v6899_v52 }
0x1632   : > { %9545 = vmatpush3.bf16.msra.mxu0 %v13047_v36  ;;  %9347 = vmatprep.mubr.msk.f32.mxu0 %vm10942_vm4, %v10933_v0 }
0x1633   : > { %9546 = vmatprep.subr.bf16.mxu0 %v10943_v33 }
0x1636   : > { %9548 = vmatpush3.bf16.msra.mxu0 %v13056_v39  ;;  %v6984_v39 = vrot.slane %v6882_v45, 7 }
0x1637   : > { %9549 = vmatprep.subr.bf16.mxu0 %v10943_v33 }
0x1704   : > { %v6968_v53 = vpop.f32.mrb[96].mxu0 }
0x1705   : > { %v6973_v54 = vrot.slane %v6968_v53, 3  ;;  %v9327_v25 = vpop.f32.mrb[97].mxu0  ;;  %v7240_v53 = vld [vmem:[%s13620_s11 + $0x60] sm:$0xff] }
0x1707   : > { %v6975_v56 = vadd.f32 %v6973_v54, %v13113_v19  ;;  %v7241_v54 = vld [vmem:[%s13620_s11 + $0x68] sm:$0xff] }
0x1708   : > { %v7250_v25 = vpack.c.bf16 %v7241_v54, %v7240_v53 }
0x1709   : > { %10742 = vtanh.f32 %v6975_v56  ;;  %v8918_v59 = vmul.f32 -1.442695, %v6975_v56  ;;  %v7242_v56 = vld [vmem:[%s13620_s11 + $0x70] sm:$0xff] }
0x170b   : > { %10744 = vpow2.f32 %v8918_v59 }
0x1713   : > { %v10743_v58 = vpop.eup %10742 }
0x1714   : > { %6988 = vrot.lane.b32.xlu1 %v10743_v58, %s13664_s19  ;;  %v7245_v58 = vld [vmem:[%s13620_s11 + $0x88] sm:$0xff] }
0x1715   : > { %v10745_v36 = vpop.eup %10744 }
0x1716   : > { %v6979_v62 = vadd.f32 1.0, %v10745_v36 }
0x1718   : > { %10746 = vrcp.f32 %v6979_v62 }
0x1722   : > { %v10747_v1 = vpop.eup %10746 }
0x1723   : > { %v6986_v51 = vmul.f32 %v10747_v1, %v6984_v39 }
0x1786   : > { %v6989_v61 = vpop.permute.xlu1 %6988 }
0x1787   : > { %v6991_v2 = vmul.f32 %v10747_v1, %v6989_v61  ;;  %v7247_v61 = vld [vmem:[%s13620_s11 + $0x98] sm:$0xff] }
0x1789   : > { %6993 = vrot.lane.b32.xlu0 %v6991_v2, %s13667_s18 }
0x17fb   : > { %v6994_v63 = vpop.permute.xlu0 %6993 }
0x17fc   : > { %v6996_v4 = vadd.f32 %v6994_v63, %v6986_v51 }
0x17fe   : > { %10748 = vtanh.f32 %v6996_v4  ;;  %v7098_v20 = vrot.slane %v6996_v4, 7 }
0x1808   : > { %v10749_v19 = vpop.eup %10748 }
0x1809   : > { %6999 = vrot.lane.b32.xlu1 %v10749_v19, %s13664_s19 }
0x187b   : > { %v7000_v6 = vpop.permute.xlu1 %6999 }
0x187c   : > { %v7002_v7 = vmul.f32 %v10747_v1, %v7000_v6  ;;  %v7246_v1 = vld [vmem:[%s13620_s11 + $0x90] sm:$0xff] }
0x187d   : > { %v13249_v39 = vpack.c.bf16 %v7247_v61, %v7246_v1 }
0x187e   : > { %v7011_v8 = vrot.slane %v7002_v7, 5 }
0x1880   : > { %7012 = vrot.lane.b32.xlu0 %v7011_v8, %s13667_s18 }
0x18f2   : > { %v7013_v9 = vpop.permute.xlu0 %7012 }
0x18f3   : > { %9337 = vmatmul.mubr.msk.f32.vlgmr.msra.gmra.mrb[78].mxu1 %vm3528_vm7, %v7013_v9 }
0x18f4   : > { %9354 = vmatprep.mubr.msk.bf16.mxu1 %vm10942_vm4, %v10933_v0  ;;  %9351 = vmatpush3.bf16.msra.mxu1 %v7250_v25 }
0x18f5   : > { %9352 = vmatprep.subr.bf16.mxu1 %v10933_v0 }
0x19c6   : > { %v7082_v10 = vpop.f32.mrb[78].mxu1 }
0x19c7   : > { %v7087_v11 = vrot.slane %v7082_v10, 2  ;;  %v9338_v12 = vpop.f32.mrb[79].mxu1 }
0x19c9   : > { %v7089_v13 = vadd.f32 %v7087_v11, %v13134_v46  ;;  %v8923_v11 = vld [vmem:[%s13621_s12 + $0x1] ss:$0 sm:$0xff] }
0x19cb   : > { %10750 = vtanh.f32 %v7089_v13  ;;  %v8920_v15 = vmul.f32 -1.442695, %v7089_v13 }
0x19cd   : > { %10752 = vpow2.f32 %v8920_v15 }
0x19d5   : > { %v10751_v14 = vpop.eup %10750 }
0x19d6   : > { %7102 = vrot.lane.b32.xlu1 %v10751_v14, %s13664_s19 }
0x19d7   : > { %v10753_v16 = vpop.eup %10752 }
0x19d8   : > { %v7093_v48 = vadd.f32 1.0, %v10753_v16 }
0x19da   : > { %10754 = vrcp.f32 %v7093_v48 }
0x19e4   : > { %v10755_v17 = vpop.eup %10754 }
0x19e5   : > { %v7100_v21 = vmul.f32 %v10755_v17, %v7098_v20 }
0x1a48   : > { %v7103_v60 = vpop.permute.xlu1 %7102 }
0x1a49   : > { %v7105_v18 = vmul.f32 %v10755_v17, %v7103_v60 }
0x1a4b   : > { %7107 = vrot.lane.b32.xlu0 %v7105_v18, %s13667_s18 }
0x1abd   : > { %v7108_v23 = vpop.permute.xlu0 %7107 }
0x1abe   : > { %v7110_v24 = vadd.f32 %v7108_v23, %v7100_v21 }
0x1ac0   : > { %10756 = vtanh.f32 %v7110_v24 }
0x1aca   : > { %v10757_v46 = vpop.eup %10756 }
0x1acb   : > { %7113 = vrot.lane.b32.xlu1 %v10757_v46, %s13664_s19 }
0x1b3d   : > { %v7114_v26 = vpop.permute.xlu1 %7113 }
0x1b3e   : > { %v7116_v27 = vmul.f32 %v10755_v17, %v7114_v26 }
0x1b40   : > { %v7125_v28 = vrot.slane %v7116_v27, 6 }
0x1b42   : > { %7126 = vrot.lane.b32.xlu0 %v7125_v28, %s13667_s18 }
0x1bb4   : > { %v7127_v29 = vpop.permute.xlu0 %7126 }
0x1bb5   : > { %9348 = vmatmul.mubr.msk.f32.vlgmr.msra.gmra.mrb[98].mxu0 %vm3528_vm7, %v7127_v29 }
0x1bb6   : > { %9366 = vmatprep.mubr.msk.f32.mxu0 %vm10942_vm4, %v10933_v0 }
0x1c88   : > { %v7196_v30 = vpop.f32.mrb[98].mxu0 }
0x1c89   : > { %v7201_v31 = vrot.slane %v7196_v30, 1  ;;  %v9349_v34 = vpop.f32.mrb[99].mxu0 }
0x1c8b   : > { %v7203_v35 = vadd.f32 %v7201_v31, %v13155_v32  ;;  %v7212_v32 = vrot.slane %v7110_v24, 7 }
0x1c8d   : > { %10758 = vtanh.f32 %v7203_v35  ;;  %v8922_v40 = vmul.f32 -1.442695, %v7203_v35 }
0x1c8f   : > { %10760 = vpow2.f32 %v8922_v40 }
0x1c97   : > { %v10759_v37 = vpop.eup %10758 }
0x1c98   : > { %7216 = vrot.lane.b32.xlu1 %v10759_v37, %s13664_s19 }
0x1c99   : > { %v10761_v41 = vpop.eup %10760 }
0x1c9a   : > { %v7207_v42 = vadd.f32 1.0, %v10761_v41 }
0x1c9c   : > { %10762 = vrcp.f32 %v7207_v42 }
0x1ca6   : > { %v10763_v43 = vpop.eup %10762 }
0x1ca7   : > { %v7214_v5 = vmul.f32 %v10763_v43, %v7212_v32 }
0x1d0a   : > { %v7217_v44 = vpop.permute.xlu1 %7216 }
0x1d0b   : > { %v7219_v45 = vmul.f32 %v10763_v43, %v7217_v44 }
0x1d0d   : > { %7221 = vrot.lane.b32.xlu0 %v7219_v45, %s13667_s18 }
0x1d11   : > { %6542 = vrot.lane.b32.xlu0 %v13119_v38, %s13667_s18 }
0x1d15   : > { %6776 = vrot.lane.b32.xlu0 %v13161_v22, %s13667_s18 }
0x1d19   : > { %7004 = vrot.lane.b32.xlu0 %v7002_v7, %s13667_s18 }
0x1d7f   : > { %v7222_v47 = vpop.permute.xlu0 %7221 }
0x1d80   : > { %v7224_v50 = vadd.f32 %v7222_v47, %v7214_v5 }
0x1d82   : > { %10764 = vtanh.f32 %v7224_v50 }
0x1d83   : > { %v6543_v52 = vpop.permute.xlu0 %6542 }
0x1d84   : > { %6546 = vst.msk [vmem:[#allocation9] sm:$0x2] %vm6545_vm3, %v6543_v52 }
0x1d85   : > { %6548 = vst.msk [vmem:[#allocation9 + $0x5] sm:$0x2] %vm6547_vm5, %v6543_v52 }
0x1d87   : > { %v6777_v38 = vpop.permute.xlu0 %6776 }
0x1d88   : > { %6780 = vst.msk [vmem:[#allocation9] sm:$0x8] %vm6779_vm6, %v6777_v38 }
0x1d89   : > { %6782 = vst.msk [vmem:[#allocation9 + $0x1] sm:$0x8] %vm6781_vm8, %v6777_v38 }
0x1d8b   : > { %v7005_v63 = vpop.permute.xlu0 %7004 }
0x1d8c   : > { %v10765_v22 = vpop.eup %10764 }
0x1d8d   : > { %7227 = vrot.lane.b32.xlu1 %v10765_v22, %s13664_s19 }
0x1d91   : > { %6659 = vrot.lane.b32.xlu1 %v13140_v3, %s13667_s18  ;;  %v7243_v3 = vld [vmem:[%s13620_s11 + $0x78] sm:$0xff] }
0x1d92   : > { %v7251_v59 = vpack.c.bf16 %v7243_v3, %v7242_v56 }
0x1d94   : > { %9353 = vmatpush3.bf16.msra.mxu1 %v7251_v59 }
0x1d95   : > { %6890 = vrot.lane.b32.xlu1 %v13176_v49, %s13667_s18  ;;  %v7244_v49 = vld [vmem:[%s13620_s11 + $0x80] sm:$0xff]  ;;  %9555 = vmatprep.subr.bf16.mxu1 %v10943_v33 }
0x1d96   : > { %v13239_v36 = vpack.c.bf16 %v7245_v58, %v7244_v49 }
0x1d98   : > { %9551 = vmatpush3.bf16.msra.mxu0 %v13239_v36 }
0x1d99   : > { %7118 = vrot.lane.b32.xlu1 %v7116_v27, %s13667_s18  ;;  %9552 = vmatprep.subr.bf16.mxu0 %v10943_v33 }
0x1d9c   : > { %9554 = vmatpush3.bf16.msra.mxu0 %v13249_v39 }
0x1d9d   : > { %9561 = vmatprep.subr.bf16.mxu0 %v10943_v33 }
0x1d9f   : > { %9367 = vmatmul.mubr.f32.vlgmr.msra.gmra.mrb[100].mxu0 %v10933_v0 }
0x1da0   : > { %9563 = vmatpush3.bf16.msra.mxu0 %v13239_v36  ;;  %9388 = vmatprep.mubr.msk.f32.mxu0 %vm10942_vm4, %v10933_v0 }
0x1da1   : > { %9564 = vmatprep.subr.bf16.mxu0 %v10943_v33 }
0x1da4   : > { %9566 = vmatpush3.bf16.msra.mxu0 %v13249_v39 }
0x1da5   : > { %9573 = vmatprep.subr.bf16.mxu0 %v10943_v33 }
0x1dff   : > { %v7228_v62 = vpop.permute.xlu1 %7227 }
0x1e00   : > { %v7230_v2 = vmul.f32 %v10763_v43, %v7228_v62 }
0x1e02   : > { %7232 = vrot.lane.b32.xlu0 %v7230_v2, %s13667_s18 }
0x1e03   : > { %v6660_v51 = vpop.permute.xlu1 %6659 }
0x1e04   : > { %6663 = vst.msk [vmem:[#allocation9] sm:$0x4] %vm6662_vm9, %v6660_v51 }
0x1e05   : > { %6665 = vst.msk [vmem:[#allocation9 + $0x3] sm:$0x4] %vm6664_vm10, %v6660_v51 }
0x1e06   : > { %7008 = vst.msk [vmem:[#allocation9] sm:$0x20] %vm13640_vm11, %v7005_v63  ;;  %vm7123_vm11 = vcmask 260230  }
0x1e07   : > { %7010 = vst.msk [vmem:[#allocation9 - $0x3] sm:$0x20] %vm7009_vm13, %v7005_v63  ;;  %v6891_v4 = vpop.permute.xlu1 %6890 }
0x1e08   : > { %6894 = vst.msk [vmem:[#allocation9] sm:$0x10] %vm13641_vm14, %v6891_v4  ;;  %vm7235_vm14 = vcmask 130055  }
0x1e09   : > { %6896 = vst.msk [vmem:[#allocation9 - $0x1] sm:$0x10] %vm13642_vm15, %v6891_v4  ;;  %vm7237_vm15 = vcmask 261255  }
0x1e0b   : > { %v7119_v19 = vpop.permute.xlu1 %7118 }
0x1e0c   : > { %7122 = vst.msk [vmem:[#allocation9] sm:$0x40] %vm7121_vm0, %v7119_v19 }
0x1e0d   : > { %7124 = vst.msk [vmem:[#allocation9 - $0x5] sm:$0x40] %vm7123_vm11, %v7119_v19 }
0x1e72   : > { %v7369_v9 = vpop.f32.mrb[100].mxu0 }
0x1e73   : > { %v9368_v10 = vpop.f32.mrb[101].mxu0 }
0x1e74   : > { %v7233_v6 = vpop.permute.xlu0 %7232 }
0x1e75   : > { %7236 = vst.msk [vmem:[#allocation9] sm:$0x80] %vm7235_vm14, %v7233_v6 }
0x1e76   : > { %7238 = vst.msk [vmem:[#allocation9 - $0x7] sm:$0x80] %vm7237_vm15, %v7233_v6 }
0x1e7d   : > { %v7239_v7 = vld [vmem:[#allocation9] sm:$0xff] }
0x1e7e   : > { %v7249_v8 = vpack.c.bf16 %v7239_v7, %v7239_v7 }
0x1e80   : > { %9355 = vmatmul.mubr.msk.bf16.vlgmr.msra.gmra.mrb[80].mxu1 %vm3528_vm7, %v7249_v8 }
0x1e81   : > { %9557 = vmatpush3.bf16.msra.mxu1 %v13239_v36  ;;  %9377 = vmatprep.mubr.msk.f32.mxu1 %vm10942_vm4, %v10933_v0 }
0x1e82   : > { %9558 = vmatprep.subr.bf16.mxu1 %v10943_v33 }
0x1e85   : > { %9560 = vmatpush3.bf16.msra.mxu1 %v13249_v39 }
0x1e86   : > { %9567 = vmatprep.subr.bf16.mxu1 %v10943_v33 }
0x1f53   : > { %v7293_v12 = vpop.f32.mrb[80].mxu1 }
0x1f54   : > { %v13283_v13 = vadd.f32 %v8923_v11, %v7293_v12  ;;  %v9356_v14 = vpop.f32.mrb[81].mxu1 }
0x1f55   : > { %v7296_v15 = vpop.f32.mrb[82].mxu1 }
0x1f56   : > { %v9357_v16 = vpop.f32.mrb[83].mxu1  ;;  %v7300_v48 = vrot.slane %v13283_v13, 7  ;;  %v7404_v37 = vrot.slane %v13283_v13, 5  ;;  %v7516_v62 = vrot.slane %v13283_v13, 3 }
0x1f58   : > { %v13289_v17 = vsel %vm13085_vm12, %v13283_v13, %v7300_v48  ;;  %v13309_v43 = vsel %vm13085_vm12, %v13283_v13, %v7404_v37  ;;  %v13330_v51 = vsel %vm13085_vm12, %v13283_v13, %v7516_v62 }
0x1f59   : > { %v7373_v60 = vadd.f32 %v7369_v9, %v13289_v17 }
0x1f5b   : > { %10766 = vtanh.f32 %v7373_v60  ;;  %v8925_v20 = vmul.f32 -1.442695, %v7373_v60 }
0x1f5d   : > { %10768 = vpow2.f32 %v8925_v20 }
0x1f65   : > { %v10767_v18 = vpop.eup %10766 }
0x1f66   : > { %7383 = vrot.lane.b32.xlu1 %v10767_v18, %s13664_s19 }
0x1f67   : > { %v10769_v21 = vpop.eup %10768 }
0x1f68   : > { %v7377_v23 = vadd.f32 1.0, %v10769_v21  ;;  %v7631_v21 = vrot.slane %v13283_v13, 1 }
0x1f6a   : > { %10770 = vrcp.f32 %v7377_v23 }
0x1f74   : > { %v10771_v24 = vpop.eup %10770 }
0x1f75   : > { %v7381_v27 = vmul.f32 0.0, %v10771_v24 }
0x1fd8   : > { %v7384_v46 = vpop.permute.xlu1 %7383 }
0x1fd9   : > { %v7386_v26 = vmul.f32 %v10771_v24, %v7384_v46 }
0x1fdb   : > { %7388 = vrot.lane.b32.xlu0 %v7386_v26, %s13667_s18  ;;  %v13351_v26 = vsel %vm13085_vm12, %v13283_v13, %v7631_v21  ;;  %vm13668_vm12 = vcmask 128005  }
0x204d   : > { %v7389_v28 = vpop.permute.xlu0 %7388 }
0x204e   : > { %v7391_v29 = vadd.f32 %v7389_v28, %v7381_v27 }
0x2050   : > { %10772 = vtanh.f32 %v7391_v29  ;;  %v7491_v22 = vrot.slane %v7391_v29, 7 }
0x205a   : > { %v10773_v30 = vpop.eup %10772 }
0x205b   : > { %7394 = vrot.lane.b32.xlu1 %v10773_v30, %s13664_s19 }
0x20cd   : > { %v7395_v31 = vpop.permute.xlu1 %7394 }
0x20ce   : > { %v7397_v34 = vmul.f32 %v10771_v24, %v7395_v31 }
0x20d0   : > { %7399 = vrot.lane.b32.xlu0 %v7397_v34, %s13667_s18 }
0x2142   : > { %v7400_v35 = vpop.permute.xlu0 %7399 }
0x2143   : > { %7402 = vst.msk [vmem:[#allocation9] sm:$0x1] %vm6431_vm2, %v7400_v35  ;;  %9378 = vmatmul.mubr.msk.f32.vlgmr.msra.gmra.mrb[84].mxu1 %vm3528_vm7, %v7400_v35 }
0x2144   : > { %7403 = vst.msk [vmem:[#allocation9 + $0x7] sm:$0x1] %vm6433_vm1, %v7400_v35  ;;  %9569 = vmatpush3.bf16.msra.mxu1 %v13239_v36  ;;  %9399 = vmatprep.mubr.msk.f32.mxu1 %vm10942_vm4, %v10933_v0  ;;  %vm13669_vm1 = vcmask 126980  }
0x2145   : > { %9570 = vmatprep.subr.bf16.mxu1 %v10943_v33 }
0x2148   : > { %9572 = vmatpush3.bf16.msra.mxu1 %v13249_v39 }
0x2149   : > { %9579 = vmatprep.subr.bf16.mxu1 %v10943_v33 }
0x2216   : > { %v7475_v40 = vpop.f32.mrb[84].mxu1 }
0x2217   : > { %v7480_v41 = vrot.slane %v7475_v40, 7  ;;  %v9379_v42 = vpop.f32.mrb[85].mxu1 }
0x2219   : > { %v7482_v44 = vadd.f32 %v7480_v41, %v13309_v43 }
0x221b   : > { %10774 = vtanh.f32 %v7482_v44  ;;  %v8927_v32 = vmul.f32 -1.442695, %v7482_v44 }
0x221d   : > { %10776 = vpow2.f32 %v8927_v32 }
0x2225   : > { %v10775_v45 = vpop.eup %10774 }
0x2226   : > { %7495 = vrot.lane.b32.xlu1 %v10775_v45, %s13664_s19 }
0x2227   : > { %v10777_v5 = vpop.eup %10776 }
0x2228   : > { %v7486_v47 = vadd.f32 1.0, %v10777_v5 }
0x222a   : > { %10778 = vrcp.f32 %v7486_v47 }
0x2234   : > { %v10779_v50 = vpop.eup %10778 }
0x2235   : > { %v7493_v53 = vmul.f32 %v10779_v50, %v7491_v22 }
0x2298   : > { %v7496_v52 = vpop.permute.xlu1 %7495 }
0x2299   : > { %v7498_v38 = vmul.f32 %v10779_v50, %v7496_v52 }
0x229b   : > { %7500 = vrot.lane.b32.xlu0 %v7498_v38, %s13667_s18 }
0x230d   : > { %v7501_v54 = vpop.permute.xlu0 %7500 }
0x230e   : > { %v7503_v25 = vadd.f32 %v7501_v54, %v7493_v53 }
0x2310   : > { %10780 = vtanh.f32 %v7503_v25  ;;  %v7606_v11 = vrot.slane %v7503_v25, 7 }
0x231a   : > { %v10781_v56 = vpop.eup %10780 }
0x231b   : > { %7506 = vrot.lane.b32.xlu1 %v10781_v56, %s13664_s19 }
0x238d   : > { %v7507_v3 = vpop.permute.xlu1 %7506 }
0x238e   : > { %v13315_v49 = vmul.f32 %v10779_v50, %v7507_v3 }
0x2390   : > { %v7519_v58 = vrot.slane %v13315_v49, 1 }
0x2392   : > { %7520 = vrot.lane.b32.xlu0 %v7519_v58, %s13667_s18 }
0x2404   : > { %v7521_v59 = vpop.permute.xlu0 %7520 }
0x2405   : > { %9389 = vmatmul.mubr.msk.f32.vlgmr.msra.gmra.mrb[102].mxu0 %vm3528_vm7, %v7521_v59 }
0x2406   : > { %9575 = vmatpush3.bf16.msra.mxu0 %v13239_v36  ;;  %9410 = vmatprep.mubr.msk.f32.mxu0 %vm10942_vm4, %v10933_v0 }
0x2407   : > { %9576 = vmatprep.subr.bf16.mxu0 %v10943_v33 }
0x240a   : > { %9578 = vmatpush3.bf16.msra.mxu0 %v13249_v39 }
0x240b   : > { %9585 = vmatprep.subr.bf16.mxu0 %v10943_v33 }
0x24d8   : > { %v7590_v1 = vpop.f32.mrb[102].mxu0 }
0x24d9   : > { %v7595_v61 = vrot.slane %v7590_v1, 6  ;;  %v9390_v2 = vpop.f32.mrb[103].mxu0 }
0x24db   : > { %v7597_v63 = vadd.f32 %v7595_v61, %v13330_v51 }
0x24dd   : > { %10782 = vtanh.f32 %v7597_v63  ;;  %v8929_v19 = vmul.f32 -1.442695, %v7597_v63 }
0x24df   : > { %10784 = vpow2.f32 %v8929_v19 }
0x24e7   : > { %v10783_v4 = vpop.eup %10782 }
0x24e8   : > { %7610 = vrot.lane.b32.xlu1 %v10783_v4, %s13664_s19 }
0x24e9   : > { %v10785_v6 = vpop.eup %10784 }
0x24ea   : > { %v7601_v7 = vadd.f32 1.0, %v10785_v6 }
0x24ec   : > { %10786 = vrcp.f32 %v7601_v7 }
0x24f6   : > { %v10787_v8 = vpop.eup %10786 }
0x24f7   : > { %v7608_v12 = vmul.f32 %v10787_v8, %v7606_v11 }
0x255a   : > { %v7611_v9 = vpop.permute.xlu1 %7610 }
0x255b   : > { %v7613_v10 = vmul.f32 %v10787_v8, %v7611_v9 }
0x255d   : > { %7615 = vrot.lane.b32.xlu0 %v7613_v10, %s13667_s18 }
0x25cf   : > { %v7616_v14 = vpop.permute.xlu0 %7615 }
0x25d0   : > { %v7618_v15 = vadd.f32 %v7616_v14, %v7608_v12 }
0x25d2   : > { %10788 = vtanh.f32 %v7618_v15  ;;  %v7721_v40 = vrot.slane %v7618_v15, 7 }
0x25dc   : > { %v10789_v16 = vpop.eup %10788 }
0x25dd   : > { %7621 = vrot.lane.b32.xlu1 %v10789_v16, %s13664_s19 }
0x264f   : > { %v7622_v48 = vpop.permute.xlu1 %7621 }
0x2650   : > { %v13336_v60 = vmul.f32 %v10787_v8, %v7622_v48 }
0x2652   : > { %v7634_v18 = vrot.slane %v13336_v60, 2 }
0x2654   : > { %7635 = vrot.lane.b32.xlu0 %v7634_v18, %s13667_s18 }
0x26c6   : > { %v7636_v20 = vpop.permute.xlu0 %7635 }
0x26c7   : > { %9400 = vmatmul.mubr.msk.f32.vlgmr.msra.gmra.mrb[86].mxu1 %vm3528_vm7, %v7636_v20 }
0x26c8   : > { %9581 = vmatpush3.bf16.msra.mxu1 %v13239_v36  ;;  %9421 = vmatprep.mubr.msk.f32.mxu1 %vm10942_vm4, %v10933_v0 }
0x26c9   : > { %9582 = vmatprep.subr.bf16.mxu1 %v10943_v33 }
0x26cc   : > { %9584 = vmatpush3.bf16.msra.mxu1 %v13249_v39 }
0x26cd   : > { %9591 = vmatprep.subr.bf16.mxu1 %v10943_v33 }
0x279a   : > { %v7705_v23 = vpop.f32.mrb[86].mxu1 }
0x279b   : > { %v7710_v24 = vrot.slane %v7705_v23, 5  ;;  %v9401_v46 = vpop.f32.mrb[87].mxu1 }
0x279d   : > { %v7712_v27 = vadd.f32 %v7710_v24, %v13351_v26 }
0x279f   : > { %10790 = vtanh.f32 %v7712_v27  ;;  %v8931_v29 = vmul.f32 -1.442695, %v7712_v27 }
0x27a1   : > { %10792 = vpow2.f32 %v8931_v29 }
0x27a9   : > { %v10791_v28 = vpop.eup %10790 }
0x27aa   : > { %7725 = vrot.lane.b32.xlu1 %v10791_v28, %s13664_s19 }
0x27ab   : > { %v10793_v30 = vpop.eup %10792 }
0x27ac   : > { %v7716_v31 = vadd.f32 1.0, %v10793_v30 }
0x27ae   : > { %10794 = vrcp.f32 %v7716_v31 }
0x27b8   : > { %v10795_v34 = vpop.eup %10794 }
0x27b9   : > { %v7723_v57 = vmul.f32 %v10795_v34, %v7721_v40 }
0x281c   : > { %v7726_v35 = vpop.permute.xlu1 %7725 }
0x281d   : > { %v7728_v37 = vmul.f32 %v10795_v34, %v7726_v35 }
0x281f   : > { %7730 = vrot.lane.b32.xlu0 %v7728_v37, %s13667_s18 }
0x2891   : > { %v7731_v13 = vpop.permute.xlu0 %7730 }
0x2892   : > { %v7733_v41 = vadd.f32 %v7731_v13, %v7723_v57 }
0x2894   : > { %10796 = vtanh.f32 %v7733_v41  ;;  %v7833_v59 = vrot.slane %v7733_v41, 7 }
0x289e   : > { %v10797_v42 = vpop.eup %10796 }
0x289f   : > { %7736 = vrot.lane.b32.xlu1 %v10797_v42, %s13664_s19 }
0x2911   : > { %v7737_v44 = vpop.permute.xlu1 %7736 }
0x2912   : > { %v13357_v45 = vmul.f32 %v10795_v34, %v7737_v44 }
0x2914   : > { %v7746_v32 = vrot.slane %v13357_v45, 3 }
0x2916   : > { %7747 = vrot.lane.b32.xlu0 %v7746_v32, %s13667_s18 }
0x2988   : > { %v7748_v5 = vpop.permute.xlu0 %7747 }
0x2989   : > { %9411 = vmatmul.mubr.msk.f32.vlgmr.msra.gmra.mrb[104].mxu0 %vm3528_vm7, %v7748_v5 }
0x298a   : > { %9587 = vmatpush3.bf16.msra.mxu0 %v13239_v36  ;;  %9432 = vmatprep.mubr.msk.f32.mxu0 %vm10942_vm4, %v10933_v0 }
0x298b   : > { %9588 = vmatprep.subr.bf16.mxu0 %v10943_v33 }
0x298e   : > { %9590 = vmatpush3.bf16.msra.mxu0 %v13249_v39 }
0x298f   : > { %9597 = vmatprep.subr.bf16.mxu0 %v10943_v33 }
0x2a5c   : > { %v7817_v47 = vpop.f32.mrb[104].mxu0 }
0x2a5d   : > { %v7822_v50 = vrot.slane %v7817_v47, 4  ;;  %v9412_v52 = vpop.f32.mrb[105].mxu0 }
0x2a5f   : > { %v7824_v38 = vadd.f32 %v7822_v50, %v13289_v17 }
0x2a61   : > { %10798 = vtanh.f32 %v7824_v38  ;;  %v8933_v53 = vmul.f32 -1.442695, %v7824_v38 }
0x2a63   : > { %10800 = vpow2.f32 %v8933_v53 }
0x2a6b   : > { %v10799_v22 = vpop.eup %10798 }
0x2a6c   : > { %7837 = vrot.lane.b32.xlu1 %v10799_v22, %s13664_s19 }
0x2a6d   : > { %v10801_v54 = vpop.eup %10800 }
0x2a6e   : > { %v7828_v25 = vadd.f32 1.0, %v10801_v54 }
0x2a70   : > { %10802 = vrcp.f32 %v7828_v25 }
0x2a7a   : > { %v10803_v56 = vpop.eup %10802 }
0x2a7b   : > { %v7835_v62 = vmul.f32 %v10803_v56, %v7833_v59 }
0x2ade   : > { %v7838_v3 = vpop.permute.xlu1 %7837 }
0x2adf   : > { %v7840_v58 = vmul.f32 %v10803_v56, %v7838_v3 }
0x2ae1   : > { %7842 = vrot.lane.b32.xlu0 %v7840_v58, %s13667_s18 }
0x2b53   : > { %v7843_v1 = vpop.permute.xlu0 %7842 }
0x2b54   : > { %v7845_v61 = vadd.f32 %v7843_v1, %v7835_v62 }
0x2b56   : > { %10804 = vtanh.f32 %v7845_v61 }
0x2b60   : > { %v10805_v17 = vpop.eup %10804 }
0x2b61   : > { %7848 = vrot.lane.b32.xlu1 %v10805_v17, %s13664_s19 }
0x2bd3   : > { %v7849_v2 = vpop.permute.xlu1 %7848 }
0x2bd4   : > { %v13372_v63 = vmul.f32 %v10803_v56, %v7849_v2 }
0x2bd6   : > { %v7858_v4 = vrot.slane %v13372_v63, 4 }
0x2bd8   : > { %7859 = vrot.lane.b32.xlu0 %v7858_v4, %s13667_s18 }
0x2c4a   : > { %v7860_v19 = vpop.permute.xlu0 %7859 }
0x2c4b   : > { %9422 = vmatmul.mubr.msk.f32.vlgmr.msra.gmra.mrb[88].mxu1 %vm3528_vm7, %v7860_v19 }
0x2c4c   : > { %9593 = vmatpush3.bf16.msra.mxu1 %v13239_v36  ;;  %9443 = vmatprep.mubr.msk.f32.mxu1 %vm10942_vm4, %v10933_v0 }
0x2c4d   : > { %9594 = vmatprep.subr.bf16.mxu1 %v10943_v33 }
0x2c50   : > { %9596 = vmatpush3.bf16.msra.mxu1 %v13249_v39  ;;  %v7945_v39 = vrot.slane %v7845_v61, 7 }
0x2c51   : > { %9603 = vmatprep.subr.bf16.mxu1 %v10943_v33 }
0x2d1e   : > { %v7929_v6 = vpop.f32.mrb[88].mxu1 }
0x2d1f   : > { %v7934_v7 = vrot.slane %v7929_v6, 3  ;;  %v9423_v8 = vpop.f32.mrb[89].mxu1  ;;  %v8200_v6 = vld [vmem:[%s13622_s13 + $0x28] sm:$0xff] }
0x2d21   : > { %v7936_v9 = vadd.f32 %v7934_v7, %v13309_v43  ;;  %v8195_v7 = vld [vmem:[%s13622_s13] sm:$0xff] }
0x2d23   : > { %10806 = vtanh.f32 %v7936_v9  ;;  %v8935_v11 = vmul.f32 -1.442695, %v7936_v9  ;;  %v8202_v9 = vld [vmem:[%s13622_s13 + $0x38] sm:$0xff] }
0x2d25   : > { %10808 = vpow2.f32 %v8935_v11  ;;  %v8197_v11 = vld [vmem:[%s13622_s13 + $0x10] sm:$0xff] }
0x2d2d   : > { %v10807_v10 = vpop.eup %10806 }
0x2d2e   : > { %7949 = vrot.lane.b32.xlu1 %v10807_v10, %s13664_s19 }
0x2d2f   : > { %v10809_v36 = vpop.eup %10808 }
0x2d30   : > { %v7940_v12 = vadd.f32 1.0, %v10809_v36  ;;  %v8198_v36 = vld [vmem:[%s13622_s13 + $0x18] sm:$0xff] }
0x2d32   : > { %10810 = vrcp.f32 %v7940_v12 }
0x2d3c   : > { %v10811_v14 = vpop.eup %10810 }
0x2d3d   : > { %v7947_v48 = vmul.f32 %v10811_v14, %v7945_v39 }
0x2da0   : > { %v7950_v15 = vpop.permute.xlu1 %7949 }
0x2da1   : > { %v7952_v16 = vmul.f32 %v10811_v14, %v7950_v15 }
0x2da3   : > { %7954 = vrot.lane.b32.xlu0 %v7952_v16, %s13667_s18 }
0x2e15   : > { %v7955_v18 = vpop.permute.xlu0 %7954 }
0x2e16   : > { %v7957_v20 = vadd.f32 %v7955_v18, %v7947_v48 }
0x2e18   : > { %10812 = vtanh.f32 %v7957_v20  ;;  %v8057_v41 = vrot.slane %v7957_v20, 7 }
0x2e22   : > { %v10813_v43 = vpop.eup %10812 }
0x2e23   : > { %7960 = vrot.lane.b32.xlu1 %v10813_v43, %s13664_s19 }
0x2e95   : > { %v7961_v21 = vpop.permute.xlu1 %7960 }
0x2e96   : > { %v7963_v23 = vmul.f32 %v10811_v14, %v7961_v21  ;;  %v9601_v14 = vpack.c.bf16 %v8198_v36, %v8197_v11  ;;  %v8209_v11 = vld [vmem:[%s13622_s13 + $0x70] sm:$0xff]  ;;  %v8210_v36 = vld [vmem:[%s13622_s13 + $0x78] sm:$0xff] }
0x2e98   : > { %v7970_v24 = vrot.slane %v7963_v23, 5 }
0x2e9a   : > { %7971 = vrot.lane.b32.xlu0 %v7970_v24, %s13667_s18  ;;  %v8295_v24 = vshrl.u32 %v6245_v55, 7 }
0x2f0c   : > { %v7972_v46 = vpop.permute.xlu0 %7971 }
0x2f0d   : > { %9433 = vmatmul.mubr.msk.f32.vlgmr.msra.gmra.mrb[106].mxu0 %vm3528_vm7, %v7972_v46 }
0x2f0e   : > { %9454 = vmatprep.mubr.msk.f32.mxu0 %vm10942_vm4, %v10933_v0 }
0x2fe0   : > { %v8041_v27 = vpop.f32.mrb[106].mxu0 }
0x2fe1   : > { %v8046_v28 = vrot.slane %v8041_v27, 2  ;;  %v9434_v29 = vpop.f32.mrb[107].mxu0  ;;  %v8215_v27 = vld [vmem:[%s13623_s14] sm:$0x1] }
0x2fe2   : > { %v8296_v29 = vsub.s32 0, %v8295_v24  ;;  %v8218_v24 = vld [vmem:[%s13623_s14 + $0x3] sm:$0x1] }
0x2fe3   : > { %v8048_v30 = vadd.f32 %v8046_v28, %v13330_v51 }
0x2fe5   : > { %10814 = vtanh.f32 %v8048_v30  ;;  %v8937_v34 = vmul.f32 -1.442695, %v8048_v30 }
0x2fe7   : > { %10816 = vpow2.f32 %v8937_v34 }
0x2fef   : > { %v10815_v31 = vpop.eup %10814 }
0x2ff0   : > { %8061 = vrot.lane.b32.xlu1 %v10815_v31, %s13664_s19 }
0x2ff1   : > { %v10817_v35 = vpop.eup %10816 }
0x2ff2   : > { %v8052_v37 = vadd.f32 1.0, %v10817_v35 }
0x2ff4   : > { %10818 = vrcp.f32 %v8052_v37 }
0x2ffe   : > { %v10819_v40 = vpop.eup %10818 }
0x2fff   : > { %v8059_v42 = vmul.f32 %v10819_v40, %v8057_v41  ;;  %v8203_v41 = vld [vmem:[%s13622_s13 + $0x40] sm:$0xff] }
0x3062   : > { %v8062_v57 = vpop.permute.xlu1 %8061 }
0x3063   : > { %v8064_v13 = vmul.f32 %v10819_v40, %v8062_v57 }
0x3065   : > { %8066 = vrot.lane.b32.xlu0 %v8064_v13, %s13667_s18 }
0x30d7   : > { %v8067_v44 = vpop.permute.xlu0 %8066 }
0x30d8   : > { %v8069_v32 = vadd.f32 %v8067_v44, %v8059_v42  ;;  %v8204_v42 = vld [vmem:[%s13622_s13 + $0x48] sm:$0xff]  ;;  %v8205_v44 = vld [vmem:[%s13622_s13 + $0x50] sm:$0xff] }
0x30da   : > { %10820 = vtanh.f32 %v8069_v32 }
0x30e4   : > { %v10821_v51 = vpop.eup %10820 }
0x30e5   : > { %8072 = vrot.lane.b32.xlu1 %v10821_v51, %s13664_s19  ;;  %v8206_v51 = vld [vmem:[%s13622_s13 + $0x58] sm:$0xff] }
0x3157   : > { %v8073_v5 = vpop.permute.xlu1 %8072 }
0x3158   : > { %v8075_v47 = vmul.f32 %v10819_v40, %v8073_v5  ;;  %v8942_v40 = vld [vmem:[%s13623_s14 + $0x1] ss:$0 sm:$0xff]  ;;  %v9613_v5 = vpack.c.bf16 %v8206_v51, %v8205_v44 }
0x315a   : > { %v8082_v50 = vrot.slane %v8075_v47, 6 }
0x315c   : > { %8083 = vrot.lane.b32.xlu0 %v8082_v50, %s13667_s18  ;;  %v8208_v50 = vld [vmem:[%s13622_s13 + $0x68] sm:$0xff] }
0x31ce   : > { %v8084_v52 = vpop.permute.xlu0 %8083 }
0x31cf   : > { %9444 = vmatmul.mubr.msk.f32.vlgmr.msra.gmra.mrb[90].mxu1 %vm3528_vm7, %v8084_v52 }
0x31d0   : > { %9465 = vmatprep.mubr.msk.f32.mxu1 %vm10942_vm4, %v10933_v0 }
0x32a2   : > { %v8153_v38 = vpop.f32.mrb[90].mxu1 }
0x32a3   : > { %v8158_v22 = vrot.slane %v8153_v38, 1  ;;  %v9445_v53 = vpop.f32.mrb[91].mxu1 }
0x32a5   : > { %v8160_v54 = vadd.f32 %v8158_v22, %v13351_v26  ;;  %v8169_v26 = vrot.slane %v8069_v32, 7  ;;  %v9610_v32 = vpack.c.bf16 %v8204_v42, %v8203_v41 }
0x32a7   : > { %10822 = vtanh.f32 %v8160_v54  ;;  %v8939_v56 = vmul.f32 -1.442695, %v8160_v54 }
0x32a9   : > { %10824 = vpow2.f32 %v8939_v56 }
0x32b1   : > { %v10823_v25 = vpop.eup %10822 }
0x32b2   : > { %8173 = vrot.lane.b32.xlu1 %v10823_v25, %s13664_s19 }
0x32b3   : > { %v10825_v3 = vpop.eup %10824 }
0x32b4   : > { %v8164_v58 = vadd.f32 1.0, %v10825_v3 }
0x32b6   : > { %10826 = vrcp.f32 %v8164_v58 }
0x32c0   : > { %v10827_v59 = vpop.eup %10826 }
0x32c1   : > { %v8171_v61 = vmul.f32 %v10827_v59, %v8169_v26 }
0x3324   : > { %v8174_v62 = vpop.permute.xlu1 %8173 }
0x3325   : > { %v8176_v1 = vmul.f32 %v10827_v59, %v8174_v62 }
0x3327   : > { %8178 = vrot.lane.b32.xlu0 %v8176_v1, %s13667_s18 }
0x332b   : > { %7511 = vrot.lane.b32.xlu0 %v13315_v49, %s13667_s18 }
0x332f   : > { %7741 = vrot.lane.b32.xlu0 %v13357_v45, %s13667_s18  ;;  %v8199_v45 = vld [vmem:[%s13622_s13 + $0x20] sm:$0xff] }
0x3330   : > { %v9604_v8 = vpack.c.bf16 %v8200_v6, %v8199_v45 }
0x3332   : > { %9605 = vmatpush3.bf16.msra.mxu1 %v9604_v8 }
0x3333   : > { %7965 = vrot.lane.b32.xlu0 %v7963_v23, %s13667_s18  ;;  %9606 = vmatprep.subr.bf16.mxu1 %v10943_v33 }
0x3399   : > { %v8179_v17 = vpop.permute.xlu0 %8178 }
0x339a   : > { %v8181_v2 = vadd.f32 %v8179_v17, %v8171_v61 }
0x339c   : > { %10828 = vtanh.f32 %v8181_v2 }
0x339d   : > { %v7512_v4 = vpop.permute.xlu0 %7511 }
0x339e   : > { %7514 = vst.msk [vmem:[#allocation9] sm:$0x2] %vm6545_vm3, %v7512_v4  ;;  %vm13670_vm3 = vcmask 258180  }
0x339f   : > { %7515 = vst.msk [vmem:[#allocation9 + $0x5] sm:$0x2] %vm6547_vm5, %v7512_v4  ;;  %vm8630_vm5 = vcmask 7168  }
0x33a1   : > { %v7742_v19 = vpop.permute.xlu0 %7741 }
0x33a2   : > { %7744 = vst.msk [vmem:[#allocation9] sm:$0x8] %vm6779_vm6, %v7742_v19  ;;  %vm8627_vm6 = vcmask 253952  }
0x33a3   : > { %7745 = vst.msk [vmem:[#allocation9 + $0x1] sm:$0x8] %vm6781_vm8, %v7742_v19 }
0x33a5   : > { %v7966_v48 = vpop.permute.xlu0 %7965 }
0x33a6   : > { %v10829_v49 = vpop.eup %10828 }
0x33a7   : > { %8184 = vrot.lane.b32.xlu1 %v10829_v49, %s13664_s19  ;;  %s8782_s19 = sshll.u32 %s11344_s21, 3 }
0x33a8   : > { %s565_s2 = scalar_lea.vmem %s13626_s17, %s8782_s19  ;;  %s13516_s19 = sand.u32 1, %s10923_s25  }
0x33a9   : > { %s544_s23 = scalar_lea.vmem [#allocation10], %s13516_s19  ;;  %s8633_s22 = scalar_lea.sflag [#allocation11], %s13516_s19 }
0x33aa   : > { %s8653_s26 = sshll.u32 %s544_s23, 4  ;;  %s8654_s26 = int_to_ptr.vmem [resolvable:$true] %s8653_s26 }
0x33ab   : > { %7626 = vrot.lane.b32.xlu1 %v13336_v60, %s13667_s18  ;;  %v8196_v60 = vld [vmem:[%s13622_s13 + $0x8] sm:$0xff]  ;;  %s10837_s4 = scalar_lea.vmem %s8654_s26, 16 }
0x33ac   : > { %v9598_v10 = vpack.c.bf16 %v8196_v60, %v8195_v7  ;;  %p10838_p11 = scmp.ne.s32.totalorder %s8654_s26, %s10837_s4 }
0x33ae   : > { %9599 = vmatpush3.bf16.msra.mxu0 %v9598_v10  ;;  %p10839_p12 = pnand %p10838_p11, %p11074_p5 }
0x33af   : > { %7853 = vrot.lane.b32.xlu1 %v13372_v63, %s13667_s18  ;;  %v8201_v63 = vld [vmem:[%s13622_s13 + $0x30] sm:$0xff]  ;;  %9600 = vmatprep.subr.bf16.mxu0 %v10943_v33 }
0x33b0   : > { %v9607_v12 = vpack.c.bf16 %v8202_v9, %v8201_v63  ;;  %p10840_p13 = pneg %p10839_p12 }
0x33b2   : > { %9608 = vmatpush3.bf16.msra.mxu1 %v9607_v12  ;;  %9602 = vmatpush3.bf16.msra.mxu0 %v9601_v14  ;;  %v9619_v12 = vpack.c.bf16 %v8210_v36, %v8209_v11  ;;  %v8211_v14 = vld [vmem:[%s13622_s13 + $0x80] sm:$0xff] }
0x33b3   : > { %8077 = vrot.lane.b32.xlu1 %v8075_v47, %s13667_s18  ;;  %9615 = vmatprep.subr.bf16.mxu1 %v10943_v33  ;;  %v8207_v47 = vld [vmem:[%s13622_s13 + $0x60] sm:$0xff] }
0x33b4   : > { %9609 = vmatprep.subr.bf16.mxu0 %v10943_v33  ;;  %v9616_v52 = vpack.c.bf16 %v8208_v50, %v8207_v47 }
0x3419   : > { %v8185_v15 = vpop.permute.xlu1 %8184 }
0x341a   : > { %v8187_v16 = vmul.f32 %v10827_v59, %v8185_v15  ;;  %v8212_v15 = vld [vmem:[%s13622_s13 + $0x88] sm:$0xff] }
0x341c   : > { %8189 = vrot.lane.b32.xlu0 %v8187_v16, %s13667_s18  ;;  %v9622_v16 = vpack.c.bf16 %v8212_v15, %v8211_v14  ;;  %s13536_s18 = scalar_lea.hbm %s13624_s15, %s8946_s3 }
0x341d   : > { %v7627_v39 = vpop.permute.xlu1 %7626 }
0x341e   : > { %7629 = vst.msk [vmem:[#allocation9] sm:$0x4] %vm6662_vm9, %v7627_v39 }
0x341f   : > { %7630 = vst.msk [vmem:[#allocation9 + $0x3] sm:$0x4] %vm6664_vm10, %v7627_v39 }
0x3420   : > { %7968 = vst.msk [vmem:[#allocation9] sm:$0x20] %vm13668_vm12, %v7966_v48 }
0x3421   : > { %7969 = vst.msk [vmem:[#allocation9 - $0x3] sm:$0x20] %vm7009_vm13, %v7966_v48  ;;  %v7854_v18 = vpop.permute.xlu1 %7853 }
0x3422   : > { %7856 = vst.msk [vmem:[#allocation9] sm:$0x10] %vm13669_vm1, %v7854_v18 }
0x3423   : > { %7857 = vst.msk [vmem:[#allocation9 - $0x1] sm:$0x10] %vm13670_vm3, %v7854_v18 }
0x3425   : > { %v8078_v20 = vpop.permute.xlu1 %8077 }
0x3426   : > { %8080 = vst.msk [vmem:[#allocation9] sm:$0x40] %vm7121_vm0, %v8078_v20 }
0x3427   : > { %8081 = vst.msk [vmem:[#allocation9 - $0x5] sm:$0x40] %vm7123_vm11, %v8078_v20 }
0x348e   : > { %v8190_v43 = vpop.permute.xlu0 %8189 }
0x348f   : > { %8192 = vst.msk [vmem:[#allocation9] sm:$0x80] %vm7235_vm14, %v8190_v43 }
0x3490   : > { %8193 = vst.msk [vmem:[#allocation9 - $0x7] sm:$0x80] %vm7237_vm15, %v8190_v43 }
0x3497   : > { %v8194_v21 = vld [vmem:[#allocation9] sm:$0xff] }
0x3498   : > { %v8221_v23 = vrot.slane %v8194_v21, 7  ;;  %9466 = vmatmul.mubr.msk.f32.vlgmr.msra.gmra.mrb[92].mxu1 %vm3528_vm7, %v8194_v21 }
0x3499   : > { %9487 = vmatprep.mubr.msk.f32.mxu1 %vm10942_vm4, %v10933_v0  ;;  %9617 = vmatpush3.bf16.msra.mxu1 %v9616_v52 }
0x349a   : > { %9455 = vmatmul.mubr.msk.f32.vlgmr.msra.gmra.mrb[108].mxu0 %vm3528_vm7, %v8221_v23  ;;  %9618 = vmatprep.subr.bf16.mxu1 %v10943_v33 }
0x349b   : > { %9476 = vmatprep.mubr.msk.f32.mxu0 %vm10942_vm4, %v10933_v0  ;;  %9611 = vmatpush3.bf16.msra.mxu0 %v9610_v32 }
0x349c   : > { %9612 = vmatprep.subr.bf16.mxu0 %v10943_v33 }
0x349d   : > { %9620 = vmatpush3.bf16.msra.mxu1 %v9619_v12 }
0x349f   : > { %9614 = vmatpush3.bf16.msra.mxu0 %v9613_v5 }
0x34a0   : > { %9621 = vmatprep.subr.bf16.mxu0 %v10943_v33 }
0x356b   : > { %v8366_v46 = vpop.f32.mrb[92].mxu1 }
0x356c   : > { %v9467_v28 = vpop.f32.mrb[93].mxu1 }
0x356d   : > { %v8290_v30 = vpop.f32.mrb[108].mxu0 }
0x356e   : > { %v8291_v31 = vadd.f32 %v8290_v30, %v8215_v27  ;;  %v9456_v34 = vpop.f32.mrb[109].mxu0 }
0x3570   : > { %v8297_v35 = vrot.slane %v8291_v31, %v8296_v29 }
0x3572   : > { %v8367_v37 = vadd.f32 %v8366_v46, %v8297_v35 }
0x3574   : > { %10830 = vtanh.f32 %v8367_v37 }
0x357e   : > { %v10831_v57 = vpop.eup %10830 }
0x357f   : > { %v8375_v13 = vmul.f32 %v10831_v57, %v8942_v40 }
0x3581   : > { %v8376_v55 = vsel %vm3528_vm7, %v8375_v13, 0.0 }
0x3582   : > { %8377 = vadd.xlane.f32.xlu1 %v8376_v55 }
0x360f   : > { %v8378_v38 = vpop.xlane.xlu1 %8377 }
0x3610   : > { %v8379_v22 = vrot.slane %v8378_v38, 4 }
0x3612   : > { %v8380_v53 = vmax.f32 %v8378_v38, %v8379_v22 }
0x3614   : > { %v8381_v54 = vrot.slane %v8380_v53, 2 }
0x3616   : > { %v8382_v25 = vmax.f32 %v8380_v53, %v8381_v54 }
0x3618   : > { %v8383_v56 = vrot.slane %v8382_v25, 1 }
0x361a   : > { %v8384_v3 = vmax.f32 %v8382_v25, %v8383_v56 }
0x361c   : > { %v8385_v58 = vsub.f32 %v8378_v38, %v8384_v3 }
0x361e   : > { %v8386_v59 = vmul.f32 1.442695, %v8385_v58 }
0x3620   : > { %10832 = vpow2.f32 %v8386_v59 }
0x362a   : > { %v10833_v62 = vpop.eup %10832 }
0x362b   : > { %v8388_v1 = vrot.slane %v10833_v62, 4 }
0x362d   : > { %v8389_v26 = vadd.f32 %v10833_v62, %v8388_v1 }
0x362f   : > { %v8390_v61 = vrot.slane %v8389_v26, 2 }
0x3631   : > { %v8391_v17 = vadd.f32 %v8390_v61, %v8389_v26 }
0x3633   : > { %v8392_v2 = vrot.slane %v8391_v17, 1 }
0x3635   : > { %v8393_v4 = vadd.f32 %v8392_v2, %v8391_v17 }
0x3637   : > { %10834 = vrcp.f32 %v8393_v4 }
0x3641   : > { %v10835_v19 = vpop.eup %10834 }
0x3642   : > { %v8395_v49 = vmul.f32 %v10835_v19, %v10833_v62 }
0x3644   : > { %v8396_v45 = vmul.f32 %v8395_v49, %v8194_v21  ;;  %8631 = vst.msk [vmem:[%s565_s2] sm:$0xff] %vm8630_vm5, %v8395_v49  ;;  %v8214_v21 = vld [vmem:[%s13622_s13 + $0x98] sm:$0xff]  ;;  %s10944_s2 = smov [#allocation10]  }
0x3645   : > { %s10841_s21 = sshll.u32 %s10944_s2, 4  ;;  %s10842_s21 = int_to_ptr.vmem [resolvable:$false] %s10841_s21 }
0x3646   : > { %v8397_v6 = vsel %vm3528_vm7, %v8396_v45, 0.0  ;;  %s10843_s5 = scalar_lea.vmem %s10842_s21, 32  ;;  %p10844_p0 = scmp.lt.s32.totalorder %s8654_s26, %s10842_s21 }
0x3647   : > { %v8398_v7 = vrot.slane %v8397_v6, 4  ;;  %p10845_p1 = scmp.lt.s32.totalorder %s10843_s5, %s10837_s4 }
0x3649   : > { %v8399_v8 = vadd.f32 %v8398_v7, %v8397_v6  ;;  %p10846_p2 = por %p10845_p1, %p10844_p0 }
0x364b   : > { %v8400_v60 = vrot.slane %v8399_v8, 2  ;;  %p10847_p3 = pnand %p10846_p2, %p10840_p13 }
0x364d   : > { %v8401_v63 = vadd.f32 %v8400_v60, %v8399_v8 }
0x364f   : > { %v8402_v9 = vrot.slane %v8401_v63, 1 }
0x3651   : > { %v8403_v10 = vadd.f32 %v8402_v9, %v8401_v63 }
0x3653   : > { %9477 = vmatmul.mubr.msk.f32.vlgmr.msra.gmra.mrb[110].mxu0 %vm3528_vm7, %v8403_v10 }
0x3654   : > { %9498 = vmatprep.mubr.msk.f32.mxu0 %vm10942_vm4, %v10933_v0  ;;  %9623 = vmatpush3.bf16.msra.mxu0 %v9622_v16  ;;  %v8217_v0 = vld [vmem:[%s13623_s14 + $0x2] sm:$0x1] }
0x3655   : > { %9624 = vmatprep.subr.bf16.mxu0 %v10943_v33  ;;  %v8213_v33 = vld [vmem:[%s13622_s13 + $0x90] sm:$0xff] }
0x3656   : > { %v9625_v23 = vpack.c.bf16 %v8214_v21, %v8213_v33 }
0x3658   : > { %9626 = vmatpush3.bf16.msra.mxu0 %v9625_v23 }
0x3726   : > { %v8473_v39 = vpop.f32.mrb[110].mxu0 }
0x3727   : > { %v8474_v48 = vadd.f32 %v8473_v39, %v8217_v0  ;;  %v9478_v18 = vpop.f32.mrb[111].mxu0 }
0x3729   : > { %vm8477_vm4 = vcmp.gt.f32.partialorder %v8474_v48, 0.0  ;;  %v8478_v20 = vmul.f32 0.1, %v8474_v48 }
0x372b   : > { %v8479_v43 = vsel %vm8477_vm4, %v8474_v48, %v8478_v20 }
0x372c   : > { %9488 = vmatmul.mubr.msk.f32.vlgmr.msra.gmra.mrb[94].mxu1 %vm3528_vm7, %v8479_v43  ;;  %8628 = vst.msk [vmem:[%s544_s23] sm:$0x1] %vm8627_vm6, %v8479_v43 }
0x37ff   : > { %v8549_v46 = vpop.f32.mrb[94].mxu1 }
0x3800   : > { %v8550_v27 = vadd.f32 %v8549_v46, %v8218_v24  ;;  %v9489_v28 = vpop.f32.mrb[95].mxu1 }
0x3802   : > { %v8553_v29 = vmax.f32 %v8550_v27, 0.0 }
0x3804   : > { %9499 = vmatmul.mubr.msk.f32.vlgmr.msra.gmra.mrb[112].mxu0 %vm3528_vm7, %v8553_v29 }
0x3805   : > { %10850 = shalt.err (!%p10847_p3)
}
0x3806   : > { %s10851_s23 = scalar_lea.hbm %s13536_s18, 16  ;;  %s10855_s0 = scalar_lea.hbm %s13624_s15, 32 }
0x3807   : > { %p10852_p4 = scmp.ne.s32.totalorder %s13536_s18, %s10851_s23  ;;  %p10856_p9 = scmp.lt.u32.totalorder %s13536_s18, %s13624_s15 }
0x3808   : > { %p10857_p10 = scmp.lt.u32.totalorder %s10855_s0, %s10851_s23  ;;  %p10859_p12 = scmp.lt.u32.totalorder %s10851_s23, %s13536_s18 }
0x3809   : > { %p10853_p7 = pnand %p10852_p4, %p11074_p5 }
0x380a   : > { %p10858_p11 = por %p10857_p10, %p10856_p9 }
0x380b   : > { %p10854_p8 = pneg %p10853_p7 }
0x380c   : > { %p10860_p13 = por %p10859_p12, %p10858_p11 }
0x380e   : > { %p10861_p0 = pnand %p10860_p13, %p10854_p8 }
0x3810   : > { %10864 = shalt.err (!%p10861_p0)
}
0x3811   : > { %9628 = dma.vmem_to_hbm [thread:$0]  (%p11074_p5), %s8654_s26, 16, %s13536_s18, %s8633_s22   ;;  %v8219_v30 = vld [vmem:[%s13623_s14 + $0x4] sm:$0x1] }
0x3812   : > { %s550_s5 = scalar_lea.vmem [#allocation12], %s13516_s19  ;;  %s13565_s0 = scalar_lea.hbm %s13625_s16, %s8946_s3 }
0x3813   : > { %s8666_s6 = sshll.u32 %s550_s5, 4  ;;  %s8637_s18 = scalar_lea.sflag [#allocation13], %s13516_s19  ;;  %s13567_s6 = int_to_ptr.vmem [resolvable:$true] %s8666_s6 }
0x3814   : > { %s10865_s26 = scalar_lea.vmem %s13567_s6, 16  ;;  %s10945_s22 = smov [#allocation12]  }
0x3815   : > { %p10866_p1 = scmp.ne.s32.totalorder %s13567_s6, %s10865_s26  ;;  %s10869_s28 = sshll.u32 %s10945_s22, 4  ;;  %s10870_s28 = int_to_ptr.vmem [resolvable:$false] %s10869_s28 }
0x3816   : > { %s10871_s30 = scalar_lea.vmem %s10870_s28, 32  ;;  %p10872_p4 = scmp.lt.s32.totalorder %s13567_s6, %s10870_s28 }
0x3817   : > { %p10867_p2 = pnand %p10866_p1, %p11074_p5  ;;  %p10873_p7 = scmp.lt.s32.totalorder %s10871_s30, %s10865_s26 }
0x3819   : > { %p10868_p3 = pneg %p10867_p2  ;;  %p10874_p8 = por %p10873_p7, %p10872_p4 }
0x381b   : > { %p10875_p9 = pnand %p10874_p8, %p10868_p3 }
0x38d7   : > { %v8623_v31 = vpop.f32.mrb[112].mxu0 }
0x38d8   : > { %v8624_v34 = vadd.f32 %v8623_v31, %v8219_v30  ;;  %v9500_v35 = vpop.f32.mrb[113].mxu0 }
0x38da   : > { %8629 = vst.msk [vmem:[%s550_s5] sm:$0x1] %vm6431_vm2, %v8624_v34 }
0x38db   : > { %10878 = shalt.err (!%p10875_p9)
}
0x38dc   : > { %s10879_s19 = scalar_lea.hbm %s13565_s0, 16  ;;  %s10883_s4 = scalar_lea.hbm %s13625_s16, 32 }
0x38dd   : > { %p10880_p10 = scmp.ne.s32.totalorder %s13565_s0, %s10879_s19  ;;  %p10884_p13 = scmp.lt.u32.totalorder %s13565_s0, %s13625_s16 }
0x38de   : > { %p10885_p0 = scmp.lt.u32.totalorder %s10883_s4, %s10879_s19  ;;  %p10887_p2 = scmp.lt.u32.totalorder %s10879_s19, %s13565_s0 }
0x38df   : > { %p10881_p11 = pnand %p10880_p10, %p11074_p5 }
0x38e0   : > { %p10886_p1 = por %p10885_p0, %p10884_p13 }
0x38e1   : > { %p10882_p12 = pneg %p10881_p11 }
0x38e2   : > { %p10888_p3 = por %p10887_p2, %p10886_p1 }
0x38e4   : > { %p10889_p4 = pnand %p10888_p3, %p10882_p12 }
0x38e6   : > { %10892 = shalt.err (!%p10889_p4)
}
0x38e7   : > { %9629 = dma.vmem_to_hbm [thread:$0]  (%p11074_p5), %s13567_s6, 16, %s13565_s0, %s8637_s18  }
0x38e8 PF: > { %p9639_p7 = scmp.ge.s32.totalorder %s10931_s27, 2  ;;  %s8681_s23 = sand.u32 1, %s10919_s24  }
0x38e9   : > { %s8682_s29 = scalar_lea.sflag [#allocation11], %s8681_s23 }
0x38ea   : > { %p9633_p8 = pnand %p9639_p7, %p11078_p6 }
0x38ec   : > { %10910 = dma.done.wait (!%p9633_p8), %s8682_s29, 16  }
0x38ed   : > { %10912 = vsyncadd (!%p9633_p8), %s8682_s29, 4294967280  ;;  %s8690_s26 = scalar_lea.sflag [#allocation13], %s8681_s23 }
0x38ee   : > { %10914 = dma.done.wait (!%p9633_p8), %s8690_s26, 16  }
0x38ef   : > { %10916 = vsyncadd (!%p9633_p8), %s8690_s26, 4294967280  ;;  %s13671_s27 = sld [smem:[#allocation17_spill]]  ;;  %s13672_s1 = sld [smem:[#allocation16_spill]] }
0x38f0   : > { %s13673_s26 = sld [smem:[#allocation18_spill]]  ;;  %s13674_s24 = smov %s10923_s25 }
0x38f5   : > { %p31_p5 = scmp.ge.s32.totalorder %s13671_s27, 4   ;;  %s13675_s25 = smov %s13672_s1 }
0x38f7   :  { %33 = sbr.rel (!%p31_p5) target bundleno = 13 (0xd), region = 772 }
0x38fe   :  { %8701 = vsyncpa [#allocation11], 1 }
0x38ff   :  { %8703 = vsyncpa [#allocation11 + $0x1], 1 }
0x3900   :  { %8704 = vsyncpa [#allocation13], 1 }
0x3901   :  { %8706 = vsyncpa [#allocation13 + $0x1], 1 }

</bundles_post_ra>
